<compile_context>
chip_gen: v5e
topology: v5e:2x2
jax: 0.10.0
libtpu: 0.0.40
codegen_flags: <defaults>
</compile_context>

<pallas_src>
import functools

import jax
import jax.numpy as jnp
import numpy as np
from jax.experimental import pallas as pl
from jax.experimental.pallas import tpu as pltpu


def _round_up(x, m):
    return ((x + m - 1) // m) * m


# ----------------------------------------------------------------------------
# Fused bidirectional LSTM layer kernel (input projection + recurrence).
# Grid axis 0 iterates over time chunks (sequential recurrence -> "arbitrary").
# Gate layout along the 4*Hp axis is [i | f | o | g], each gate padded to Hp,
# so gate slices are lane-aligned and the sigmoid gates form one contiguous op.
# ----------------------------------------------------------------------------
def _bidir_lstm_kernel(*refs, nin, hp, tc, t_real, needs_mask, emit_y):
    xs_f = refs[0:nin]                 # forward-direction input chunk(s), bf16
    xs_b = refs[nin:2 * nin]           # backward-direction input chunk(s), bf16
    wih_ref = refs[2 * nin + 0]        # (2*nin, Din, 4Hp) bf16  (VMEM resident)
    whh_ref = refs[2 * nin + 1]        # (2, Hp, 4Hp)      bf16  (VMEM resident)
    bias_ref = refs[2 * nin + 2]       # (2, 1, 4Hp)       f32
    h0_ref = refs[2 * nin + 3]         # (2, Bp, Hp)       f32
    c0_ref = refs[2 * nin + 4]         # (2, Bp, Hp)       f32
    o = 2 * nin + 5
    if emit_y:
        y_f_ref, y_b_ref = refs[o], refs[o + 1]   # (tc*Bp, Hp) bf16 blocks
        o += 2
    hN_ref, cN_ref = refs[o], refs[o + 1]         # (2, Bp, Hp) f32
    h_sc, c_sc = refs[o + 2], refs[o + 3]         # (2, Bp, Hp) f32 scratch

    c_idx = pl.program_id(0)
    nch = pl.num_programs(0)
    bp = h_sc.shape[1]

    @pl.when(c_idx == 0)
    def _():
        h_sc[...] = h0_ref[...]
        c_sc[...] = c0_ref[...]

    for d in range(2):
        xs = xs_f if d == 0 else xs_b

        # Fused input projection for the whole chunk, one matmul per half:
        # (tc*Bp, Din) @ (Din, 4Hp), bf16 operands, f32 accumulation.
        acc = None
        for h in range(nin):
            part = jnp.dot(xs[h][...], wih_ref[d * nin + h],
                           preferred_element_type=jnp.float32)
            acc = part if acc is None else acc + part
        g_pre = acc + bias_ref[d]                         # (tc*Bp, 4Hp) f32

        w_hh = whh_ref[d]                                 # (Hp, 4Hp) bf16
        h_st = h_sc[d]                                    # register-carried
        c_st = c_sc[d]
        base = (c_idx if d == 0 else nch - 1 - c_idx) * tc

        for s in range(tc):
            t_loc = s if d == 0 else tc - 1 - s
            gates = g_pre[t_loc * bp:(t_loc + 1) * bp, :] + jnp.dot(
                h_st.astype(jnp.bfloat16), w_hh,
                preferred_element_type=jnp.float32)        # (Bp, 4Hp) f32

            sig = jax.nn.sigmoid(gates[:, :3 * hp])        # i|f|o in one pass
            i_g = sig[:, 0 * hp:1 * hp]
            f_g = sig[:, 1 * hp:2 * hp]
            o_g = sig[:, 2 * hp:3 * hp]
            g_g = jnp.tanh(gates[:, 3 * hp:])

            c_new = f_g * c_st + i_g * g_g
            h_new = o_g * jnp.tanh(c_new)

            if needs_mask:
                # Padded time steps must not advance the state (scalar blend
                # keeps the lowering simple: scalar * vector broadcast).
                m = ((base + t_loc) < t_real).astype(jnp.float32)
                c_st = m * c_new + (1.0 - m) * c_st
                h_st = m * h_new + (1.0 - m) * h_st
            else:
                c_st = c_new
                h_st = h_new

            if emit_y:
                if d == 0:
                    y_f_ref[pl.ds(t_loc * bp, bp), :] = h_st.astype(jnp.bfloat16)
                else:
                    y_b_ref[pl.ds(t_loc * bp, bp), :] = h_st.astype(jnp.bfloat16)

        # Spill the carried state to scratch only once per chunk.
        h_sc[d] = h_st
        c_sc[d] = c_st

    # Final states: constant-index output block, written only on the last step.
    @pl.when(c_idx == nch - 1)
    def _():
        hN_ref[...] = h_sc[...]
        cN_ref[...] = c_sc[...]


# ----------------------------------------------------------------------------
# VMEM budgeting: generous footprint estimate, capped by actual chip capacity.
# ----------------------------------------------------------------------------
def _footprint_bytes(nin, din, hp, bp, tc, emit_y):
    bf16, f32 = 2, 4
    stream_in = 2 * nin * 2 * tc * bp * din * bf16          # 2*nin streams, x2 bufs
    stream_out = (2 * 2 * tc * bp * hp * bf16) if emit_y else 0
    weights = 2 * (2 * nin * din * 4 * hp + 2 * hp * 4 * hp) * bf16
    small = 2 * (2 * 4 * hp * f32 + 4 * 2 * bp * hp * f32)   # bias + h0/c0/hN/cN
    scratch = 2 * 2 * bp * hp * f32
    interm = 2 * tc * bp * 4 * hp * f32                      # g_pre (both dirs)
    return stream_in + stream_out + weights + small + scratch + interm + (8 << 20)


def _vmem_limit_bytes(footprint):
    try:
        cap = pltpu.get_tpu_info().vmem_capacity_bytes
    except Exception:
        cap = 64 * 1024 * 1024          # conservative (v7x per-TC capacity)
    return int(min(int(0.85 * cap), max(int(footprint), 32 * 1024 * 1024)))


# ----------------------------------------------------------------------------
# One bidirectional layer as a single pallas_call.
# Streams are 2-D (Tp*Bp, feat) so every block is a lane-dense slab.
# ----------------------------------------------------------------------------
def _bidir_lstm_layer(x_streams, wih, whh, bias, h0, c0, *,
                      hp, bp, tc, nch, t_real, emit_y):
    nin = len(x_streams)
    din = x_streams[0].shape[1]
    four_hp = 4 * hp
    needs_mask = (nch * tc != t_real)

    kernel = functools.partial(_bidir_lstm_kernel, nin=nin, hp=hp, tc=tc,
                               t_real=t_real, needs_mask=needs_mask,
                               emit_y=emit_y)

    x_spec_f = pl.BlockSpec((tc * bp, din), lambda c: (c, 0))
    x_spec_b = pl.BlockSpec((tc * bp, din), lambda c: (nch - 1 - c, 0))

    def const_spec(shape):
        return pl.BlockSpec(shape, lambda c: tuple(0 for _ in shape))

    in_specs = ([x_spec_f] * nin + [x_spec_b] * nin + [
        const_spec((2 * nin, din, four_hp)),   # W_ih^T (resident)
        const_spec((2, hp, four_hp)),          # W_hh^T (resident)
        const_spec((2, 1, four_hp)),           # bias
        const_spec((2, bp, hp)),               # h0
        const_spec((2, bp, hp)),               # c0
    ])

    out_shape = []
    out_specs = []
    if emit_y:
        out_shape += [jax.ShapeDtypeStruct((nch * tc * bp, hp), jnp.bfloat16)] * 2
        out_specs += [pl.BlockSpec((tc * bp, hp), lambda c: (c, 0)),
                      pl.BlockSpec((tc * bp, hp), lambda c: (nch - 1 - c, 0))]
    out_shape += [jax.ShapeDtypeStruct((2, bp, hp), jnp.float32)] * 2
    out_specs += [const_spec((2, bp, hp)), const_spec((2, bp, hp))]

    limit = _vmem_limit_bytes(
        _footprint_bytes(nin=nin, din=din, hp=hp, bp=bp, tc=tc, emit_y=emit_y))

    return pl.pallas_call(
        kernel,
        out_shape=tuple(out_shape),
        grid_spec=pltpu.PrefetchScalarGridSpec(
            num_scalar_prefetch=0,
            grid=(nch,),
            in_specs=in_specs,
            out_specs=tuple(out_specs),
            scratch_shapes=[pltpu.VMEM((2, bp, hp), jnp.float32),
                            pltpu.VMEM((2, bp, hp), jnp.float32)]),
        compiler_params=pltpu.CompilerParams(
            dimension_semantics=("arbitrary",),
            vmem_limit_bytes=limit),
    )(*x_streams, *x_streams, wih, whh, bias, h0, c0)


# ----------------------------------------------------------------------------
# Weight preparation: torch gate order [i,f,g,o] -> [i,f,o,g], per-gate padding
# to Hp lanes, transpose to (K, 4Hp), pad K to Kp, cast to bf16.
# ----------------------------------------------------------------------------
def _prep_gate_matrix(w, H, Hp, Kp):
    K = w.shape[1]
    w4 = w.reshape(4, H, K)
    w4 = jnp.stack([w4[0], w4[1], w4[3], w4[2]], axis=0)   # [i, f, o, g]
    w4 = jnp.pad(w4, ((0, 0), (0, Hp - H), (0, 0)))
    wT = jnp.transpose(w4, (2, 0, 1)).reshape(K, 4 * Hp)
    wT = jnp.pad(wT, ((0, Kp - K), (0, 0)))
    return wT.astype(jnp.bfloat16)


def _prep_bias(b_ih, b_hh, H, Hp):
    b = (b_ih + b_hh).reshape(4, H)
    b = jnp.stack([b[0], b[1], b[3], b[2]], axis=0)
    b = jnp.pad(b, ((0, 0), (0, Hp - H)))
    return b.reshape(1, 4 * Hp).astype(jnp.float32)


# ----------------------------------------------------------------------------
# Encoder wrapper (bidirectional, multi-layer), mirroring nn.LSTM semantics.
# ----------------------------------------------------------------------------
def encoder_forward(params, input_seq, h_0, c_0, *, num_layers, hidden_size):
    """input_seq: (B, T, input_size) batch-first like the PyTorch module.
    h_0, c_0: (2*num_layers, B, hidden_size). Returns (h, c) of same shape."""
    B, T, D = input_seq.shape
    H = hidden_size
    Hp = _round_up(H, 128)     # lane-pad hidden size
    Bp = _round_up(B, 8)       # sublane-pad batch
    Dp = _round_up(D, 128)     # lane-pad input features
    tc = 8                     # fixed time chunk; tail padded + masked
    Tp = _round_up(T, tc)
    nch = Tp // tc

    # (B,T,D) -> (Tp,Bp,Dp) zero-padded -> bf16 -> flat (Tp*Bp, Dp) rows
    x = jnp.transpose(input_seq, (1, 0, 2)).astype(jnp.float32)
    x = jnp.pad(x, ((0, Tp - T), (0, Bp - B), (0, Dp - D)))
    x = x.astype(jnp.bfloat16).reshape(Tp * Bp, Dp)

    h0p = jnp.pad(h_0.astype(jnp.float32), ((0, 0), (0, Bp - B), (0, Hp - H)))
    c0p = jnp.pad(c_0.astype(jnp.float32), ((0, 0), (0, Bp - B), (0, Hp - H)))

    h_out, c_out = [], []
    streams = [x]
    for layer in range(num_layers):
        wih_list, whh_list, bias_list = [], [], []
        for d in range(2):
            p = params[(layer, d)]
            if layer == 0:
                wih_list.append(_prep_gate_matrix(p["w_ih"], H, Hp, Dp))
            else:
                # Split W_ih into fwd/bwd input halves -> no concat of the
                # direction outputs is ever materialized.
                wih_list.append(_prep_gate_matrix(p["w_ih"][:, :H], H, Hp, Hp))
                wih_list.append(_prep_gate_matrix(p["w_ih"][:, H:], H, Hp, Hp))
            whh_list.append(_prep_gate_matrix(p["w_hh"], H, Hp, Hp))
            bias_list.append(_prep_bias(p["b_ih"], p["b_hh"], H, Hp))
        wih = jnp.stack(wih_list, axis=0)       # (2*nin, Din, 4Hp) bf16
        whh = jnp.stack(whh_list, axis=0)       # (2, Hp, 4Hp)      bf16
        bias = jnp.stack(bias_list, axis=0)     # (2, 1, 4Hp)       f32

        emit_y = layer < num_layers - 1         # last layer: skip y writeback
        outs = _bidir_lstm_layer(
            streams, wih, whh, bias,
            h0p[2 * layer:2 * layer + 2], c0p[2 * layer:2 * layer + 2],
            hp=Hp, bp=Bp, tc=tc, nch=nch, t_real=T, emit_y=emit_y)
        if emit_y:
            y_f, y_b, hN, cN = outs
            streams = [y_f, y_b]
        else:
            hN, cN = outs
        h_out.append(hN)
        c_out.append(cN)

    h = jnp.concatenate(h_out, axis=0)[:, :B, :H]   # (2*num_layers, B, H)
    c = jnp.concatenate(c_out, axis=0)[:, :B, :H]
    return h, c


# ----------------------------------------------------------------------------
# Deterministic parameter init (shapes follow nn.LSTM with bidirectional=True).
# ----------------------------------------------------------------------------
def init_lstm_params(key, input_size, hidden_size, num_layers):
    k = 1.0 / np.sqrt(hidden_size)
    params = {}
    for layer in range(num_layers):
        d_in = input_size if layer == 0 else 2 * hidden_size
        for direction in range(2):
            key, k1, k2, k3, k4 = jax.random.split(key, 5)
            params[(layer, direction)] = {
                "w_ih": jax.random.uniform(k1, (4 * hidden_size, d_in),
                                           jnp.float32, -k, k),
                "w_hh": jax.random.uniform(k2, (4 * hidden_size, hidden_size),
                                           jnp.float32, -k, k),
                "b_ih": jax.random.uniform(k3, (4 * hidden_size,),
                                           jnp.float32, -k, k),
                "b_hh": jax.random.uniform(k4, (4 * hidden_size,),
                                           jnp.float32, -k, k),
            }
    return params


# ----------------------------------------------------------------------------
# Pure numpy reference (same math as torch.nn.LSTM) for correctness checking.
# ----------------------------------------------------------------------------
def lstm_ref(x, params, h0, c0, num_layers, H):
    x = np.asarray(x, np.float32)
    B, T, _ = x.shape
    h0 = np.asarray(h0, np.float32)
    c0 = np.asarray(c0, np.float32)
    sig = lambda z: 1.0 / (1.0 + np.exp(-z))
    layer_in = x
    hs, cs = [], []
    for layer in range(num_layers):
        outs = []
        for d in range(2):
            p = params[(layer, d)]
            w_ih = np.asarray(p["w_ih"]); w_hh = np.asarray(p["w_hh"])
            b = np.asarray(p["b_ih"]) + np.asarray(p["b_hh"])
            h = h0[layer * 2 + d].copy(); c = c0[layer * 2 + d].copy()
            ts = range(T) if d == 0 else range(T - 1, -1, -1)
            y = np.zeros((B, T, H), np.float32)
            for t in ts:
                g = layer_in[:, t] @ w_ih.T + h @ w_hh.T + b
                i = sig(g[:, :H]); f = sig(g[:, H:2 * H])
                gg = np.tanh(g[:, 2 * H:3 * H]); o = sig(g[:, 3 * H:])
                c = f * c + i * gg
                h = o * np.tanh(c)
                y[:, t] = h
            outs.append(y); hs.append(h); cs.append(c)
        layer_in = np.concatenate(outs, axis=-1)
    return np.stack(hs), np.stack(cs)


def _run_and_check(params, input_seq, h_0, c_0, num_layers, hidden_size):
    fwd = jax.jit(functools.partial(encoder_forward,
                                    num_layers=num_layers,
                                    hidden_size=hidden_size))
    h, c = fwd(params, input_seq, h_0, c_0)
    h = jax.block_until_ready(h)
    c = jax.block_until_ready(c)

    B = input_seq.shape[0]
    assert h.shape == (2 * num_layers, B, hidden_size)
    assert c.shape == (2 * num_layers, B, hidden_size)

    h_ref, c_ref = lstm_ref(input_seq, params, h_0, c_0, num_layers, hidden_size)
    # Tolerance covers bf16 inputs / weights / inter-layer activations
    # (f32 accumulation and f32 recurrent state).
    np.testing.assert_allclose(np.asarray(h), h_ref, rtol=6e-2, atol=6e-2)
    np.testing.assert_allclose(np.asarray(c), c_ref, rtol=6e-2, atol=6e-2)


if __name__ == "__main__":
    # Small shapes consistent with the module's forward.
    batch, seq_len = 2, 8
    input_size, hidden_size, num_layers = 16, 32, 2

    key = jax.random.PRNGKey(0)
    key, kx, kh, kc, kp, kx2, kh2, kc2 = jax.random.split(key, 8)

    # The PyTorch forward draws h_0/c_0 from torch.randn each call; generated
    # deterministically here instead and passed in explicitly.
    input_seq = jax.random.normal(kx, (batch, seq_len, input_size), jnp.float32)
    h_0 = jax.random.normal(kh, (2 * num_layers, batch, hidden_size), jnp.float32)
    c_0 = jax.random.normal(kc, (2 * num_layers, batch, hidden_size), jnp.float32)
    params = init_lstm_params(kp, input_size, hidden_size, num_layers)

    _run_and_check(params, input_seq, h_0, c_0, num_layers, hidden_size)

    # Second check: seq_len not a multiple of the time chunk, exercising the
    # time-padding + in-kernel masking path.
    seq_len2 = 6
    input_seq2 = jax.random.normal(kx2, (batch, seq_len2, input_size), jnp.float32)
    h_02 = jax.random.normal(kh2, (2 * num_layers, batch, hidden_size), jnp.float32)
    c_02 = jax.random.normal(kc2, (2 * num_layers, batch, hidden_size), jnp.float32)
    _run_and_check(params, input_seq2, h_02, c_02, num_layers, hidden_size)

    print("KERNEL_OK")
</pallas_src>

<mosaic_0001>
module attributes {stable_mosaic.version = 11 : i64} {
  func.func @_bidir_lstm_kernel(%arg0: i32, %arg1: memref<64x128xbf16, #tpu.memory_space<vmem>>, %arg2: memref<64x128xbf16, #tpu.memory_space<vmem>>, %arg3: memref<2x128x512xbf16, #tpu.memory_space<vmem>>, %arg4: memref<2x128x512xbf16, #tpu.memory_space<vmem>>, %arg5: memref<2x1x512xf32, #tpu.memory_space<vmem>>, %arg6: memref<2x8x128xf32, #tpu.memory_space<vmem>>, %arg7: memref<2x8x128xf32, #tpu.memory_space<vmem>>, %arg8: memref<64x128xbf16, #tpu.memory_space<vmem>>, %arg9: memref<64x128xbf16, #tpu.memory_space<vmem>>, %arg10: memref<2x8x128xf32, #tpu.memory_space<vmem>>, %arg11: memref<2x8x128xf32, #tpu.memory_space<vmem>>, %arg12: memref<2x8x128xf32, #tpu.memory_space<vmem>>, %arg13: memref<2x8x128xf32, #tpu.memory_space<vmem>>) attributes {dimension_semantics = [#tpu.dimension_semantics<arbitrary>], iteration_bounds = array<i64: 1>, scalar_prefetch = 0 : i64, scratch_operands = 2 : i64, tpu.core_type = #tpu.core_type<tc>, window_params = [{transform_indices = @transform_0, window_bounds = array<i64: 64, 128>}, {transform_indices = @transform_1, window_bounds = array<i64: 64, 128>}, {pipeline_mode = #tpu.pipeline_mode<synchronous>, transform_indices = @transform_2, window_bounds = array<i64: 2, 128, 512>}, {pipeline_mode = #tpu.pipeline_mode<synchronous>, transform_indices = @transform_3, window_bounds = array<i64: 2, 128, 512>}, {pipeline_mode = #tpu.pipeline_mode<synchronous>, transform_indices = @transform_4, window_bounds = array<i64: 2, 1, 512>}, {pipeline_mode = #tpu.pipeline_mode<synchronous>, transform_indices = @transform_5, window_bounds = array<i64: 2, 8, 128>}, {pipeline_mode = #tpu.pipeline_mode<synchronous>, transform_indices = @transform_6, window_bounds = array<i64: 2, 8, 128>}, {transform_indices = @transform_7, window_bounds = array<i64: 64, 128>}, {transform_indices = @transform_8, window_bounds = array<i64: 64, 128>}, {pipeline_mode = #tpu.pipeline_mode<synchronous>, transform_indices = @transform_9, window_bounds = array<i64: 2, 8, 128>}, {pipeline_mode = #tpu.pipeline_mode<synchronous>, transform_indices = @transform_10, window_bounds = array<i64: 2, 8, 128>}]} {
    %c0_i32 = arith.constant 0 : i32
    %0 = arith.cmpi eq, %arg0, %c0_i32 : i32
    %1 = arith.extui %0 : i1 to i32
    %c0_i32_0 = arith.constant 0 : i32
    %2 = arith.cmpi ne, %1, %c0_i32_0 : i32
    scf.if %2 {
      %c0_105 = arith.constant 0 : index
      %c0_106 = arith.constant 0 : index
      %c0_107 = arith.constant 0 : index
      %398 = vector.load %arg6[%c0_105, %c0_106, %c0_107] : memref<2x8x128xf32, #tpu.memory_space<vmem>>, vector<2x8x128xf32>
      %c0_108 = arith.constant 0 : index
      %c0_109 = arith.constant 0 : index
      %c0_110 = arith.constant 0 : index
      %399 = vector.load %arg12[%c0_108, %c0_109, %c0_110] : memref<2x8x128xf32, #tpu.memory_space<vmem>>, vector<2x8x128xf32>
      tpu.vector_store %arg12[%c0_108, %c0_109, %c0_110], %398 {strides = array<i32>} : memref<2x8x128xf32, #tpu.memory_space<vmem>>, vector<2x8x128xf32>,
      %c0_111 = arith.constant 0 : index
      %c0_112 = arith.constant 0 : index
      %c0_113 = arith.constant 0 : index
      %400 = vector.load %arg7[%c0_111, %c0_112, %c0_113] : memref<2x8x128xf32, #tpu.memory_space<vmem>>, vector<2x8x128xf32>
      %c0_114 = arith.constant 0 : index
      %c0_115 = arith.constant 0 : index
      %c0_116 = arith.constant 0 : index
      %401 = vector.load %arg13[%c0_114, %c0_115, %c0_116] : memref<2x8x128xf32, #tpu.memory_space<vmem>>, vector<2x8x128xf32>
      tpu.vector_store %arg13[%c0_114, %c0_115, %c0_116], %400 {strides = array<i32>} : memref<2x8x128xf32, #tpu.memory_space<vmem>>, vector<2x8x128xf32>,
    } else {
    }
    %c0 = arith.constant 0 : index
    %c0_1 = arith.constant 0 : index
    %3 = vector.load %arg1[%c0, %c0_1] : memref<64x128xbf16, #tpu.memory_space<vmem>>, vector<64x128xbf16>
    %c0_2 = arith.constant 0 : index
    %c0_3 = arith.constant 0 : index
    %c0_4 = arith.constant 0 : index
    %4 = vector.load %arg3[%c0_2, %c0_3, %c0_4] : memref<2x128x512xbf16, #tpu.memory_space<vmem>>, vector<1x128x512xbf16>
    %5 = vector.shape_cast %4 : vector<1x128x512xbf16> to vector<128x512xbf16>
    %cst = arith.constant dense<0.000000e+00> : vector<64x512xf32>
    %6 = tpu.matmul %3, %5, %cst {dimension_numbers = #tpu.dot_dimension_numbers<[1], [0], [0], [1], [0, 0, 1, 1], [], []>} : vector<64x128xbf16>, vector<128x512xbf16>, vector<64x512xf32> -> vector<64x512xf32>
    %c0_5 = arith.constant 0 : index
    %c0_6 = arith.constant 0 : index
    %c0_7 = arith.constant 0 : index
    %7 = vector.load %arg5[%c0_5, %c0_6, %c0_7] : memref<2x1x512xf32, #tpu.memory_space<vmem>>, vector<1x1x512xf32>
    %8 = vector.shape_cast %7 : vector<1x1x512xf32> to vector<1x512xf32>
    %9 = vector.broadcast %8 : vector<1x512xf32> to vector<64x512xf32>
    %10 = arith.addf %6, %9 : vector<64x512xf32>
    %c0_8 = arith.constant 0 : index
    %c0_9 = arith.constant 0 : index
    %c0_10 = arith.constant 0 : index
    %11 = vector.load %arg4[%c0_8, %c0_9, %c0_10] : memref<2x128x512xbf16, #tpu.memory_space<vmem>>, vector<1x128x512xbf16>
    %12 = vector.shape_cast %11 : vector<1x128x512xbf16> to vector<128x512xbf16>
    %c0_11 = arith.constant 0 : index
    %c0_12 = arith.constant 0 : index
    %c0_13 = arith.constant 0 : index
    %13 = vector.load %arg12[%c0_11, %c0_12, %c0_13] : memref<2x8x128xf32, #tpu.memory_space<vmem>>, vector<1x8x128xf32>
    %14 = vector.shape_cast %13 : vector<1x8x128xf32> to vector<8x128xf32>
    %c0_14 = arith.constant 0 : index
    %c0_15 = arith.constant 0 : index
    %c0_16 = arith.constant 0 : index
    %15 = vector.load %arg13[%c0_14, %c0_15, %c0_16] : memref<2x8x128xf32, #tpu.memory_space<vmem>>, vector<1x8x128xf32>
    %16 = vector.shape_cast %15 : vector<1x8x128xf32> to vector<8x128xf32>
    %17 = vector.extract_strided_slice %10 {offsets = [0, 0], sizes = [8, 512], strides = [1, 1]} : vector<64x512xf32> to vector<8x512xf32>
    %18 = arith.truncf %14 : vector<8x128xf32> to vector<8x128xbf16>
    %cst_17 = arith.constant dense<0.000000e+00> : vector<8x512xf32>
    %19 = tpu.matmul %18, %12, %cst_17 {dimension_numbers = #tpu.dot_dimension_numbers<[1], [0], [0], [1], [0, 0, 1, 1], [], []>} : vector<8x128xbf16>, vector<128x512xbf16>, vector<8x512xf32> -> vector<8x512xf32>
    %20 = arith.addf %17, %19 : vector<8x512xf32>
    %21 = vector.extract_strided_slice %20 {offsets = [0, 0], sizes = [8, 384], strides = [1, 1]} : vector<8x512xf32> to vector<8x384xf32>
    %22 = arith.negf %21 : vector<8x384xf32>
    %23 = math.exp %22 : vector<8x384xf32>
    %cst_18 = arith.constant 1.000000e+00 : f32
    %24 = vector.broadcast %cst_18 : f32 to vector<8x384xf32>
    %25 = arith.addf %24, %23 : vector<8x384xf32>
    %26 = arith.divf %24, %25 : vector<8x384xf32>
    %27 = vector.extract_strided_slice %26 {offsets = [0, 0], sizes = [8, 128], strides = [1, 1]} : vector<8x384xf32> to vector<8x128xf32>
    %28 = vector.extract_strided_slice %26 {offsets = [0, 128], sizes = [8, 128], strides = [1, 1]} : vector<8x384xf32> to vector<8x128xf32>
    %29 = vector.extract_strided_slice %26 {offsets = [0, 256], sizes = [8, 128], strides = [1, 1]} : vector<8x384xf32> to vector<8x128xf32>
    %30 = vector.extract_strided_slice %20 {offsets = [0, 384], sizes = [8, 128], strides = [1, 1]} : vector<8x512xf32> to vector<8x128xf32>
    %31 = math.tanh %30 : vector<8x128xf32>
    %32 = arith.mulf %28, %16 : vector<8x128xf32>
    %33 = arith.mulf %27, %31 : vector<8x128xf32>
    %34 = arith.addf %32, %33 : vector<8x128xf32>
    %35 = math.tanh %34 : vector<8x128xf32>
    %36 = arith.mulf %29, %35 : vector<8x128xf32>
    %37 = arith.truncf %36 : vector<8x128xf32> to vector<8x128xbf16>
    %c0_19 = arith.constant 0 : index
    %c0_20 = arith.constant 0 : index
    %38 = vector.load %arg8[%c0_19, %c0_20] : memref<64x128xbf16, #tpu.memory_space<vmem>>, vector<8x128xbf16>
    tpu.vector_store %arg8[%c0_19, %c0_20], %37 {strides = array<i32>} : memref<64x128xbf16, #tpu.memory_space<vmem>>, vector<8x128xbf16>,
    %39 = vector.extract_strided_slice %10 {offsets = [8, 0], sizes = [8, 512], strides = [1, 1]} : vector<64x512xf32> to vector<8x512xf32>
    %40 = arith.truncf %36 : vector<8x128xf32> to vector<8x128xbf16>
    %cst_21 = arith.constant dense<0.000000e+00> : vector<8x512xf32>
    %41 = tpu.matmul %40, %12, %cst_21 {dimension_numbers = #tpu.dot_dimension_numbers<[1], [0], [0], [1], [0, 0, 1, 1], [], []>} : vector<8x128xbf16>, vector<128x512xbf16>, vector<8x512xf32> -> vector<8x512xf32>
    %42 = arith.addf %39, %41 : vector<8x512xf32>
    %43 = vector.extract_strided_slice %42 {offsets = [0, 0], sizes = [8, 384], strides = [1, 1]} : vector<8x512xf32> to vector<8x384xf32>
    %44 = arith.negf %43 : vector<8x384xf32>
    %45 = math.exp %44 : vector<8x384xf32>
    %cst_22 = arith.constant 1.000000e+00 : f32
    %46 = vector.broadcast %cst_22 : f32 to vector<8x384xf32>
    %47 = arith.addf %46, %45 : vector<8x384xf32>
    %48 = arith.divf %46, %47 : vector<8x384xf32>
    %49 = vector.extract_strided_slice %48 {offsets = [0, 0], sizes = [8, 128], strides = [1, 1]} : vector<8x384xf32> to vector<8x128xf32>
    %50 = vector.extract_strided_slice %48 {offsets = [0, 128], sizes = [8, 128], strides = [1, 1]} : vector<8x384xf32> to vector<8x128xf32>
    %51 = vector.extract_strided_slice %48 {offsets = [0, 256], sizes = [8, 128], strides = [1, 1]} : vector<8x384xf32> to vector<8x128xf32>
    %52 = vector.extract_strided_slice %42 {offsets = [0, 384], sizes = [8, 128], strides = [1, 1]} : vector<8x512xf32> to vector<8x128xf32>
    %53 = math.tanh %52 : vector<8x128xf32>
    %54 = arith.mulf %50, %34 : vector<8x128xf32>
    %55 = arith.mulf %49, %53 : vector<8x128xf32>
    %56 = arith.addf %54, %55 : vector<8x128xf32>
    %57 = math.tanh %56 : vector<8x128xf32>
    %58 = arith.mulf %51, %57 : vector<8x128xf32>
    %59 = arith.truncf %58 : vector<8x128xf32> to vector<8x128xbf16>
    %c8 = arith.constant 8 : index
    %c0_23 = arith.constant 0 : index
    %60 = vector.load %arg8[%c8, %c0_23] : memref<64x128xbf16, #tpu.memory_space<vmem>>, vector<8x128xbf16>
    tpu.vector_store %arg8[%c8, %c0_23], %59 {strides = array<i32>} : memref<64x128xbf16, #tpu.memory_space<vmem>>, vector<8x128xbf16>,
    %61 = vector.extract_strided_slice %10 {offsets = [16, 0], sizes = [8, 512], strides = [1, 1]} : vector<64x512xf32> to vector<8x512xf32>
    %62 = arith.truncf %58 : vector<8x128xf32> to vector<8x128xbf16>
    %cst_24 = arith.constant dense<0.000000e+00> : vector<8x512xf32>
    %63 = tpu.matmul %62, %12, %cst_24 {dimension_numbers = #tpu.dot_dimension_numbers<[1], [0], [0], [1], [0, 0, 1, 1], [], []>} : vector<8x128xbf16>, vector<128x512xbf16>, vector<8x512xf32> -> vector<8x512xf32>
    %64 = arith.addf %61, %63 : vector<8x512xf32>
    %65 = vector.extract_strided_slice %64 {offsets = [0, 0], sizes = [8, 384], strides = [1, 1]} : vector<8x512xf32> to vector<8x384xf32>
    %66 = arith.negf %65 : vector<8x384xf32>
    %67 = math.exp %66 : vector<8x384xf32>
    %cst_25 = arith.constant 1.000000e+00 : f32
    %68 = vector.broadcast %cst_25 : f32 to vector<8x384xf32>
    %69 = arith.addf %68, %67 : vector<8x384xf32>
    %70 = arith.divf %68, %69 : vector<8x384xf32>
    %71 = vector.extract_strided_slice %70 {offsets = [0, 0], sizes = [8, 128], strides = [1, 1]} : vector<8x384xf32> to vector<8x128xf32>
    %72 = vector.extract_strided_slice %70 {offsets = [0, 128], sizes = [8, 128], strides = [1, 1]} : vector<8x384xf32> to vector<8x128xf32>
    %73 = vector.extract_strided_slice %70 {offsets = [0, 256], sizes = [8, 128], strides = [1, 1]} : vector<8x384xf32> to vector<8x128xf32>
    %74 = vector.extract_strided_slice %64 {offsets = [0, 384], sizes = [8, 128], strides = [1, 1]} : vector<8x512xf32> to vector<8x128xf32>
    %75 = math.tanh %74 : vector<8x128xf32>
    %76 = arith.mulf %72, %56 : vector<8x128xf32>
    %77 = arith.mulf %71, %75 : vector<8x128xf32>
    %78 = arith.addf %76, %77 : vector<8x128xf32>
    %79 = math.tanh %78 : vector<8x128xf32>
    %80 = arith.mulf %73, %79 : vector<8x128xf32>
    %81 = arith.truncf %80 : vector<8x128xf32> to vector<8x128xbf16>
    %c16 = arith.constant 16 : index
    %c0_26 = arith.constant 0 : index
    %82 = vector.load %arg8[%c16, %c0_26] : memref<64x128xbf16, #tpu.memory_space<vmem>>, vector<8x128xbf16>
    tpu.vector_store %arg8[%c16, %c0_26], %81 {strides = array<i32>} : memref<64x128xbf16, #tpu.memory_space<vmem>>, vector<8x128xbf16>,
    %83 = vector.extract_strided_slice %10 {offsets = [24, 0], sizes = [8, 512], strides = [1, 1]} : vector<64x512xf32> to vector<8x512xf32>
    %84 = arith.truncf %80 : vector<8x128xf32> to vector<8x128xbf16>
    %cst_27 = arith.constant dense<0.000000e+00> : vector<8x512xf32>
    %85 = tpu.matmul %84, %12, %cst_27 {dimension_numbers = #tpu.dot_dimension_numbers<[1], [0], [0], [1], [0, 0, 1, 1], [], []>} : vector<8x128xbf16>, vector<128x512xbf16>, vector<8x512xf32> -> vector<8x512xf32>
    %86 = arith.addf %83, %85 : vector<8x512xf32>
    %87 = vector.extract_strided_slice %86 {offsets = [0, 0], sizes = [8, 384], strides = [1, 1]} : vector<8x512xf32> to vector<8x384xf32>
    %88 = arith.negf %87 : vector<8x384xf32>
    %89 = math.exp %88 : vector<8x384xf32>
    %cst_28 = arith.constant 1.000000e+00 : f32
    %90 = vector.broadcast %cst_28 : f32 to vector<8x384xf32>
    %91 = arith.addf %90, %89 : vector<8x384xf32>
    %92 = arith.divf %90, %91 : vector<8x384xf32>
    %93 = vector.extract_strided_slice %92 {offsets = [0, 0], sizes = [8, 128], strides = [1, 1]} : vector<8x384xf32> to vector<8x128xf32>
    %94 = vector.extract_strided_slice %92 {offsets = [0, 128], sizes = [8, 128], strides = [1, 1]} : vector<8x384xf32> to vector<8x128xf32>
    %95 = vector.extract_strided_slice %92 {offsets = [0, 256], sizes = [8, 128], strides = [1, 1]} : vector<8x384xf32> to vector<8x128xf32>
    %96 = vector.extract_strided_slice %86 {offsets = [0, 384], sizes = [8, 128], strides = [1, 1]} : vector<8x512xf32> to vector<8x128xf32>
    %97 = math.tanh %96 : vector<8x128xf32>
    %98 = arith.mulf %94, %78 : vector<8x128xf32>
    %99 = arith.mulf %93, %97 : vector<8x128xf32>
    %100 = arith.addf %98, %99 : vector<8x128xf32>
    %101 = math.tanh %100 : vector<8x128xf32>
    %102 = arith.mulf %95, %101 : vector<8x128xf32>
    %103 = arith.truncf %102 : vector<8x128xf32> to vector<8x128xbf16>
    %c24 = arith.constant 24 : index
    %c0_29 = arith.constant 0 : index
    %104 = vector.load %arg8[%c24, %c0_29] : memref<64x128xbf16, #tpu.memory_space<vmem>>, vector<8x128xbf16>
    tpu.vector_store %arg8[%c24, %c0_29], %103 {strides = array<i32>} : memref<64x128xbf16, #tpu.memory_space<vmem>>, vector<8x128xbf16>,
    %105 = vector.extract_strided_slice %10 {offsets = [32, 0], sizes = [8, 512], strides = [1, 1]} : vector<64x512xf32> to vector<8x512xf32>
    %106 = arith.truncf %102 : vector<8x128xf32> to vector<8x128xbf16>
    %cst_30 = arith.constant dense<0.000000e+00> : vector<8x512xf32>
    %107 = tpu.matmul %106, %12, %cst_30 {dimension_numbers = #tpu.dot_dimension_numbers<[1], [0], [0], [1], [0, 0, 1, 1], [], []>} : vector<8x128xbf16>, vector<128x512xbf16>, vector<8x512xf32> -> vector<8x512xf32>
    %108 = arith.addf %105, %107 : vector<8x512xf32>
    %109 = vector.extract_strided_slice %108 {offsets = [0, 0], sizes = [8, 384], strides = [1, 1]} : vector<8x512xf32> to vector<8x384xf32>
    %110 = arith.negf %109 : vector<8x384xf32>
    %111 = math.exp %110 : vector<8x384xf32>
    %cst_31 = arith.constant 1.000000e+00 : f32
    %112 = vector.broadcast %cst_31 : f32 to vector<8x384xf32>
    %113 = arith.addf %112, %111 : vector<8x384xf32>
    %114 = arith.divf %112, %113 : vector<8x384xf32>
    %115 = vector.extract_strided_slice %114 {offsets = [0, 0], sizes = [8, 128], strides = [1, 1]} : vector<8x384xf32> to vector<8x128xf32>
    %116 = vector.extract_strided_slice %114 {offsets = [0, 128], sizes = [8, 128], strides = [1, 1]} : vector<8x384xf32> to vector<8x128xf32>
    %117 = vector.extract_strided_slice %114 {offsets = [0, 256], sizes = [8, 128], strides = [1, 1]} : vector<8x384xf32> to vector<8x128xf32>
    %118 = vector.extract_strided_slice %108 {offsets = [0, 384], sizes = [8, 128], strides = [1, 1]} : vector<8x512xf32> to vector<8x128xf32>
    %119 = math.tanh %118 : vector<8x128xf32>
    %120 = arith.mulf %116, %100 : vector<8x128xf32>
    %121 = arith.mulf %115, %119 : vector<8x128xf32>
    %122 = arith.addf %120, %121 : vector<8x128xf32>
    %123 = math.tanh %122 : vector<8x128xf32>
    %124 = arith.mulf %117, %123 : vector<8x128xf32>
    %125 = arith.truncf %124 : vector<8x128xf32> to vector<8x128xbf16>
    %c32 = arith.constant 32 : index
    %c0_32 = arith.constant 0 : index
    %126 = vector.load %arg8[%c32, %c0_32] : memref<64x128xbf16, #tpu.memory_space<vmem>>, vector<8x128xbf16>
    tpu.vector_store %arg8[%c32, %c0_32], %125 {strides = array<i32>} : memref<64x128xbf16, #tpu.memory_space<vmem>>, vector<8x128xbf16>,
    %127 = vector.extract_strided_slice %10 {offsets = [40, 0], sizes = [8, 512], strides = [1, 1]} : vector<64x512xf32> to vector<8x512xf32>
    %128 = arith.truncf %124 : vector<8x128xf32> to vector<8x128xbf16>
    %cst_33 = arith.constant dense<0.000000e+00> : vector<8x512xf32>
    %129 = tpu.matmul %128, %12, %cst_33 {dimension_numbers = #tpu.dot_dimension_numbers<[1], [0], [0], [1], [0, 0, 1, 1], [], []>} : vector<8x128xbf16>, vector<128x512xbf16>, vector<8x512xf32> -> vector<8x512xf32>
    %130 = arith.addf %127, %129 : vector<8x512xf32>
    %131 = vector.extract_strided_slice %130 {offsets = [0, 0], sizes = [8, 384], strides = [1, 1]} : vector<8x512xf32> to vector<8x384xf32>
    %132 = arith.negf %131 : vector<8x384xf32>
    %133 = math.exp %132 : vector<8x384xf32>
    %cst_34 = arith.constant 1.000000e+00 : f32
    %134 = vector.broadcast %cst_34 : f32 to vector<8x384xf32>
    %135 = arith.addf %134, %133 : vector<8x384xf32>
    %136 = arith.divf %134, %135 : vector<8x384xf32>
    %137 = vector.extract_strided_slice %136 {offsets = [0, 0], sizes = [8, 128], strides = [1, 1]} : vector<8x384xf32> to vector<8x128xf32>
    %138 = vector.extract_strided_slice %136 {offsets = [0, 128], sizes = [8, 128], strides = [1, 1]} : vector<8x384xf32> to vector<8x128xf32>
    %139 = vector.extract_strided_slice %136 {offsets = [0, 256], sizes = [8, 128], strides = [1, 1]} : vector<8x384xf32> to vector<8x128xf32>
    %140 = vector.extract_strided_slice %130 {offsets = [0, 384], sizes = [8, 128], strides = [1, 1]} : vector<8x512xf32> to vector<8x128xf32>
    %141 = math.tanh %140 : vector<8x128xf32>
    %142 = arith.mulf %138, %122 : vector<8x128xf32>
    %143 = arith.mulf %137, %141 : vector<8x128xf32>
    %144 = arith.addf %142, %143 : vector<8x128xf32>
    %145 = math.tanh %144 : vector<8x128xf32>
    %146 = arith.mulf %139, %145 : vector<8x128xf32>
    %147 = arith.truncf %146 : vector<8x128xf32> to vector<8x128xbf16>
    %c40 = arith.constant 40 : index
    %c0_35 = arith.constant 0 : index
    %148 = vector.load %arg8[%c40, %c0_35] : memref<64x128xbf16, #tpu.memory_space<vmem>>, vector<8x128xbf16>
    tpu.vector_store %arg8[%c40, %c0_35], %147 {strides = array<i32>} : memref<64x128xbf16, #tpu.memory_space<vmem>>, vector<8x128xbf16>,
    %149 = vector.extract_strided_slice %10 {offsets = [48, 0], sizes = [8, 512], strides = [1, 1]} : vector<64x512xf32> to vector<8x512xf32>
    %150 = arith.truncf %146 : vector<8x128xf32> to vector<8x128xbf16>
    %cst_36 = arith.constant dense<0.000000e+00> : vector<8x512xf32>
    %151 = tpu.matmul %150, %12, %cst_36 {dimension_numbers = #tpu.dot_dimension_numbers<[1], [0], [0], [1], [0, 0, 1, 1], [], []>} : vector<8x128xbf16>, vector<128x512xbf16>, vector<8x512xf32> -> vector<8x512xf32>
    %152 = arith.addf %149, %151 : vector<8x512xf32>
    %153 = vector.extract_strided_slice %152 {offsets = [0, 0], sizes = [8, 384], strides = [1, 1]} : vector<8x512xf32> to vector<8x384xf32>
    %154 = arith.negf %153 : vector<8x384xf32>
    %155 = math.exp %154 : vector<8x384xf32>
    %cst_37 = arith.constant 1.000000e+00 : f32
    %156 = vector.broadcast %cst_37 : f32 to vector<8x384xf32>
    %157 = arith.addf %156, %155 : vector<8x384xf32>
    %158 = arith.divf %156, %157 : vector<8x384xf32>
    %159 = vector.extract_strided_slice %158 {offsets = [0, 0], sizes = [8, 128], strides = [1, 1]} : vector<8x384xf32> to vector<8x128xf32>
    %160 = vector.extract_strided_slice %158 {offsets = [0, 128], sizes = [8, 128], strides = [1, 1]} : vector<8x384xf32> to vector<8x128xf32>
    %161 = vector.extract_strided_slice %158 {offsets = [0, 256], sizes = [8, 128], strides = [1, 1]} : vector<8x384xf32> to vector<8x128xf32>
    %162 = vector.extract_strided_slice %152 {offsets = [0, 384], sizes = [8, 128], strides = [1, 1]} : vector<8x512xf32> to vector<8x128xf32>
    %163 = math.tanh %162 : vector<8x128xf32>
    %164 = arith.mulf %160, %144 : vector<8x128xf32>
    %165 = arith.mulf %159, %163 : vector<8x128xf32>
    %166 = arith.addf %164, %165 : vector<8x128xf32>
    %167 = math.tanh %166 : vector<8x128xf32>
    %168 = arith.mulf %161, %167 : vector<8x128xf32>
    %169 = arith.truncf %168 : vector<8x128xf32> to vector<8x128xbf16>
    %c48 = arith.constant 48 : index
    %c0_38 = arith.constant 0 : index
    %170 = vector.load %arg8[%c48, %c0_38] : memref<64x128xbf16, #tpu.memory_space<vmem>>, vector<8x128xbf16>
    tpu.vector_store %arg8[%c48, %c0_38], %169 {strides = array<i32>} : memref<64x128xbf16, #tpu.memory_space<vmem>>, vector<8x128xbf16>,
    %171 = vector.extract_strided_slice %10 {offsets = [56, 0], sizes = [8, 512], strides = [1, 1]} : vector<64x512xf32> to vector<8x512xf32>
    %172 = arith.truncf %168 : vector<8x128xf32> to vector<8x128xbf16>
    %cst_39 = arith.constant dense<0.000000e+00> : vector<8x512xf32>
    %173 = tpu.matmul %172, %12, %cst_39 {dimension_numbers = #tpu.dot_dimension_numbers<[1], [0], [0], [1], [0, 0, 1, 1], [], []>} : vector<8x128xbf16>, vector<128x512xbf16>, vector<8x512xf32> -> vector<8x512xf32>
    %174 = arith.addf %171, %173 : vector<8x512xf32>
    %175 = vector.extract_strided_slice %174 {offsets = [0, 0], sizes = [8, 384], strides = [1, 1]} : vector<8x512xf32> to vector<8x384xf32>
    %176 = arith.negf %175 : vector<8x384xf32>
    %177 = math.exp %176 : vector<8x384xf32>
    %cst_40 = arith.constant 1.000000e+00 : f32
    %178 = vector.broadcast %cst_40 : f32 to vector<8x384xf32>
    %179 = arith.addf %178, %177 : vector<8x384xf32>
    %180 = arith.divf %178, %179 : vector<8x384xf32>
    %181 = vector.extract_strided_slice %180 {offsets = [0, 0], sizes = [8, 128], strides = [1, 1]} : vector<8x384xf32> to vector<8x128xf32>
    %182 = vector.extract_strided_slice %180 {offsets = [0, 128], sizes = [8, 128], strides = [1, 1]} : vector<8x384xf32> to vector<8x128xf32>
    %183 = vector.extract_strided_slice %180 {offsets = [0, 256], sizes = [8, 128], strides = [1, 1]} : vector<8x384xf32> to vector<8x128xf32>
    %184 = vector.extract_strided_slice %174 {offsets = [0, 384], sizes = [8, 128], strides = [1, 1]} : vector<8x512xf32> to vector<8x128xf32>
    %185 = math.tanh %184 : vector<8x128xf32>
    %186 = arith.mulf %182, %166 : vector<8x128xf32>
    %187 = arith.mulf %181, %185 : vector<8x128xf32>
    %188 = arith.addf %186, %187 : vector<8x128xf32>
    %189 = math.tanh %188 : vector<8x128xf32>
    %190 = arith.mulf %183, %189 : vector<8x128xf32>
    %191 = arith.truncf %190 : vector<8x128xf32> to vector<8x128xbf16>
    %c56 = arith.constant 56 : index
    %c0_41 = arith.constant 0 : index
    %192 = vector.load %arg8[%c56, %c0_41] : memref<64x128xbf16, #tpu.memory_space<vmem>>, vector<8x128xbf16>
    tpu.vector_store %arg8[%c56, %c0_41], %191 {strides = array<i32>} : memref<64x128xbf16, #tpu.memory_space<vmem>>, vector<8x128xbf16>,
    %c0_42 = arith.constant 0 : index
    %c0_43 = arith.constant 0 : index
    %c0_44 = arith.constant 0 : index
    %193 = vector.load %arg12[%c0_42, %c0_43, %c0_44] : memref<2x8x128xf32, #tpu.memory_space<vmem>>, vector<1x8x128xf32>
    %194 = vector.shape_cast %193 : vector<1x8x128xf32> to vector<8x128xf32>
    %195 = vector.shape_cast %190 : vector<8x128xf32> to vector<1x8x128xf32>
    tpu.vector_store %arg12[%c0_42, %c0_43, %c0_44], %195 {strides = array<i32>} : memref<2x8x128xf32, #tpu.memory_space<vmem>>, vector<1x8x128xf32>,
    %c0_45 = arith.constant 0 : index
    %c0_46 = arith.constant 0 : index
    %c0_47 = arith.constant 0 : index
    %196 = vector.load %arg13[%c0_45, %c0_46, %c0_47] : memref<2x8x128xf32, #tpu.memory_space<vmem>>, vector<1x8x128xf32>
    %197 = vector.shape_cast %196 : vector<1x8x128xf32> to vector<8x128xf32>
    %198 = vector.shape_cast %188 : vector<8x128xf32> to vector<1x8x128xf32>
    tpu.vector_store %arg13[%c0_45, %c0_46, %c0_47], %198 {strides = array<i32>} : memref<2x8x128xf32, #tpu.memory_space<vmem>>, vector<1x8x128xf32>,
    %c0_48 = arith.constant 0 : index
    %c0_49 = arith.constant 0 : index
    %199 = vector.load %arg2[%c0_48, %c0_49] : memref<64x128xbf16, #tpu.memory_space<vmem>>, vector<64x128xbf16>
    %c1 = arith.constant 1 : index
    %c0_50 = arith.constant 0 : index
    %c0_51 = arith.constant 0 : index
    %200 = vector.load %arg3[%c1, %c0_50, %c0_51] : memref<2x128x512xbf16, #tpu.memory_space<vmem>>, vector<1x128x512xbf16>
    %201 = vector.shape_cast %200 : vector<1x128x512xbf16> to vector<128x512xbf16>
    %cst_52 = arith.constant dense<0.000000e+00> : vector<64x512xf32>
    %202 = tpu.matmul %199, %201, %cst_52 {dimension_numbers = #tpu.dot_dimension_numbers<[1], [0], [0], [1], [0, 0, 1, 1], [], []>} : vector<64x128xbf16>, vector<128x512xbf16>, vector<64x512xf32> -> vector<64x512xf32>
    %c1_53 = arith.constant 1 : index
    %c0_54 = arith.constant 0 : index
    %c0_55 = arith.constant 0 : index
    %203 = vector.load %arg5[%c1_53, %c0_54, %c0_55] : memref<2x1x512xf32, #tpu.memory_space<vmem>>, vector<1x1x512xf32>
    %204 = vector.shape_cast %203 : vector<1x1x512xf32> to vector<1x512xf32>
    %205 = vector.broadcast %204 : vector<1x512xf32> to vector<64x512xf32>
    %206 = arith.addf %202, %205 : vector<64x512xf32>
    %c1_56 = arith.constant 1 : index
    %c0_57 = arith.constant 0 : index
    %c0_58 = arith.constant 0 : index
    %207 = vector.load %arg4[%c1_56, %c0_57, %c0_58] : memref<2x128x512xbf16, #tpu.memory_space<vmem>>, vector<1x128x512xbf16>
    %208 = vector.shape_cast %207 : vector<1x128x512xbf16> to vector<128x512xbf16>
    %c1_59 = arith.constant 1 : index
    %c0_60 = arith.constant 0 : index
    %c0_61 = arith.constant 0 : index
    %209 = vector.load %arg12[%c1_59, %c0_60, %c0_61] : memref<2x8x128xf32, #tpu.memory_space<vmem>>, vector<1x8x128xf32>
    %210 = vector.shape_cast %209 : vector<1x8x128xf32> to vector<8x128xf32>
    %c1_62 = arith.constant 1 : index
    %c0_63 = arith.constant 0 : index
    %c0_64 = arith.constant 0 : index
    %211 = vector.load %arg13[%c1_62, %c0_63, %c0_64] : memref<2x8x128xf32, #tpu.memory_space<vmem>>, vector<1x8x128xf32>
    %212 = vector.shape_cast %211 : vector<1x8x128xf32> to vector<8x128xf32>
    %213 = vector.extract_strided_slice %206 {offsets = [56, 0], sizes = [8, 512], strides = [1, 1]} : vector<64x512xf32> to vector<8x512xf32>
    %214 = arith.truncf %210 : vector<8x128xf32> to vector<8x128xbf16>
    %cst_65 = arith.constant dense<0.000000e+00> : vector<8x512xf32>
    %215 = tpu.matmul %214, %208, %cst_65 {dimension_numbers = #tpu.dot_dimension_numbers<[1], [0], [0], [1], [0, 0, 1, 1], [], []>} : vector<8x128xbf16>, vector<128x512xbf16>, vector<8x512xf32> -> vector<8x512xf32>
    %216 = arith.addf %213, %215 : vector<8x512xf32>
    %217 = vector.extract_strided_slice %216 {offsets = [0, 0], sizes = [8, 384], strides = [1, 1]} : vector<8x512xf32> to vector<8x384xf32>
    %218 = arith.negf %217 : vector<8x384xf32>
    %219 = math.exp %218 : vector<8x384xf32>
    %cst_66 = arith.constant 1.000000e+00 : f32
    %220 = vector.broadcast %cst_66 : f32 to vector<8x384xf32>
    %221 = arith.addf %220, %219 : vector<8x384xf32>
    %222 = arith.divf %220, %221 : vector<8x384xf32>
    %223 = vector.extract_strided_slice %222 {offsets = [0, 0], sizes = [8, 128], strides = [1, 1]} : vector<8x384xf32> to vector<8x128xf32>
    %224 = vector.extract_strided_slice %222 {offsets = [0, 128], sizes = [8, 128], strides = [1, 1]} : vector<8x384xf32> to vector<8x128xf32>
    %225 = vector.extract_strided_slice %222 {offsets = [0, 256], sizes = [8, 128], strides = [1, 1]} : vector<8x384xf32> to vector<8x128xf32>
    %226 = vector.extract_strided_slice %216 {offsets = [0, 384], sizes = [8, 128], strides = [1, 1]} : vector<8x512xf32> to vector<8x128xf32>
    %227 = math.tanh %226 : vector<8x128xf32>
    %228 = arith.mulf %224, %212 : vector<8x128xf32>
    %229 = arith.mulf %223, %227 : vector<8x128xf32>
    %230 = arith.addf %228, %229 : vector<8x128xf32>
    %231 = math.tanh %230 : vector<8x128xf32>
    %232 = arith.mulf %225, %231 : vector<8x128xf32>
    %233 = arith.truncf %232 : vector<8x128xf32> to vector<8x128xbf16>
    %c56_67 = arith.constant 56 : index
    %c0_68 = arith.constant 0 : index
    %234 = vector.load %arg9[%c56_67, %c0_68] : memref<64x128xbf16, #tpu.memory_space<vmem>>, vector<8x128xbf16>
    tpu.vector_store %arg9[%c56_67, %c0_68], %233 {strides = array<i32>} : memref<64x128xbf16, #tpu.memory_space<vmem>>, vector<8x128xbf16>,
    %235 = vector.extract_strided_slice %206 {offsets = [48, 0], sizes = [8, 512], strides = [1, 1]} : vector<64x512xf32> to vector<8x512xf32>
    %236 = arith.truncf %232 : vector<8x128xf32> to vector<8x128xbf16>
    %cst_69 = arith.constant dense<0.000000e+00> : vector<8x512xf32>
    %237 = tpu.matmul %236, %208, %cst_69 {dimension_numbers = #tpu.dot_dimension_numbers<[1], [0], [0], [1], [0, 0, 1, 1], [], []>} : vector<8x128xbf16>, vector<128x512xbf16>, vector<8x512xf32> -> vector<8x512xf32>
    %238 = arith.addf %235, %237 : vector<8x512xf32>
    %239 = vector.extract_strided_slice %238 {offsets = [0, 0], sizes = [8, 384], strides = [1, 1]} : vector<8x512xf32> to vector<8x384xf32>
    %240 = arith.negf %239 : vector<8x384xf32>
    %241 = math.exp %240 : vector<8x384xf32>
    %cst_70 = arith.constant 1.000000e+00 : f32
    %242 = vector.broadcast %cst_70 : f32 to vector<8x384xf32>
    %243 = arith.addf %242, %241 : vector<8x384xf32>
    %244 = arith.divf %242, %243 : vector<8x384xf32>
    %245 = vector.extract_strided_slice %244 {offsets = [0, 0], sizes = [8, 128], strides = [1, 1]} : vector<8x384xf32> to vector<8x128xf32>
    %246 = vector.extract_strided_slice %244 {offsets = [0, 128], sizes = [8, 128], strides = [1, 1]} : vector<8x384xf32> to vector<8x128xf32>
    %247 = vector.extract_strided_slice %244 {offsets = [0, 256], sizes = [8, 128], strides = [1, 1]} : vector<8x384xf32> to vector<8x128xf32>
    %248 = vector.extract_strided_slice %238 {offsets = [0, 384], sizes = [8, 128], strides = [1, 1]} : vector<8x512xf32> to vector<8x128xf32>
    %249 = math.tanh %248 : vector<8x128xf32>
    %250 = arith.mulf %246, %230 : vector<8x128xf32>
    %251 = arith.mulf %245, %249 : vector<8x128xf32>
    %252 = arith.addf %250, %251 : vector<8x128xf32>
    %253 = math.tanh %252 : vector<8x128xf32>
    %254 = arith.mulf %247, %253 : vector<8x128xf32>
    %255 = arith.truncf %254 : vector<8x128xf32> to vector<8x128xbf16>
    %c48_71 = arith.constant 48 : index
    %c0_72 = arith.constant 0 : index
    %256 = vector.load %arg9[%c48_71, %c0_72] : memref<64x128xbf16, #tpu.memory_space<vmem>>, vector<8x128xbf16>
    tpu.vector_store %arg9[%c48_71, %c0_72], %255 {strides = array<i32>} : memref<64x128xbf16, #tpu.memory_space<vmem>>, vector<8x128xbf16>,
    %257 = vector.extract_strided_slice %206 {offsets = [40, 0], sizes = [8, 512], strides = [1, 1]} : vector<64x512xf32> to vector<8x512xf32>
    %258 = arith.truncf %254 : vector<8x128xf32> to vector<8x128xbf16>
    %cst_73 = arith.constant dense<0.000000e+00> : vector<8x512xf32>
    %259 = tpu.matmul %258, %208, %cst_73 {dimension_numbers = #tpu.dot_dimension_numbers<[1], [0], [0], [1], [0, 0, 1, 1], [], []>} : vector<8x128xbf16>, vector<128x512xbf16>, vector<8x512xf32> -> vector<8x512xf32>
    %260 = arith.addf %257, %259 : vector<8x512xf32>
    %261 = vector.extract_strided_slice %260 {offsets = [0, 0], sizes = [8, 384], strides = [1, 1]} : vector<8x512xf32> to vector<8x384xf32>
    %262 = arith.negf %261 : vector<8x384xf32>
    %263 = math.exp %262 : vector<8x384xf32>
    %cst_74 = arith.constant 1.000000e+00 : f32
    %264 = vector.broadcast %cst_74 : f32 to vector<8x384xf32>
    %265 = arith.addf %264, %263 : vector<8x384xf32>
    %266 = arith.divf %264, %265 : vector<8x384xf32>
    %267 = vector.extract_strided_slice %266 {offsets = [0, 0], sizes = [8, 128], strides = [1, 1]} : vector<8x384xf32> to vector<8x128xf32>
    %268 = vector.extract_strided_slice %266 {offsets = [0, 128], sizes = [8, 128], strides = [1, 1]} : vector<8x384xf32> to vector<8x128xf32>
    %269 = vector.extract_strided_slice %266 {offsets = [0, 256], sizes = [8, 128], strides = [1, 1]} : vector<8x384xf32> to vector<8x128xf32>
    %270 = vector.extract_strided_slice %260 {offsets = [0, 384], sizes = [8, 128], strides = [1, 1]} : vector<8x512xf32> to vector<8x128xf32>
    %271 = math.tanh %270 : vector<8x128xf32>
    %272 = arith.mulf %268, %252 : vector<8x128xf32>
    %273 = arith.mulf %267, %271 : vector<8x128xf32>
    %274 = arith.addf %272, %273 : vector<8x128xf32>
    %275 = math.tanh %274 : vector<8x128xf32>
    %276 = arith.mulf %269, %275 : vector<8x128xf32>
    %277 = arith.truncf %276 : vector<8x128xf32> to vector<8x128xbf16>
    %c40_75 = arith.constant 40 : index
    %c0_76 = arith.constant 0 : index
    %278 = vector.load %arg9[%c40_75, %c0_76] : memref<64x128xbf16, #tpu.memory_space<vmem>>, vector<8x128xbf16>
    tpu.vector_store %arg9[%c40_75, %c0_76], %277 {strides = array<i32>} : memref<64x128xbf16, #tpu.memory_space<vmem>>, vector<8x128xbf16>,
    %279 = vector.extract_strided_slice %206 {offsets = [32, 0], sizes = [8, 512], strides = [1, 1]} : vector<64x512xf32> to vector<8x512xf32>
    %280 = arith.truncf %276 : vector<8x128xf32> to vector<8x128xbf16>
    %cst_77 = arith.constant dense<0.000000e+00> : vector<8x512xf32>
    %281 = tpu.matmul %280, %208, %cst_77 {dimension_numbers = #tpu.dot_dimension_numbers<[1], [0], [0], [1], [0, 0, 1, 1], [], []>} : vector<8x128xbf16>, vector<128x512xbf16>, vector<8x512xf32> -> vector<8x512xf32>
    %282 = arith.addf %279, %281 : vector<8x512xf32>
    %283 = vector.extract_strided_slice %282 {offsets = [0, 0], sizes = [8, 384], strides = [1, 1]} : vector<8x512xf32> to vector<8x384xf32>
    %284 = arith.negf %283 : vector<8x384xf32>
    %285 = math.exp %284 : vector<8x384xf32>
    %cst_78 = arith.constant 1.000000e+00 : f32
    %286 = vector.broadcast %cst_78 : f32 to vector<8x384xf32>
    %287 = arith.addf %286, %285 : vector<8x384xf32>
    %288 = arith.divf %286, %287 : vector<8x384xf32>
    %289 = vector.extract_strided_slice %288 {offsets = [0, 0], sizes = [8, 128], strides = [1, 1]} : vector<8x384xf32> to vector<8x128xf32>
    %290 = vector.extract_strided_slice %288 {offsets = [0, 128], sizes = [8, 128], strides = [1, 1]} : vector<8x384xf32> to vector<8x128xf32>
    %291 = vector.extract_strided_slice %288 {offsets = [0, 256], sizes = [8, 128], strides = [1, 1]} : vector<8x384xf32> to vector<8x128xf32>
    %292 = vector.extract_strided_slice %282 {offsets = [0, 384], sizes = [8, 128], strides = [1, 1]} : vector<8x512xf32> to vector<8x128xf32>
    %293 = math.tanh %292 : vector<8x128xf32>
    %294 = arith.mulf %290, %274 : vector<8x128xf32>
    %295 = arith.mulf %289, %293 : vector<8x128xf32>
    %296 = arith.addf %294, %295 : vector<8x128xf32>
    %297 = math.tanh %296 : vector<8x128xf32>
    %298 = arith.mulf %291, %297 : vector<8x128xf32>
    %299 = arith.truncf %298 : vector<8x128xf32> to vector<8x128xbf16>
    %c32_79 = arith.constant 32 : index
    %c0_80 = arith.constant 0 : index
    %300 = vector.load %arg9[%c32_79, %c0_80] : memref<64x128xbf16, #tpu.memory_space<vmem>>, vector<8x128xbf16>
    tpu.vector_store %arg9[%c32_79, %c0_80], %299 {strides = array<i32>} : memref<64x128xbf16, #tpu.memory_space<vmem>>, vector<8x128xbf16>,
    %301 = vector.extract_strided_slice %206 {offsets = [24, 0], sizes = [8, 512], strides = [1, 1]} : vector<64x512xf32> to vector<8x512xf32>
    %302 = arith.truncf %298 : vector<8x128xf32> to vector<8x128xbf16>
    %cst_81 = arith.constant dense<0.000000e+00> : vector<8x512xf32>
    %303 = tpu.matmul %302, %208, %cst_81 {dimension_numbers = #tpu.dot_dimension_numbers<[1], [0], [0], [1], [0, 0, 1, 1], [], []>} : vector<8x128xbf16>, vector<128x512xbf16>, vector<8x512xf32> -> vector<8x512xf32>
    %304 = arith.addf %301, %303 : vector<8x512xf32>
    %305 = vector.extract_strided_slice %304 {offsets = [0, 0], sizes = [8, 384], strides = [1, 1]} : vector<8x512xf32> to vector<8x384xf32>
    %306 = arith.negf %305 : vector<8x384xf32>
    %307 = math.exp %306 : vector<8x384xf32>
    %cst_82 = arith.constant 1.000000e+00 : f32
    %308 = vector.broadcast %cst_82 : f32 to vector<8x384xf32>
    %309 = arith.addf %308, %307 : vector<8x384xf32>
    %310 = arith.divf %308, %309 : vector<8x384xf32>
    %311 = vector.extract_strided_slice %310 {offsets = [0, 0], sizes = [8, 128], strides = [1, 1]} : vector<8x384xf32> to vector<8x128xf32>
    %312 = vector.extract_strided_slice %310 {offsets = [0, 128], sizes = [8, 128], strides = [1, 1]} : vector<8x384xf32> to vector<8x128xf32>
    %313 = vector.extract_strided_slice %310 {offsets = [0, 256], sizes = [8, 128], strides = [1, 1]} : vector<8x384xf32> to vector<8x128xf32>
    %314 = vector.extract_strided_slice %304 {offsets = [0, 384], sizes = [8, 128], strides = [1, 1]} : vector<8x512xf32> to vector<8x128xf32>
    %315 = math.tanh %314 : vector<8x128xf32>
    %316 = arith.mulf %312, %296 : vector<8x128xf32>
    %317 = arith.mulf %311, %315 : vector<8x128xf32>
    %318 = arith.addf %316, %317 : vector<8x128xf32>
    %319 = math.tanh %318 : vector<8x128xf32>
    %320 = arith.mulf %313, %319 : vector<8x128xf32>
    %321 = arith.truncf %320 : vector<8x128xf32> to vector<8x128xbf16>
    %c24_83 = arith.constant 24 : index
    %c0_84 = arith.constant 0 : index
    %322 = vector.load %arg9[%c24_83, %c0_84] : memref<64x128xbf16, #tpu.memory_space<vmem>>, vector<8x128xbf16>
    tpu.vector_store %arg9[%c24_83, %c0_84], %321 {strides = array<i32>} : memref<64x128xbf16, #tpu.memory_space<vmem>>, vector<8x128xbf16>,
    %323 = vector.extract_strided_slice %206 {offsets = [16, 0], sizes = [8, 512], strides = [1, 1]} : vector<64x512xf32> to vector<8x512xf32>
    %324 = arith.truncf %320 : vector<8x128xf32> to vector<8x128xbf16>
    %cst_85 = arith.constant dense<0.000000e+00> : vector<8x512xf32>
    %325 = tpu.matmul %324, %208, %cst_85 {dimension_numbers = #tpu.dot_dimension_numbers<[1], [0], [0], [1], [0, 0, 1, 1], [], []>} : vector<8x128xbf16>, vector<128x512xbf16>, vector<8x512xf32> -> vector<8x512xf32>
    %326 = arith.addf %323, %325 : vector<8x512xf32>
    %327 = vector.extract_strided_slice %326 {offsets = [0, 0], sizes = [8, 384], strides = [1, 1]} : vector<8x512xf32> to vector<8x384xf32>
    %328 = arith.negf %327 : vector<8x384xf32>
    %329 = math.exp %328 : vector<8x384xf32>
    %cst_86 = arith.constant 1.000000e+00 : f32
    %330 = vector.broadcast %cst_86 : f32 to vector<8x384xf32>
    %331 = arith.addf %330, %329 : vector<8x384xf32>
    %332 = arith.divf %330, %331 : vector<8x384xf32>
    %333 = vector.extract_strided_slice %332 {offsets = [0, 0], sizes = [8, 128], strides = [1, 1]} : vector<8x384xf32> to vector<8x128xf32>
    %334 = vector.extract_strided_slice %332 {offsets = [0, 128], sizes = [8, 128], strides = [1, 1]} : vector<8x384xf32> to vector<8x128xf32>
    %335 = vector.extract_strided_slice %332 {offsets = [0, 256], sizes = [8, 128], strides = [1, 1]} : vector<8x384xf32> to vector<8x128xf32>
    %336 = vector.extract_strided_slice %326 {offsets = [0, 384], sizes = [8, 128], strides = [1, 1]} : vector<8x512xf32> to vector<8x128xf32>
    %337 = math.tanh %336 : vector<8x128xf32>
    %338 = arith.mulf %334, %318 : vector<8x128xf32>
    %339 = arith.mulf %333, %337 : vector<8x128xf32>
    %340 = arith.addf %338, %339 : vector<8x128xf32>
    %341 = math.tanh %340 : vector<8x128xf32>
    %342 = arith.mulf %335, %341 : vector<8x128xf32>
    %343 = arith.truncf %342 : vector<8x128xf32> to vector<8x128xbf16>
    %c16_87 = arith.constant 16 : index
    %c0_88 = arith.constant 0 : index
    %344 = vector.load %arg9[%c16_87, %c0_88] : memref<64x128xbf16, #tpu.memory_space<vmem>>, vector<8x128xbf16>
    tpu.vector_store %arg9[%c16_87, %c0_88], %343 {strides = array<i32>} : memref<64x128xbf16, #tpu.memory_space<vmem>>, vector<8x128xbf16>,
    %345 = vector.extract_strided_slice %206 {offsets = [8, 0], sizes = [8, 512], strides = [1, 1]} : vector<64x512xf32> to vector<8x512xf32>
    %346 = arith.truncf %342 : vector<8x128xf32> to vector<8x128xbf16>
    %cst_89 = arith.constant dense<0.000000e+00> : vector<8x512xf32>
    %347 = tpu.matmul %346, %208, %cst_89 {dimension_numbers = #tpu.dot_dimension_numbers<[1], [0], [0], [1], [0, 0, 1, 1], [], []>} : vector<8x128xbf16>, vector<128x512xbf16>, vector<8x512xf32> -> vector<8x512xf32>
    %348 = arith.addf %345, %347 : vector<8x512xf32>
    %349 = vector.extract_strided_slice %348 {offsets = [0, 0], sizes = [8, 384], strides = [1, 1]} : vector<8x512xf32> to vector<8x384xf32>
    %350 = arith.negf %349 : vector<8x384xf32>
    %351 = math.exp %350 : vector<8x384xf32>
    %cst_90 = arith.constant 1.000000e+00 : f32
    %352 = vector.broadcast %cst_90 : f32 to vector<8x384xf32>
    %353 = arith.addf %352, %351 : vector<8x384xf32>
    %354 = arith.divf %352, %353 : vector<8x384xf32>
    %355 = vector.extract_strided_slice %354 {offsets = [0, 0], sizes = [8, 128], strides = [1, 1]} : vector<8x384xf32> to vector<8x128xf32>
    %356 = vector.extract_strided_slice %354 {offsets = [0, 128], sizes = [8, 128], strides = [1, 1]} : vector<8x384xf32> to vector<8x128xf32>
    %357 = vector.extract_strided_slice %354 {offsets = [0, 256], sizes = [8, 128], strides = [1, 1]} : vector<8x384xf32> to vector<8x128xf32>
    %358 = vector.extract_strided_slice %348 {offsets = [0, 384], sizes = [8, 128], strides = [1, 1]} : vector<8x512xf32> to vector<8x128xf32>
    %359 = math.tanh %358 : vector<8x128xf32>
    %360 = arith.mulf %356, %340 : vector<8x128xf32>
    %361 = arith.mulf %355, %359 : vector<8x128xf32>
    %362 = arith.addf %360, %361 : vector<8x128xf32>
    %363 = math.tanh %362 : vector<8x128xf32>
    %364 = arith.mulf %357, %363 : vector<8x128xf32>
    %365 = arith.truncf %364 : vector<8x128xf32> to vector<8x128xbf16>
    %c8_91 = arith.constant 8 : index
    %c0_92 = arith.constant 0 : index
    %366 = vector.load %arg9[%c8_91, %c0_92] : memref<64x128xbf16, #tpu.memory_space<vmem>>, vector<8x128xbf16>
    tpu.vector_store %arg9[%c8_91, %c0_92], %365 {strides = array<i32>} : memref<64x128xbf16, #tpu.memory_space<vmem>>, vector<8x128xbf16>,
    %367 = vector.extract_strided_slice %206 {offsets = [0, 0], sizes = [8, 512], strides = [1, 1]} : vector<64x512xf32> to vector<8x512xf32>
    %368 = arith.truncf %364 : vector<8x128xf32> to vector<8x128xbf16>
    %cst_93 = arith.constant dense<0.000000e+00> : vector<8x512xf32>
    %369 = tpu.matmul %368, %208, %cst_93 {dimension_numbers = #tpu.dot_dimension_numbers<[1], [0], [0], [1], [0, 0, 1, 1], [], []>} : vector<8x128xbf16>, vector<128x512xbf16>, vector<8x512xf32> -> vector<8x512xf32>
    %370 = arith.addf %367, %369 : vector<8x512xf32>
    %371 = vector.extract_strided_slice %370 {offsets = [0, 0], sizes = [8, 384], strides = [1, 1]} : vector<8x512xf32> to vector<8x384xf32>
    %372 = arith.negf %371 : vector<8x384xf32>
    %373 = math.exp %372 : vector<8x384xf32>
    %cst_94 = arith.constant 1.000000e+00 : f32
    %374 = vector.broadcast %cst_94 : f32 to vector<8x384xf32>
    %375 = arith.addf %374, %373 : vector<8x384xf32>
    %376 = arith.divf %374, %375 : vector<8x384xf32>
    %377 = vector.extract_strided_slice %376 {offsets = [0, 0], sizes = [8, 128], strides = [1, 1]} : vector<8x384xf32> to vector<8x128xf32>
    %378 = vector.extract_strided_slice %376 {offsets = [0, 128], sizes = [8, 128], strides = [1, 1]} : vector<8x384xf32> to vector<8x128xf32>
    %379 = vector.extract_strided_slice %376 {offsets = [0, 256], sizes = [8, 128], strides = [1, 1]} : vector<8x384xf32> to vector<8x128xf32>
    %380 = vector.extract_strided_slice %370 {offsets = [0, 384], sizes = [8, 128], strides = [1, 1]} : vector<8x512xf32> to vector<8x128xf32>
    %381 = math.tanh %380 : vector<8x128xf32>
    %382 = arith.mulf %378, %362 : vector<8x128xf32>
    %383 = arith.mulf %377, %381 : vector<8x128xf32>
    %384 = arith.addf %382, %383 : vector<8x128xf32>
    %385 = math.tanh %384 : vector<8x128xf32>
    %386 = arith.mulf %379, %385 : vector<8x128xf32>
    %387 = arith.truncf %386 : vector<8x128xf32> to vector<8x128xbf16>
    %c0_95 = arith.constant 0 : index
    %c0_96 = arith.constant 0 : index
    %388 = vector.load %arg9[%c0_95, %c0_96] : memref<64x128xbf16, #tpu.memory_space<vmem>>, vector<8x128xbf16>
    tpu.vector_store %arg9[%c0_95, %c0_96], %387 {strides = array<i32>} : memref<64x128xbf16, #tpu.memory_space<vmem>>, vector<8x128xbf16>,
    %c1_97 = arith.constant 1 : index
    %c0_98 = arith.constant 0 : index
    %c0_99 = arith.constant 0 : index
    %389 = vector.load %arg12[%c1_97, %c0_98, %c0_99] : memref<2x8x128xf32, #tpu.memory_space<vmem>>, vector<1x8x128xf32>
    %390 = vector.shape_cast %389 : vector<1x8x128xf32> to vector<8x128xf32>
    %391 = vector.shape_cast %386 : vector<8x128xf32> to vector<1x8x128xf32>
    tpu.vector_store %arg12[%c1_97, %c0_98, %c0_99], %391 {strides = array<i32>} : memref<2x8x128xf32, #tpu.memory_space<vmem>>, vector<1x8x128xf32>,
    %c1_100 = arith.constant 1 : index
    %c0_101 = arith.constant 0 : index
    %c0_102 = arith.constant 0 : index
    %392 = vector.load %arg13[%c1_100, %c0_101, %c0_102] : memref<2x8x128xf32, #tpu.memory_space<vmem>>, vector<1x8x128xf32>
    %393 = vector.shape_cast %392 : vector<1x8x128xf32> to vector<8x128xf32>
    %394 = vector.shape_cast %384 : vector<8x128xf32> to vector<1x8x128xf32>
    tpu.vector_store %arg13[%c1_100, %c0_101, %c0_102], %394 {strides = array<i32>} : memref<2x8x128xf32, #tpu.memory_space<vmem>>, vector<1x8x128xf32>,
    %c0_i32_103 = arith.constant 0 : i32
    %395 = arith.cmpi eq, %arg0, %c0_i32_103 : i32
    %396 = arith.extui %395 : i1 to i32
    %c0_i32_104 = arith.constant 0 : i32
    %397 = arith.cmpi ne, %396, %c0_i32_104 : i32
    scf.if %397 {
      %c0_105 = arith.constant 0 : index
      %c0_106 = arith.constant 0 : index
      %c0_107 = arith.constant 0 : index
      %398 = vector.load %arg12[%c0_105, %c0_106, %c0_107] : memref<2x8x128xf32, #tpu.memory_space<vmem>>, vector<2x8x128xf32>
      %c0_108 = arith.constant 0 : index
      %c0_109 = arith.constant 0 : index
      %c0_110 = arith.constant 0 : index
      %399 = vector.load %arg10[%c0_108, %c0_109, %c0_110] : memref<2x8x128xf32, #tpu.memory_space<vmem>>, vector<2x8x128xf32>
      tpu.vector_store %arg10[%c0_108, %c0_109, %c0_110], %398 {strides = array<i32>} : memref<2x8x128xf32, #tpu.memory_space<vmem>>, vector<2x8x128xf32>,
      %c0_111 = arith.constant 0 : index
      %c0_112 = arith.constant 0 : index
      %c0_113 = arith.constant 0 : index
      %400 = vector.load %arg13[%c0_111, %c0_112, %c0_113] : memref<2x8x128xf32, #tpu.memory_space<vmem>>, vector<2x8x128xf32>
      %c0_114 = arith.constant 0 : index
      %c0_115 = arith.constant 0 : index
      %c0_116 = arith.constant 0 : index
      %401 = vector.load %arg11[%c0_114, %c0_115, %c0_116] : memref<2x8x128xf32, #tpu.memory_space<vmem>>, vector<2x8x128xf32>
      tpu.vector_store %arg11[%c0_114, %c0_115, %c0_116], %400 {strides = array<i32>} : memref<2x8x128xf32, #tpu.memory_space<vmem>>, vector<2x8x128xf32>,
    } else {
    }
    return
  }
  func.func @transform_0(%arg0: i32) -> (i32, i32) {
    %c0_i32 = arith.constant 0 : i32
    %c0_i32_0 = arith.constant 0 : i32
    return %arg0, %c0_i32 : i32, i32
  }
  func.func @transform_1(%arg0: i32) -> (i32, i32) {
    %c0_i32 = arith.constant 0 : i32
    %0 = arith.subi %c0_i32, %arg0 : i32
    %c0_i32_0 = arith.constant 0 : i32
    %c0_i32_1 = arith.constant 0 : i32
    return %0, %c0_i32_0 : i32, i32
  }
  func.func @transform_2(%arg0: i32) -> (i32, i32, i32) {
    %c0_i32 = arith.constant 0 : i32
    %c0_i32_0 = arith.constant 0 : i32
    %c0_i32_1 = arith.constant 0 : i32
    %c0_i32_2 = arith.constant 0 : i32
    return %c0_i32, %c0_i32_0, %c0_i32_1 : i32, i32, i32
  }
  func.func @transform_3(%arg0: i32) -> (i32, i32, i32) {
    %c0_i32 = arith.constant 0 : i32
    %c0_i32_0 = arith.constant 0 : i32
    %c0_i32_1 = arith.constant 0 : i32
    %c0_i32_2 = arith.constant 0 : i32
    return %c0_i32, %c0_i32_0, %c0_i32_1 : i32, i32, i32
  }
  func.func @transform_4(%arg0: i32) -> (i32, i32, i32) {
    %c0_i32 = arith.constant 0 : i32
    %c0_i32_0 = arith.constant 0 : i32
    %c0_i32_1 = arith.constant 0 : i32
    %c0_i32_2 = arith.constant 0 : i32
    return %c0_i32, %c0_i32_0, %c0_i32_1 : i32, i32, i32
  }
  func.func @transform_5(%arg0: i32) -> (i32, i32, i32) {
    %c0_i32 = arith.constant 0 : i32
    %c0_i32_0 = arith.constant 0 : i32
    %c0_i32_1 = arith.constant 0 : i32
    %c0_i32_2 = arith.constant 0 : i32
    return %c0_i32, %c0_i32_0, %c0_i32_1 : i32, i32, i32
  }
  func.func @transform_6(%arg0: i32) -> (i32, i32, i32) {
    %c0_i32 = arith.constant 0 : i32
    %c0_i32_0 = arith.constant 0 : i32
    %c0_i32_1 = arith.constant 0 : i32
    %c0_i32_2 = arith.constant 0 : i32
    return %c0_i32, %c0_i32_0, %c0_i32_1 : i32, i32, i32
  }
  func.func @transform_7(%arg0: i32) -> (i32, i32) {
    %c0_i32 = arith.constant 0 : i32
    %c0_i32_0 = arith.constant 0 : i32
    return %arg0, %c0_i32 : i32, i32
  }
  func.func @transform_8(%arg0: i32) -> (i32, i32) {
    %c0_i32 = arith.constant 0 : i32
    %0 = arith.subi %c0_i32, %arg0 : i32
    %c0_i32_0 = arith.constant 0 : i32
    %c0_i32_1 = arith.constant 0 : i32
    return %0, %c0_i32_0 : i32, i32
  }
  func.func @transform_9(%arg0: i32) -> (i32, i32, i32) {
    %c0_i32 = arith.constant 0 : i32
    %c0_i32_0 = arith.constant 0 : i32
    %c0_i32_1 = arith.constant 0 : i32
    %c0_i32_2 = arith.constant 0 : i32
    return %c0_i32, %c0_i32_0, %c0_i32_1 : i32, i32, i32
  }
  func.func @transform_10(%arg0: i32) -> (i32, i32, i32) {
    %c0_i32 = arith.constant 0 : i32
    %c0_i32_0 = arith.constant 0 : i32
    %c0_i32_1 = arith.constant 0 : i32
    %c0_i32_2 = arith.constant 0 : i32
    return %c0_i32, %c0_i32_0, %c0_i32_1 : i32, i32, i32
  }
}

module attributes {stable_mosaic.version = 11 : i64} {
  func.func @_bidir_lstm_kernel(%arg0: i32, %arg1: memref<64x128xbf16, #tpu.memory_space<vmem>>, %arg2: memref<64x128xbf16, #tpu.memory_space<vmem>>, %arg3: memref<64x128xbf16, #tpu.memory_space<vmem>>, %arg4: memref<64x128xbf16, #tpu.memory_space<vmem>>, %arg5: memref<4x128x512xbf16, #tpu.memory_space<vmem>>, %arg6: memref<2x128x512xbf16, #tpu.memory_space<vmem>>, %arg7: memref<2x1x512xf32, #tpu.memory_space<vmem>>, %arg8: memref<2x8x128xf32, #tpu.memory_space<vmem>>, %arg9: memref<2x8x128xf32, #tpu.memory_space<vmem>>, %arg10: memref<2x8x128xf32, #tpu.memory_space<vmem>>, %arg11: memref<2x8x128xf32, #tpu.memory_space<vmem>>, %arg12: memref<2x8x128xf32, #tpu.memory_space<vmem>>, %arg13: memref<2x8x128xf32, #tpu.memory_space<vmem>>) attributes {dimension_semantics = [#tpu.dimension_semantics<arbitrary>], iteration_bounds = array<i64: 1>, scalar_prefetch = 0 : i64, scratch_operands = 2 : i64, tpu.core_type = #tpu.core_type<tc>, window_params = [{transform_indices = @transform_0, window_bounds = array<i64: 64, 128>}, {transform_indices = @transform_1, window_bounds = array<i64: 64, 128>}, {transform_indices = @transform_2, window_bounds = array<i64: 64, 128>}, {transform_indices = @transform_3, window_bounds = array<i64: 64, 128>}, {pipeline_mode = #tpu.pipeline_mode<synchronous>, transform_indices = @transform_4, window_bounds = array<i64: 4, 128, 512>}, {pipeline_mode = #tpu.pipeline_mode<synchronous>, transform_indices = @transform_5, window_bounds = array<i64: 2, 128, 512>}, {pipeline_mode = #tpu.pipeline_mode<synchronous>, transform_indices = @transform_6, window_bounds = array<i64: 2, 1, 512>}, {pipeline_mode = #tpu.pipeline_mode<synchronous>, transform_indices = @transform_7, window_bounds = array<i64: 2, 8, 128>}, {pipeline_mode = #tpu.pipeline_mode<synchronous>, transform_indices = @transform_8, window_bounds = array<i64: 2, 8, 128>}, {pipeline_mode = #tpu.pipeline_mode<synchronous>, transform_indices = @transform_9, window_bounds = array<i64: 2, 8, 128>}, {pipeline_mode = #tpu.pipeline_mode<synchronous>, transform_indices = @transform_10, window_bounds = array<i64: 2, 8, 128>}]} {
    %c0_i32 = arith.constant 0 : i32
    %0 = arith.cmpi eq, %arg0, %c0_i32 : i32
    %1 = arith.extui %0 : i1 to i32
    %c0_i32_0 = arith.constant 0 : i32
    %2 = arith.cmpi ne, %1, %c0_i32_0 : i32
    scf.if %2 {
      %c0_90 = arith.constant 0 : index
      %c0_91 = arith.constant 0 : index
      %c0_92 = arith.constant 0 : index
      %376 = vector.load %arg8[%c0_90, %c0_91, %c0_92] : memref<2x8x128xf32, #tpu.memory_space<vmem>>, vector<2x8x128xf32>
      %c0_93 = arith.constant 0 : index
      %c0_94 = arith.constant 0 : index
      %c0_95 = arith.constant 0 : index
      %377 = vector.load %arg12[%c0_93, %c0_94, %c0_95] : memref<2x8x128xf32, #tpu.memory_space<vmem>>, vector<2x8x128xf32>
      tpu.vector_store %arg12[%c0_93, %c0_94, %c0_95], %376 {strides = array<i32>} : memref<2x8x128xf32, #tpu.memory_space<vmem>>, vector<2x8x128xf32>,
      %c0_96 = arith.constant 0 : index
      %c0_97 = arith.constant 0 : index
      %c0_98 = arith.constant 0 : index
      %378 = vector.load %arg9[%c0_96, %c0_97, %c0_98] : memref<2x8x128xf32, #tpu.memory_space<vmem>>, vector<2x8x128xf32>
      %c0_99 = arith.constant 0 : index
      %c0_100 = arith.constant 0 : index
      %c0_101 = arith.constant 0 : index
      %379 = vector.load %arg13[%c0_99, %c0_100, %c0_101] : memref<2x8x128xf32, #tpu.memory_space<vmem>>, vector<2x8x128xf32>
      tpu.vector_store %arg13[%c0_99, %c0_100, %c0_101], %378 {strides = array<i32>} : memref<2x8x128xf32, #tpu.memory_space<vmem>>, vector<2x8x128xf32>,
    } else {
    }
    %c0 = arith.constant 0 : index
    %c0_1 = arith.constant 0 : index
    %3 = vector.load %arg1[%c0, %c0_1] : memref<64x128xbf16, #tpu.memory_space<vmem>>, vector<64x128xbf16>
    %c0_2 = arith.constant 0 : index
    %c0_3 = arith.constant 0 : index
    %c0_4 = arith.constant 0 : index
    %4 = vector.load %arg5[%c0_2, %c0_3, %c0_4] : memref<4x128x512xbf16, #tpu.memory_space<vmem>>, vector<1x128x512xbf16>
    %5 = vector.shape_cast %4 : vector<1x128x512xbf16> to vector<128x512xbf16>
    %cst = arith.constant dense<0.000000e+00> : vector<64x512xf32>
    %6 = tpu.matmul %3, %5, %cst {dimension_numbers = #tpu.dot_dimension_numbers<[1], [0], [0], [1], [0, 0, 1, 1], [], []>} : vector<64x128xbf16>, vector<128x512xbf16>, vector<64x512xf32> -> vector<64x512xf32>
    %c0_5 = arith.constant 0 : index
    %c0_6 = arith.constant 0 : index
    %7 = vector.load %arg2[%c0_5, %c0_6] : memref<64x128xbf16, #tpu.memory_space<vmem>>, vector<64x128xbf16>
    %c1 = arith.constant 1 : index
    %c0_7 = arith.constant 0 : index
    %c0_8 = arith.constant 0 : index
    %8 = vector.load %arg5[%c1, %c0_7, %c0_8] : memref<4x128x512xbf16, #tpu.memory_space<vmem>>, vector<1x128x512xbf16>
    %9 = vector.shape_cast %8 : vector<1x128x512xbf16> to vector<128x512xbf16>
    %cst_9 = arith.constant dense<0.000000e+00> : vector<64x512xf32>
    %10 = tpu.matmul %7, %9, %cst_9 {dimension_numbers = #tpu.dot_dimension_numbers<[1], [0], [0], [1], [0, 0, 1, 1], [], []>} : vector<64x128xbf16>, vector<128x512xbf16>, vector<64x512xf32> -> vector<64x512xf32>
    %11 = arith.addf %6, %10 : vector<64x512xf32>
    %c0_10 = arith.constant 0 : index
    %c0_11 = arith.constant 0 : index
    %c0_12 = arith.constant 0 : index
    %12 = vector.load %arg7[%c0_10, %c0_11, %c0_12] : memref<2x1x512xf32, #tpu.memory_space<vmem>>, vector<1x1x512xf32>
    %13 = vector.shape_cast %12 : vector<1x1x512xf32> to vector<1x512xf32>
    %14 = vector.broadcast %13 : vector<1x512xf32> to vector<64x512xf32>
    %15 = arith.addf %11, %14 : vector<64x512xf32>
    %c0_13 = arith.constant 0 : index
    %c0_14 = arith.constant 0 : index
    %c0_15 = arith.constant 0 : index
    %16 = vector.load %arg6[%c0_13, %c0_14, %c0_15] : memref<2x128x512xbf16, #tpu.memory_space<vmem>>, vector<1x128x512xbf16>
    %17 = vector.shape_cast %16 : vector<1x128x512xbf16> to vector<128x512xbf16>
    %c0_16 = arith.constant 0 : index
    %c0_17 = arith.constant 0 : index
    %c0_18 = arith.constant 0 : index
    %18 = vector.load %arg12[%c0_16, %c0_17, %c0_18] : memref<2x8x128xf32, #tpu.memory_space<vmem>>, vector<1x8x128xf32>
    %19 = vector.shape_cast %18 : vector<1x8x128xf32> to vector<8x128xf32>
    %c0_19 = arith.constant 0 : index
    %c0_20 = arith.constant 0 : index
    %c0_21 = arith.constant 0 : index
    %20 = vector.load %arg13[%c0_19, %c0_20, %c0_21] : memref<2x8x128xf32, #tpu.memory_space<vmem>>, vector<1x8x128xf32>
    %21 = vector.shape_cast %20 : vector<1x8x128xf32> to vector<8x128xf32>
    %22 = vector.extract_strided_slice %15 {offsets = [0, 0], sizes = [8, 512], strides = [1, 1]} : vector<64x512xf32> to vector<8x512xf32>
    %23 = arith.truncf %19 : vector<8x128xf32> to vector<8x128xbf16>
    %cst_22 = arith.constant dense<0.000000e+00> : vector<8x512xf32>
    %24 = tpu.matmul %23, %17, %cst_22 {dimension_numbers = #tpu.dot_dimension_numbers<[1], [0], [0], [1], [0, 0, 1, 1], [], []>} : vector<8x128xbf16>, vector<128x512xbf16>, vector<8x512xf32> -> vector<8x512xf32>
    %25 = arith.addf %22, %24 : vector<8x512xf32>
    %26 = vector.extract_strided_slice %25 {offsets = [0, 0], sizes = [8, 384], strides = [1, 1]} : vector<8x512xf32> to vector<8x384xf32>
    %27 = arith.negf %26 : vector<8x384xf32>
    %28 = math.exp %27 : vector<8x384xf32>
    %cst_23 = arith.constant 1.000000e+00 : f32
    %29 = vector.broadcast %cst_23 : f32 to vector<8x384xf32>
    %30 = arith.addf %29, %28 : vector<8x384xf32>
    %31 = arith.divf %29, %30 : vector<8x384xf32>
    %32 = vector.extract_strided_slice %31 {offsets = [0, 0], sizes = [8, 128], strides = [1, 1]} : vector<8x384xf32> to vector<8x128xf32>
    %33 = vector.extract_strided_slice %31 {offsets = [0, 128], sizes = [8, 128], strides = [1, 1]} : vector<8x384xf32> to vector<8x128xf32>
    %34 = vector.extract_strided_slice %31 {offsets = [0, 256], sizes = [8, 128], strides = [1, 1]} : vector<8x384xf32> to vector<8x128xf32>
    %35 = vector.extract_strided_slice %25 {offsets = [0, 384], sizes = [8, 128], strides = [1, 1]} : vector<8x512xf32> to vector<8x128xf32>
    %36 = math.tanh %35 : vector<8x128xf32>
    %37 = arith.mulf %33, %21 : vector<8x128xf32>
    %38 = arith.mulf %32, %36 : vector<8x128xf32>
    %39 = arith.addf %37, %38 : vector<8x128xf32>
    %40 = math.tanh %39 : vector<8x128xf32>
    %41 = arith.mulf %34, %40 : vector<8x128xf32>
    %42 = vector.extract_strided_slice %15 {offsets = [8, 0], sizes = [8, 512], strides = [1, 1]} : vector<64x512xf32> to vector<8x512xf32>
    %43 = arith.truncf %41 : vector<8x128xf32> to vector<8x128xbf16>
    %cst_24 = arith.constant dense<0.000000e+00> : vector<8x512xf32>
    %44 = tpu.matmul %43, %17, %cst_24 {dimension_numbers = #tpu.dot_dimension_numbers<[1], [0], [0], [1], [0, 0, 1, 1], [], []>} : vector<8x128xbf16>, vector<128x512xbf16>, vector<8x512xf32> -> vector<8x512xf32>
    %45 = arith.addf %42, %44 : vector<8x512xf32>
    %46 = vector.extract_strided_slice %45 {offsets = [0, 0], sizes = [8, 384], strides = [1, 1]} : vector<8x512xf32> to vector<8x384xf32>
    %47 = arith.negf %46 : vector<8x384xf32>
    %48 = math.exp %47 : vector<8x384xf32>
    %cst_25 = arith.constant 1.000000e+00 : f32
    %49 = vector.broadcast %cst_25 : f32 to vector<8x384xf32>
    %50 = arith.addf %49, %48 : vector<8x384xf32>
    %51 = arith.divf %49, %50 : vector<8x384xf32>
    %52 = vector.extract_strided_slice %51 {offsets = [0, 0], sizes = [8, 128], strides = [1, 1]} : vector<8x384xf32> to vector<8x128xf32>
    %53 = vector.extract_strided_slice %51 {offsets = [0, 128], sizes = [8, 128], strides = [1, 1]} : vector<8x384xf32> to vector<8x128xf32>
    %54 = vector.extract_strided_slice %51 {offsets = [0, 256], sizes = [8, 128], strides = [1, 1]} : vector<8x384xf32> to vector<8x128xf32>
    %55 = vector.extract_strided_slice %45 {offsets = [0, 384], sizes = [8, 128], strides = [1, 1]} : vector<8x512xf32> to vector<8x128xf32>
    %56 = math.tanh %55 : vector<8x128xf32>
    %57 = arith.mulf %53, %39 : vector<8x128xf32>
    %58 = arith.mulf %52, %56 : vector<8x128xf32>
    %59 = arith.addf %57, %58 : vector<8x128xf32>
    %60 = math.tanh %59 : vector<8x128xf32>
    %61 = arith.mulf %54, %60 : vector<8x128xf32>
    %62 = vector.extract_strided_slice %15 {offsets = [16, 0], sizes = [8, 512], strides = [1, 1]} : vector<64x512xf32> to vector<8x512xf32>
    %63 = arith.truncf %61 : vector<8x128xf32> to vector<8x128xbf16>
    %cst_26 = arith.constant dense<0.000000e+00> : vector<8x512xf32>
    %64 = tpu.matmul %63, %17, %cst_26 {dimension_numbers = #tpu.dot_dimension_numbers<[1], [0], [0], [1], [0, 0, 1, 1], [], []>} : vector<8x128xbf16>, vector<128x512xbf16>, vector<8x512xf32> -> vector<8x512xf32>
    %65 = arith.addf %62, %64 : vector<8x512xf32>
    %66 = vector.extract_strided_slice %65 {offsets = [0, 0], sizes = [8, 384], strides = [1, 1]} : vector<8x512xf32> to vector<8x384xf32>
    %67 = arith.negf %66 : vector<8x384xf32>
    %68 = math.exp %67 : vector<8x384xf32>
    %cst_27 = arith.constant 1.000000e+00 : f32
    %69 = vector.broadcast %cst_27 : f32 to vector<8x384xf32>
    %70 = arith.addf %69, %68 : vector<8x384xf32>
    %71 = arith.divf %69, %70 : vector<8x384xf32>
    %72 = vector.extract_strided_slice %71 {offsets = [0, 0], sizes = [8, 128], strides = [1, 1]} : vector<8x384xf32> to vector<8x128xf32>
    %73 = vector.extract_strided_slice %71 {offsets = [0, 128], sizes = [8, 128], strides = [1, 1]} : vector<8x384xf32> to vector<8x128xf32>
    %74 = vector.extract_strided_slice %71 {offsets = [0, 256], sizes = [8, 128], strides = [1, 1]} : vector<8x384xf32> to vector<8x128xf32>
    %75 = vector.extract_strided_slice %65 {offsets = [0, 384], sizes = [8, 128], strides = [1, 1]} : vector<8x512xf32> to vector<8x128xf32>
    %76 = math.tanh %75 : vector<8x128xf32>
    %77 = arith.mulf %73, %59 : vector<8x128xf32>
    %78 = arith.mulf %72, %76 : vector<8x128xf32>
    %79 = arith.addf %77, %78 : vector<8x128xf32>
    %80 = math.tanh %79 : vector<8x128xf32>
    %81 = arith.mulf %74, %80 : vector<8x128xf32>
    %82 = vector.extract_strided_slice %15 {offsets = [24, 0], sizes = [8, 512], strides = [1, 1]} : vector<64x512xf32> to vector<8x512xf32>
    %83 = arith.truncf %81 : vector<8x128xf32> to vector<8x128xbf16>
    %cst_28 = arith.constant dense<0.000000e+00> : vector<8x512xf32>
    %84 = tpu.matmul %83, %17, %cst_28 {dimension_numbers = #tpu.dot_dimension_numbers<[1], [0], [0], [1], [0, 0, 1, 1], [], []>} : vector<8x128xbf16>, vector<128x512xbf16>, vector<8x512xf32> -> vector<8x512xf32>
    %85 = arith.addf %82, %84 : vector<8x512xf32>
    %86 = vector.extract_strided_slice %85 {offsets = [0, 0], sizes = [8, 384], strides = [1, 1]} : vector<8x512xf32> to vector<8x384xf32>
    %87 = arith.negf %86 : vector<8x384xf32>
    %88 = math.exp %87 : vector<8x384xf32>
    %cst_29 = arith.constant 1.000000e+00 : f32
    %89 = vector.broadcast %cst_29 : f32 to vector<8x384xf32>
    %90 = arith.addf %89, %88 : vector<8x384xf32>
    %91 = arith.divf %89, %90 : vector<8x384xf32>
    %92 = vector.extract_strided_slice %91 {offsets = [0, 0], sizes = [8, 128], strides = [1, 1]} : vector<8x384xf32> to vector<8x128xf32>
    %93 = vector.extract_strided_slice %91 {offsets = [0, 128], sizes = [8, 128], strides = [1, 1]} : vector<8x384xf32> to vector<8x128xf32>
    %94 = vector.extract_strided_slice %91 {offsets = [0, 256], sizes = [8, 128], strides = [1, 1]} : vector<8x384xf32> to vector<8x128xf32>
    %95 = vector.extract_strided_slice %85 {offsets = [0, 384], sizes = [8, 128], strides = [1, 1]} : vector<8x512xf32> to vector<8x128xf32>
    %96 = math.tanh %95 : vector<8x128xf32>
    %97 = arith.mulf %93, %79 : vector<8x128xf32>
    %98 = arith.mulf %92, %96 : vector<8x128xf32>
    %99 = arith.addf %97, %98 : vector<8x128xf32>
    %100 = math.tanh %99 : vector<8x128xf32>
    %101 = arith.mulf %94, %100 : vector<8x128xf32>
    %102 = vector.extract_strided_slice %15 {offsets = [32, 0], sizes = [8, 512], strides = [1, 1]} : vector<64x512xf32> to vector<8x512xf32>
    %103 = arith.truncf %101 : vector<8x128xf32> to vector<8x128xbf16>
    %cst_30 = arith.constant dense<0.000000e+00> : vector<8x512xf32>
    %104 = tpu.matmul %103, %17, %cst_30 {dimension_numbers = #tpu.dot_dimension_numbers<[1], [0], [0], [1], [0, 0, 1, 1], [], []>} : vector<8x128xbf16>, vector<128x512xbf16>, vector<8x512xf32> -> vector<8x512xf32>
    %105 = arith.addf %102, %104 : vector<8x512xf32>
    %106 = vector.extract_strided_slice %105 {offsets = [0, 0], sizes = [8, 384], strides = [1, 1]} : vector<8x512xf32> to vector<8x384xf32>
    %107 = arith.negf %106 : vector<8x384xf32>
    %108 = math.exp %107 : vector<8x384xf32>
    %cst_31 = arith.constant 1.000000e+00 : f32
    %109 = vector.broadcast %cst_31 : f32 to vector<8x384xf32>
    %110 = arith.addf %109, %108 : vector<8x384xf32>
    %111 = arith.divf %109, %110 : vector<8x384xf32>
    %112 = vector.extract_strided_slice %111 {offsets = [0, 0], sizes = [8, 128], strides = [1, 1]} : vector<8x384xf32> to vector<8x128xf32>
    %113 = vector.extract_strided_slice %111 {offsets = [0, 128], sizes = [8, 128], strides = [1, 1]} : vector<8x384xf32> to vector<8x128xf32>
    %114 = vector.extract_strided_slice %111 {offsets = [0, 256], sizes = [8, 128], strides = [1, 1]} : vector<8x384xf32> to vector<8x128xf32>
    %115 = vector.extract_strided_slice %105 {offsets = [0, 384], sizes = [8, 128], strides = [1, 1]} : vector<8x512xf32> to vector<8x128xf32>
    %116 = math.tanh %115 : vector<8x128xf32>
    %117 = arith.mulf %113, %99 : vector<8x128xf32>
    %118 = arith.mulf %112, %116 : vector<8x128xf32>
    %119 = arith.addf %117, %118 : vector<8x128xf32>
    %120 = math.tanh %119 : vector<8x128xf32>
    %121 = arith.mulf %114, %120 : vector<8x128xf32>
    %122 = vector.extract_strided_slice %15 {offsets = [40, 0], sizes = [8, 512], strides = [1, 1]} : vector<64x512xf32> to vector<8x512xf32>
    %123 = arith.truncf %121 : vector<8x128xf32> to vector<8x128xbf16>
    %cst_32 = arith.constant dense<0.000000e+00> : vector<8x512xf32>
    %124 = tpu.matmul %123, %17, %cst_32 {dimension_numbers = #tpu.dot_dimension_numbers<[1], [0], [0], [1], [0, 0, 1, 1], [], []>} : vector<8x128xbf16>, vector<128x512xbf16>, vector<8x512xf32> -> vector<8x512xf32>
    %125 = arith.addf %122, %124 : vector<8x512xf32>
    %126 = vector.extract_strided_slice %125 {offsets = [0, 0], sizes = [8, 384], strides = [1, 1]} : vector<8x512xf32> to vector<8x384xf32>
    %127 = arith.negf %126 : vector<8x384xf32>
    %128 = math.exp %127 : vector<8x384xf32>
    %cst_33 = arith.constant 1.000000e+00 : f32
    %129 = vector.broadcast %cst_33 : f32 to vector<8x384xf32>
    %130 = arith.addf %129, %128 : vector<8x384xf32>
    %131 = arith.divf %129, %130 : vector<8x384xf32>
    %132 = vector.extract_strided_slice %131 {offsets = [0, 0], sizes = [8, 128], strides = [1, 1]} : vector<8x384xf32> to vector<8x128xf32>
    %133 = vector.extract_strided_slice %131 {offsets = [0, 128], sizes = [8, 128], strides = [1, 1]} : vector<8x384xf32> to vector<8x128xf32>
    %134 = vector.extract_strided_slice %131 {offsets = [0, 256], sizes = [8, 128], strides = [1, 1]} : vector<8x384xf32> to vector<8x128xf32>
    %135 = vector.extract_strided_slice %125 {offsets = [0, 384], sizes = [8, 128], strides = [1, 1]} : vector<8x512xf32> to vector<8x128xf32>
    %136 = math.tanh %135 : vector<8x128xf32>
    %137 = arith.mulf %133, %119 : vector<8x128xf32>
    %138 = arith.mulf %132, %136 : vector<8x128xf32>
    %139 = arith.addf %137, %138 : vector<8x128xf32>
    %140 = math.tanh %139 : vector<8x128xf32>
    %141 = arith.mulf %134, %140 : vector<8x128xf32>
    %142 = vector.extract_strided_slice %15 {offsets = [48, 0], sizes = [8, 512], strides = [1, 1]} : vector<64x512xf32> to vector<8x512xf32>
    %143 = arith.truncf %141 : vector<8x128xf32> to vector<8x128xbf16>
    %cst_34 = arith.constant dense<0.000000e+00> : vector<8x512xf32>
    %144 = tpu.matmul %143, %17, %cst_34 {dimension_numbers = #tpu.dot_dimension_numbers<[1], [0], [0], [1], [0, 0, 1, 1], [], []>} : vector<8x128xbf16>, vector<128x512xbf16>, vector<8x512xf32> -> vector<8x512xf32>
    %145 = arith.addf %142, %144 : vector<8x512xf32>
    %146 = vector.extract_strided_slice %145 {offsets = [0, 0], sizes = [8, 384], strides = [1, 1]} : vector<8x512xf32> to vector<8x384xf32>
    %147 = arith.negf %146 : vector<8x384xf32>
    %148 = math.exp %147 : vector<8x384xf32>
    %cst_35 = arith.constant 1.000000e+00 : f32
    %149 = vector.broadcast %cst_35 : f32 to vector<8x384xf32>
    %150 = arith.addf %149, %148 : vector<8x384xf32>
    %151 = arith.divf %149, %150 : vector<8x384xf32>
    %152 = vector.extract_strided_slice %151 {offsets = [0, 0], sizes = [8, 128], strides = [1, 1]} : vector<8x384xf32> to vector<8x128xf32>
    %153 = vector.extract_strided_slice %151 {offsets = [0, 128], sizes = [8, 128], strides = [1, 1]} : vector<8x384xf32> to vector<8x128xf32>
    %154 = vector.extract_strided_slice %151 {offsets = [0, 256], sizes = [8, 128], strides = [1, 1]} : vector<8x384xf32> to vector<8x128xf32>
    %155 = vector.extract_strided_slice %145 {offsets = [0, 384], sizes = [8, 128], strides = [1, 1]} : vector<8x512xf32> to vector<8x128xf32>
    %156 = math.tanh %155 : vector<8x128xf32>
    %157 = arith.mulf %153, %139 : vector<8x128xf32>
    %158 = arith.mulf %152, %156 : vector<8x128xf32>
    %159 = arith.addf %157, %158 : vector<8x128xf32>
    %160 = math.tanh %159 : vector<8x128xf32>
    %161 = arith.mulf %154, %160 : vector<8x128xf32>
    %162 = vector.extract_strided_slice %15 {offsets = [56, 0], sizes = [8, 512], strides = [1, 1]} : vector<64x512xf32> to vector<8x512xf32>
    %163 = arith.truncf %161 : vector<8x128xf32> to vector<8x128xbf16>
    %cst_36 = arith.constant dense<0.000000e+00> : vector<8x512xf32>
    %164 = tpu.matmul %163, %17, %cst_36 {dimension_numbers = #tpu.dot_dimension_numbers<[1], [0], [0], [1], [0, 0, 1, 1], [], []>} : vector<8x128xbf16>, vector<128x512xbf16>, vector<8x512xf32> -> vector<8x512xf32>
    %165 = arith.addf %162, %164 : vector<8x512xf32>
    %166 = vector.extract_strided_slice %165 {offsets = [0, 0], sizes = [8, 384], strides = [1, 1]} : vector<8x512xf32> to vector<8x384xf32>
    %167 = arith.negf %166 : vector<8x384xf32>
    %168 = math.exp %167 : vector<8x384xf32>
    %cst_37 = arith.constant 1.000000e+00 : f32
    %169 = vector.broadcast %cst_37 : f32 to vector<8x384xf32>
    %170 = arith.addf %169, %168 : vector<8x384xf32>
    %171 = arith.divf %169, %170 : vector<8x384xf32>
    %172 = vector.extract_strided_slice %171 {offsets = [0, 0], sizes = [8, 128], strides = [1, 1]} : vector<8x384xf32> to vector<8x128xf32>
    %173 = vector.extract_strided_slice %171 {offsets = [0, 128], sizes = [8, 128], strides = [1, 1]} : vector<8x384xf32> to vector<8x128xf32>
    %174 = vector.extract_strided_slice %171 {offsets = [0, 256], sizes = [8, 128], strides = [1, 1]} : vector<8x384xf32> to vector<8x128xf32>
    %175 = vector.extract_strided_slice %165 {offsets = [0, 384], sizes = [8, 128], strides = [1, 1]} : vector<8x512xf32> to vector<8x128xf32>
    %176 = math.tanh %175 : vector<8x128xf32>
    %177 = arith.mulf %173, %159 : vector<8x128xf32>
    %178 = arith.mulf %172, %176 : vector<8x128xf32>
    %179 = arith.addf %177, %178 : vector<8x128xf32>
    %180 = math.tanh %179 : vector<8x128xf32>
    %181 = arith.mulf %174, %180 : vector<8x128xf32>
    %c0_38 = arith.constant 0 : index
    %c0_39 = arith.constant 0 : index
    %c0_40 = arith.constant 0 : index
    %182 = vector.load %arg12[%c0_38, %c0_39, %c0_40] : memref<2x8x128xf32, #tpu.memory_space<vmem>>, vector<1x8x128xf32>
    %183 = vector.shape_cast %182 : vector<1x8x128xf32> to vector<8x128xf32>
    %184 = vector.shape_cast %181 : vector<8x128xf32> to vector<1x8x128xf32>
    tpu.vector_store %arg12[%c0_38, %c0_39, %c0_40], %184 {strides = array<i32>} : memref<2x8x128xf32, #tpu.memory_space<vmem>>, vector<1x8x128xf32>,
    %c0_41 = arith.constant 0 : index
    %c0_42 = arith.constant 0 : index
    %c0_43 = arith.constant 0 : index
    %185 = vector.load %arg13[%c0_41, %c0_42, %c0_43] : memref<2x8x128xf32, #tpu.memory_space<vmem>>, vector<1x8x128xf32>
    %186 = vector.shape_cast %185 : vector<1x8x128xf32> to vector<8x128xf32>
    %187 = vector.shape_cast %179 : vector<8x128xf32> to vector<1x8x128xf32>
    tpu.vector_store %arg13[%c0_41, %c0_42, %c0_43], %187 {strides = array<i32>} : memref<2x8x128xf32, #tpu.memory_space<vmem>>, vector<1x8x128xf32>,
    %c0_44 = arith.constant 0 : index
    %c0_45 = arith.constant 0 : index
    %188 = vector.load %arg3[%c0_44, %c0_45] : memref<64x128xbf16, #tpu.memory_space<vmem>>, vector<64x128xbf16>
    %c2 = arith.constant 2 : index
    %c0_46 = arith.constant 0 : index
    %c0_47 = arith.constant 0 : index
    %189 = vector.load %arg5[%c2, %c0_46, %c0_47] : memref<4x128x512xbf16, #tpu.memory_space<vmem>>, vector<1x128x512xbf16>
    %190 = vector.shape_cast %189 : vector<1x128x512xbf16> to vector<128x512xbf16>
    %cst_48 = arith.constant dense<0.000000e+00> : vector<64x512xf32>
    %191 = tpu.matmul %188, %190, %cst_48 {dimension_numbers = #tpu.dot_dimension_numbers<[1], [0], [0], [1], [0, 0, 1, 1], [], []>} : vector<64x128xbf16>, vector<128x512xbf16>, vector<64x512xf32> -> vector<64x512xf32>
    %c0_49 = arith.constant 0 : index
    %c0_50 = arith.constant 0 : index
    %192 = vector.load %arg4[%c0_49, %c0_50] : memref<64x128xbf16, #tpu.memory_space<vmem>>, vector<64x128xbf16>
    %c3 = arith.constant 3 : index
    %c0_51 = arith.constant 0 : index
    %c0_52 = arith.constant 0 : index
    %193 = vector.load %arg5[%c3, %c0_51, %c0_52] : memref<4x128x512xbf16, #tpu.memory_space<vmem>>, vector<1x128x512xbf16>
    %194 = vector.shape_cast %193 : vector<1x128x512xbf16> to vector<128x512xbf16>
    %cst_53 = arith.constant dense<0.000000e+00> : vector<64x512xf32>
    %195 = tpu.matmul %192, %194, %cst_53 {dimension_numbers = #tpu.dot_dimension_numbers<[1], [0], [0], [1], [0, 0, 1, 1], [], []>} : vector<64x128xbf16>, vector<128x512xbf16>, vector<64x512xf32> -> vector<64x512xf32>
    %196 = arith.addf %191, %195 : vector<64x512xf32>
    %c1_54 = arith.constant 1 : index
    %c0_55 = arith.constant 0 : index
    %c0_56 = arith.constant 0 : index
    %197 = vector.load %arg7[%c1_54, %c0_55, %c0_56] : memref<2x1x512xf32, #tpu.memory_space<vmem>>, vector<1x1x512xf32>
    %198 = vector.shape_cast %197 : vector<1x1x512xf32> to vector<1x512xf32>
    %199 = vector.broadcast %198 : vector<1x512xf32> to vector<64x512xf32>
    %200 = arith.addf %196, %199 : vector<64x512xf32>
    %c1_57 = arith.constant 1 : index
    %c0_58 = arith.constant 0 : index
    %c0_59 = arith.constant 0 : index
    %201 = vector.load %arg6[%c1_57, %c0_58, %c0_59] : memref<2x128x512xbf16, #tpu.memory_space<vmem>>, vector<1x128x512xbf16>
    %202 = vector.shape_cast %201 : vector<1x128x512xbf16> to vector<128x512xbf16>
    %c1_60 = arith.constant 1 : index
    %c0_61 = arith.constant 0 : index
    %c0_62 = arith.constant 0 : index
    %203 = vector.load %arg12[%c1_60, %c0_61, %c0_62] : memref<2x8x128xf32, #tpu.memory_space<vmem>>, vector<1x8x128xf32>
    %204 = vector.shape_cast %203 : vector<1x8x128xf32> to vector<8x128xf32>
    %c1_63 = arith.constant 1 : index
    %c0_64 = arith.constant 0 : index
    %c0_65 = arith.constant 0 : index
    %205 = vector.load %arg13[%c1_63, %c0_64, %c0_65] : memref<2x8x128xf32, #tpu.memory_space<vmem>>, vector<1x8x128xf32>
    %206 = vector.shape_cast %205 : vector<1x8x128xf32> to vector<8x128xf32>
    %207 = vector.extract_strided_slice %200 {offsets = [56, 0], sizes = [8, 512], strides = [1, 1]} : vector<64x512xf32> to vector<8x512xf32>
    %208 = arith.truncf %204 : vector<8x128xf32> to vector<8x128xbf16>
    %cst_66 = arith.constant dense<0.000000e+00> : vector<8x512xf32>
    %209 = tpu.matmul %208, %202, %cst_66 {dimension_numbers = #tpu.dot_dimension_numbers<[1], [0], [0], [1], [0, 0, 1, 1], [], []>} : vector<8x128xbf16>, vector<128x512xbf16>, vector<8x512xf32> -> vector<8x512xf32>
    %210 = arith.addf %207, %209 : vector<8x512xf32>
    %211 = vector.extract_strided_slice %210 {offsets = [0, 0], sizes = [8, 384], strides = [1, 1]} : vector<8x512xf32> to vector<8x384xf32>
    %212 = arith.negf %211 : vector<8x384xf32>
    %213 = math.exp %212 : vector<8x384xf32>
    %cst_67 = arith.constant 1.000000e+00 : f32
    %214 = vector.broadcast %cst_67 : f32 to vector<8x384xf32>
    %215 = arith.addf %214, %213 : vector<8x384xf32>
    %216 = arith.divf %214, %215 : vector<8x384xf32>
    %217 = vector.extract_strided_slice %216 {offsets = [0, 0], sizes = [8, 128], strides = [1, 1]} : vector<8x384xf32> to vector<8x128xf32>
    %218 = vector.extract_strided_slice %216 {offsets = [0, 128], sizes = [8, 128], strides = [1, 1]} : vector<8x384xf32> to vector<8x128xf32>
    %219 = vector.extract_strided_slice %216 {offsets = [0, 256], sizes = [8, 128], strides = [1, 1]} : vector<8x384xf32> to vector<8x128xf32>
    %220 = vector.extract_strided_slice %210 {offsets = [0, 384], sizes = [8, 128], strides = [1, 1]} : vector<8x512xf32> to vector<8x128xf32>
    %221 = math.tanh %220 : vector<8x128xf32>
    %222 = arith.mulf %218, %206 : vector<8x128xf32>
    %223 = arith.mulf %217, %221 : vector<8x128xf32>
    %224 = arith.addf %222, %223 : vector<8x128xf32>
    %225 = math.tanh %224 : vector<8x128xf32>
    %226 = arith.mulf %219, %225 : vector<8x128xf32>
    %227 = vector.extract_strided_slice %200 {offsets = [48, 0], sizes = [8, 512], strides = [1, 1]} : vector<64x512xf32> to vector<8x512xf32>
    %228 = arith.truncf %226 : vector<8x128xf32> to vector<8x128xbf16>
    %cst_68 = arith.constant dense<0.000000e+00> : vector<8x512xf32>
    %229 = tpu.matmul %228, %202, %cst_68 {dimension_numbers = #tpu.dot_dimension_numbers<[1], [0], [0], [1], [0, 0, 1, 1], [], []>} : vector<8x128xbf16>, vector<128x512xbf16>, vector<8x512xf32> -> vector<8x512xf32>
    %230 = arith.addf %227, %229 : vector<8x512xf32>
    %231 = vector.extract_strided_slice %230 {offsets = [0, 0], sizes = [8, 384], strides = [1, 1]} : vector<8x512xf32> to vector<8x384xf32>
    %232 = arith.negf %231 : vector<8x384xf32>
    %233 = math.exp %232 : vector<8x384xf32>
    %cst_69 = arith.constant 1.000000e+00 : f32
    %234 = vector.broadcast %cst_69 : f32 to vector<8x384xf32>
    %235 = arith.addf %234, %233 : vector<8x384xf32>
    %236 = arith.divf %234, %235 : vector<8x384xf32>
    %237 = vector.extract_strided_slice %236 {offsets = [0, 0], sizes = [8, 128], strides = [1, 1]} : vector<8x384xf32> to vector<8x128xf32>
    %238 = vector.extract_strided_slice %236 {offsets = [0, 128], sizes = [8, 128], strides = [1, 1]} : vector<8x384xf32> to vector<8x128xf32>
    %239 = vector.extract_strided_slice %236 {offsets = [0, 256], sizes = [8, 128], strides = [1, 1]} : vector<8x384xf32> to vector<8x128xf32>
    %240 = vector.extract_strided_slice %230 {offsets = [0, 384], sizes = [8, 128], strides = [1, 1]} : vector<8x512xf32> to vector<8x128xf32>
    %241 = math.tanh %240 : vector<8x128xf32>
    %242 = arith.mulf %238, %224 : vector<8x128xf32>
    %243 = arith.mulf %237, %241 : vector<8x128xf32>
    %244 = arith.addf %242, %243 : vector<8x128xf32>
    %245 = math.tanh %244 : vector<8x128xf32>
    %246 = arith.mulf %239, %245 : vector<8x128xf32>
    %247 = vector.extract_strided_slice %200 {offsets = [40, 0], sizes = [8, 512], strides = [1, 1]} : vector<64x512xf32> to vector<8x512xf32>
    %248 = arith.truncf %246 : vector<8x128xf32> to vector<8x128xbf16>
    %cst_70 = arith.constant dense<0.000000e+00> : vector<8x512xf32>
    %249 = tpu.matmul %248, %202, %cst_70 {dimension_numbers = #tpu.dot_dimension_numbers<[1], [0], [0], [1], [0, 0, 1, 1], [], []>} : vector<8x128xbf16>, vector<128x512xbf16>, vector<8x512xf32> -> vector<8x512xf32>
    %250 = arith.addf %247, %249 : vector<8x512xf32>
    %251 = vector.extract_strided_slice %250 {offsets = [0, 0], sizes = [8, 384], strides = [1, 1]} : vector<8x512xf32> to vector<8x384xf32>
    %252 = arith.negf %251 : vector<8x384xf32>
    %253 = math.exp %252 : vector<8x384xf32>
    %cst_71 = arith.constant 1.000000e+00 : f32
    %254 = vector.broadcast %cst_71 : f32 to vector<8x384xf32>
    %255 = arith.addf %254, %253 : vector<8x384xf32>
    %256 = arith.divf %254, %255 : vector<8x384xf32>
    %257 = vector.extract_strided_slice %256 {offsets = [0, 0], sizes = [8, 128], strides = [1, 1]} : vector<8x384xf32> to vector<8x128xf32>
    %258 = vector.extract_strided_slice %256 {offsets = [0, 128], sizes = [8, 128], strides = [1, 1]} : vector<8x384xf32> to vector<8x128xf32>
    %259 = vector.extract_strided_slice %256 {offsets = [0, 256], sizes = [8, 128], strides = [1, 1]} : vector<8x384xf32> to vector<8x128xf32>
    %260 = vector.extract_strided_slice %250 {offsets = [0, 384], sizes = [8, 128], strides = [1, 1]} : vector<8x512xf32> to vector<8x128xf32>
    %261 = math.tanh %260 : vector<8x128xf32>
    %262 = arith.mulf %258, %244 : vector<8x128xf32>
    %263 = arith.mulf %257, %261 : vector<8x128xf32>
    %264 = arith.addf %262, %263 : vector<8x128xf32>
    %265 = math.tanh %264 : vector<8x128xf32>
    %266 = arith.mulf %259, %265 : vector<8x128xf32>
    %267 = vector.extract_strided_slice %200 {offsets = [32, 0], sizes = [8, 512], strides = [1, 1]} : vector<64x512xf32> to vector<8x512xf32>
    %268 = arith.truncf %266 : vector<8x128xf32> to vector<8x128xbf16>
    %cst_72 = arith.constant dense<0.000000e+00> : vector<8x512xf32>
    %269 = tpu.matmul %268, %202, %cst_72 {dimension_numbers = #tpu.dot_dimension_numbers<[1], [0], [0], [1], [0, 0, 1, 1], [], []>} : vector<8x128xbf16>, vector<128x512xbf16>, vector<8x512xf32> -> vector<8x512xf32>
    %270 = arith.addf %267, %269 : vector<8x512xf32>
    %271 = vector.extract_strided_slice %270 {offsets = [0, 0], sizes = [8, 384], strides = [1, 1]} : vector<8x512xf32> to vector<8x384xf32>
    %272 = arith.negf %271 : vector<8x384xf32>
    %273 = math.exp %272 : vector<8x384xf32>
    %cst_73 = arith.constant 1.000000e+00 : f32
    %274 = vector.broadcast %cst_73 : f32 to vector<8x384xf32>
    %275 = arith.addf %274, %273 : vector<8x384xf32>
    %276 = arith.divf %274, %275 : vector<8x384xf32>
    %277 = vector.extract_strided_slice %276 {offsets = [0, 0], sizes = [8, 128], strides = [1, 1]} : vector<8x384xf32> to vector<8x128xf32>
    %278 = vector.extract_strided_slice %276 {offsets = [0, 128], sizes = [8, 128], strides = [1, 1]} : vector<8x384xf32> to vector<8x128xf32>
    %279 = vector.extract_strided_slice %276 {offsets = [0, 256], sizes = [8, 128], strides = [1, 1]} : vector<8x384xf32> to vector<8x128xf32>
    %280 = vector.extract_strided_slice %270 {offsets = [0, 384], sizes = [8, 128], strides = [1, 1]} : vector<8x512xf32> to vector<8x128xf32>
    %281 = math.tanh %280 : vector<8x128xf32>
    %282 = arith.mulf %278, %264 : vector<8x128xf32>
    %283 = arith.mulf %277, %281 : vector<8x128xf32>
    %284 = arith.addf %282, %283 : vector<8x128xf32>
    %285 = math.tanh %284 : vector<8x128xf32>
    %286 = arith.mulf %279, %285 : vector<8x128xf32>
    %287 = vector.extract_strided_slice %200 {offsets = [24, 0], sizes = [8, 512], strides = [1, 1]} : vector<64x512xf32> to vector<8x512xf32>
    %288 = arith.truncf %286 : vector<8x128xf32> to vector<8x128xbf16>
    %cst_74 = arith.constant dense<0.000000e+00> : vector<8x512xf32>
    %289 = tpu.matmul %288, %202, %cst_74 {dimension_numbers = #tpu.dot_dimension_numbers<[1], [0], [0], [1], [0, 0, 1, 1], [], []>} : vector<8x128xbf16>, vector<128x512xbf16>, vector<8x512xf32> -> vector<8x512xf32>
    %290 = arith.addf %287, %289 : vector<8x512xf32>
    %291 = vector.extract_strided_slice %290 {offsets = [0, 0], sizes = [8, 384], strides = [1, 1]} : vector<8x512xf32> to vector<8x384xf32>
    %292 = arith.negf %291 : vector<8x384xf32>
    %293 = math.exp %292 : vector<8x384xf32>
    %cst_75 = arith.constant 1.000000e+00 : f32
    %294 = vector.broadcast %cst_75 : f32 to vector<8x384xf32>
    %295 = arith.addf %294, %293 : vector<8x384xf32>
    %296 = arith.divf %294, %295 : vector<8x384xf32>
    %297 = vector.extract_strided_slice %296 {offsets = [0, 0], sizes = [8, 128], strides = [1, 1]} : vector<8x384xf32> to vector<8x128xf32>
    %298 = vector.extract_strided_slice %296 {offsets = [0, 128], sizes = [8, 128], strides = [1, 1]} : vector<8x384xf32> to vector<8x128xf32>
    %299 = vector.extract_strided_slice %296 {offsets = [0, 256], sizes = [8, 128], strides = [1, 1]} : vector<8x384xf32> to vector<8x128xf32>
    %300 = vector.extract_strided_slice %290 {offsets = [0, 384], sizes = [8, 128], strides = [1, 1]} : vector<8x512xf32> to vector<8x128xf32>
    %301 = math.tanh %300 : vector<8x128xf32>
    %302 = arith.mulf %298, %284 : vector<8x128xf32>
    %303 = arith.mulf %297, %301 : vector<8x128xf32>
    %304 = arith.addf %302, %303 : vector<8x128xf32>
    %305 = math.tanh %304 : vector<8x128xf32>
    %306 = arith.mulf %299, %305 : vector<8x128xf32>
    %307 = vector.extract_strided_slice %200 {offsets = [16, 0], sizes = [8, 512], strides = [1, 1]} : vector<64x512xf32> to vector<8x512xf32>
    %308 = arith.truncf %306 : vector<8x128xf32> to vector<8x128xbf16>
    %cst_76 = arith.constant dense<0.000000e+00> : vector<8x512xf32>
    %309 = tpu.matmul %308, %202, %cst_76 {dimension_numbers = #tpu.dot_dimension_numbers<[1], [0], [0], [1], [0, 0, 1, 1], [], []>} : vector<8x128xbf16>, vector<128x512xbf16>, vector<8x512xf32> -> vector<8x512xf32>
    %310 = arith.addf %307, %309 : vector<8x512xf32>
    %311 = vector.extract_strided_slice %310 {offsets = [0, 0], sizes = [8, 384], strides = [1, 1]} : vector<8x512xf32> to vector<8x384xf32>
    %312 = arith.negf %311 : vector<8x384xf32>
    %313 = math.exp %312 : vector<8x384xf32>
    %cst_77 = arith.constant 1.000000e+00 : f32
    %314 = vector.broadcast %cst_77 : f32 to vector<8x384xf32>
    %315 = arith.addf %314, %313 : vector<8x384xf32>
    %316 = arith.divf %314, %315 : vector<8x384xf32>
    %317 = vector.extract_strided_slice %316 {offsets = [0, 0], sizes = [8, 128], strides = [1, 1]} : vector<8x384xf32> to vector<8x128xf32>
    %318 = vector.extract_strided_slice %316 {offsets = [0, 128], sizes = [8, 128], strides = [1, 1]} : vector<8x384xf32> to vector<8x128xf32>
    %319 = vector.extract_strided_slice %316 {offsets = [0, 256], sizes = [8, 128], strides = [1, 1]} : vector<8x384xf32> to vector<8x128xf32>
    %320 = vector.extract_strided_slice %310 {offsets = [0, 384], sizes = [8, 128], strides = [1, 1]} : vector<8x512xf32> to vector<8x128xf32>
    %321 = math.tanh %320 : vector<8x128xf32>
    %322 = arith.mulf %318, %304 : vector<8x128xf32>
    %323 = arith.mulf %317, %321 : vector<8x128xf32>
    %324 = arith.addf %322, %323 : vector<8x128xf32>
    %325 = math.tanh %324 : vector<8x128xf32>
    %326 = arith.mulf %319, %325 : vector<8x128xf32>
    %327 = vector.extract_strided_slice %200 {offsets = [8, 0], sizes = [8, 512], strides = [1, 1]} : vector<64x512xf32> to vector<8x512xf32>
    %328 = arith.truncf %326 : vector<8x128xf32> to vector<8x128xbf16>
    %cst_78 = arith.constant dense<0.000000e+00> : vector<8x512xf32>
    %329 = tpu.matmul %328, %202, %cst_78 {dimension_numbers = #tpu.dot_dimension_numbers<[1], [0], [0], [1], [0, 0, 1, 1], [], []>} : vector<8x128xbf16>, vector<128x512xbf16>, vector<8x512xf32> -> vector<8x512xf32>
    %330 = arith.addf %327, %329 : vector<8x512xf32>
    %331 = vector.extract_strided_slice %330 {offsets = [0, 0], sizes = [8, 384], strides = [1, 1]} : vector<8x512xf32> to vector<8x384xf32>
    %332 = arith.negf %331 : vector<8x384xf32>
    %333 = math.exp %332 : vector<8x384xf32>
    %cst_79 = arith.constant 1.000000e+00 : f32
    %334 = vector.broadcast %cst_79 : f32 to vector<8x384xf32>
    %335 = arith.addf %334, %333 : vector<8x384xf32>
    %336 = arith.divf %334, %335 : vector<8x384xf32>
    %337 = vector.extract_strided_slice %336 {offsets = [0, 0], sizes = [8, 128], strides = [1, 1]} : vector<8x384xf32> to vector<8x128xf32>
    %338 = vector.extract_strided_slice %336 {offsets = [0, 128], sizes = [8, 128], strides = [1, 1]} : vector<8x384xf32> to vector<8x128xf32>
    %339 = vector.extract_strided_slice %336 {offsets = [0, 256], sizes = [8, 128], strides = [1, 1]} : vector<8x384xf32> to vector<8x128xf32>
    %340 = vector.extract_strided_slice %330 {offsets = [0, 384], sizes = [8, 128], strides = [1, 1]} : vector<8x512xf32> to vector<8x128xf32>
    %341 = math.tanh %340 : vector<8x128xf32>
    %342 = arith.mulf %338, %324 : vector<8x128xf32>
    %343 = arith.mulf %337, %341 : vector<8x128xf32>
    %344 = arith.addf %342, %343 : vector<8x128xf32>
    %345 = math.tanh %344 : vector<8x128xf32>
    %346 = arith.mulf %339, %345 : vector<8x128xf32>
    %347 = vector.extract_strided_slice %200 {offsets = [0, 0], sizes = [8, 512], strides = [1, 1]} : vector<64x512xf32> to vector<8x512xf32>
    %348 = arith.truncf %346 : vector<8x128xf32> to vector<8x128xbf16>
    %cst_80 = arith.constant dense<0.000000e+00> : vector<8x512xf32>
    %349 = tpu.matmul %348, %202, %cst_80 {dimension_numbers = #tpu.dot_dimension_numbers<[1], [0], [0], [1], [0, 0, 1, 1], [], []>} : vector<8x128xbf16>, vector<128x512xbf16>, vector<8x512xf32> -> vector<8x512xf32>
    %350 = arith.addf %347, %349 : vector<8x512xf32>
    %351 = vector.extract_strided_slice %350 {offsets = [0, 0], sizes = [8, 384], strides = [1, 1]} : vector<8x512xf32> to vector<8x384xf32>
    %352 = arith.negf %351 : vector<8x384xf32>
    %353 = math.exp %352 : vector<8x384xf32>
    %cst_81 = arith.constant 1.000000e+00 : f32
    %354 = vector.broadcast %cst_81 : f32 to vector<8x384xf32>
    %355 = arith.addf %354, %353 : vector<8x384xf32>
    %356 = arith.divf %354, %355 : vector<8x384xf32>
    %357 = vector.extract_strided_slice %356 {offsets = [0, 0], sizes = [8, 128], strides = [1, 1]} : vector<8x384xf32> to vector<8x128xf32>
    %358 = vector.extract_strided_slice %356 {offsets = [0, 128], sizes = [8, 128], strides = [1, 1]} : vector<8x384xf32> to vector<8x128xf32>
    %359 = vector.extract_strided_slice %356 {offsets = [0, 256], sizes = [8, 128], strides = [1, 1]} : vector<8x384xf32> to vector<8x128xf32>
    %360 = vector.extract_strided_slice %350 {offsets = [0, 384], sizes = [8, 128], strides = [1, 1]} : vector<8x512xf32> to vector<8x128xf32>
    %361 = math.tanh %360 : vector<8x128xf32>
    %362 = arith.mulf %358, %344 : vector<8x128xf32>
    %363 = arith.mulf %357, %361 : vector<8x128xf32>
    %364 = arith.addf %362, %363 : vector<8x128xf32>
    %365 = math.tanh %364 : vector<8x128xf32>
    %366 = arith.mulf %359, %365 : vector<8x128xf32>
    %c1_82 = arith.constant 1 : index
    %c0_83 = arith.constant 0 : index
    %c0_84 = arith.constant 0 : index
    %367 = vector.load %arg12[%c1_82, %c0_83, %c0_84] : memref<2x8x128xf32, #tpu.memory_space<vmem>>, vector<1x8x128xf32>
    %368 = vector.shape_cast %367 : vector<1x8x128xf32> to vector<8x128xf32>
    %369 = vector.shape_cast %366 : vector<8x128xf32> to vector<1x8x128xf32>
    tpu.vector_store %arg12[%c1_82, %c0_83, %c0_84], %369 {strides = array<i32>} : memref<2x8x128xf32, #tpu.memory_space<vmem>>, vector<1x8x128xf32>,
    %c1_85 = arith.constant 1 : index
    %c0_86 = arith.constant 0 : index
    %c0_87 = arith.constant 0 : index
    %370 = vector.load %arg13[%c1_85, %c0_86, %c0_87] : memref<2x8x128xf32, #tpu.memory_space<vmem>>, vector<1x8x128xf32>
    %371 = vector.shape_cast %370 : vector<1x8x128xf32> to vector<8x128xf32>
    %372 = vector.shape_cast %364 : vector<8x128xf32> to vector<1x8x128xf32>
    tpu.vector_store %arg13[%c1_85, %c0_86, %c0_87], %372 {strides = array<i32>} : memref<2x8x128xf32, #tpu.memory_space<vmem>>, vector<1x8x128xf32>,
    %c0_i32_88 = arith.constant 0 : i32
    %373 = arith.cmpi eq, %arg0, %c0_i32_88 : i32
    %374 = arith.extui %373 : i1 to i32
    %c0_i32_89 = arith.constant 0 : i32
    %375 = arith.cmpi ne, %374, %c0_i32_89 : i32
    scf.if %375 {
      %c0_90 = arith.constant 0 : index
      %c0_91 = arith.constant 0 : index
      %c0_92 = arith.constant 0 : index
      %376 = vector.load %arg12[%c0_90, %c0_91, %c0_92] : memref<2x8x128xf32, #tpu.memory_space<vmem>>, vector<2x8x128xf32>
      %c0_93 = arith.constant 0 : index
      %c0_94 = arith.constant 0 : index
      %c0_95 = arith.constant 0 : index
      %377 = vector.load %arg10[%c0_93, %c0_94, %c0_95] : memref<2x8x128xf32, #tpu.memory_space<vmem>>, vector<2x8x128xf32>
      tpu.vector_store %arg10[%c0_93, %c0_94, %c0_95], %376 {strides = array<i32>} : memref<2x8x128xf32, #tpu.memory_space<vmem>>, vector<2x8x128xf32>,
      %c0_96 = arith.constant 0 : index
      %c0_97 = arith.constant 0 : index
      %c0_98 = arith.constant 0 : index
      %378 = vector.load %arg13[%c0_96, %c0_97, %c0_98] : memref<2x8x128xf32, #tpu.memory_space<vmem>>, vector<2x8x128xf32>
      %c0_99 = arith.constant 0 : index
      %c0_100 = arith.constant 0 : index
      %c0_101 = arith.constant 0 : index
      %379 = vector.load %arg11[%c0_99, %c0_100, %c0_101] : memref<2x8x128xf32, #tpu.memory_space<vmem>>, vector<2x8x128xf32>
      tpu.vector_store %arg11[%c0_99, %c0_100, %c0_101], %378 {strides = array<i32>} : memref<2x8x128xf32, #tpu.memory_space<vmem>>, vector<2x8x128xf32>,
    } else {
    }
    return
  }
  func.func @transform_0(%arg0: i32) -> (i32, i32) {
    %c0_i32 = arith.constant 0 : i32
    %c0_i32_0 = arith.constant 0 : i32
    return %arg0, %c0_i32 : i32, i32
  }
  func.func @transform_1(%arg0: i32) -> (i32, i32) {
    %c0_i32 = arith.constant 0 : i32
    %c0_i32_0 = arith.constant 0 : i32
    return %arg0, %c0_i32 : i32, i32
  }
  func.func @transform_2(%arg0: i32) -> (i32, i32) {
    %c0_i32 = arith.constant 0 : i32
    %0 = arith.subi %c0_i32, %arg0 : i32
    %c0_i32_0 = arith.constant 0 : i32
    %c0_i32_1 = arith.constant 0 : i32
    return %0, %c0_i32_0 : i32, i32
  }
  func.func @transform_3(%arg0: i32) -> (i32, i32) {
    %c0_i32 = arith.constant 0 : i32
    %0 = arith.subi %c0_i32, %arg0 : i32
    %c0_i32_0 = arith.constant 0 : i32
    %c0_i32_1 = arith.constant 0 : i32
    return %0, %c0_i32_0 : i32, i32
  }
  func.func @transform_4(%arg0: i32) -> (i32, i32, i32) {
    %c0_i32 = arith.constant 0 : i32
    %c0_i32_0 = arith.constant 0 : i32
    %c0_i32_1 = arith.constant 0 : i32
    %c0_i32_2 = arith.constant 0 : i32
    return %c0_i32, %c0_i32_0, %c0_i32_1 : i32, i32, i32
  }
  func.func @transform_5(%arg0: i32) -> (i32, i32, i32) {
    %c0_i32 = arith.constant 0 : i32
    %c0_i32_0 = arith.constant 0 : i32
    %c0_i32_1 = arith.constant 0 : i32
    %c0_i32_2 = arith.constant 0 : i32
    return %c0_i32, %c0_i32_0, %c0_i32_1 : i32, i32, i32
  }
  func.func @transform_6(%arg0: i32) -> (i32, i32, i32) {
    %c0_i32 = arith.constant 0 : i32
    %c0_i32_0 = arith.constant 0 : i32
    %c0_i32_1 = arith.constant 0 : i32
    %c0_i32_2 = arith.constant 0 : i32
    return %c0_i32, %c0_i32_0, %c0_i32_1 : i32, i32, i32
  }
  func.func @transform_7(%arg0: i32) -> (i32, i32, i32) {
    %c0_i32 = arith.constant 0 : i32
    %c0_i32_0 = arith.constant 0 : i32
    %c0_i32_1 = arith.constant 0 : i32
    %c0_i32_2 = arith.constant 0 : i32
    return %c0_i32, %c0_i32_0, %c0_i32_1 : i32, i32, i32
  }
  func.func @transform_8(%arg0: i32) -> (i32, i32, i32) {
    %c0_i32 = arith.constant 0 : i32
    %c0_i32_0 = arith.constant 0 : i32
    %c0_i32_1 = arith.constant 0 : i32
    %c0_i32_2 = arith.constant 0 : i32
    return %c0_i32, %c0_i32_0, %c0_i32_1 : i32, i32, i32
  }
  func.func @transform_9(%arg0: i32) -> (i32, i32, i32) {
    %c0_i32 = arith.constant 0 : i32
    %c0_i32_0 = arith.constant 0 : i32
    %c0_i32_1 = arith.constant 0 : i32
    %c0_i32_2 = arith.constant 0 : i32
    return %c0_i32, %c0_i32_0, %c0_i32_1 : i32, i32, i32
  }
  func.func @transform_10(%arg0: i32) -> (i32, i32, i32) {
    %c0_i32 = arith.constant 0 : i32
    %c0_i32_0 = arith.constant 0 : i32
    %c0_i32_1 = arith.constant 0 : i32
    %c0_i32_2 = arith.constant 0 : i32
    return %c0_i32, %c0_i32_0, %c0_i32_1 : i32, i32, i32
  }
}

</mosaic_0001>

<bundles_post_ra>
// kernel: encoder_forward.2
= control target key start
LH: loop header
LB: loop body
LE: loop exit
PB: predicated region body
PF: predicated region fallthrough
CT: control target
= control target key end

     0   :  { %s6141_s2 = inlined_call_operand.vmem [shape: bf16[2,128,512], index: 2, kind: input, shape index: {}]   ;;  %s6142_s3 = inlined_call_operand.vmem [shape: bf16[2,128,512], index: 3, kind: input, shape index: {}]   ;;  %s6143_s0 = inlined_call_operand.vmem [shape: bf16[64,128], index: 0, kind: input, shape index: {}, may-alias: {0,1}]   ;;  %s6144_s5 = inlined_call_operand.vmem [shape: f32[2,8,128], index: 5, kind: input, shape index: {}]   ;;  %s6145_s4 = inlined_call_operand.vmem [shape: f32[2,1,512], index: 4, kind: input, shape index: {}]   ;;  %s6146_s6 = inlined_call_operand.vmem [shape: f32[2,8,128], index: 6, kind: input, shape index: {}]   ;;  %s6147_s7 = inlined_call_operand.vmem [shape: bf16[64,128], index: 7, kind: output, shape index: {0}]   ;;  %s6148_s1 = inlined_call_operand.vmem [shape: bf16[64,128], index: 1, kind: input, shape index: {}, may-alias: {0,1}]   ;;  %s6149_s10 = inlined_call_operand.vmem [shape: f32[2,8,128], index: 10, kind: output, shape index: {3}]   ;;  %s6150_s9 = inlined_call_operand.vmem [shape: f32[2,8,128], index: 9, kind: output, shape index: {2}]   ;;  %s6151_s8 = inlined_call_operand.vmem [shape: bf16[64,128], index: 8, kind: output, shape index: {1}]  }
   0x1   :  { %v3298_v0 = vld [vmem:[%s6141_s2 + $0xe0] sm:$0xf]  ;;  %v3859_v1 = vld [vmem:[%s6141_s2 + $0xec] sm:$0xf0]  ;;  %v3857_v2 = vld [vmem:[%s6141_s2 + $0xe4] sm:$0xf] }
   0x2   :  { %v3299_v3 = vor.u32 %v3859_v1, %v3298_v0  ;;  %v3300_v4 = vld [vmem:[%s6141_s2 + $0xf0] sm:$0xf0]  ;;  %v3306_v5 = vld [vmem:[%s6141_s2 + $0xe8] sm:$0xf]  ;;  %v3860_v6 = vld [vmem:[%s6141_s2 + $0xf4] sm:$0xf0] }
   0x3   :  { %v3303_v7 = vor.u32 %v3857_v2, %v3300_v4  ;;  %v3307_v8 = vor.u32 %v3860_v6, %v3306_v5  ;;  %v3858_v9 = vld [vmem:[%s6141_s2 + $0xec] sm:$0xf]  ;;  %v3308_v10 = vld [vmem:[%s6141_s2 + $0xf8] sm:$0xf0]  ;;  %v3282_v11 = vld [vmem:[%s6141_s2 + $0xc0] sm:$0xf] }
   0x4   :  { %312 = vmatpush.bf16.msra.mxu0 %v3299_v3  ;;  %v3311_v12 = vor.u32 %v3858_v9, %v3308_v10  ;;  %v3855_v13 = vld [vmem:[%s6141_s2 + $0xcc] sm:$0xf0]  ;;  %v3853_v14 = vld [vmem:[%s6141_s2 + $0xc4] sm:$0xf]  ;;  %v3284_v15 = vld [vmem:[%s6141_s2 + $0xd0] sm:$0xf0] }
   0x5   :  { %341 = vmatpush.bf16.msra.mxu1 %v3303_v7  ;;  %370 = vmatpush.bf16.msra.mxu2 %v3307_v8  ;;  %v3283_v16 = vor.u32 %v3855_v13, %v3282_v11  ;;  %v3287_v17 = vor.u32 %v3853_v14, %v3284_v15  ;;  %v3290_v18 = vld [vmem:[%s6141_s2 + $0xc8] sm:$0xf]  ;;  %v3856_v19 = vld [vmem:[%s6141_s2 + $0xd4] sm:$0xf0]  ;;  %v3854_v20 = vld [vmem:[%s6141_s2 + $0xcc] sm:$0xf] }
   0x6   :  { %399 = vmatpush.bf16.msra.mxu3 %v3311_v12  ;;  %v3291_v21 = vor.u32 %v3856_v19, %v3290_v18  ;;  %v3292_v22 = vld [vmem:[%s6141_s2 + $0xd8] sm:$0xf0]  ;;  %v3266_v23 = vld [vmem:[%s6141_s2 + $0xa0] sm:$0xf]  ;;  %v3851_v24 = vld [vmem:[%s6141_s2 + $0xac] sm:$0xf0] }
   0x7   :  { %v3295_v25 = vor.u32 %v3854_v20, %v3292_v22  ;;  %v3849_v26 = vld [vmem:[%s6141_s2 + $0xa4] sm:$0xf]  ;;  %v3268_v27 = vld [vmem:[%s6141_s2 + $0xb0] sm:$0xf0]  ;;  %v3274_v28 = vld [vmem:[%s6141_s2 + $0xa8] sm:$0xf]  ;;  %v3267_v29 = vor.u32 %v3851_v24, %v3266_v23 }
   0x8   :  { %313 = vmatpush.bf16.msra.mxu0 %v3283_v16  ;;  %v3852_v30 = vld [vmem:[%s6141_s2 + $0xb4] sm:$0xf0]  ;;  %v3850_v31 = vld [vmem:[%s6141_s2 + $0xac] sm:$0xf]  ;;  %v3276_v32 = vld [vmem:[%s6141_s2 + $0xb8] sm:$0xf0]  ;;  %v3271_v33 = vor.u32 %v3849_v26, %v3268_v27 }
   0x9   :  { %342 = vmatpush.bf16.msra.mxu1 %v3287_v17  ;;  %371 = vmatpush.bf16.msra.mxu2 %v3291_v21  ;;  %v3275_v34 = vor.u32 %v3852_v30, %v3274_v28  ;;  %v3250_v35 = vld [vmem:[%s6141_s2 + $0x80] sm:$0xf]  ;;  %v3847_v36 = vld [vmem:[%s6141_s2 + $0x8c] sm:$0xf0]  ;;  %v3845_v37 = vld [vmem:[%s6141_s2 + $0x84] sm:$0xf]  ;;  %v3279_v38 = vor.u32 %v3850_v31, %v3276_v32 }
   0xa   :  { %400 = vmatpush.bf16.msra.mxu3 %v3295_v25  ;;  %v3252_v39 = vld [vmem:[%s6141_s2 + $0x90] sm:$0xf0]  ;;  %v3258_v40 = vld [vmem:[%s6141_s2 + $0x88] sm:$0xf]  ;;  %v3848_v41 = vld [vmem:[%s6141_s2 + $0x94] sm:$0xf0]  ;;  %v3251_v44 = vor.u32 %v3847_v36, %v3250_v35 }
   0xb   :  { %v3846_v42 = vld [vmem:[%s6141_s2 + $0x8c] sm:$0xf]  ;;  %v3260_v43 = vld [vmem:[%s6141_s2 + $0x98] sm:$0xf0]  ;;  %v3255_v45 = vor.u32 %v3845_v37, %v3252_v39  ;;  %v3259_v46 = vor.u32 %v3848_v41, %v3258_v40  ;;  %v3234_v47 = vld [vmem:[%s6141_s2 + $0x60] sm:$0xf] }
   0xc   :  { %314 = vmatpush.bf16.msra.mxu0 %v3267_v29  ;;  %v3843_v48 = vld [vmem:[%s6141_s2 + $0x6c] sm:$0xf0]  ;;  %v3841_v49 = vld [vmem:[%s6141_s2 + $0x64] sm:$0xf]  ;;  %v3263_v50 = vor.u32 %v3846_v42, %v3260_v43  ;;  %v3236_v51 = vld [vmem:[%s6141_s2 + $0x70] sm:$0xf0] }
   0xd   :  { %343 = vmatpush.bf16.msra.mxu1 %v3271_v33  ;;  %372 = vmatpush.bf16.msra.mxu2 %v3275_v34  ;;  %v3242_v52 = vld [vmem:[%s6141_s2 + $0x68] sm:$0xf]  ;;  %v3844_v53 = vld [vmem:[%s6141_s2 + $0x74] sm:$0xf0]  ;;  %v3842_v54 = vld [vmem:[%s6141_s2 + $0x6c] sm:$0xf]  ;;  %v3235_v56 = vor.u32 %v3843_v48, %v3234_v47  ;;  %v3239_v57 = vor.u32 %v3841_v49, %v3236_v51 }
   0xe   :  { %401 = vmatpush.bf16.msra.mxu3 %v3279_v38  ;;  %v3244_v55 = vld [vmem:[%s6141_s2 + $0x78] sm:$0xf0]  ;;  %v3243_v58 = vor.u32 %v3844_v53, %v3242_v52  ;;  %v3218_v59 = vld [vmem:[%s6141_s2 + $0x40] sm:$0xf]  ;;  %v3839_v60 = vld [vmem:[%s6141_s2 + $0x4c] sm:$0xf0] }
   0xf   :  { %v3837_v61 = vld [vmem:[%s6141_s2 + $0x44] sm:$0xf]  ;;  %v3247_v62 = vor.u32 %v3842_v54, %v3244_v55  ;;  %v3220_v63 = vld [vmem:[%s6141_s2 + $0x50] sm:$0xf0]  ;;  %v3226_v0 = vld [vmem:[%s6141_s2 + $0x48] sm:$0xf]  ;;  %v3219_v4 = vor.u32 %v3839_v60, %v3218_v59 }
  0x10   :  { %315 = vmatpush.bf16.msra.mxu0 %v3251_v44  ;;  %v3840_v1 = vld [vmem:[%s6141_s2 + $0x54] sm:$0xf0]  ;;  %v3838_v2 = vld [vmem:[%s6141_s2 + $0x4c] sm:$0xf]  ;;  %v3228_v3 = vld [vmem:[%s6141_s2 + $0x58] sm:$0xf0]  ;;  %v3223_v5 = vor.u32 %v3837_v61, %v3220_v63 }
  0x11   :  { %344 = vmatpush.bf16.msra.mxu1 %v3255_v45  ;;  %373 = vmatpush.bf16.msra.mxu2 %v3259_v46  ;;  %v3227_v6 = vor.u32 %v3840_v1, %v3226_v0  ;;  %v3202_v7 = vld [vmem:[%s6141_s2 + $0x20] sm:$0xf]  ;;  %v3835_v8 = vld [vmem:[%s6141_s2 + $0x2c] sm:$0xf0]  ;;  %v3833_v9 = vld [vmem:[%s6141_s2 + $0x24] sm:$0xf]  ;;  %v3231_v10 = vor.u32 %v3838_v2, %v3228_v3 }
  0x12   :  { %402 = vmatpush.bf16.msra.mxu3 %v3263_v50  ;;  %v3204_v11 = vld [vmem:[%s6141_s2 + $0x30] sm:$0xf0]  ;;  %v3210_v12 = vld [vmem:[%s6141_s2 + $0x28] sm:$0xf]  ;;  %v3836_v13 = vld [vmem:[%s6141_s2 + $0x34] sm:$0xf0]  ;;  %v3203_v16 = vor.u32 %v3835_v8, %v3202_v7 }
  0x13   :  { %v3834_v14 = vld [vmem:[%s6141_s2 + $0x2c] sm:$0xf]  ;;  %v3212_v15 = vld [vmem:[%s6141_s2 + $0x38] sm:$0xf0]  ;;  %v3186_v17 = vld [vmem:[%s6141_s2] sm:$0xf]  ;;  %v3207_v18 = vor.u32 %v3833_v9, %v3204_v11  ;;  %v3211_v19 = vor.u32 %v3836_v13, %v3210_v12 }
  0x14   :  { %316 = vmatpush.bf16.msra.mxu0 %v3235_v56  ;;  %v3831_v20 = vld [vmem:[%s6141_s2 + $0xc] sm:$0xf0]  ;;  %v3829_v21 = vld [vmem:[%s6141_s2 + $0x4] sm:$0xf]  ;;  %v3188_v22 = vld [vmem:[%s6141_s2 + $0x10] sm:$0xf0]  ;;  %v3215_v23 = vor.u32 %v3834_v14, %v3212_v15 }
  0x15   :  { %345 = vmatpush.bf16.msra.mxu1 %v3239_v57  ;;  %374 = vmatpush.bf16.msra.mxu2 %v3243_v58  ;;  %v3194_v24 = vld [vmem:[%s6141_s2 + $0x8] sm:$0xf]  ;;  %v3832_v25 = vld [vmem:[%s6141_s2 + $0x14] sm:$0xf0]  ;;  %v3830_v26 = vld [vmem:[%s6141_s2 + $0xc] sm:$0xf]  ;;  %v3187_v30 = vor.u32 %v3831_v20, %v3186_v17  ;;  %v3191_v33 = vor.u32 %v3829_v21, %v3188_v22 }
  0x16   :  { %403 = vmatpush.bf16.msra.mxu3 %v3247_v62  ;;  %v3196_v27 = vld [vmem:[%s6141_s2 + $0x18] sm:$0xf0]  ;;  %v3426_v28 = vld [vmem:[%s6142_s3 + $0xe0] sm:$0xf]  ;;  %v3891_v29 = vld [vmem:[%s6142_s3 + $0xec] sm:$0xf0]  ;;  %v3195_v34 = vor.u32 %v3832_v25, %v3194_v24 }
  0x17   :  { %v3889_v31 = vld [vmem:[%s6142_s3 + $0xe4] sm:$0xf]  ;;  %v3428_v32 = vld [vmem:[%s6142_s3 + $0xf0] sm:$0xf0]  ;;  %v3199_v36 = vor.u32 %v3830_v26, %v3196_v27  ;;  %v4479_v37 = vor.u32 %v3891_v29, %v3426_v28  ;;  %v3434_v38 = vld [vmem:[%s6142_s3 + $0xe8] sm:$0xf] }
  0x18   :  { %317 = vmatpush.bf16.msra.mxu0 %v3219_v4  ;;  %v3825_v35 = vld [vmem:[%s6143_s0] sm:$0xff]  ;;  %v3892_v39 = vld [vmem:[%s6142_s3 + $0xf4] sm:$0xf0]  ;;  %v4490_v41 = vor.u32 %v3889_v31, %v3428_v32  ;;  %v3887_v42 = vld [vmem:[%s6142_s3 + $0xcc] sm:$0xf0] }
  0x19   :  { %346 = vmatpush.bf16.msra.mxu1 %v3223_v5  ;;  %375 = vmatpush.bf16.msra.mxu2 %v3227_v6  ;;  %v3410_v40 = vld [vmem:[%s6142_s3 + $0xc0] sm:$0xf]  ;;  %v3890_v43 = vld [vmem:[%s6142_s3 + $0xec] sm:$0xf]  ;;  %v3436_v44 = vld [vmem:[%s6142_s3 + $0xf8] sm:$0xf0]  ;;  %v4507_v47 = vor.u32 %v3892_v39, %v3434_v38 }
  0x1a   :  { %404 = vmatpush.bf16.msra.mxu3 %v3231_v10  ;;  %v3885_v45 = vld [vmem:[%s6142_s3 + $0xc4] sm:$0xf]  ;;  %v3412_v46 = vld [vmem:[%s6142_s3 + $0xd0] sm:$0xf0]  ;;  %v4510_v48 = vor.u32 %v3887_v42, %v3410_v40  ;;  %v3418_v49 = vld [vmem:[%s6142_s3 + $0xc8] sm:$0xf]  ;;  %v4518_v51 = vor.u32 %v3890_v43, %v3436_v44 }
  0x1b   :  { %v3888_v50 = vld [vmem:[%s6142_s3 + $0xd4] sm:$0xf0]  ;;  %v3394_v52 = vld [vmem:[%s6142_s3 + $0xa0] sm:$0xf]  ;;  %v4524_v53 = vor.u32 %v3885_v45, %v3412_v46  ;;  %v3883_v54 = vld [vmem:[%s6142_s3 + $0xac] sm:$0xf0] }
  0x1c   :  { %318 = vmatpush.bf16.msra.mxu0 %v3203_v16  ;;  %v3886_v55 = vld [vmem:[%s6142_s3 + $0xcc] sm:$0xf]  ;;  %v3420_v56 = vld [vmem:[%s6142_s3 + $0xd8] sm:$0xf0]  ;;  %v3881_v57 = vld [vmem:[%s6142_s3 + $0xa4] sm:$0xf]  ;;  %v4542_v59 = vor.u32 %v3888_v50, %v3418_v49  ;;  %v4546_v60 = vor.u32 %v3883_v54, %v3394_v52 }
  0x1d   :  { %347 = vmatpush.bf16.msra.mxu1 %v3207_v18  ;;  %376 = vmatpush.bf16.msra.mxu2 %v3211_v19  ;;  %v3396_v58 = vld [vmem:[%s6142_s3 + $0xb0] sm:$0xf0]  ;;  %v3402_v61 = vld [vmem:[%s6142_s3 + $0xa8] sm:$0xf]  ;;  %v3884_v62 = vld [vmem:[%s6142_s3 + $0xb4] sm:$0xf0]  ;;  %v4554_v63 = vor.u32 %v3886_v55, %v3420_v56 }
  0x1e   :  { %405 = vmatpush.bf16.msra.mxu3 %v3215_v23  ;;  %v3378_v0 = vld [vmem:[%s6142_s3 + $0x80] sm:$0xf]  ;;  %v4560_v1 = vor.u32 %v3881_v57, %v3396_v58  ;;  %v3879_v2 = vld [vmem:[%s6142_s3 + $0x8c] sm:$0xf0]  ;;  %v3882_v3 = vld [vmem:[%s6142_s3 + $0xac] sm:$0xf]  ;;  %v4578_v7 = vor.u32 %v3884_v62, %v3402_v61 }
  0x1f   :  { %v3404_v4 = vld [vmem:[%s6142_s3 + $0xb8] sm:$0xf0]  ;;  %v3877_v5 = vld [vmem:[%s6142_s3 + $0x84] sm:$0xf]  ;;  %v3380_v6 = vld [vmem:[%s6142_s3 + $0x90] sm:$0xf0]  ;;  %v4582_v8 = vor.u32 %v3879_v2, %v3378_v0 }
  0x20   :  { %319 = vmatpush.bf16.msra.mxu0 %v3187_v30  ;;  %v3386_v9 = vld [vmem:[%s6142_s3 + $0x88] sm:$0xf]  ;;  %v3880_v10 = vld [vmem:[%s6142_s3 + $0x94] sm:$0xf0]  ;;  %v4590_v11 = vor.u32 %v3882_v3, %v3404_v4  ;;  %v3362_v12 = vld [vmem:[%s6142_s3 + $0x60] sm:$0xf]  ;;  %v4596_v13 = vor.u32 %v3877_v5, %v3380_v6 }
  0x21   :  { %348 = vmatpush.bf16.msra.mxu1 %v3191_v33  ;;  %377 = vmatpush.bf16.msra.mxu2 %v3195_v34  ;;  %v3875_v14 = vld [vmem:[%s6142_s3 + $0x6c] sm:$0xf0]  ;;  %v3878_v15 = vld [vmem:[%s6142_s3 + $0x8c] sm:$0xf]  ;;  %v3388_v16 = vld [vmem:[%s6142_s3 + $0x98] sm:$0xf0]  ;;  %v4617_v20 = vor.u32 %v3880_v10, %v3386_v9 }
  0x22   :  { %406 = vmatpush.bf16.msra.mxu3 %v3199_v36  ;;  %v3873_v17 = vld [vmem:[%s6142_s3 + $0x64] sm:$0xf]  ;;  %v3364_v18 = vld [vmem:[%s6142_s3 + $0x70] sm:$0xf0]  ;;  %v3826_v19 = vld [vmem:[%s6143_s0 + $0x8] sm:$0xff]  ;;  %v4621_v21 = vor.u32 %v3875_v14, %v3362_v12  ;;  %v4629_v24 = vor.u32 %v3878_v15, %v3388_v16 }
  0x23   :  { %320 = vmatmul.bf16.vlgmr.msra.gmra.mxu0 %v3825_v35  ;;  %v3370_v22 = vld [vmem:[%s6142_s3 + $0x68] sm:$0xf]  ;;  %v3876_v23 = vld [vmem:[%s6142_s3 + $0x74] sm:$0xf0]  ;;  %v3346_v25 = vld [vmem:[%s6142_s3 + $0x40] sm:$0xf]  ;;  %v4635_v26 = vor.u32 %v3873_v17, %v3364_v18 }
  0x24   :  { %623 = vmatpush.bf16.msrb.mxu0 %v4479_v37  ;;  %349 = vmatmul.bf16.vlgmr.msra.gmra.mxu1 %v3825_v35  ;;  %v3871_v27 = vld [vmem:[%s6142_s3 + $0x4c] sm:$0xf0]  ;;  %v3874_v28 = vld [vmem:[%s6142_s3 + $0x6c] sm:$0xf]  ;;  %v3372_v29 = vld [vmem:[%s6142_s3 + $0x78] sm:$0xf0]  ;;  %v4653_v32 = vor.u32 %v3876_v23, %v3370_v22 }
  0x25   :  { %636 = vmatpush.bf16.msrb.mxu1 %v4490_v41  ;;  %378 = vmatmul.bf16.vlgmr.msra.gmra.mxu2 %v3825_v35  ;;  %v3869_v30 = vld [vmem:[%s6142_s3 + $0x44] sm:$0xf]  ;;  %v3348_v31 = vld [vmem:[%s6142_s3 + $0x50] sm:$0xf0]  ;;  %v4657_v33 = vor.u32 %v3871_v27, %v3346_v25  ;;  %v3354_v34 = vld [vmem:[%s6142_s3 + $0x48] sm:$0xf]  ;;  %v4665_v36 = vor.u32 %v3874_v28, %v3372_v29 }
  0x26   :  { %407 = vmatmul.bf16.vlgmr.msra.gmra.mxu3 %v3825_v35  ;;  %649 = vmatpush.bf16.msrb.mxu2 %v4507_v47  ;;  %v3872_v35 = vld [vmem:[%s6142_s3 + $0x54] sm:$0xf0]  ;;  %v4668_v38 = vor.u32 %v3869_v30, %v3348_v31  ;;  %v3330_v40 = vld [vmem:[%s6142_s3 + $0x20] sm:$0xf]  ;;  %v3867_v42 = vld [vmem:[%s6142_s3 + $0x2c] sm:$0xf0] }
  0x27   :  { %662 = vmatpush.bf16.msrb.mxu3 %v4518_v51  ;;  %v4671_v39 = vor.u32 %v3872_v35, %v3354_v34  ;;  %v3865_v43 = vld [vmem:[%s6142_s3 + $0x24] sm:$0xf]  ;;  %v4684_v44 = vor.u32 %v3867_v42, %v3330_v40  ;;  %v3332_v45 = vld [vmem:[%s6142_s3 + $0x30] sm:$0xf0]  ;;  %v3338_v46 = vld [vmem:[%s6142_s3 + $0x28] sm:$0xf] }
  0x28   :  { %624 = vmatpush.bf16.msrb.mxu0 %v4510_v48  ;;  %v3868_v49 = vld [vmem:[%s6142_s3 + $0x34] sm:$0xf0]  ;;  %v4696_v50 = vor.u32 %v3865_v43, %v3332_v45  ;;  %v3870_v52 = vld [vmem:[%s6142_s3 + $0x4c] sm:$0xf]  ;;  %v3356_v54 = vld [vmem:[%s6142_s3 + $0x58] sm:$0xf0] }
  0x29   :  { %637 = vmatpush.bf16.msrb.mxu1 %v4524_v53  ;;  %v3314_v55 = vld [vmem:[%s6142_s3] sm:$0xf]  ;;  %v4707_v56 = vor.u32 %v3870_v52, %v3356_v54  ;;  %v3863_v57 = vld [vmem:[%s6142_s3 + $0xc] sm:$0xf0]  ;;  %v3861_v58 = vld [vmem:[%s6142_s3 + $0x4] sm:$0xf]  ;;  %v4719_v62 = vor.u32 %v3868_v49, %v3338_v46 }
  0x2a   :  { %650 = vmatpush.bf16.msrb.mxu2 %v4542_v59  ;;  %v3316_v61 = vld [vmem:[%s6142_s3 + $0x10] sm:$0xf0]  ;;  %v3866_v0 = vld [vmem:[%s6142_s3 + $0x2c] sm:$0xf]  ;;  %v3340_v2 = vld [vmem:[%s6142_s3 + $0x38] sm:$0xf0]  ;;  %v4729_v3 = vor.u32 %v3863_v57, %v3314_v55 }
  0x2b   :  { %663 = vmatpush.bf16.msrb.mxu3 %v4554_v63  ;;  %v4731_v4 = vor.u32 %v3866_v0, %v3340_v2  ;;  %v3322_v5 = vld [vmem:[%s6142_s3 + $0x8] sm:$0xf]  ;;  %v3864_v6 = vld [vmem:[%s6142_s3 + $0x14] sm:$0xf0]  ;;  %v4740_v9 = vor.u32 %v3861_v58, %v3316_v61  ;;  %v3862_v10 = vld [vmem:[%s6142_s3 + $0xc] sm:$0xf] }
  0x2c   :  { %625 = vmatpush.bf16.msrb.mxu0 %v4546_v60  ;;  %v3324_v12 = vld [vmem:[%s6142_s3 + $0x18] sm:$0xf0]  ;;  %v4749_v14 = vor.u32 %v3864_v6, %v3322_v5  ;;  %v3827_v16 = vld [vmem:[%s6143_s0 + $0x10] sm:$0xff]  ;;  %v70_v18 = vld [vmem:[%s6144_s5] sm:$0xff] }
  0x2d   :  { %638 = vmatpush.bf16.msrb.mxu1 %v4560_v1  ;;  %v4753_v15 = vor.u32 %v3862_v10, %v3324_v12  ;;  %v3828_v17 = vld [vmem:[%s6143_s0 + $0x18] sm:$0xff]  ;;  %v118_v30 = vld [vmem:[%s6145_s4] sm:$0xf] }
  0x2e   :  { %651 = vmatpush.bf16.msrb.mxu2 %v4578_v7  ;;  %v4840_v31 = vperm.slane %v118_v30, 0  ;;  %v4844_v35 = vperm.slane %v118_v30, 1  ;;  %v4854_v49 = vperm.slane %v118_v30, 2  ;;  %v4856_v52 = vperm.slane %v118_v30, 3 }
  0x2f   :  { %664 = vmatpush.bf16.msrb.mxu3 %v4590_v11 }
  0x30   :  { %626 = vmatpush.bf16.msrb.mxu0 %v4582_v8 }
  0x31   :  { %639 = vmatpush.bf16.msrb.mxu1 %v4596_v13 }
  0x32   :  { %652 = vmatpush.bf16.msrb.mxu2 %v4617_v20 }
  0x33   :  { %665 = vmatpush.bf16.msrb.mxu3 %v4629_v24  ;;  %325 = vmatmul.bf16.gmra.mxu0 %v3826_v19 }
  0x34   :  { %627 = vmatpush.bf16.msrb.mxu0 %v4621_v21  ;;  %354 = vmatmul.bf16.gmra.mxu1 %v3826_v19 }
  0x35   :  { %640 = vmatpush.bf16.msrb.mxu1 %v4635_v26  ;;  %383 = vmatmul.bf16.gmra.mxu2 %v3826_v19 }
  0x36   :  { %412 = vmatmul.bf16.gmra.mxu3 %v3826_v19  ;;  %653 = vmatpush.bf16.msrb.mxu2 %v4653_v32  ;;  %v462_v19 = vpack.c.bf16 %v70_v18, %v70_v18 }
  0x37   :  { %666 = vmatpush.bf16.msrb.mxu3 %v4665_v36 }
  0x38   :  { %628 = vmatpush.bf16.msrb.mxu0 %v4657_v33 }
  0x39   :  { %641 = vmatpush.bf16.msrb.mxu1 %v4668_v38 }
  0x3a   :  { %654 = vmatpush.bf16.msrb.mxu2 %v4671_v39 }
  0x3b   :  { %667 = vmatpush.bf16.msrb.mxu3 %v4707_v56 }
  0x3c   :  { %629 = vmatpush.bf16.msrb.mxu0 %v4684_v44 }
  0x3d   :  { %642 = vmatpush.bf16.msrb.mxu1 %v4696_v50 }
  0x3e   :  { %655 = vmatpush.bf16.msrb.mxu2 %v4719_v62 }
  0x3f   :  { %668 = vmatpush.bf16.msrb.mxu3 %v4731_v4 }
  0x40   :  { %630 = vmatpush.bf16.msrb.mxu0 %v4729_v3 }
  0x41   :  { %643 = vmatpush.bf16.msrb.mxu1 %v4740_v9 }
  0x42   :  { %656 = vmatpush.bf16.msrb.mxu2 %v4749_v14 }
  0x43   :  { %669 = vmatpush.bf16.msrb.mxu3 %v4753_v15  ;;  %330 = vmatmul.bf16.gmra.mxu0 %v3827_v16 }
  0x44   :  { %744 = vmatpush.bf16.msra.mxu0 %v4479_v37  ;;  %359 = vmatmul.bf16.gmra.mxu1 %v3827_v16 }
  0x45   :  { %757 = vmatpush.bf16.msra.mxu1 %v4490_v41  ;;  %388 = vmatmul.bf16.gmra.mxu2 %v3827_v16 }
  0x46   :  { %770 = vmatpush.bf16.msra.mxu2 %v4507_v47  ;;  %417 = vmatmul.bf16.gmra.mxu3 %v3827_v16 }
  0x47   :  { %783 = vmatpush.bf16.msra.mxu3 %v4518_v51 }
  0x48   :  { %745 = vmatpush.bf16.msra.mxu0 %v4510_v48 }
  0x49   :  { %758 = vmatpush.bf16.msra.mxu1 %v4524_v53 }
  0x4a   :  { %771 = vmatpush.bf16.msra.mxu2 %v4542_v59 }
  0x4b   :  { %784 = vmatpush.bf16.msra.mxu3 %v4554_v63 }
  0x4c   :  { %746 = vmatpush.bf16.msra.mxu0 %v4546_v60 }
  0x4d   :  { %759 = vmatpush.bf16.msra.mxu1 %v4560_v1 }
  0x4e   :  { %772 = vmatpush.bf16.msra.mxu2 %v4578_v7 }
  0x4f   :  { %785 = vmatpush.bf16.msra.mxu3 %v4590_v11 }
  0x50   :  { %747 = vmatpush.bf16.msra.mxu0 %v4582_v8 }
  0x51   :  { %760 = vmatpush.bf16.msra.mxu1 %v4596_v13 }
  0x52   :  { %773 = vmatpush.bf16.msra.mxu2 %v4617_v20 }
  0x53   :  { %786 = vmatpush.bf16.msra.mxu3 %v4629_v24  ;;  %335 = vmatmul.bf16.gmra.mxu0 %v3828_v17 }
  0x54   :  { %748 = vmatpush.bf16.msra.mxu0 %v4621_v21  ;;  %364 = vmatmul.bf16.gmra.mxu1 %v3828_v17 }
  0x55   :  { %761 = vmatpush.bf16.msra.mxu1 %v4635_v26  ;;  %393 = vmatmul.bf16.gmra.mxu2 %v3828_v17 }
  0x56   :  { %774 = vmatpush.bf16.msra.mxu2 %v4653_v32  ;;  %422 = vmatmul.bf16.gmra.mxu3 %v3828_v17 }
  0x57   :  { %787 = vmatpush.bf16.msra.mxu3 %v4665_v36 }
  0x58   :  { %749 = vmatpush.bf16.msra.mxu0 %v4657_v33 }
  0x59   :  { %762 = vmatpush.bf16.msra.mxu1 %v4668_v38 }
  0x5a   :  { %775 = vmatpush.bf16.msra.mxu2 %v4671_v39 }
  0x5b   :  { %788 = vmatpush.bf16.msra.mxu3 %v4707_v56 }
  0x5c   :  { %750 = vmatpush.bf16.msra.mxu0 %v4684_v44 }
  0x5d   :  { %763 = vmatpush.bf16.msra.mxu1 %v4696_v50 }
  0x5e   :  { %776 = vmatpush.bf16.msra.mxu2 %v4719_v62 }
  0x5f   :  { %789 = vmatpush.bf16.msra.mxu3 %v4731_v4 }
  0x60   :  { %751 = vmatpush.bf16.msra.mxu0 %v4729_v3 }
  0x61   :  { %764 = vmatpush.bf16.msra.mxu1 %v4740_v9 }
  0x62   :  { %777 = vmatpush.bf16.msra.mxu2 %v4749_v14 }
  0x63   :  { %790 = vmatpush.bf16.msra.mxu3 %v4753_v15  ;;  %631 = vmatmul.bf16.vlgmr.msrb.gmra.mxu0 %v462_v19 }
  0x64   :  { %644 = vmatmul.bf16.vlgmr.msrb.gmra.mxu1 %v462_v19  ;;  %865 = vmatpush.bf16.msrb.mxu0 %v4479_v37 }
  0x65   :  { %657 = vmatmul.bf16.vlgmr.msrb.gmra.mxu2 %v462_v19  ;;  %878 = vmatpush.bf16.msrb.mxu1 %v4490_v41 }
  0x66   :  { %670 = vmatmul.bf16.vlgmr.msrb.gmra.mxu3 %v462_v19  ;;  %891 = vmatpush.bf16.msrb.mxu2 %v4507_v47 }
  0x67   :  { %904 = vmatpush.bf16.msrb.mxu3 %v4518_v51 }
  0x68   :  { %866 = vmatpush.bf16.msrb.mxu0 %v4510_v48 }
  0x69   :  { %879 = vmatpush.bf16.msrb.mxu1 %v4524_v53 }
  0x6a   :  { %892 = vmatpush.bf16.msrb.mxu2 %v4542_v59 }
  0x6b   :  { %905 = vmatpush.bf16.msrb.mxu3 %v4554_v63 }
  0x6c   :  { %867 = vmatpush.bf16.msrb.mxu0 %v4546_v60 }
  0x6d   :  { %880 = vmatpush.bf16.msrb.mxu1 %v4560_v1 }
  0x6e   :  { %893 = vmatpush.bf16.msrb.mxu2 %v4578_v7 }
  0x6f   :  { %906 = vmatpush.bf16.msrb.mxu3 %v4590_v11 }
  0x70   :  { %868 = vmatpush.bf16.msrb.mxu0 %v4582_v8 }
  0x71   :  { %881 = vmatpush.bf16.msrb.mxu1 %v4596_v13 }
  0x72   :  { %894 = vmatpush.bf16.msrb.mxu2 %v4617_v20 }
  0x73   :  { %907 = vmatpush.bf16.msrb.mxu3 %v4629_v24 }
  0x74   :  { %869 = vmatpush.bf16.msrb.mxu0 %v4621_v21 }
  0x75   :  { %882 = vmatpush.bf16.msrb.mxu1 %v4635_v26 }
  0x76   :  { %895 = vmatpush.bf16.msrb.mxu2 %v4653_v32 }
  0x77   :  { %908 = vmatpush.bf16.msrb.mxu3 %v4665_v36 }
  0x78   :  { %870 = vmatpush.bf16.msrb.mxu0 %v4657_v33 }
  0x79   :  { %883 = vmatpush.bf16.msrb.mxu1 %v4668_v38 }
  0x7a   :  { %896 = vmatpush.bf16.msrb.mxu2 %v4671_v39 }
  0x7b   :  { %909 = vmatpush.bf16.msrb.mxu3 %v4707_v56 }
  0x7c   :  { %871 = vmatpush.bf16.msrb.mxu0 %v4684_v44 }
  0x7d   :  { %884 = vmatpush.bf16.msrb.mxu1 %v4696_v50 }
  0x7e   :  { %897 = vmatpush.bf16.msrb.mxu2 %v4719_v62 }
  0x7f   :  { %910 = vmatpush.bf16.msrb.mxu3 %v4731_v4 }
  0x80   :  { %872 = vmatpush.bf16.msrb.mxu0 %v4729_v3 }
  0x81   :  { %885 = vmatpush.bf16.msrb.mxu1 %v4740_v9 }
  0x82   :  { %898 = vmatpush.bf16.msrb.mxu2 %v4749_v14 }
  0x83   :  { %911 = vmatpush.bf16.msrb.mxu3 %v4753_v15 }
  0xa0   :  { %v321_v22 = vpop.f32.mrf.mxu0 }
  0xa1   :  { %v350_v23 = vpop.f32.mrf.mxu1 }
  0xa8   :  { %v379_v25 = vpop.f32.mrf.mxu2  ;;  %v4833_v28 = vpop.f32.mrf.mxu0 }
  0xa9   :  { %v4831_v27 = vpop.f32.mrf.mxu3  ;;  %v4835_v29 = vpop.f32.mrf.mxu1 }
  0xb0   :  { %v4842_v34 = vpop.f32.mrf.mxu2  ;;  %v326_v42 = vpop.f32.mrf.mxu0 }
  0xb1   :  { %v4846_v40 = vpop.f32.mrf.mxu3  ;;  %v4849_v43 = vadd.f32 %v326_v42, %v4840_v31  ;;  %v355_v45 = vpop.f32.mrf.mxu1 }
  0xb2   :  { %6152 = vst [vmem:[#allocation4_spill] sm:$0xff] %v4846_v40  ;;  %v4852_v46 = vadd.f32 %v355_v45, %v4844_v35 }
  0xb3   :  { %6153 = vst [vmem:[#allocation5_spill] sm:$0xff] %v4849_v43 }
  0xb4   :  { %6154 = vst [vmem:[#allocation6_spill] sm:$0xff] %v4852_v46 }
  0xb8   :  { %v384_v54 = vpop.f32.mrf.mxu2  ;;  %v4861_v58 = vpop.f32.mrf.mxu0 }
  0xb9   :  { %v4859_v55 = vadd.f32 %v384_v54, %v4854_v49  ;;  %v413_v57 = vpop.f32.mrf.mxu3  ;;  %6156 = vst [vmem:[#allocation8_spill] sm:$0xff] %v4861_v58  ;;  %v4866_v0 = vpop.f32.mrf.mxu1 }
  0xba   :  { %v4864_v61 = vadd.f32 %v413_v57, %v4856_v52  ;;  %6158 = vst [vmem:[#allocation10_spill] sm:$0xff] %v4866_v0 }
  0xbb   :  { %6155 = vst [vmem:[#allocation7_spill] sm:$0xff] %v4859_v55 }
  0xbc   :  { %6157 = vst [vmem:[#allocation9_spill] sm:$0xff] %v4864_v61 }
  0xc0   :  { %v4868_v2 = vpop.f32.mrf.mxu2  ;;  %v331_v6 = vpop.f32.mrf.mxu0 }
  0xc1   :  { %6159 = vst [vmem:[#allocation11_spill] sm:$0xff] %v4868_v2  ;;  %v4870_v5 = vpop.f32.mrf.mxu3  ;;  %v4873_v10 = vadd.f32 %v331_v6, %v4840_v31  ;;  %v360_v12 = vpop.f32.mrf.mxu1 }
  0xc2   :  { %6160 = vst [vmem:[#allocation12_spill] sm:$0xff] %v4870_v5  ;;  %v4876_v16 = vadd.f32 %v360_v12, %v4844_v35 }
  0xc3   :  { %6161 = vst [vmem:[#allocation13_spill] sm:$0xff] %v4873_v10 }
  0xc4   :  { %6162 = vst [vmem:[#allocation14_spill] sm:$0xff] %v4876_v16 }
  0xc8   :  { %v389_v17 = vpop.f32.mrf.mxu2  ;;  %v4881_v30 = vpop.f32.mrf.mxu0 }
  0xc9   :  { %v4879_v18 = vadd.f32 %v389_v17, %v4854_v49  ;;  %v418_v19 = vpop.f32.mrf.mxu3  ;;  %6164 = vst [vmem:[#allocation16_spill] sm:$0xff] %v4881_v30  ;;  %v4886_v45 = vpop.f32.mrf.mxu1 }
  0xca   :  { %v4884_v42 = vadd.f32 %v418_v19, %v4856_v52  ;;  %6166 = vst [vmem:[#allocation18_spill] sm:$0xff] %v4886_v45 }
  0xcb   :  { %6163 = vst [vmem:[#allocation15_spill] sm:$0xff] %v4879_v18 }
  0xcc   :  { %6165 = vst [vmem:[#allocation17_spill] sm:$0xff] %v4884_v42 }
  0xd0   :  { %v4888_v54 = vpop.f32.mrf.mxu2  ;;  %v336_v6 = vpop.f32.mrf.mxu0 }
  0xd1   :  { %6167 = vst [vmem:[#allocation19_spill] sm:$0xff] %v4888_v54  ;;  %v4890_v57 = vpop.f32.mrf.mxu3  ;;  %v4893_v12 = vadd.f32 %v336_v6, %v4840_v31  ;;  %v365_v16 = vpop.f32.mrf.mxu1 }
  0xd2   :  { %6168 = vst [vmem:[#allocation20_spill] sm:$0xff] %v4890_v57  ;;  %v4896_v17 = vadd.f32 %v365_v16, %v4844_v35  ;;  %v322_v57 = vadd.f32 %v321_v22, %v4840_v31 }
  0xd3   :  { %6169 = vst [vmem:[#allocation21_spill] sm:$0xff] %v4893_v12  ;;  %v351_v12 = vadd.f32 %v350_v23, %v4844_v35 }
  0xd4   :  { %6170 = vst [vmem:[#allocation22_spill] sm:$0xff] %v4896_v17 }
  0xd8   :  { %v394_v18 = vpop.f32.mrf.mxu2  ;;  %v4901_v42 = vpop.f32.mrf.mxu0 }
  0xd9   :  { %v4899_v30 = vadd.f32 %v394_v18, %v4854_v49  ;;  %v423_v19 = vpop.f32.mrf.mxu3  ;;  %6172 = vst [vmem:[#allocation24_spill] sm:$0xff] %v4901_v42  ;;  %v4906_v54 = vpop.f32.mrf.mxu1 }
  0xda   :  { %v4904_v45 = vadd.f32 %v423_v19, %v4856_v52  ;;  %6174 = vst [vmem:[#allocation26_spill] sm:$0xff] %v4906_v54  ;;  %v380_v19 = vadd.f32 %v379_v25, %v4854_v49  ;;  %v409_v25 = vadd.f32 %v4831_v27, %v4856_v52 }
  0xdb   :  { %6171 = vst [vmem:[#allocation23_spill] sm:$0xff] %v4899_v30 }
  0xdc   :  { %6173 = vst [vmem:[#allocation25_spill] sm:$0xff] %v4904_v45 }
  0xe0   :  { %v4909_v6 = vpop.f32.mrf.mxu2  ;;  %v632_v17 = vpop.f32.mrf.mxu0 }
  0xe1   :  { %6175 = vst [vmem:[#allocation27_spill] sm:$0xff] %v4909_v6  ;;  %v4912_v16 = vpop.f32.mrf.mxu3  ;;  %v675_v10 = vadd.f32 %v632_v17, %v322_v57  ;;  %v645_v18 = vpop.f32.mrf.mxu1 }
  0xe2   :  { %6176 = vst [vmem:[#allocation28_spill] sm:$0xff] %v4912_v16  ;;  %v676_v30 = vadd.f32 %v645_v18, %v351_v12 }
  0xe3   :  { %v3440_v5 = vmul.f32 -1.442695, %v675_v10 }
  0xe4   :  { %v3441_v2 = vmul.f32 -1.442695, %v676_v30 }
  0xe5   :  { %3961 = vpow2.f32 %v3440_v5 }
  0xe6   :  { %3963 = vpow2.f32 %v3441_v2 }
  0xe8   :  { %v658_v42 = vpop.f32.mrf.mxu2  ;;  %v634_v22 = vpop.f32.mrf.mxu0 }
  0xe9   :  { %v677_v54 = vadd.f32 %v658_v42, %v380_v19  ;;  %v671_v45 = vpop.f32.mrf.mxu3  ;;  %v647_v0 = vpop.f32.mrf.mxu1 }
  0xea   :  { %v678_v42 = vadd.f32 %v671_v45, %v409_v25 }
  0xeb   :  { %v3442_v6 = vmul.f32 -1.442695, %v677_v54  ;;  %v3962_v58 = vpop.eup %3961 }
  0xec   :  { %v3964_v23 = vpop.eup %3963  ;;  %v688_v61 = vadd.f32 1.0, %v3962_v58 }
  0xed   :  { %3965 = vpow2.f32 %v3442_v6  ;;  %v689_v16 = vadd.f32 1.0, %v3964_v23 }
  0xee   :  { %3967 = vrcp.f32 %v688_v61  ;;  %v702_v58 = vand.u32 2147483648, %v688_v61  ;;  %v700_v22 = vand.u32 2147483647, %v688_v61  ;;  %vm696_vm2 = vweird.f32 %v688_v61 }
  0xef   :  { %3969 = vrcp.f32 %v689_v16  ;;  %v717_v6 = vand.u32 2147483648, %v689_v16  ;;  %vm711_vm3 = vweird.f32 %v689_v16 }
  0xf0   :  { %v660_v57 = vpop.f32.mrf.mxu2  ;;  %vm701_vm6 = vcmp.eq.f32.partialorder %v700_v22, 8.507059e+37 }
  0xf1   :  { %v673_v10 = vpop.f32.mrf.mxu3  ;;  %v715_v57 = vand.u32 2147483647, %v689_v16 }
  0xf3   :  { %v3966_v30 = vpop.eup %3965  ;;  %vm716_vm7 = vcmp.eq.f32.partialorder %v715_v57, 8.507059e+37 }
  0xf4   :  { %v690_v2 = vadd.f32 1.0, %v3966_v30  ;;  %v3968_v5 = vpop.eup %3967  ;;  %v703_v30 = vor.u32 1.1754944e-38, %v702_v58 }
  0xf5   :  { %v3970_v12 = vpop.eup %3969  ;;  %v692_v17 = vmul.f32 %v3968_v5, %v688_v61  ;;  %vm697_vm0 = vweird.f32 %v3968_v5 }
  0xf6   :  { %3971 = vrcp.f32 %v690_v2  ;;  %v707_v0 = vmul.f32 %v3970_v12, %v689_v16  ;;  %vm712_vm1 = vweird.f32 %v3970_v12  ;;  %vm698_vm4 = vmor %vm696_vm2, %vm697_vm0  ;;  %vm726_vm9 = vweird.f32 %v690_v2 }
  0xf7   :  { %v693_v54 = vsub.f32 1.0, %v692_v17  ;;  %3973 = vtanh.f32 %v678_v42  ;;  %vm713_vm5 = vmor %vm711_vm3, %vm712_vm1  ;;  %v718_v17 = vor.u32 1.1754944e-38, %v717_v6  ;;  %v74_v42 = vld [vmem:[%s6146_s6] sm:$0xff]  ;;  %v732_v6 = vand.u32 2147483648, %v690_v2 }
  0xf8   :  { %v708_v18 = vsub.f32 1.0, %v707_v0 }
  0xf9   :  { %v694_v19 = vmul.f32 %v3968_v5, %v693_v54  ;;  %v733_v22 = vor.u32 1.1754944e-38, %v732_v6 }
  0xfa   :  { %v709_v23 = vmul.f32 %v3970_v12, %v708_v18 }
  0xfb   :  { %v695_v27 = vadd.f32 %v3968_v5, %v694_v19 }
  0xfc   :  { %v3972_v10 = vpop.eup %3971  ;;  %v710_v25 = vadd.f32 %v3970_v12, %v709_v23  ;;  %v730_v23 = vand.u32 2147483647, %v690_v2 }
  0xfd   :  { %v722_v45 = vmul.f32 %v3972_v10, %v690_v2  ;;  %v699_v0 = vsel %vm698_vm4, %v3968_v5, %v695_v27  ;;  %v3974_v54 = vpop.eup %3973  ;;  %vm727_vm8 = vweird.f32 %v3972_v10 }
  0xfe   :  { %v704_v55 = vsel %vm701_vm6, %v703_v30, %v699_v0  ;;  %v714_v46 = vsel %vm713_vm5, %v3970_v12, %v710_v25  ;;  %vm728_vm10 = vmor %vm726_vm9, %vm727_vm8  ;;  %vm731_vm11 = vcmp.eq.f32.partialorder %v730_v23, 8.507059e+37 }
  0xff   :  { %v723_v18 = vsub.f32 1.0, %v722_v45  ;;  %v719_v19 = vsel %vm716_vm7, %v718_v17, %v714_v46  ;;  %v738_v61 = vmul.f32 %v3974_v54, %v704_v55  ;;  %v353_v55 = vadd.f32 %v4835_v29, %v4844_v35 }
 0x100   :  { %v737_v43 = vmul.f32 %v719_v19, %v74_v42  ;;  %v382_v42 = vadd.f32 %v4842_v34, %v4854_v49 }
 0x101   :  { %v724_v16 = vmul.f32 %v3972_v10, %v723_v18 }
 0x102   :  { %v4920_v40 = vadd.f32 %v738_v61, %v737_v43  ;;  %v324_v43 = vadd.f32 %v4833_v28, %v4840_v31 }
 0x103   :  { %v725_v58 = vadd.f32 %v3972_v10, %v724_v16 }
 0x104   :  { %3975 = vtanh.f32 %v4920_v40 }
 0x105   :  { %v729_v5 = vsel %vm728_vm10, %v3972_v10, %v725_v58 }
 0x106   :  { %v734_v12 = vsel %vm731_vm11, %v733_v22, %v729_v5 }
 0x10a   :  { %v3976_v27 = vpop.eup %3975 }
 0x10b   :  { %v741_v57 = vmul.f32 %v3976_v27, %v734_v12  ;;  %v6177_v27 = vld [vmem:[#allocation4_spill] sm:$0xff] }
 0x10c   :  { %v411_v34 = vadd.f32 %v6177_v27, %v4856_v52 }
 0x10d   :  { %v742_v46 = vpack.c.bf16 %v741_v57, %v741_v57 }
 0x10f   :  { %743 = vst [vmem:[%s6147_s7] sm:$0xf] %v742_v46  ;;  %752 = vmatmul.bf16.vlgmr.msra.gmra.mxu0 %v742_v46  ;;  %765 = vmatmul.bf16.vlgmr.msra.gmra.mxu1 %v742_v46 }
 0x110   :  { %778 = vmatmul.bf16.vlgmr.msra.gmra.mxu2 %v742_v46  ;;  %791 = vmatmul.bf16.vlgmr.msra.gmra.mxu3 %v742_v46 }
 0x111   :  { %986 = vmatpush.bf16.msra.mxu0 %v4479_v37  ;;  %999 = vmatpush.bf16.msra.mxu1 %v4490_v41 }
 0x112   :  { %1012 = vmatpush.bf16.msra.mxu2 %v4507_v47  ;;  %1025 = vmatpush.bf16.msra.mxu3 %v4518_v51 }
 0x115   :  { %987 = vmatpush.bf16.msra.mxu0 %v4510_v48  ;;  %1000 = vmatpush.bf16.msra.mxu1 %v4524_v53 }
 0x116   :  { %1013 = vmatpush.bf16.msra.mxu2 %v4542_v59  ;;  %1026 = vmatpush.bf16.msra.mxu3 %v4554_v63 }
 0x119   :  { %988 = vmatpush.bf16.msra.mxu0 %v4546_v60  ;;  %1001 = vmatpush.bf16.msra.mxu1 %v4560_v1 }
 0x11a   :  { %1014 = vmatpush.bf16.msra.mxu2 %v4578_v7  ;;  %1027 = vmatpush.bf16.msra.mxu3 %v4590_v11 }
 0x11d   :  { %989 = vmatpush.bf16.msra.mxu0 %v4582_v8  ;;  %1002 = vmatpush.bf16.msra.mxu1 %v4596_v13 }
 0x11e   :  { %1015 = vmatpush.bf16.msra.mxu2 %v4617_v20  ;;  %1028 = vmatpush.bf16.msra.mxu3 %v4629_v24 }
 0x121   :  { %990 = vmatpush.bf16.msra.mxu0 %v4621_v21  ;;  %1003 = vmatpush.bf16.msra.mxu1 %v4635_v26 }
 0x122   :  { %1016 = vmatpush.bf16.msra.mxu2 %v4653_v32  ;;  %1029 = vmatpush.bf16.msra.mxu3 %v4665_v36 }
 0x125   :  { %991 = vmatpush.bf16.msra.mxu0 %v4657_v33  ;;  %1004 = vmatpush.bf16.msra.mxu1 %v4668_v38 }
 0x126   :  { %1017 = vmatpush.bf16.msra.mxu2 %v4671_v39  ;;  %1030 = vmatpush.bf16.msra.mxu3 %v4707_v56 }
 0x129   :  { %992 = vmatpush.bf16.msra.mxu0 %v4684_v44  ;;  %1005 = vmatpush.bf16.msra.mxu1 %v4696_v50 }
 0x12a   :  { %1018 = vmatpush.bf16.msra.mxu2 %v4719_v62  ;;  %1031 = vmatpush.bf16.msra.mxu3 %v4731_v4 }
 0x12d   :  { %993 = vmatpush.bf16.msra.mxu0 %v4729_v3  ;;  %1006 = vmatpush.bf16.msra.mxu1 %v4740_v9 }
 0x12e   :  { %1019 = vmatpush.bf16.msra.mxu2 %v4749_v14  ;;  %1032 = vmatpush.bf16.msra.mxu3 %v4753_v15 }
 0x18c   :  { %v753_v2 = vpop.f32.mrf.mxu0  ;;  %v766_v10 = vpop.f32.mrf.mxu1 }
 0x18d   :  { %v796_v45 = vadd.f32 %v753_v2, %v324_v43  ;;  %v797_v30 = vadd.f32 %v766_v10, %v353_v55 }
 0x18f   :  { %v3443_v25 = vmul.f32 -1.442695, %v796_v45  ;;  %v3444_v17 = vmul.f32 -1.442695, %v797_v30 }
 0x191   :  { %3977 = vpow2.f32 %v3443_v25 }
 0x192   :  { %3979 = vpow2.f32 %v3444_v17 }
 0x193   :  { %v779_v0 = vpop.f32.mrf.mxu2  ;;  %v792_v54 = vpop.f32.mrf.mxu3 }
 0x194   :  { %v798_v18 = vadd.f32 %v779_v0, %v382_v42  ;;  %v755_v19 = vpop.f32.mrf.mxu0  ;;  %v768_v61 = vpop.f32.mrf.mxu1  ;;  %v799_v46 = vadd.f32 %v792_v54, %v411_v34 }
 0x196   :  { %v3445_v28 = vmul.f32 -1.442695, %v798_v18 }
 0x197   :  { %v3978_v16 = vpop.eup %3977 }
 0x198   :  { %v3980_v58 = vpop.eup %3979  ;;  %v809_v29 = vadd.f32 1.0, %v3978_v16  ;;  %3981 = vpow2.f32 %v3445_v28 }
 0x199   :  { %v810_v6 = vadd.f32 1.0, %v3980_v58 }
 0x19a   :  { %3983 = vrcp.f32 %v809_v29  ;;  %v823_v30 = vand.u32 2147483648, %v809_v29  ;;  %v821_v42 = vand.u32 2147483647, %v809_v29  ;;  %vm817_vm14 = vweird.f32 %v809_v29 }
 0x19b   :  { %3985 = vrcp.f32 %v810_v6  ;;  %v781_v23 = vpop.f32.mrf.mxu2  ;;  %v794_v5 = vpop.f32.mrf.mxu3  ;;  %v838_v25 = vand.u32 2147483648, %v810_v6  ;;  %v836_v18 = vand.u32 2147483647, %v810_v6  ;;  %vm832_vm15 = vweird.f32 %v810_v6 }
 0x19c   :  { %v824_v28 = vor.u32 1.1754944e-38, %v823_v30  ;;  %vm822_vm2 = vcmp.eq.f32.partialorder %v821_v42, 8.507059e+37 }
 0x19d   :  { %v839_v58 = vor.u32 1.1754944e-38, %v838_v25  ;;  %vm837_vm3 = vcmp.eq.f32.partialorder %v836_v18, 8.507059e+37  ;;  %v6178_v18 = vld [vmem:[#allocation5_spill] sm:$0xff] }
 0x19e   :  { %v3982_v22 = vpop.eup %3981 }
 0x19f   :  { %v811_v12 = vadd.f32 1.0, %v3982_v22 }
 0x1a0   :  { %v3984_v57 = vpop.eup %3983 }
 0x1a1   :  { %v3986_v43 = vpop.eup %3985  ;;  %v813_v55 = vmul.f32 %v3984_v57, %v809_v29  ;;  %3987 = vrcp.f32 %v811_v12  ;;  %vm818_vm12 = vweird.f32 %v3984_v57  ;;  %vm847_vm5 = vweird.f32 %v811_v12 }
 0x1a2   :  { %v828_v2 = vmul.f32 %v3986_v43, %v810_v6  ;;  %3989 = vtanh.f32 %v799_v46  ;;  %vm833_vm13 = vweird.f32 %v3986_v43  ;;  %vm819_vm0 = vmor %vm817_vm14, %vm818_vm12 }
 0x1a3   :  { %v814_v10 = vsub.f32 1.0, %v813_v55  ;;  %vm834_vm1 = vmor %vm832_vm15, %vm833_vm13 }
 0x1a4   :  { %v829_v45 = vsub.f32 1.0, %v828_v2 }
 0x1a5   :  { %v815_v17 = vmul.f32 %v3984_v57, %v814_v10 }
 0x1a6   :  { %v830_v0 = vmul.f32 %v3986_v43, %v829_v45  ;;  %v853_v45 = vand.u32 2147483648, %v811_v12 }
 0x1a7   :  { %v3988_v19 = vpop.eup %3987  ;;  %v816_v61 = vadd.f32 %v3984_v57, %v815_v17 }
 0x1a8   :  { %v843_v54 = vmul.f32 %v3988_v19, %v811_v12  ;;  %v831_v16 = vadd.f32 %v3986_v43, %v830_v0  ;;  %v3990_v5 = vpop.eup %3989  ;;  %vm848_vm4 = vweird.f32 %v3988_v19  ;;  %v854_v25 = vor.u32 1.1754944e-38, %v853_v45 }
 0x1a9   :  { %v820_v23 = vsel %vm819_vm0, %v3984_v57, %v816_v61  ;;  %v851_v57 = vand.u32 2147483647, %v811_v12  ;;  %vm849_vm6 = vmor %vm847_vm5, %vm848_vm4  ;;  %v6179_v61 = vld [vmem:[#allocation6_spill] sm:$0xff] }
 0x1aa   :  { %v844_v22 = vsub.f32 1.0, %v843_v54  ;;  %v825_v27 = vsel %vm822_vm2, %v824_v28, %v820_v23  ;;  %v835_v34 = vsel %vm834_vm1, %v3986_v43, %v831_v16 }
 0x1ab   :  { %v840_v46 = vsel %vm837_vm3, %v839_v58, %v835_v34  ;;  %v859_v55 = vmul.f32 %v3990_v5, %v825_v27  ;;  %vm852_vm7 = vcmp.eq.f32.partialorder %v851_v57, 8.507059e+37  ;;  %v6180_v5 = vld [vmem:[#allocation7_spill] sm:$0xff] }
 0x1ac   :  { %v845_v2 = vmul.f32 %v3988_v19, %v844_v22  ;;  %v858_v10 = vmul.f32 %v840_v46, %v4920_v40 }
 0x1ae   :  { %v4967_v29 = vadd.f32 %v859_v55, %v858_v10  ;;  %v846_v6 = vadd.f32 %v3988_v19, %v845_v2 }
 0x1b0   :  { %3991 = vtanh.f32 %v4967_v29  ;;  %v850_v30 = vsel %vm849_vm6, %v3988_v19, %v846_v6 }
 0x1b1   :  { %v855_v17 = vsel %vm852_vm7, %v854_v25, %v850_v30 }
 0x1b6   :  { %v3992_v43 = vpop.eup %3991 }
 0x1b7   :  { %v862_v42 = vmul.f32 %v3992_v43, %v855_v17  ;;  %v6181_v17 = vld [vmem:[#allocation9_spill] sm:$0xff] }
 0x1b9   :  { %v863_v0 = vpack.c.bf16 %v862_v42, %v862_v42 }
 0x1bb   :  { %864 = vst [vmem:[%s6147_s7 + $0x4] sm:$0xf] %v863_v0  ;;  %873 = vmatmul.bf16.vlgmr.msrb.gmra.mxu0 %v863_v0  ;;  %886 = vmatmul.bf16.vlgmr.msrb.gmra.mxu1 %v863_v0 }
 0x1bc   :  { %899 = vmatmul.bf16.vlgmr.msrb.gmra.mxu2 %v863_v0  ;;  %912 = vmatmul.bf16.vlgmr.msrb.gmra.mxu3 %v863_v0 }
 0x1bd   :  { %1107 = vmatpush.bf16.msrb.mxu0 %v4479_v37  ;;  %1120 = vmatpush.bf16.msrb.mxu1 %v4490_v41 }
 0x1be   :  { %1133 = vmatpush.bf16.msrb.mxu2 %v4507_v47  ;;  %1146 = vmatpush.bf16.msrb.mxu3 %v4518_v51 }
 0x1c1   :  { %1108 = vmatpush.bf16.msrb.mxu0 %v4510_v48  ;;  %1121 = vmatpush.bf16.msrb.mxu1 %v4524_v53 }
 0x1c2   :  { %1134 = vmatpush.bf16.msrb.mxu2 %v4542_v59  ;;  %1147 = vmatpush.bf16.msrb.mxu3 %v4554_v63 }
 0x1c5   :  { %1109 = vmatpush.bf16.msrb.mxu0 %v4546_v60  ;;  %1122 = vmatpush.bf16.msrb.mxu1 %v4560_v1 }
 0x1c6   :  { %1135 = vmatpush.bf16.msrb.mxu2 %v4578_v7  ;;  %1148 = vmatpush.bf16.msrb.mxu3 %v4590_v11 }
 0x1c9   :  { %1110 = vmatpush.bf16.msrb.mxu0 %v4582_v8  ;;  %1123 = vmatpush.bf16.msrb.mxu1 %v4596_v13 }
 0x1ca   :  { %1136 = vmatpush.bf16.msrb.mxu2 %v4617_v20  ;;  %1149 = vmatpush.bf16.msrb.mxu3 %v4629_v24 }
 0x1cd   :  { %1111 = vmatpush.bf16.msrb.mxu0 %v4621_v21  ;;  %1124 = vmatpush.bf16.msrb.mxu1 %v4635_v26 }
 0x1ce   :  { %1137 = vmatpush.bf16.msrb.mxu2 %v4653_v32  ;;  %1150 = vmatpush.bf16.msrb.mxu3 %v4665_v36 }
 0x1d1   :  { %1112 = vmatpush.bf16.msrb.mxu0 %v4657_v33  ;;  %1125 = vmatpush.bf16.msrb.mxu1 %v4668_v38 }
 0x1d2   :  { %1138 = vmatpush.bf16.msrb.mxu2 %v4671_v39  ;;  %1151 = vmatpush.bf16.msrb.mxu3 %v4707_v56 }
 0x1d5   :  { %1113 = vmatpush.bf16.msrb.mxu0 %v4684_v44  ;;  %1126 = vmatpush.bf16.msrb.mxu1 %v4696_v50 }
 0x1d6   :  { %1139 = vmatpush.bf16.msrb.mxu2 %v4719_v62  ;;  %1152 = vmatpush.bf16.msrb.mxu3 %v4731_v4 }
 0x1d9   :  { %1114 = vmatpush.bf16.msrb.mxu0 %v4729_v3  ;;  %1127 = vmatpush.bf16.msrb.mxu1 %v4740_v9 }
 0x1da   :  { %1140 = vmatpush.bf16.msrb.mxu2 %v4749_v14  ;;  %1153 = vmatpush.bf16.msrb.mxu3 %v4753_v15 }
 0x238   :  { %v874_v40 = vpop.f32.mrf.mxu0  ;;  %v887_v12 = vpop.f32.mrf.mxu1 }
 0x239   :  { %v917_v19 = vadd.f32 %v874_v40, %v6178_v18  ;;  %v918_v54 = vadd.f32 %v887_v12, %v6179_v61 }
 0x23b   :  { %v3446_v28 = vmul.f32 -1.442695, %v917_v19  ;;  %v3447_v16 = vmul.f32 -1.442695, %v918_v54 }
 0x23d   :  { %3993 = vpow2.f32 %v3446_v28 }
 0x23e   :  { %3995 = vpow2.f32 %v3447_v16 }
 0x23f   :  { %v900_v58 = vpop.f32.mrf.mxu2  ;;  %v913_v23 = vpop.f32.mrf.mxu3 }
 0x240   :  { %v919_v22 = vadd.f32 %v900_v58, %v6180_v5  ;;  %v876_v27 = vpop.f32.mrf.mxu0  ;;  %v889_v34 = vpop.f32.mrf.mxu1  ;;  %v920_v42 = vadd.f32 %v913_v23, %v6181_v17 }
 0x242   :  { %v3448_v46 = vmul.f32 -1.442695, %v919_v22 }
 0x243   :  { %v3994_v55 = vpop.eup %3993 }
 0x244   :  { %v3996_v2 = vpop.eup %3995  ;;  %v930_v10 = vadd.f32 1.0, %v3994_v55  ;;  %3997 = vpow2.f32 %v3448_v46 }
 0x245   :  { %v931_v6 = vadd.f32 1.0, %v3996_v2 }
 0x246   :  { %3999 = vrcp.f32 %v930_v10  ;;  %v944_v61 = vand.u32 2147483648, %v930_v10  ;;  %v942_v16 = vand.u32 2147483647, %v930_v10  ;;  %vm938_vm10 = vweird.f32 %v930_v10 }
 0x247   :  { %4001 = vrcp.f32 %v931_v6  ;;  %v902_v45 = vpop.f32.mrf.mxu2  ;;  %v915_v57 = vpop.f32.mrf.mxu3  ;;  %v959_v54 = vand.u32 2147483648, %v931_v6  ;;  %v957_v5 = vand.u32 2147483647, %v931_v6  ;;  %vm953_vm11 = vweird.f32 %v931_v6 }
 0x248   :  { %v945_v34 = vor.u32 1.1754944e-38, %v944_v61  ;;  %vm943_vm14 = vcmp.eq.f32.partialorder %v942_v16, 8.507059e+37 }
 0x249   :  { %v960_v55 = vor.u32 1.1754944e-38, %v959_v54  ;;  %vm958_vm15 = vcmp.eq.f32.partialorder %v957_v5, 8.507059e+37  ;;  %v6183_v5 = vld [vmem:[#allocation10_spill] sm:$0xff] }
 0x24a   :  { %v3998_v30 = vpop.eup %3997 }
 0x24b   :  { %v932_v25 = vadd.f32 1.0, %v3998_v30 }
 0x24c   :  { %v4000_v43 = vpop.eup %3999 }
 0x24d   :  { %v4002_v0 = vpop.eup %4001  ;;  %v934_v40 = vmul.f32 %v4000_v43, %v930_v10  ;;  %4003 = vrcp.f32 %v932_v25  ;;  %vm939_vm8 = vweird.f32 %v4000_v43  ;;  %vm968_vm1 = vweird.f32 %v932_v25 }
 0x24e   :  { %v949_v12 = vmul.f32 %v4002_v0, %v931_v6  ;;  %4005 = vtanh.f32 %v920_v42  ;;  %vm954_vm9 = vweird.f32 %v4002_v0  ;;  %vm940_vm12 = vmor %vm938_vm10, %vm939_vm8 }
 0x24f   :  { %v935_v18 = vsub.f32 1.0, %v934_v40  ;;  %vm955_vm13 = vmor %vm953_vm11, %vm954_vm9 }
 0x250   :  { %v950_v19 = vsub.f32 1.0, %v949_v12 }
 0x251   :  { %v936_v28 = vmul.f32 %v4000_v43, %v935_v18 }
 0x252   :  { %v951_v58 = vmul.f32 %v4002_v0, %v950_v19  ;;  %v974_v19 = vand.u32 2147483648, %v932_v25 }
 0x253   :  { %v4004_v22 = vpop.eup %4003  ;;  %v937_v27 = vadd.f32 %v4000_v43, %v936_v28 }
 0x254   :  { %v964_v23 = vmul.f32 %v4004_v22, %v932_v25  ;;  %v952_v46 = vadd.f32 %v4002_v0, %v951_v58  ;;  %v4006_v45 = vpop.eup %4005  ;;  %vm969_vm0 = vweird.f32 %v4004_v22  ;;  %v975_v54 = vor.u32 1.1754944e-38, %v974_v19 }
 0x255   :  { %v941_v2 = vsel %vm940_vm12, %v4000_v43, %v937_v27  ;;  %v972_v43 = vand.u32 2147483647, %v932_v25  ;;  %vm970_vm2 = vmor %vm968_vm1, %vm969_vm0 }
 0x256   :  { %v965_v57 = vsub.f32 1.0, %v964_v23  ;;  %v946_v30 = vsel %vm943_vm14, %v945_v34, %v941_v2  ;;  %v956_v17 = vsel %vm955_vm13, %v4002_v0, %v952_v46 }
 0x257   :  { %v961_v42 = vsel %vm958_vm15, %v960_v55, %v956_v17  ;;  %v980_v40 = vmul.f32 %v4006_v45, %v946_v30  ;;  %vm973_vm3 = vcmp.eq.f32.partialorder %v972_v43, 8.507059e+37  ;;  %v6184_v45 = vld [vmem:[#allocation11_spill] sm:$0xff] }
 0x258   :  { %v966_v12 = vmul.f32 %v4004_v22, %v965_v57  ;;  %v979_v18 = vmul.f32 %v961_v42, %v4967_v29  ;;  %v6182_v29 = vld [vmem:[#allocation8_spill] sm:$0xff]  ;;  %v387_v57 = vadd.f32 %v6184_v45, %v4854_v49 }
 0x259   :  { %v329_v25 = vadd.f32 %v6182_v29, %v4840_v31 }
 0x25a   :  { %v5010_v10 = vadd.f32 %v980_v40, %v979_v18  ;;  %v967_v6 = vadd.f32 %v4004_v22, %v966_v12 }
 0x25c   :  { %4007 = vtanh.f32 %v5010_v10  ;;  %v971_v61 = vsel %vm970_vm2, %v4004_v22, %v967_v6  ;;  %v358_v22 = vadd.f32 %v6183_v5, %v4844_v35 }
 0x25d   :  { %v976_v28 = vsel %vm973_vm3, %v975_v54, %v971_v61 }
 0x262   :  { %v4008_v0 = vpop.eup %4007 }
 0x263   :  { %v983_v16 = vmul.f32 %v4008_v0, %v976_v28 }
 0x265   :  { %v984_v58 = vpack.c.bf16 %v983_v16, %v983_v16  ;;  %v6185_v16 = vld [vmem:[#allocation12_spill] sm:$0xff] }
 0x267   :  { %985 = vst [vmem:[%s6147_s7 + $0x8] sm:$0xf] %v984_v58  ;;  %994 = vmatmul.bf16.vlgmr.msra.gmra.mxu0 %v984_v58  ;;  %1007 = vmatmul.bf16.vlgmr.msra.gmra.mxu1 %v984_v58 }
 0x268   :  { %1020 = vmatmul.bf16.vlgmr.msra.gmra.mxu2 %v984_v58  ;;  %1033 = vmatmul.bf16.vlgmr.msra.gmra.mxu3 %v984_v58  ;;  %v416_v58 = vadd.f32 %v6185_v16, %v4856_v52 }
 0x269   :  { %1228 = vmatpush.bf16.msra.mxu0 %v4479_v37  ;;  %1241 = vmatpush.bf16.msra.mxu1 %v4490_v41 }
 0x26a   :  { %1254 = vmatpush.bf16.msra.mxu2 %v4507_v47  ;;  %1267 = vmatpush.bf16.msra.mxu3 %v4518_v51 }
 0x26d   :  { %1229 = vmatpush.bf16.msra.mxu0 %v4510_v48  ;;  %1242 = vmatpush.bf16.msra.mxu1 %v4524_v53 }
 0x26e   :  { %1255 = vmatpush.bf16.msra.mxu2 %v4542_v59  ;;  %1268 = vmatpush.bf16.msra.mxu3 %v4554_v63 }
 0x271   :  { %1230 = vmatpush.bf16.msra.mxu0 %v4546_v60  ;;  %1243 = vmatpush.bf16.msra.mxu1 %v4560_v1 }
 0x272   :  { %1256 = vmatpush.bf16.msra.mxu2 %v4578_v7  ;;  %1269 = vmatpush.bf16.msra.mxu3 %v4590_v11 }
 0x275   :  { %1231 = vmatpush.bf16.msra.mxu0 %v4582_v8  ;;  %1244 = vmatpush.bf16.msra.mxu1 %v4596_v13 }
 0x276   :  { %1257 = vmatpush.bf16.msra.mxu2 %v4617_v20  ;;  %1270 = vmatpush.bf16.msra.mxu3 %v4629_v24 }
 0x279   :  { %1232 = vmatpush.bf16.msra.mxu0 %v4621_v21  ;;  %1245 = vmatpush.bf16.msra.mxu1 %v4635_v26 }
 0x27a   :  { %1258 = vmatpush.bf16.msra.mxu2 %v4653_v32  ;;  %1271 = vmatpush.bf16.msra.mxu3 %v4665_v36 }
 0x27d   :  { %1233 = vmatpush.bf16.msra.mxu0 %v4657_v33  ;;  %1246 = vmatpush.bf16.msra.mxu1 %v4668_v38 }
 0x27e   :  { %1259 = vmatpush.bf16.msra.mxu2 %v4671_v39  ;;  %1272 = vmatpush.bf16.msra.mxu3 %v4707_v56 }
 0x281   :  { %1234 = vmatpush.bf16.msra.mxu0 %v4684_v44  ;;  %1247 = vmatpush.bf16.msra.mxu1 %v4696_v50 }
 0x282   :  { %1260 = vmatpush.bf16.msra.mxu2 %v4719_v62  ;;  %1273 = vmatpush.bf16.msra.mxu3 %v4731_v4 }
 0x285   :  { %1235 = vmatpush.bf16.msra.mxu0 %v4729_v3  ;;  %1248 = vmatpush.bf16.msra.mxu1 %v4740_v9 }
 0x286   :  { %1261 = vmatpush.bf16.msra.mxu2 %v4749_v14  ;;  %1274 = vmatpush.bf16.msra.mxu3 %v4753_v15 }
 0x2e4   :  { %v995_v27 = vpop.f32.mrf.mxu0  ;;  %v1008_v23 = vpop.f32.mrf.mxu1 }
 0x2e5   :  { %v1038_v34 = vadd.f32 %v995_v27, %v329_v25  ;;  %v1039_v46 = vadd.f32 %v1008_v23, %v358_v22 }
 0x2e7   :  { %v3449_v55 = vmul.f32 -1.442695, %v1038_v34  ;;  %v3450_v2 = vmul.f32 -1.442695, %v1039_v46 }
 0x2e9   :  { %4009 = vpow2.f32 %v3449_v55 }
 0x2ea   :  { %4011 = vpow2.f32 %v3450_v2 }
 0x2eb   :  { %v1021_v30 = vpop.f32.mrf.mxu2  ;;  %v1034_v17 = vpop.f32.mrf.mxu3 }
 0x2ec   :  { %v1040_v42 = vadd.f32 %v1021_v30, %v387_v57  ;;  %v997_v40 = vpop.f32.mrf.mxu0  ;;  %v1010_v12 = vpop.f32.mrf.mxu1  ;;  %v1041_v5 = vadd.f32 %v1034_v17, %v416_v58 }
 0x2ee   :  { %v3451_v18 = vmul.f32 -1.442695, %v1040_v42 }
 0x2ef   :  { %v4010_v6 = vpop.eup %4009 }
 0x2f0   :  { %v4012_v19 = vpop.eup %4011  ;;  %v1051_v43 = vadd.f32 1.0, %v4010_v6  ;;  %4013 = vpow2.f32 %v3451_v18 }
 0x2f1   :  { %v1052_v61 = vadd.f32 1.0, %v4012_v19 }
 0x2f2   :  { %4015 = vrcp.f32 %v1051_v43  ;;  %v1065_v55 = vand.u32 2147483648, %v1051_v43  ;;  %v1063_v57 = vand.u32 2147483647, %v1051_v43  ;;  %vm1059_vm6 = vweird.f32 %v1051_v43 }
 0x2f3   :  { %4017 = vrcp.f32 %v1052_v61  ;;  %v1023_v54 = vpop.f32.mrf.mxu2  ;;  %v1036_v0 = vpop.f32.mrf.mxu3  ;;  %v1080_v2 = vand.u32 2147483648, %v1052_v61  ;;  %v1078_v42 = vand.u32 2147483647, %v1052_v61  ;;  %vm1074_vm7 = vweird.f32 %v1052_v61 }
 0x2f4   :  { %v1066_v18 = vor.u32 1.1754944e-38, %v1065_v55  ;;  %vm1064_vm10 = vcmp.eq.f32.partialorder %v1063_v57, 8.507059e+37 }
 0x2f5   :  { %v1081_v19 = vor.u32 1.1754944e-38, %v1080_v2  ;;  %vm1079_vm11 = vcmp.eq.f32.partialorder %v1078_v42, 8.507059e+37  ;;  %v6186_v42 = vld [vmem:[#allocation13_spill] sm:$0xff] }
 0x2f6   :  { %v4014_v28 = vpop.eup %4013 }
 0x2f7   :  { %v1053_v29 = vadd.f32 1.0, %v4014_v28 }
 0x2f8   :  { %v4016_v25 = vpop.eup %4015 }
 0x2f9   :  { %v4018_v22 = vpop.eup %4017  ;;  %v1055_v27 = vmul.f32 %v4016_v25, %v1051_v43  ;;  %4019 = vrcp.f32 %v1053_v29  ;;  %vm1060_vm4 = vweird.f32 %v4016_v25  ;;  %vm1089_vm13 = vweird.f32 %v1053_v29 }
 0x2fa   :  { %v1070_v23 = vmul.f32 %v4018_v22, %v1052_v61  ;;  %4021 = vtanh.f32 %v1041_v5  ;;  %vm1075_vm5 = vweird.f32 %v4018_v22  ;;  %vm1061_vm8 = vmor %vm1059_vm6, %vm1060_vm4 }
 0x2fb   :  { %v1056_v34 = vsub.f32 1.0, %v1055_v27  ;;  %vm1076_vm9 = vmor %vm1074_vm7, %vm1075_vm5 }
 0x2fc   :  { %v1071_v46 = vsub.f32 1.0, %v1070_v23 }
 0x2fd   :  { %v1057_v45 = vmul.f32 %v4016_v25, %v1056_v34 }
 0x2fe   :  { %v1072_v30 = vmul.f32 %v4018_v22, %v1071_v46  ;;  %v1095_v46 = vand.u32 2147483648, %v1053_v29 }
 0x2ff   :  { %v4020_v40 = vpop.eup %4019  ;;  %v1058_v12 = vadd.f32 %v4016_v25, %v1057_v45 }
 0x300   :  { %v1085_v17 = vmul.f32 %v4020_v40, %v1053_v29  ;;  %v1073_v6 = vadd.f32 %v4018_v22, %v1072_v30  ;;  %v4022_v0 = vpop.eup %4021  ;;  %vm1090_vm12 = vweird.f32 %v4020_v40  ;;  %v1096_v2 = vor.u32 1.1754944e-38, %v1095_v46 }
 0x301   :  { %v1062_v54 = vsel %vm1061_vm8, %v4016_v25, %v1058_v12  ;;  %v1093_v25 = vand.u32 2147483647, %v1053_v29  ;;  %vm1091_vm14 = vmor %vm1089_vm13, %vm1090_vm12  ;;  %v6187_v12 = vld [vmem:[#allocation14_spill] sm:$0xff] }
 0x302   :  { %v1086_v28 = vsub.f32 1.0, %v1085_v17  ;;  %v1067_v16 = vsel %vm1064_vm10, %v1066_v18, %v1062_v54  ;;  %v1077_v58 = vsel %vm1076_vm9, %v4018_v22, %v1073_v6 }
 0x303   :  { %v1082_v5 = vsel %vm1079_vm11, %v1081_v19, %v1077_v58  ;;  %v1101_v27 = vmul.f32 %v4022_v0, %v1067_v16  ;;  %vm1094_vm15 = vcmp.eq.f32.partialorder %v1093_v25, 8.507059e+37  ;;  %v6188_v0 = vld [vmem:[#allocation15_spill] sm:$0xff] }
 0x304   :  { %v1087_v23 = vmul.f32 %v4020_v40, %v1086_v28  ;;  %v1100_v34 = vmul.f32 %v1082_v5, %v5010_v10 }
 0x306   :  { %v5057_v43 = vadd.f32 %v1101_v27, %v1100_v34  ;;  %v1088_v61 = vadd.f32 %v4020_v40, %v1087_v23 }
 0x308   :  { %4023 = vtanh.f32 %v5057_v43  ;;  %v1092_v55 = vsel %vm1091_vm14, %v4020_v40, %v1088_v61 }
 0x309   :  { %v1097_v45 = vsel %vm1094_vm15, %v1096_v2, %v1092_v55 }
 0x30e   :  { %v4024_v22 = vpop.eup %4023 }
 0x30f   :  { %v1104_v57 = vmul.f32 %v4024_v22, %v1097_v45  ;;  %v6189_v45 = vld [vmem:[#allocation17_spill] sm:$0xff] }
 0x311   :  { %v1105_v30 = vpack.c.bf16 %v1104_v57, %v1104_v57 }
 0x313   :  { %1106 = vst [vmem:[%s6147_s7 + $0xc] sm:$0xf] %v1105_v30  ;;  %1115 = vmatmul.bf16.vlgmr.msrb.gmra.mxu0 %v1105_v30  ;;  %1128 = vmatmul.bf16.vlgmr.msrb.gmra.mxu1 %v1105_v30 }
 0x314   :  { %1141 = vmatmul.bf16.vlgmr.msrb.gmra.mxu2 %v1105_v30  ;;  %1154 = vmatmul.bf16.vlgmr.msrb.gmra.mxu3 %v1105_v30 }
 0x315   :  { %1349 = vmatpush.bf16.msrb.mxu0 %v4479_v37  ;;  %1362 = vmatpush.bf16.msrb.mxu1 %v4490_v41 }
 0x316   :  { %1375 = vmatpush.bf16.msrb.mxu2 %v4507_v47  ;;  %1388 = vmatpush.bf16.msrb.mxu3 %v4518_v51 }
 0x319   :  { %1350 = vmatpush.bf16.msrb.mxu0 %v4510_v48  ;;  %1363 = vmatpush.bf16.msrb.mxu1 %v4524_v53 }
 0x31a   :  { %1376 = vmatpush.bf16.msrb.mxu2 %v4542_v59  ;;  %1389 = vmatpush.bf16.msrb.mxu3 %v4554_v63 }
 0x31d   :  { %1351 = vmatpush.bf16.msrb.mxu0 %v4546_v60  ;;  %1364 = vmatpush.bf16.msrb.mxu1 %v4560_v1 }
 0x31e   :  { %1377 = vmatpush.bf16.msrb.mxu2 %v4578_v7  ;;  %1390 = vmatpush.bf16.msrb.mxu3 %v4590_v11 }
 0x321   :  { %1352 = vmatpush.bf16.msrb.mxu0 %v4582_v8  ;;  %1365 = vmatpush.bf16.msrb.mxu1 %v4596_v13 }
 0x322   :  { %1378 = vmatpush.bf16.msrb.mxu2 %v4617_v20  ;;  %1391 = vmatpush.bf16.msrb.mxu3 %v4629_v24 }
 0x325   :  { %1353 = vmatpush.bf16.msrb.mxu0 %v4621_v21  ;;  %1366 = vmatpush.bf16.msrb.mxu1 %v4635_v26 }
 0x326   :  { %1379 = vmatpush.bf16.msrb.mxu2 %v4653_v32  ;;  %1392 = vmatpush.bf16.msrb.mxu3 %v4665_v36 }
 0x329   :  { %1354 = vmatpush.bf16.msrb.mxu0 %v4657_v33  ;;  %1367 = vmatpush.bf16.msrb.mxu1 %v4668_v38 }
 0x32a   :  { %1380 = vmatpush.bf16.msrb.mxu2 %v4671_v39  ;;  %1393 = vmatpush.bf16.msrb.mxu3 %v4707_v56 }
 0x32d   :  { %1355 = vmatpush.bf16.msrb.mxu0 %v4684_v44  ;;  %1368 = vmatpush.bf16.msrb.mxu1 %v4696_v50 }
 0x32e   :  { %1381 = vmatpush.bf16.msrb.mxu2 %v4719_v62  ;;  %1394 = vmatpush.bf16.msrb.mxu3 %v4731_v4 }
 0x331   :  { %1356 = vmatpush.bf16.msrb.mxu0 %v4729_v3  ;;  %1369 = vmatpush.bf16.msrb.mxu1 %v4740_v9 }
 0x332   :  { %1382 = vmatpush.bf16.msrb.mxu2 %v4749_v14  ;;  %1395 = vmatpush.bf16.msrb.mxu3 %v4753_v15 }
 0x390   :  { %v1116_v10 = vpop.f32.mrf.mxu0  ;;  %v1129_v29 = vpop.f32.mrf.mxu1 }
 0x391   :  { %v1159_v40 = vadd.f32 %v1116_v10, %v6186_v42  ;;  %v1160_v17 = vadd.f32 %v1129_v29, %v6187_v12 }
 0x393   :  { %v3452_v18 = vmul.f32 -1.442695, %v1159_v40  ;;  %v3453_v6 = vmul.f32 -1.442695, %v1160_v17 }
 0x395   :  { %4025 = vpow2.f32 %v3452_v18 }
 0x396   :  { %4027 = vpow2.f32 %v3453_v6 }
 0x397   :  { %v1142_v19 = vpop.f32.mrf.mxu2  ;;  %v1155_v54 = vpop.f32.mrf.mxu3 }
 0x398   :  { %v1161_v28 = vadd.f32 %v1142_v19, %v6188_v0  ;;  %v1118_v16 = vpop.f32.mrf.mxu0  ;;  %v1131_v58 = vpop.f32.mrf.mxu1  ;;  %v1162_v57 = vadd.f32 %v1155_v54, %v6189_v45 }
 0x39a   :  { %v3454_v5 = vmul.f32 -1.442695, %v1161_v28 }
 0x39b   :  { %v4026_v27 = vpop.eup %4025 }
 0x39c   :  { %v4028_v23 = vpop.eup %4027  ;;  %v1172_v34 = vadd.f32 1.0, %v4026_v27  ;;  %4029 = vpow2.f32 %v3454_v5 }
 0x39d   :  { %v1173_v61 = vadd.f32 1.0, %v4028_v23 }
 0x39e   :  { %4031 = vrcp.f32 %v1172_v34  ;;  %v1186_v12 = vand.u32 2147483648, %v1172_v34  ;;  %v1184_v6 = vand.u32 2147483647, %v1172_v34  ;;  %vm1180_vm2 = vweird.f32 %v1172_v34 }
 0x39f   :  { %4033 = vrcp.f32 %v1173_v61  ;;  %v1144_v46 = vpop.f32.mrf.mxu2  ;;  %v1157_v25 = vpop.f32.mrf.mxu3  ;;  %v1201_v17 = vand.u32 2147483648, %v1173_v61  ;;  %v1199_v0 = vand.u32 2147483647, %v1173_v61  ;;  %vm1195_vm3 = vweird.f32 %v1173_v61 }
 0x3a0   :  { %v1187_v58 = vor.u32 1.1754944e-38, %v1186_v12  ;;  %vm1185_vm6 = vcmp.eq.f32.partialorder %v1184_v6, 8.507059e+37 }
 0x3a1   :  { %v1202_v27 = vor.u32 1.1754944e-38, %v1201_v17  ;;  %vm1200_vm7 = vcmp.eq.f32.partialorder %v1199_v0, 8.507059e+37 }
 0x3a2   :  { %v4030_v55 = vpop.eup %4029 }
 0x3a3   :  { %v1174_v2 = vadd.f32 1.0, %v4030_v55 }
 0x3a4   :  { %v4032_v22 = vpop.eup %4031 }
 0x3a5   :  { %v4034_v30 = vpop.eup %4033  ;;  %v1176_v10 = vmul.f32 %v4032_v22, %v1172_v34  ;;  %4035 = vrcp.f32 %v1174_v2  ;;  %vm1181_vm0 = vweird.f32 %v4032_v22  ;;  %vm1210_vm9 = vweird.f32 %v1174_v2 }
 0x3a6   :  { %v1191_v29 = vmul.f32 %v4034_v30, %v1173_v61  ;;  %4037 = vtanh.f32 %v1162_v57  ;;  %vm1196_vm1 = vweird.f32 %v4034_v30  ;;  %vm1182_vm4 = vmor %vm1180_vm2, %vm1181_vm0 }
 0x3a7   :  { %v1177_v42 = vsub.f32 1.0, %v1176_v10  ;;  %vm1197_vm5 = vmor %vm1195_vm3, %vm1196_vm1 }
 0x3a8   :  { %v1192_v40 = vsub.f32 1.0, %v1191_v29 }
 0x3a9   :  { %v1178_v18 = vmul.f32 %v4032_v22, %v1177_v42 }
 0x3aa   :  { %v1193_v19 = vmul.f32 %v4034_v30, %v1192_v40  ;;  %v1216_v40 = vand.u32 2147483648, %v1174_v2 }
 0x3ab   :  { %v4036_v28 = vpop.eup %4035  ;;  %v1179_v16 = vadd.f32 %v4032_v22, %v1178_v18 }
 0x3ac   :  { %v1206_v54 = vmul.f32 %v4036_v28, %v1174_v2  ;;  %v1194_v5 = vadd.f32 %v4034_v30, %v1193_v19  ;;  %v4038_v46 = vpop.eup %4037  ;;  %vm1211_vm8 = vweird.f32 %v4036_v28  ;;  %v1217_v17 = vor.u32 1.1754944e-38, %v1216_v40 }
 0x3ad   :  { %v1183_v23 = vsel %vm1182_vm4, %v4032_v22, %v1179_v16  ;;  %v1214_v22 = vand.u32 2147483647, %v1174_v2  ;;  %vm1212_vm10 = vmor %vm1210_vm9, %vm1211_vm8 }
 0x3ae   :  { %v1207_v25 = vsub.f32 1.0, %v1206_v54  ;;  %v1188_v55 = vsel %vm1185_vm6, %v1187_v58, %v1183_v23  ;;  %v1198_v45 = vsel %vm1197_vm5, %v4034_v30, %v1194_v5 }
 0x3af   :  { %v1203_v57 = vsel %vm1200_vm7, %v1202_v27, %v1198_v45  ;;  %v1222_v10 = vmul.f32 %v4038_v46, %v1188_v55  ;;  %vm1215_vm11 = vcmp.eq.f32.partialorder %v1214_v22, 8.507059e+37 }
 0x3b0   :  { %v1208_v29 = vmul.f32 %v4036_v28, %v1207_v25  ;;  %v1221_v42 = vmul.f32 %v1203_v57, %v5057_v43 }
 0x3b2   :  { %v5100_v34 = vadd.f32 %v1222_v10, %v1221_v42  ;;  %v1209_v61 = vadd.f32 %v4036_v28, %v1208_v29 }
 0x3b4   :  { %4039 = vtanh.f32 %v5100_v34  ;;  %v1213_v12 = vsel %vm1212_vm10, %v4036_v28, %v1209_v61 }
 0x3b5   :  { %v1218_v18 = vsel %vm1215_vm11, %v1217_v17, %v1213_v12 }
 0x3ba   :  { %v4040_v30 = vpop.eup %4039 }
 0x3bb   :  { %v1225_v6 = vmul.f32 %v4040_v30, %v1218_v18 }
 0x3bd   :  { %v1226_v19 = vpack.c.bf16 %v1225_v6, %v1225_v6 }
 0x3bf   :  { %1227 = vst [vmem:[%s6147_s7 + $0x10] sm:$0xf] %v1226_v19  ;;  %1236 = vmatmul.bf16.vlgmr.msra.gmra.mxu0 %v1226_v19  ;;  %1249 = vmatmul.bf16.vlgmr.msra.gmra.mxu1 %v1226_v19 }
 0x3c0   :  { %1262 = vmatmul.bf16.vlgmr.msra.gmra.mxu2 %v1226_v19  ;;  %1275 = vmatmul.bf16.vlgmr.msra.gmra.mxu3 %v1226_v19 }
 0x3c1   :  { %1470 = vmatpush.bf16.msra.mxu0 %v4479_v37  ;;  %1483 = vmatpush.bf16.msra.mxu1 %v4490_v41  ;;  %v6190_v37 = vld [vmem:[#allocation16_spill] sm:$0xff] }
 0x3c2   :  { %1496 = vmatpush.bf16.msra.mxu2 %v4507_v47  ;;  %1509 = vmatpush.bf16.msra.mxu3 %v4518_v51  ;;  %v334_v41 = vadd.f32 %v6190_v37, %v4840_v31  ;;  %v6191_v47 = vld [vmem:[#allocation18_spill] sm:$0xff] }
 0x3c5   :  { %1471 = vmatpush.bf16.msra.mxu0 %v4510_v48  ;;  %1484 = vmatpush.bf16.msra.mxu1 %v4524_v53  ;;  %v363_v48 = vadd.f32 %v6191_v47, %v4844_v35 }
 0x3c6   :  { %1497 = vmatpush.bf16.msra.mxu2 %v4542_v59  ;;  %1510 = vmatpush.bf16.msra.mxu3 %v4554_v63 }
 0x3c9   :  { %1472 = vmatpush.bf16.msra.mxu0 %v4546_v60  ;;  %1485 = vmatpush.bf16.msra.mxu1 %v4560_v1 }
 0x3ca   :  { %1498 = vmatpush.bf16.msra.mxu2 %v4578_v7  ;;  %1511 = vmatpush.bf16.msra.mxu3 %v4590_v11  ;;  %v6192_v7 = vld [vmem:[#allocation19_spill] sm:$0xff] }
 0x3cd   :  { %1473 = vmatpush.bf16.msra.mxu0 %v4582_v8  ;;  %1486 = vmatpush.bf16.msra.mxu1 %v4596_v13  ;;  %v392_v8 = vadd.f32 %v6192_v7, %v4854_v49  ;;  %v3629_v7 = vld [vmem:[%s6141_s2 + $0x1f0] sm:$0xf0] }
 0x3ce   :  { %1499 = vmatpush.bf16.msra.mxu2 %v4617_v20  ;;  %1512 = vmatpush.bf16.msra.mxu3 %v4629_v24 }
 0x3d1   :  { %1474 = vmatpush.bf16.msra.mxu0 %v4621_v21  ;;  %1487 = vmatpush.bf16.msra.mxu1 %v4635_v26 }
 0x3d2   :  { %1500 = vmatpush.bf16.msra.mxu2 %v4653_v32  ;;  %1513 = vmatpush.bf16.msra.mxu3 %v4665_v36 }
 0x3d5   :  { %1475 = vmatpush.bf16.msra.mxu0 %v4657_v33  ;;  %1488 = vmatpush.bf16.msra.mxu1 %v4668_v38 }
 0x3d6   :  { %1501 = vmatpush.bf16.msra.mxu2 %v4671_v39  ;;  %1514 = vmatpush.bf16.msra.mxu3 %v4707_v56  ;;  %v6193_v56 = vld [vmem:[#allocation20_spill] sm:$0xff] }
 0x3d9   :  { %1476 = vmatpush.bf16.msra.mxu0 %v4684_v44  ;;  %1489 = vmatpush.bf16.msra.mxu1 %v4696_v50 }
 0x3da   :  { %1502 = vmatpush.bf16.msra.mxu2 %v4719_v62  ;;  %1515 = vmatpush.bf16.msra.mxu3 %v4731_v4  ;;  %v421_v62 = vadd.f32 %v6193_v56, %v4856_v52  ;;  %v3923_v56 = vld [vmem:[%s6141_s2 + $0x1cc] sm:$0xf0] }
 0x3dd   :  { %1477 = vmatpush.bf16.msra.mxu0 %v4729_v3  ;;  %1490 = vmatpush.bf16.msra.mxu1 %v4740_v9 }
 0x3de   :  { %1503 = vmatpush.bf16.msra.mxu2 %v4749_v14  ;;  %1516 = vmatpush.bf16.msra.mxu3 %v4753_v15 }
 0x43c   :  { %v1237_v51 = vpop.f32.mrf.mxu0  ;;  %v1250_v53 = vpop.f32.mrf.mxu1 }
 0x43d   :  { %v1280_v59 = vadd.f32 %v1237_v51, %v334_v41  ;;  %v1281_v60 = vadd.f32 %v1250_v53, %v363_v48 }
 0x43f   :  { %v3455_v63 = vmul.f32 -1.442695, %v1280_v59  ;;  %v3456_v1 = vmul.f32 -1.442695, %v1281_v60  ;;  %v3927_v60 = vld [vmem:[%s6141_s2 + $0x1ec] sm:$0xf0] }
 0x441   :  { %4041 = vpow2.f32 %v3455_v63  ;;  %v3925_v63 = vld [vmem:[%s6141_s2 + $0x1e4] sm:$0xf] }
 0x442   :  { %4043 = vpow2.f32 %v3456_v1 }
 0x443   :  { %v1263_v11 = vpop.f32.mrf.mxu2  ;;  %v1276_v13 = vpop.f32.mrf.mxu3 }
 0x444   :  { %v1282_v20 = vadd.f32 %v1263_v11, %v392_v8  ;;  %v1239_v21 = vpop.f32.mrf.mxu0  ;;  %v1252_v24 = vpop.f32.mrf.mxu1  ;;  %v1283_v9 = vadd.f32 %v1276_v13, %v421_v62  ;;  %v3635_v8 = vld [vmem:[%s6141_s2 + $0x1e8] sm:$0xf]  ;;  %v3928_v11 = vld [vmem:[%s6141_s2 + $0x1f4] sm:$0xf0]  ;;  %v3921_v62 = vld [vmem:[%s6141_s2 + $0x1c4] sm:$0xf] }
 0x445   :  { %v3632_v21 = vor.u32 %v3925_v63, %v3629_v7  ;;  %v3636_v24 = vor.u32 %v3928_v11, %v3635_v8 }
 0x446   :  { %v3457_v26 = vmul.f32 -1.442695, %v1282_v20 }
 0x447   :  { %v4042_v32 = vpop.eup %4041 }
 0x448   :  { %v4044_v33 = vpop.eup %4043  ;;  %v1293_v36 = vadd.f32 1.0, %v4042_v32  ;;  %4045 = vpow2.f32 %v3457_v26  ;;  %v3926_v26 = vld [vmem:[%s6141_s2 + $0x1ec] sm:$0xf]  ;;  %v3637_v32 = vld [vmem:[%s6141_s2 + $0x1f8] sm:$0xf0] }
 0x449   :  { %v1294_v38 = vadd.f32 1.0, %v4044_v33  ;;  %v6194_v33 = vld [vmem:[#allocation21_spill] sm:$0xff] }
 0x44a   :  { %4047 = vrcp.f32 %v1293_v36  ;;  %v1307_v28 = vand.u32 2147483648, %v1293_v36  ;;  %v1305_v58 = vand.u32 2147483647, %v1293_v36  ;;  %vm1301_vm14 = vweird.f32 %v1293_v36 }
 0x44b   :  { %4049 = vrcp.f32 %v1294_v38  ;;  %v1265_v39 = vpop.f32.mrf.mxu2  ;;  %v1278_v44 = vpop.f32.mrf.mxu3  ;;  %v1322_v16 = vand.u32 2147483648, %v1294_v38  ;;  %v1320_v27 = vand.u32 2147483647, %v1294_v38  ;;  %vm1316_vm15 = vweird.f32 %v1294_v38 }
 0x44c   :  { %v1308_v55 = vor.u32 1.1754944e-38, %v1307_v28  ;;  %vm1306_vm2 = vcmp.eq.f32.partialorder %v1305_v58, 8.507059e+37  ;;  %v3640_v44 = vor.u32 %v3926_v26, %v3637_v32  ;;  %v3919_v58 = vld [vmem:[%s6141_s2 + $0x1ac] sm:$0xf0] }
 0x44d   :  { %v1323_v57 = vor.u32 1.1754944e-38, %v1322_v16  ;;  %vm1321_vm3 = vcmp.eq.f32.partialorder %v1320_v27, 8.507059e+37  ;;  %v3621_v16 = vld [vmem:[%s6141_s2 + $0x1d8] sm:$0xf0]  ;;  %v3911_v26 = vld [vmem:[%s6141_s2 + $0x16c] sm:$0xf0] }
 0x44e   :  { %v4046_v50 = vpop.eup %4045 }
 0x44f   :  { %v1295_v3 = vadd.f32 1.0, %v4046_v50  ;;  %v3611_v50 = vld [vmem:[%s6141_s2 + $0x1c0] sm:$0xf] }
 0x450   :  { %v4048_v4 = vpop.eup %4047 }
 0x451   :  { %v4050_v14 = vpop.eup %4049  ;;  %v1297_v15 = vmul.f32 %v4048_v4, %v1293_v36  ;;  %4051 = vrcp.f32 %v1295_v3  ;;  %vm1302_vm12 = vweird.f32 %v4048_v4  ;;  %v1337_v19 = vand.u32 2147483648, %v1295_v3 }
 0x452   :  { %v1312_v43 = vmul.f32 %v4050_v14, %v1294_v38  ;;  %4053 = vtanh.f32 %v1283_v9  ;;  %vm1317_vm13 = vweird.f32 %v4050_v14  ;;  %vm1303_vm0 = vmor %vm1301_vm14, %vm1302_vm12  ;;  %vm1331_vm5 = vweird.f32 %v1295_v3  ;;  %v6195_v38 = vld [vmem:[#allocation22_spill] sm:$0xff] }
 0x453   :  { %v1298_v2 = vsub.f32 1.0, %v1297_v15  ;;  %vm1318_vm1 = vmor %vm1316_vm15, %vm1317_vm13  ;;  %v1335_v37 = vand.u32 2147483647, %v1295_v3  ;;  %v1338_v47 = vor.u32 1.1754944e-38, %v1337_v19  ;;  %v3612_v9 = vor.u32 %v3923_v56, %v3611_v50  ;;  %v3915_v19 = vld [vmem:[%s6141_s2 + $0x18c] sm:$0xf0] }
 0x454   :  { %v1313_v0 = vsub.f32 1.0, %v1312_v43  ;;  %v3619_v43 = vld [vmem:[%s6141_s2 + $0x1c8] sm:$0xf]  ;;  %v3912_v50 = vld [vmem:[%s6141_s2 + $0x174] sm:$0xf0] }
 0x455   :  { %v1299_v54 = vmul.f32 %v4048_v4, %v1298_v2  ;;  %vm1336_vm7 = vcmp.eq.f32.partialorder %v1335_v37, 8.507059e+37  ;;  %v3924_v2 = vld [vmem:[%s6141_s2 + $0x1d4] sm:$0xf0]  ;;  %v3913_v37 = vld [vmem:[%s6141_s2 + $0x184] sm:$0xf] }
 0x456   :  { %v1314_v5 = vmul.f32 %v4050_v14, %v1313_v0  ;;  %v3922_v0 = vld [vmem:[%s6141_s2 + $0x1cc] sm:$0xf]  ;;  %v3620_v28 = vor.u32 %v3924_v2, %v3619_v43 }
 0x457   :  { %v4052_v23 = vpop.eup %4051  ;;  %v1300_v46 = vadd.f32 %v4048_v4, %v1299_v54  ;;  %v3595_v54 = vld [vmem:[%s6141_s2 + $0x1a0] sm:$0xf] }
 0x458   :  { %v1327_v25 = vmul.f32 %v4052_v23, %v1295_v3  ;;  %v1315_v45 = vadd.f32 %v4050_v14, %v1314_v5  ;;  %v4054_v29 = vpop.eup %4053  ;;  %vm1332_vm4 = vweird.f32 %v4052_v23  ;;  %v3624_v5 = vor.u32 %v3922_v0, %v3621_v16  ;;  %v3907_v0 = vld [vmem:[%s6141_s2 + $0x14c] sm:$0xf0] }
 0x459   :  { %v1304_v10 = vsel %vm1303_vm0, %v4048_v4, %v1300_v46  ;;  %vm1333_vm6 = vmor %vm1331_vm5, %vm1332_vm4  ;;  %v3596_v27 = vor.u32 %v3919_v58, %v3595_v54  ;;  %v3597_v46 = vld [vmem:[%s6141_s2 + $0x1b0] sm:$0xf0] }
 0x45a   :  { %v1328_v42 = vsub.f32 1.0, %v1327_v25  ;;  %v1309_v61 = vsel %vm1306_vm2, %v1308_v55, %v1304_v10  ;;  %v1319_v40 = vsel %vm1318_vm1, %v4050_v14, %v1315_v45  ;;  %v3613_v14 = vld [vmem:[%s6141_s2 + $0x1d0] sm:$0xf0]  ;;  %v3603_v25 = vld [vmem:[%s6141_s2 + $0x1a8] sm:$0xf] }
 0x45b   :  { %v1324_v22 = vsel %vm1321_vm3, %v1323_v57, %v1319_v40  ;;  %v1343_v12 = vmul.f32 %v4054_v29, %v1309_v61  ;;  %v3616_v15 = vor.u32 %v3921_v62, %v3613_v14  ;;  %v3920_v10 = vld [vmem:[%s6141_s2 + $0x1b4] sm:$0xf0]  ;;  %v3918_v29 = vld [vmem:[%s6141_s2 + $0x1ac] sm:$0xf]  ;;  %v3573_v14 = vld [vmem:[%s6141_s2 + $0x178] sm:$0xf0] }
 0x45c   :  { %v1329_v17 = vmul.f32 %v4052_v23, %v1328_v42  ;;  %v1342_v30 = vmul.f32 %v1324_v22, %v5100_v34  ;;  %v3627_v34 = vld [vmem:[%s6141_s2 + $0x1e0] sm:$0xf]  ;;  %v3605_v42 = vld [vmem:[%s6141_s2 + $0x1b8] sm:$0xf0]  ;;  %v6197_v62 = vld [vmem:[#allocation25_spill] sm:$0xff] }
 0x45d   :  { %v3628_v1 = vor.u32 %v3927_v60, %v3627_v34  ;;  %v6196_v61 = vld [vmem:[#allocation23_spill] sm:$0xff]  ;;  %v3914_v34 = vld [vmem:[%s6141_s2 + $0x18c] sm:$0xf]  ;;  %v3549_v58 = vld [vmem:[%s6141_s2 + $0x150] sm:$0xf0] }
 0x45e   :  { %v5147_v18 = vadd.f32 %v1343_v12, %v1342_v30  ;;  %v1330_v6 = vadd.f32 %v4052_v23, %v1329_v17  ;;  %v3604_v17 = vor.u32 %v3920_v10, %v3603_v25  ;;  %v3608_v30 = vor.u32 %v3918_v29, %v3605_v42  ;;  %v3589_v60 = vld [vmem:[%s6141_s2 + $0x198] sm:$0xf0]  ;;  %v3531_v29 = vld [vmem:[%s6141_s2 + $0x120] sm:$0xf]  ;;  %v3903_v42 = vld [vmem:[%s6141_s2 + $0x12c] sm:$0xf0] }
 0x45f   :  { %v3592_v11 = vor.u32 %v3914_v34, %v3589_v60  ;;  %v3902_v34 = vld [vmem:[%s6141_s2 + $0x12c] sm:$0xf]  ;;  %v3541_v60 = vld [vmem:[%s6141_s2 + $0x138] sm:$0xf0] }
 0x460   :  { %4055 = vtanh.f32 %v5147_v18  ;;  %v1334_v41 = vsel %vm1333_vm6, %v4052_v23, %v1330_v6  ;;  %v3917_v23 = vld [vmem:[%s6141_s2 + $0x1a4] sm:$0xf]  ;;  %v3579_v6 = vld [vmem:[%s6141_s2 + $0x180] sm:$0xf] }
 0x461   :  { %v1339_v51 = vsel %vm1336_vm7, %v1338_v47, %v1334_v41  ;;  %v3600_v57 = vor.u32 %v3917_v23, %v3597_v46  ;;  %v3580_v41 = vor.u32 %v3915_v19, %v3579_v6  ;;  %v3581_v47 = vld [vmem:[%s6141_s2 + $0x190] sm:$0xf0] }
 0x466   :  { %v4056_v48 = vpop.eup %4055 }
 0x467   :  { %v1346_v53 = vmul.f32 %v4056_v48, %v1339_v51  ;;  %v3587_v48 = vld [vmem:[%s6141_s2 + $0x188] sm:$0xf]  ;;  %v3916_v51 = vld [vmem:[%s6141_s2 + $0x194] sm:$0xf0] }
 0x469   :  { %v1347_v59 = vpack.c.bf16 %v1346_v53, %v1346_v53 }
 0x46b   :  { %1348 = vst [vmem:[%s6147_s7 + $0x14] sm:$0xf] %v1347_v59  ;;  %1357 = vmatmul.bf16.vlgmr.msrb.gmra.mxu0 %v1347_v59  ;;  %1370 = vmatmul.bf16.vlgmr.msrb.gmra.mxu1 %v1347_v59 }
 0x46c   :  { %1383 = vmatmul.bf16.vlgmr.msrb.gmra.mxu2 %v1347_v59  ;;  %1396 = vmatmul.bf16.vlgmr.msrb.gmra.mxu3 %v1347_v59  ;;  %v3584_v59 = vor.u32 %v3913_v37, %v3581_v47  ;;  %v3539_v47 = vld [vmem:[%s6141_s2 + $0x128] sm:$0xf] }
 0x46d   :  { %1829 = vmatpush.bf16.msrb.mxu0 %v3628_v1  ;;  %1858 = vmatpush.bf16.msrb.mxu1 %v3632_v21  ;;  %v3588_v1 = vor.u32 %v3916_v51, %v3587_v48  ;;  %v3904_v48 = vld [vmem:[%s6141_s2 + $0x134] sm:$0xf0] }
 0x46e   :  { %1887 = vmatpush.bf16.msrb.mxu2 %v3636_v24  ;;  %1916 = vmatpush.bf16.msrb.mxu3 %v3640_v44  ;;  %v3571_v44 = vld [vmem:[%s6141_s2 + $0x168] sm:$0xf] }
 0x471   :  { %1830 = vmatpush.bf16.msrb.mxu0 %v3612_v9  ;;  %1859 = vmatpush.bf16.msrb.mxu1 %v3616_v15  ;;  %v3910_v9 = vld [vmem:[%s6141_s2 + $0x16c] sm:$0xf]  ;;  %v3547_v15 = vld [vmem:[%s6141_s2 + $0x140] sm:$0xf] }
 0x472   :  { %1888 = vmatpush.bf16.msrb.mxu2 %v3620_v28  ;;  %1917 = vmatpush.bf16.msrb.mxu3 %v3624_v5  ;;  %v3576_v2 = vor.u32 %v3910_v9, %v3573_v14  ;;  %v3905_v28 = vld [vmem:[%s6141_s2 + $0x144] sm:$0xf]  ;;  %v3548_v54 = vor.u32 %v3907_v0, %v3547_v15  ;;  %v3555_v5 = vld [vmem:[%s6141_s2 + $0x148] sm:$0xf] }
 0x475   :  { %1831 = vmatpush.bf16.msrb.mxu0 %v3596_v27  ;;  %1860 = vmatpush.bf16.msrb.mxu1 %v3600_v57  ;;  %v3908_v27 = vld [vmem:[%s6141_s2 + $0x154] sm:$0xf0] }
 0x476   :  { %1889 = vmatpush.bf16.msrb.mxu2 %v3604_v17  ;;  %1918 = vmatpush.bf16.msrb.mxu3 %v3608_v30  ;;  %v3901_v17 = vld [vmem:[%s6141_s2 + $0x124] sm:$0xf]  ;;  %v3533_v30 = vld [vmem:[%s6141_s2 + $0x130] sm:$0xf0] }
 0x479   :  { %1832 = vmatpush.bf16.msrb.mxu0 %v3580_v41  ;;  %1861 = vmatpush.bf16.msrb.mxu1 %v3584_v59  ;;  %v3532_v41 = vor.u32 %v3903_v42, %v3531_v29  ;;  %v3540_v59 = vor.u32 %v3904_v48, %v3539_v47  ;;  %v3795_v29 = vld [vmem:[%s6142_s3 + $0x1e8] sm:$0xf]  ;;  %v3773_v47 = vld [vmem:[%s6142_s3 + $0x1d0] sm:$0xf0] }
 0x47a   :  { %1890 = vmatpush.bf16.msrb.mxu2 %v3588_v1  ;;  %1919 = vmatpush.bf16.msrb.mxu3 %v3592_v11  ;;  %v3899_v11 = vld [vmem:[%s6141_s2 + $0x10c] sm:$0xf0] }
 0x47e   :  { %1920 = vmatpush.bf16.msrb.mxu3 %v3576_v2 }
 0x4e8   :  { %v1358_v13 = vpop.f32.mrf.mxu0  ;;  %v1371_v20 = vpop.f32.mrf.mxu1 }
 0x4e9   :  { %v1401_v36 = vadd.f32 %v1358_v13, %v6194_v33  ;;  %v1402_v39 = vadd.f32 %v1371_v20, %v6195_v38  ;;  %v3563_v20 = vld [vmem:[%s6141_s2 + $0x160] sm:$0xf]  ;;  %v3909_v33 = vld [vmem:[%s6141_s2 + $0x164] sm:$0xf] }
 0x4ea   :  { %v3564_v32 = vor.u32 %v3911_v26, %v3563_v20  ;;  %v3897_v20 = vld [vmem:[%s6141_s2 + $0x104] sm:$0xf] }
 0x4eb   :  { %v3458_v3 = vmul.f32 -1.442695, %v1401_v36  ;;  %v3459_v4 = vmul.f32 -1.442695, %v1402_v39  ;;  %v3565_v36 = vld [vmem:[%s6141_s2 + $0x170] sm:$0xf0] }
 0x4ec   :  { %v3568_v39 = vor.u32 %v3909_v33, %v3565_v36  ;;  %1833 = vmatpush.bf16.msrb.mxu0 %v3564_v32  ;;  %v3523_v33 = vld [vmem:[%s6141_s2 + $0x108] sm:$0xf]  ;;  %v3900_v36 = vld [vmem:[%s6141_s2 + $0x114] sm:$0xf0] }
 0x4ed   :  { %4057 = vpow2.f32 %v3458_v3 }
 0x4ee   :  { %4059 = vpow2.f32 %v3459_v4  ;;  %v3572_v4 = vor.u32 %v3912_v50, %v3571_v44  ;;  %1862 = vmatpush.bf16.msrb.mxu1 %v3568_v39 }
 0x4ef   :  { %v1384_v55 = vpop.f32.mrf.mxu2  ;;  %v1397_v45 = vpop.f32.mrf.mxu3 }
 0x4f0   :  { %v1403_v40 = vadd.f32 %v1384_v55, %v6196_v61  ;;  %v1360_v22 = vpop.f32.mrf.mxu0  ;;  %v1373_v12 = vpop.f32.mrf.mxu1  ;;  %v1404_v3 = vadd.f32 %v1397_v45, %v6197_v62  ;;  %1891 = vmatpush.bf16.msrb.mxu2 %v3572_v4  ;;  %v3906_v55 = vld [vmem:[%s6141_s2 + $0x14c] sm:$0xf]  ;;  %v3557_v45 = vld [vmem:[%s6141_s2 + $0x158] sm:$0xf0]  ;;  %1834 = vmatpush.bf16.msrb.mxu0 %v3548_v54  ;;  %v3524_v4 = vor.u32 %v3900_v36, %v3523_v33 }
 0x4f1   :  { %v3552_v22 = vor.u32 %v3905_v28, %v3549_v58  ;;  %v3556_v12 = vor.u32 %v3908_v27, %v3555_v5  ;;  %v3560_v37 = vor.u32 %v3906_v55, %v3557_v45  ;;  %v3959_v55 = vld [vmem:[%s6142_s3 + $0x1ec] sm:$0xf0]  ;;  %v3950_v33 = vld [vmem:[%s6142_s3 + $0x1ac] sm:$0xf] }
 0x4f2   :  { %v3460_v53 = vmul.f32 -1.442695, %v1403_v40 }
 0x4f3   :  { %v4058_v63 = vpop.eup %4057  ;;  %1863 = vmatpush.bf16.msrb.mxu1 %v3552_v22  ;;  %1921 = vmatpush.bf16.msrb.mxu3 %v3560_v37  ;;  %v3797_v22 = vld [vmem:[%s6142_s3 + $0x1f8] sm:$0xf0]  ;;  %v3955_v37 = vld [vmem:[%s6142_s3 + $0x1cc] sm:$0xf0] }
 0x4f4   :  { %v4060_v7 = vpop.eup %4059  ;;  %v5252_v8 = vadd.f32 1.0, %v4058_v63  ;;  %4061 = vpow2.f32 %v3460_v53  ;;  %1892 = vmatpush.bf16.msrb.mxu2 %v3556_v12  ;;  %v3536_v53 = vor.u32 %v3901_v17, %v3533_v30  ;;  %v3515_v63 = vld [vmem:[%s6141_s2 + $0x100] sm:$0xf]  ;;  %1835 = vmatpush.bf16.msrb.mxu0 %v3532_v41  ;;  %v3953_v41 = vld [vmem:[%s6142_s3 + $0x1c4] sm:$0xf] }
 0x4f5   :  { %v5254_v13 = vadd.f32 1.0, %v4060_v7  ;;  %v3544_v7 = vor.u32 %v3902_v34, %v3541_v60  ;;  %v3516_v32 = vor.u32 %v3899_v11, %v3515_v63  ;;  %v5455_v34 = vor.u32 %v3953_v41, %v3773_v47  ;;  %v3755_v60 = vld [vmem:[%s6142_s3 + $0x1a0] sm:$0xf]  ;;  %v3951_v63 = vld [vmem:[%s6142_s3 + $0x1ac] sm:$0xf0]  ;;  %v3894_v47 = vld [vmem:[%s6148_s1 + $0x8] sm:$0xff] }
 0x4f6   :  { %4063 = vrcp.f32 %v5252_v8  ;;  %v1426_v38 = vand.u32 2147483647, %v5252_v8  ;;  %v1428_v25 = vand.u32 2147483648, %v5252_v8  ;;  %vm1422_vm12 = vweird.f32 %v5252_v8  ;;  %v3757_v11 = vld [vmem:[%s6142_s3 + $0x1b0] sm:$0xf0] }
 0x4f7   :  { %4065 = vrcp.f32 %v5254_v13  ;;  %v1386_v21 = vpop.f32.mrf.mxu2  ;;  %v1399_v24 = vpop.f32.mrf.mxu3  ;;  %v1441_v10 = vand.u32 2147483647, %v5254_v13  ;;  %v1443_v40 = vand.u32 2147483648, %v5254_v13  ;;  %vm1437_vm11 = vweird.f32 %v5254_v13  ;;  %1864 = vmatpush.bf16.msrb.mxu1 %v3536_v53  ;;  %1922 = vmatpush.bf16.msrb.mxu3 %v3544_v7  ;;  %v3956_v53 = vld [vmem:[%s6142_s3 + $0x1d4] sm:$0xf0] }
 0x4f8   :  { %vm5334_vm8 = vcmp.eq.f32.partialorder %v1426_v38, 8.507059e+37  ;;  %v3517_v21 = vld [vmem:[%s6141_s2 + $0x110] sm:$0xf0]  ;;  %v3898_v38 = vld [vmem:[%s6141_s2 + $0x10c] sm:$0xf]  ;;  %1893 = vmatpush.bf16.msrb.mxu2 %v3540_v59  ;;  %1836 = vmatpush.bf16.msrb.mxu0 %v3516_v32  ;;  %v5492_v36 = vor.u32 %v3951_v63, %v3755_v60 }
 0x4f9   :  { %v1444_v44 = vor.u32 1.1754944e-38, %v1443_v40  ;;  %vm1442_vm15 = vcmp.eq.f32.partialorder %v1441_v10, 8.507059e+37  ;;  %v3957_v10 = vld [vmem:[%s6142_s3 + $0x1e4] sm:$0xf]  ;;  %v3958_v40 = vld [vmem:[%s6142_s3 + $0x1ec] sm:$0xf] }
 0x4fa   :  { %v4062_v56 = vpop.eup %4061  ;;  %v5440_v48 = vor.u32 %v3958_v40, %v3797_v22  ;;  %v3715_v40 = vld [vmem:[%s6142_s3 + $0x148] sm:$0xf]  ;;  %v3940_v22 = vld [vmem:[%s6142_s3 + $0x154] sm:$0xf0]  ;;  %v3933_v60 = vld [vmem:[%s6142_s3 + $0x124] sm:$0xf] }
 0x4fb   :  { %v5287_v43 = vadd.f32 1.0, %v4062_v56  ;;  %v3525_v56 = vld [vmem:[%s6141_s2 + $0x118] sm:$0xf0] }
 0x4fc   :  { %v5295_v16 = vpop.eup %4063  ;;  %v3528_v2 = vor.u32 %v3898_v38, %v3525_v56  ;;  %1894 = vmatpush.bf16.msrb.mxu2 %v3524_v4  ;;  %v3741_v56 = vld [vmem:[%s6142_s3 + $0x190] sm:$0xf0]  ;;  %v3948_v4 = vld [vmem:[%s6142_s3 + $0x194] sm:$0xf0] }
 0x4fd   :  { %v5306_v23 = vpop.eup %4065  ;;  %v1418_v46 = vmul.f32 %v5295_v16, %v5252_v8  ;;  %4067 = vrcp.f32 %v5287_v43  ;;  %vm1423_vm9 = vweird.f32 %v5295_v16  ;;  %v1429_v8 = vor.u32 1.1754944e-38, %v1428_v25 }
 0x4fe   :  { %v1433_v57 = vmul.f32 %v5306_v23, %v5254_v13  ;;  %4069 = vtanh.f32 %v1404_v3  ;;  %vm1438_vm10 = vweird.f32 %v5306_v23  ;;  %vm1424_vm13 = vmor %vm1422_vm12, %vm1423_vm9  ;;  %v3520_v3 = vor.u32 %v3897_v20, %v3517_v21  ;;  %1923 = vmatpush.bf16.msrb.mxu3 %v3528_v2  ;;  %v3954_v20 = vld [vmem:[%s6142_s3 + $0x1cc] sm:$0xf]  ;;  %v3781_v21 = vld [vmem:[%s6142_s3 + $0x1d8] sm:$0xf0] }
 0x4ff   :  { %v1419_v61 = vsub.f32 1.0, %v1418_v46  ;;  %vm1439_vm14 = vmor %vm1437_vm11, %vm1438_vm10  ;;  %v1458_v27 = vand.u32 2147483648, %v5287_v43  ;;  %vm1452_vm1 = vweird.f32 %v5287_v43  ;;  %v5485_v32 = vor.u32 %v3954_v20, %v3781_v21  ;;  %v3893_v2 = vld [vmem:[%s6148_s1] sm:$0xff]  ;;  %v3936_v20 = vld [vmem:[%s6142_s3 + $0x134] sm:$0xf0] }
 0x500   :  { %v1434_v6 = vsub.f32 1.0, %v1433_v57  ;;  %1865 = vmatpush.bf16.msrb.mxu1 %v3520_v3  ;;  %v3747_v3 = vld [vmem:[%s6142_s3 + $0x188] sm:$0xf] }
 0x501   :  { %v1420_v51 = vmul.f32 %v5295_v16, %v1419_v61  ;;  %v1459_v25 = vor.u32 1.1754944e-38, %v1458_v27  ;;  %v3960_v61 = vld [vmem:[%s6142_s3 + $0x1f4] sm:$0xf0]  ;;  %v3731_v27 = vld [vmem:[%s6142_s3 + $0x168] sm:$0xf] }
 0x502   :  { %v1435_v1 = vmul.f32 %v5306_v23, %v1434_v6  ;;  %v3771_v6 = vld [vmem:[%s6142_s3 + $0x1c0] sm:$0xf]  ;;  %v5429_v19 = vor.u32 %v3960_v61, %v3795_v29  ;;  %v3709_v29 = vld [vmem:[%s6142_s3 + $0x150] sm:$0xf0] }
 0x503   :  { %v4068_v24 = vpop.eup %4067  ;;  %v1421_v26 = vadd.f32 %v5295_v16, %v1420_v51  ;;  %v3779_v51 = vld [vmem:[%s6142_s3 + $0x1c8] sm:$0xf]  ;;  %v5453_v59 = vor.u32 %v3955_v37, %v3771_v6  ;;  %v5600_v6 = vor.u32 %v3940_v22, %v3715_v40  ;;  %v3733_v37 = vld [vmem:[%s6142_s3 + $0x178] sm:$0xf0]  ;;  %v6200_v40 = vld [vmem:[#allocation24_spill] sm:$0xff] }
 0x504   :  { %v4070_v39 = vpop.eup %4069  ;;  %v1448_v13 = vmul.f32 %v4068_v24, %v5287_v43  ;;  %v1436_v50 = vadd.f32 %v5306_v23, %v1435_v1  ;;  %vm1453_vm0 = vweird.f32 %v4068_v24  ;;  %v3949_v1 = vld [vmem:[%s6142_s3 + $0x1a4] sm:$0xf]  ;;  %v5467_v7 = vor.u32 %v3956_v53, %v3779_v51  ;;  %v3691_v51 = vld [vmem:[%s6142_s3 + $0x120] sm:$0xf]  ;;  %v3935_v53 = vld [vmem:[%s6142_s3 + $0x12c] sm:$0xf0] }
 0x505   :  { %v1425_v62 = vsel %vm1424_vm13, %v5295_v16, %v1421_v26  ;;  %vm1454_vm2 = vmor %vm1452_vm1, %vm1453_vm0  ;;  %v3952_v26 = vld [vmem:[%s6142_s3 + $0x1b4] sm:$0xf0]  ;;  %v5494_v38 = vor.u32 %v3949_v1, %v3757_v11  ;;  %v5623_v63 = vor.u32 %v3935_v53, %v3691_v51  ;;  %v3693_v1 = vld [vmem:[%s6142_s3 + $0x130] sm:$0xf0]  ;;  %v339_v22 = vadd.f32 %v6200_v40, %v4840_v31 }
 0x506   :  { %v1449_v9 = vsub.f32 1.0, %v1448_v13  ;;  %v1430_v14 = vsel %vm5334_vm8, %v1429_v8, %v1425_v62  ;;  %v1440_v15 = vsel %vm1439_vm14, %v5306_v23, %v1436_v50  ;;  %v1456_v23 = vand.u32 2147483647, %v5287_v43  ;;  %v3789_v43 = vld [vmem:[%s6142_s3 + $0x1f0] sm:$0xf0] }
 0x507   :  { %v1445_v0 = vsel %vm1442_vm15, %v1444_v44, %v1440_v15  ;;  %v1464_v28 = vmul.f32 %v4070_v39, %v1430_v14  ;;  %v5424_v30 = vor.u32 %v3957_v10, %v3789_v43  ;;  %v3739_v39 = vld [vmem:[%s6142_s3 + $0x180] sm:$0xf]  ;;  %v3765_v44 = vld [vmem:[%s6142_s3 + $0x1b8] sm:$0xf0]  ;;  %v3947_v8 = vld [vmem:[%s6142_s3 + $0x18c] sm:$0xf0]  ;;  %v5530_v15 = vor.u32 %v3948_v4, %v3747_v3 }
 0x508   :  { %v1450_v54 = vmul.f32 %v4068_v24, %v1449_v9  ;;  %v1463_v58 = vmul.f32 %v1445_v0, %v5147_v18  ;;  %vm1457_vm3 = vcmp.eq.f32.partialorder %v1456_v23, 8.507059e+37  ;;  %v3787_v18 = vld [vmem:[%s6142_s3 + $0x1e0] sm:$0xf]  ;;  %v3945_v50 = vld [vmem:[%s6142_s3 + $0x184] sm:$0xf]  ;;  %v5515_v62 = vor.u32 %v3950_v33, %v3765_v44 }
 0x509   :  { %v5422_v17 = vor.u32 %v3959_v55, %v3787_v18  ;;  %v5525_v9 = vor.u32 %v3947_v8, %v3739_v39  ;;  %v5527_v14 = vor.u32 %v3945_v50, %v3741_v56  ;;  %v3723_v0 = vld [vmem:[%s6142_s3 + $0x160] sm:$0xf]  ;;  %v3944_v23 = vld [vmem:[%s6142_s3 + $0x174] sm:$0xf0]  ;;  %v3946_v18 = vld [vmem:[%s6142_s3 + $0x18c] sm:$0xf]  ;;  %v5634_v21 = vor.u32 %v3933_v60, %v3693_v1 }
 0x50a   :  { %v5392_v16 = vadd.f32 %v1464_v28, %v1463_v58  ;;  %v1451_v5 = vadd.f32 %v4068_v24, %v1450_v54  ;;  %v3943_v28 = vld [vmem:[%s6142_s3 + $0x16c] sm:$0xf0]  ;;  %v3941_v54 = vld [vmem:[%s6142_s3 + $0x164] sm:$0xf]  ;;  %v3749_v55 = vld [vmem:[%s6142_s3 + $0x198] sm:$0xf0] }
 0x50b   :  { %v5548_v58 = vor.u32 %v3943_v28, %v3723_v0  ;;  %v3939_v10 = vld [vmem:[%s6142_s3 + $0x14c] sm:$0xf0]  ;;  %v3937_v43 = vld [vmem:[%s6142_s3 + $0x144] sm:$0xf]  ;;  %v3699_v11 = vld [vmem:[%s6142_s3 + $0x128] sm:$0xf] }
 0x50c   :  { %4071 = vtanh.f32 %v5392_v16  ;;  %v1455_v46 = vsel %vm1454_vm2, %v4068_v24, %v1451_v5  ;;  %v3763_v24 = vld [vmem:[%s6142_s3 + $0x1a8] sm:$0xf]  ;;  %v3725_v5 = vld [vmem:[%s6142_s3 + $0x170] sm:$0xf0]  ;;  %v5588_v61 = vor.u32 %v3937_v43, %v3709_v29  ;;  %v3717_v33 = vld [vmem:[%s6142_s3 + $0x158] sm:$0xf0] }
 0x50d   :  { %v1460_v57 = vsel %vm1457_vm3, %v1459_v25, %v1455_v46  ;;  %v5503_v13 = vor.u32 %v3952_v26, %v3763_v24  ;;  %v5559_v46 = vor.u32 %v3941_v54, %v3725_v5  ;;  %v5561_v25 = vor.u32 %v3944_v23, %v3731_v27  ;;  %v3938_v26 = vld [vmem:[%s6142_s3 + $0x14c] sm:$0xf]  ;;  %v3675_v39 = vld [vmem:[%s6142_s3 + $0x100] sm:$0xf]  ;;  %v3931_v8 = vld [vmem:[%s6142_s3 + $0x10c] sm:$0xf0] }
 0x50e   :  { %v5636_v24 = vor.u32 %v3936_v20, %v3699_v11  ;;  %v5648_v44 = vor.u32 %v3938_v26, %v3717_v33  ;;  %v3929_v50 = vld [vmem:[%s6142_s3 + $0x104] sm:$0xf]  ;;  %v3677_v56 = vld [vmem:[%s6142_s3 + $0x110] sm:$0xf0]  ;;  %v5661_v3 = vor.u32 %v3931_v8, %v3675_v39  ;;  %v3701_v0 = vld [vmem:[%s6142_s3 + $0x138] sm:$0xf0] }
 0x50f   :  { %v5663_v4 = vor.u32 %v3929_v50, %v3677_v56  ;;  %v3683_v28 = vld [vmem:[%s6142_s3 + $0x108] sm:$0xf]  ;;  %v3932_v5 = vld [vmem:[%s6142_s3 + $0x114] sm:$0xf0]  ;;  %v3930_v23 = vld [vmem:[%s6142_s3 + $0x10c] sm:$0xf] }
 0x510   :  { %v5680_v27 = vor.u32 %v3932_v5, %v3683_v28  ;;  %v71_v43 = vld [vmem:[%s6144_s5 + $0x8] sm:$0xff]  ;;  %v6202_v20 = vld [vmem:[#allocation27_spill] sm:$0xff] }
 0x511   :  { %v1982_v29 = vpack.c.bf16 %v71_v43, %v71_v43  ;;  %v397_v26 = vadd.f32 %v6202_v20, %v4854_v49 }
 0x512   :  { %v4072_v45 = vpop.eup %4071 }
 0x513   :  { %v1467_v42 = vmul.f32 %v4072_v45, %v1460_v57  ;;  %v3707_v45 = vld [vmem:[%s6142_s3 + $0x140] sm:$0xf]  ;;  %v5573_v57 = vor.u32 %v3946_v18, %v3749_v55  ;;  %v3685_v18 = vld [vmem:[%s6142_s3 + $0x118] sm:$0xf0] }
 0x514   :  { %v5692_v55 = vor.u32 %v3930_v23, %v3685_v18 }
 0x515   :  { %v1468_v12 = vpack.c.bf16 %v1467_v42, %v1467_v42  ;;  %v5586_v42 = vor.u32 %v3939_v10, %v3707_v45  ;;  %v3895_v45 = vld [vmem:[%s6148_s1 + $0x10] sm:$0xff]  ;;  %v3896_v10 = vld [vmem:[%s6148_s1 + $0x18] sm:$0xff] }
 0x517   :  { %1469 = vst [vmem:[%s6147_s7 + $0x18] sm:$0xf] %v1468_v12  ;;  %1478 = vmatmul.bf16.vlgmr.msra.gmra.mxu0 %v1468_v12  ;;  %1491 = vmatmul.bf16.vlgmr.msra.gmra.mxu1 %v1468_v12 }
 0x518   :  { %1504 = vmatmul.bf16.vlgmr.msra.gmra.mxu2 %v1468_v12  ;;  %1517 = vmatmul.bf16.vlgmr.msra.gmra.mxu3 %v1468_v12  ;;  %v3942_v12 = vld [vmem:[%s6142_s3 + $0x16c] sm:$0xf] }
 0x519   :  { %2143 = vmatpush.bf16.msra.mxu0 %v5422_v17  ;;  %2156 = vmatpush.bf16.msra.mxu1 %v5424_v30  ;;  %v5605_v41 = vor.u32 %v3942_v12, %v3733_v37  ;;  %v6201_v12 = vld [vmem:[#allocation26_spill] sm:$0xff] }
 0x51a   :  { %2169 = vmatpush.bf16.msra.mxu2 %v5429_v19  ;;  %2182 = vmatpush.bf16.msra.mxu3 %v5440_v48  ;;  %v368_v37 = vadd.f32 %v6201_v12, %v4844_v35  ;;  %v3496_v35 = vld [vmem:[%s6145_s4 + $0x4] sm:$0xf] }
 0x51b   :  { %v5777_v23 = vperm.slane %v3496_v35, 0  ;;  %v5779_v18 = vperm.slane %v3496_v35, 1 }
 0x51d   :  { %2144 = vmatpush.bf16.msra.mxu0 %v5453_v59  ;;  %2157 = vmatpush.bf16.msra.mxu1 %v5455_v34 }
 0x51e   :  { %2170 = vmatpush.bf16.msra.mxu2 %v5467_v7  ;;  %2183 = vmatpush.bf16.msra.mxu3 %v5485_v32 }
 0x521   :  { %2145 = vmatpush.bf16.msra.mxu0 %v5492_v36  ;;  %2158 = vmatpush.bf16.msra.mxu1 %v5494_v38 }
 0x522   :  { %2171 = vmatpush.bf16.msra.mxu2 %v5503_v13  ;;  %2184 = vmatpush.bf16.msra.mxu3 %v5515_v62 }
 0x525   :  { %2146 = vmatpush.bf16.msra.mxu0 %v5525_v9  ;;  %2159 = vmatpush.bf16.msra.mxu1 %v5527_v14 }
 0x526   :  { %2172 = vmatpush.bf16.msra.mxu2 %v5530_v15  ;;  %2185 = vmatpush.bf16.msra.mxu3 %v5573_v57 }
 0x527   :  { %1837 = vmatmul.bf16.vlgmr.msrb.gmra.mxu0 %v3893_v2  ;;  %1866 = vmatmul.bf16.vlgmr.msrb.gmra.mxu1 %v3893_v2 }
 0x528   :  { %1895 = vmatmul.bf16.vlgmr.msrb.gmra.mxu2 %v3893_v2  ;;  %1924 = vmatmul.bf16.vlgmr.msrb.gmra.mxu3 %v3893_v2  ;;  %v3934_v2 = vld [vmem:[%s6142_s3 + $0x12c] sm:$0xf] }
 0x529   :  { %2147 = vmatpush.bf16.msra.mxu0 %v5548_v58  ;;  %2160 = vmatpush.bf16.msra.mxu1 %v5559_v46  ;;  %v5675_v54 = vor.u32 %v3934_v2, %v3701_v0 }
 0x52a   :  { %2173 = vmatpush.bf16.msra.mxu2 %v5561_v25  ;;  %2186 = vmatpush.bf16.msra.mxu3 %v5605_v41 }
 0x52d   :  { %2148 = vmatpush.bf16.msra.mxu0 %v5586_v42  ;;  %2161 = vmatpush.bf16.msra.mxu1 %v5588_v61 }
 0x52e   :  { %2174 = vmatpush.bf16.msra.mxu2 %v5600_v6  ;;  %2187 = vmatpush.bf16.msra.mxu3 %v5648_v44 }
 0x531   :  { %2149 = vmatpush.bf16.msra.mxu0 %v5623_v63  ;;  %2162 = vmatpush.bf16.msra.mxu1 %v5634_v21 }
 0x532   :  { %2175 = vmatpush.bf16.msra.mxu2 %v5636_v24  ;;  %2188 = vmatpush.bf16.msra.mxu3 %v5675_v54 }
 0x535   :  { %2150 = vmatpush.bf16.msra.mxu0 %v5661_v3  ;;  %2163 = vmatpush.bf16.msra.mxu1 %v5663_v4 }
 0x536   :  { %2176 = vmatpush.bf16.msra.mxu2 %v5680_v27  ;;  %2189 = vmatpush.bf16.msra.mxu3 %v5692_v55 }
 0x537   :  { %1842 = vmatmul.bf16.gmra.mxu0 %v3894_v47  ;;  %1871 = vmatmul.bf16.gmra.mxu1 %v3894_v47 }
 0x538   :  { %1900 = vmatmul.bf16.gmra.mxu2 %v3894_v47  ;;  %1929 = vmatmul.bf16.gmra.mxu3 %v3894_v47 }
 0x539   :  { %2264 = vmatpush.bf16.msrb.mxu0 %v5422_v17  ;;  %2277 = vmatpush.bf16.msrb.mxu1 %v5424_v30 }
 0x53a   :  { %2290 = vmatpush.bf16.msrb.mxu2 %v5429_v19  ;;  %2303 = vmatpush.bf16.msrb.mxu3 %v5440_v48 }
 0x53d   :  { %2265 = vmatpush.bf16.msrb.mxu0 %v5453_v59  ;;  %2278 = vmatpush.bf16.msrb.mxu1 %v5455_v34 }
 0x53e   :  { %2291 = vmatpush.bf16.msrb.mxu2 %v5467_v7  ;;  %2304 = vmatpush.bf16.msrb.mxu3 %v5485_v32 }
 0x541   :  { %2266 = vmatpush.bf16.msrb.mxu0 %v5492_v36  ;;  %2279 = vmatpush.bf16.msrb.mxu1 %v5494_v38 }
 0x542   :  { %2292 = vmatpush.bf16.msrb.mxu2 %v5503_v13  ;;  %2305 = vmatpush.bf16.msrb.mxu3 %v5515_v62 }
 0x545   :  { %2267 = vmatpush.bf16.msrb.mxu0 %v5525_v9  ;;  %2280 = vmatpush.bf16.msrb.mxu1 %v5527_v14 }
 0x546   :  { %2293 = vmatpush.bf16.msrb.mxu2 %v5530_v15  ;;  %2306 = vmatpush.bf16.msrb.mxu3 %v5573_v57 }
 0x547   :  { %1847 = vmatmul.bf16.gmra.mxu0 %v3895_v45  ;;  %1876 = vmatmul.bf16.gmra.mxu1 %v3895_v45 }
 0x548   :  { %1905 = vmatmul.bf16.gmra.mxu2 %v3895_v45  ;;  %1934 = vmatmul.bf16.gmra.mxu3 %v3895_v45 }
 0x549   :  { %2268 = vmatpush.bf16.msrb.mxu0 %v5548_v58  ;;  %2281 = vmatpush.bf16.msrb.mxu1 %v5559_v46 }
 0x54a   :  { %2294 = vmatpush.bf16.msrb.mxu2 %v5561_v25  ;;  %2307 = vmatpush.bf16.msrb.mxu3 %v5605_v41 }
 0x54d   :  { %2269 = vmatpush.bf16.msrb.mxu0 %v5586_v42  ;;  %2282 = vmatpush.bf16.msrb.mxu1 %v5588_v61 }
 0x54e   :  { %2295 = vmatpush.bf16.msrb.mxu2 %v5600_v6  ;;  %2308 = vmatpush.bf16.msrb.mxu3 %v5648_v44 }
 0x551   :  { %2270 = vmatpush.bf16.msrb.mxu0 %v5623_v63  ;;  %2283 = vmatpush.bf16.msrb.mxu1 %v5634_v21 }
 0x552   :  { %2296 = vmatpush.bf16.msrb.mxu2 %v5636_v24  ;;  %2309 = vmatpush.bf16.msrb.mxu3 %v5675_v54 }
 0x555   :  { %2271 = vmatpush.bf16.msrb.mxu0 %v5661_v3  ;;  %2284 = vmatpush.bf16.msrb.mxu1 %v5663_v4 }
 0x556   :  { %2297 = vmatpush.bf16.msrb.mxu2 %v5680_v27  ;;  %2310 = vmatpush.bf16.msrb.mxu3 %v5692_v55 }
 0x557   :  { %1852 = vmatmul.bf16.gmra.mxu0 %v3896_v10  ;;  %1881 = vmatmul.bf16.gmra.mxu1 %v3896_v10 }
 0x558   :  { %1910 = vmatmul.bf16.gmra.mxu2 %v3896_v10  ;;  %1939 = vmatmul.bf16.gmra.mxu3 %v3896_v10 }
 0x567   :  { %2151 = vmatmul.bf16.vlgmr.msra.gmra.mxu0 %v1982_v29  ;;  %2164 = vmatmul.bf16.vlgmr.msra.gmra.mxu1 %v1982_v29 }
 0x568   :  { %2177 = vmatmul.bf16.vlgmr.msra.gmra.mxu2 %v1982_v29  ;;  %2190 = vmatmul.bf16.vlgmr.msra.gmra.mxu3 %v1982_v29  ;;  %v6203_v29 = vld [vmem:[#allocation28_spill] sm:$0xff] }
 0x569   :  { %2385 = vmatpush.bf16.msra.mxu0 %v5422_v17  ;;  %2398 = vmatpush.bf16.msra.mxu1 %v5424_v30  ;;  %v426_v40 = vadd.f32 %v6203_v29, %v4856_v52 }
 0x56a   :  { %2411 = vmatpush.bf16.msra.mxu2 %v5429_v19  ;;  %2424 = vmatpush.bf16.msra.mxu3 %v5440_v48 }
 0x56d   :  { %2386 = vmatpush.bf16.msra.mxu0 %v5453_v59  ;;  %2399 = vmatpush.bf16.msra.mxu1 %v5455_v34 }
 0x56e   :  { %2412 = vmatpush.bf16.msra.mxu2 %v5467_v7  ;;  %2425 = vmatpush.bf16.msra.mxu3 %v5485_v32 }
 0x571   :  { %2387 = vmatpush.bf16.msra.mxu0 %v5492_v36  ;;  %2400 = vmatpush.bf16.msra.mxu1 %v5494_v38 }
 0x572   :  { %2413 = vmatpush.bf16.msra.mxu2 %v5503_v13  ;;  %2426 = vmatpush.bf16.msra.mxu3 %v5515_v62 }
 0x575   :  { %2388 = vmatpush.bf16.msra.mxu0 %v5525_v9  ;;  %2401 = vmatpush.bf16.msra.mxu1 %v5527_v14 }
 0x576   :  { %2414 = vmatpush.bf16.msra.mxu2 %v5530_v15  ;;  %2427 = vmatpush.bf16.msra.mxu3 %v5573_v57 }
 0x579   :  { %2389 = vmatpush.bf16.msra.mxu0 %v5548_v58  ;;  %2402 = vmatpush.bf16.msra.mxu1 %v5559_v46 }
 0x57a   :  { %2415 = vmatpush.bf16.msra.mxu2 %v5561_v25  ;;  %2428 = vmatpush.bf16.msra.mxu3 %v5605_v41 }
 0x57d   :  { %2390 = vmatpush.bf16.msra.mxu0 %v5586_v42  ;;  %2403 = vmatpush.bf16.msra.mxu1 %v5588_v61 }
 0x57e   :  { %2416 = vmatpush.bf16.msra.mxu2 %v5600_v6  ;;  %2429 = vmatpush.bf16.msra.mxu3 %v5648_v44 }
 0x581   :  { %2391 = vmatpush.bf16.msra.mxu0 %v5623_v63  ;;  %2404 = vmatpush.bf16.msra.mxu1 %v5634_v21 }
 0x582   :  { %2417 = vmatpush.bf16.msra.mxu2 %v5636_v24  ;;  %2430 = vmatpush.bf16.msra.mxu3 %v5675_v54 }
 0x585   :  { %2392 = vmatpush.bf16.msra.mxu0 %v5661_v3  ;;  %2405 = vmatpush.bf16.msra.mxu1 %v5663_v4 }
 0x586   :  { %2418 = vmatpush.bf16.msra.mxu2 %v5680_v27  ;;  %2431 = vmatpush.bf16.msra.mxu3 %v5692_v55 }
 0x594   :  { %v1479_v47 = vpop.f32.mrf.mxu0  ;;  %v1492_v51 = vpop.f32.mrf.mxu1 }
 0x595   :  { %v1522_v53 = vadd.f32 %v1479_v47, %v339_v22  ;;  %v1523_v60 = vadd.f32 %v1492_v51, %v368_v37 }
 0x597   :  { %v3461_v1 = vmul.f32 -1.442695, %v1522_v53  ;;  %v3462_v11 = vmul.f32 -1.442695, %v1523_v60  ;;  %v5791_v60 = vperm.slane %v3496_v35, 2 }
 0x599   :  { %4073 = vpow2.f32 %v3461_v1  ;;  %v5793_v1 = vperm.slane %v3496_v35, 3 }
 0x59a   :  { %4075 = vpow2.f32 %v3462_v11 }
 0x59b   :  { %v1505_v33 = vpop.f32.mrf.mxu2  ;;  %v1518_v39 = vpop.f32.mrf.mxu3 }
 0x59c   :  { %v1524_v8 = vadd.f32 %v1505_v33, %v397_v26  ;;  %v1481_v50 = vpop.f32.mrf.mxu0  ;;  %v1494_v56 = vpop.f32.mrf.mxu1  ;;  %v1525_v51 = vadd.f32 %v1518_v39, %v426_v40 }
 0x59e   :  { %v3463_v31 = vmul.f32 -1.442695, %v1524_v8 }
 0x59f   :  { %v4074_v2 = vpop.eup %4073 }
 0x5a0   :  { %v4076_v0 = vpop.eup %4075  ;;  %v1535_v28 = vadd.f32 1.0, %v4074_v2  ;;  %4077 = vpow2.f32 %v3463_v31 }
 0x5a1   :  { %v1536_v5 = vadd.f32 1.0, %v4076_v0 }
 0x5a2   :  { %4079 = vrcp.f32 %v1535_v28  ;;  %v1547_v33 = vand.u32 2147483647, %v1535_v28  ;;  %v1549_v8 = vand.u32 2147483648, %v1535_v28  ;;  %vm1543_vm6 = vweird.f32 %v1535_v28 }
 0x5a3   :  { %4081 = vrcp.f32 %v1536_v5  ;;  %v1507_v49 = vpop.f32.mrf.mxu2  ;;  %v1520_v45 = vpop.f32.mrf.mxu3  ;;  %v1564_v2 = vand.u32 2147483648, %v1536_v5  ;;  %v1562_v40 = vand.u32 2147483647, %v1536_v5  ;;  %vm1558_vm7 = vweird.f32 %v1536_v5 }
 0x5a4   :  { %v1838_v10 = vpop.f32.mrf.mxu0  ;;  %v1867_v43 = vpop.f32.mrf.mxu1  ;;  %vm1548_vm10 = vcmp.eq.f32.partialorder %v1547_v33, 8.507059e+37 }
 0x5a5   :  { %v5784_v22 = vadd.f32 %v1838_v10, %v5777_v23  ;;  %v5787_v12 = vadd.f32 %v1867_v43, %v5779_v18  ;;  %vm1563_vm11 = vcmp.eq.f32.partialorder %v1562_v40, 8.507059e+37 }
 0x5a6   :  { %v4078_v37 = vpop.eup %4077 }
 0x5a7   :  { %6204 = vst [vmem:[#allocation4_spill] sm:$0xff] %v5784_v22  ;;  %v5789_v47 = vadd.f32 1.0, %v4078_v37 }
 0x5a8   :  { %6205 = vst [vmem:[#allocation5_spill] sm:$0xff] %v5787_v12  ;;  %v4080_v53 = vpop.eup %4079 }
 0x5a9   :  { %v4082_v11 = vpop.eup %4081  ;;  %v1539_v20 = vmul.f32 %v4080_v53, %v1535_v28  ;;  %4083 = vrcp.f32 %v5789_v47  ;;  %vm1544_vm4 = vweird.f32 %v4080_v53  ;;  %vm1573_vm13 = vweird.f32 %v5789_v47 }
 0x5aa   :  { %v1554_v52 = vmul.f32 %v4082_v11, %v1536_v5  ;;  %4085 = vtanh.f32 %v1525_v51  ;;  %vm1559_vm5 = vweird.f32 %v4082_v11  ;;  %vm1545_vm8 = vmor %vm1543_vm6, %vm1544_vm4 }
 0x5ab   :  { %v1540_v26 = vsub.f32 1.0, %v1539_v20  ;;  %v1896_v50 = vpop.f32.mrf.mxu2  ;;  %v1925_v56 = vpop.f32.mrf.mxu3  ;;  %vm1560_vm9 = vmor %vm1558_vm7, %vm1559_vm5 }
 0x5ac   :  { %v1555_v31 = vsub.f32 1.0, %v1554_v52  ;;  %v5797_v39 = vadd.f32 %v1896_v50, %v5791_v60  ;;  %v5800_v0 = vadd.f32 %v1925_v56, %v5793_v1  ;;  %v1840_v35 = vpop.f32.mrf.mxu0  ;;  %v1869_v49 = vpop.f32.mrf.mxu1  ;;  %v1550_v52 = vor.u32 1.1754944e-38, %v1549_v8 }
 0x5ad   :  { %v1541_v45 = vmul.f32 %v4080_v53, %v1540_v26  ;;  %v5803_v10 = vadd.f32 %v1840_v35, %v5777_v23  ;;  %v5806_v43 = vadd.f32 %v1869_v49, %v5779_v18  ;;  %v1565_v56 = vor.u32 1.1754944e-38, %v1564_v2 }
 0x5ae   :  { %6206 = vst [vmem:[#allocation6_spill] sm:$0xff] %v5797_v39  ;;  %v1556_v29 = vmul.f32 %v4082_v11, %v1555_v31 }
 0x5af   :  { %6207 = vst [vmem:[#allocation7_spill] sm:$0xff] %v5800_v0  ;;  %v4084_v37 = vpop.eup %4083  ;;  %v1542_v51 = vadd.f32 %v4080_v53, %v1541_v45 }
 0x5b0   :  { %6208 = vst [vmem:[#allocation9_spill] sm:$0xff] %v5803_v10  ;;  %v1569_v20 = vmul.f32 %v4084_v37, %v5789_v47  ;;  %v1557_v50 = vadd.f32 %v4082_v11, %v1556_v29  ;;  %v4086_v26 = vpop.eup %4085  ;;  %vm1574_vm12 = vweird.f32 %v4084_v37 }
 0x5b1   :  { %6209 = vst [vmem:[#allocation8_spill] sm:$0xff] %v5806_v43  ;;  %v1546_v35 = vsel %vm1545_vm8, %v4080_v53, %v1542_v51  ;;  %vm1575_vm14 = vmor %vm1573_vm13, %vm1574_vm12 }
 0x5b2   :  { %v1570_v0 = vsub.f32 1.0, %v1569_v20  ;;  %v1551_v49 = vsel %vm1548_vm10, %v1550_v52, %v1546_v35  ;;  %v1561_v39 = vsel %vm1560_vm9, %v4082_v11, %v1557_v50 }
 0x5b3   :  { %v1566_v31 = vsel %vm1563_vm11, %v1565_v56, %v1561_v39  ;;  %v1585_v12 = vmul.f32 %v4086_v26, %v1551_v49  ;;  %v1898_v22 = vpop.f32.mrf.mxu2  ;;  %v1927_v45 = vpop.f32.mrf.mxu3 }
 0x5b4   :  { %v1571_v28 = vmul.f32 %v4084_v37, %v1570_v0  ;;  %v1584_v5 = vmul.f32 %v1566_v31, %v5392_v16  ;;  %v5811_v43 = vadd.f32 %v1898_v22, %v5791_v60  ;;  %v5814_v8 = vadd.f32 %v1927_v45, %v5793_v1  ;;  %v1843_v2 = vpop.f32.mrf.mxu0  ;;  %v1872_v53 = vpop.f32.mrf.mxu1 }
 0x5b5   :  { %v5817_v33 = vadd.f32 %v1843_v2, %v5777_v23  ;;  %v5820_v11 = vadd.f32 %v1872_v53, %v5779_v18  ;;  %v1579_v0 = vand.u32 2147483648, %v5789_v47  ;;  %v1577_v16 = vand.u32 2147483647, %v5789_v47 }
 0x5b6   :  { %6210 = vst [vmem:[#allocation10_spill] sm:$0xff] %v5811_v43  ;;  %v1586_v39 = vadd.f32 %v1585_v12, %v1584_v5  ;;  %v1572_v29 = vadd.f32 %v4084_v37, %v1571_v28 }
 0x5b7   :  { %6211 = vst [vmem:[#allocation11_spill] sm:$0xff] %v5814_v8  ;;  %v1580_v20 = vor.u32 1.1754944e-38, %v1579_v0  ;;  %vm1578_vm15 = vcmp.eq.f32.partialorder %v1577_v16, 8.507059e+37 }
 0x5b8   :  { %6212 = vst [vmem:[#allocation12_spill] sm:$0xff] %v5817_v33  ;;  %4087 = vtanh.f32 %v1586_v39  ;;  %v1576_v22 = vsel %vm1575_vm14, %v4084_v37, %v1572_v29 }
 0x5b9   :  { %6213 = vst [vmem:[#allocation13_spill] sm:$0xff] %v5820_v11  ;;  %v1581_v37 = vsel %vm1578_vm15, %v1580_v20, %v1576_v22 }
 0x5ba   :  { %3122 = vst [vmem:[%s6149_s10] sm:$0xff] %v1586_v39 }
 0x5bb   :  { %v1901_v40 = vpop.f32.mrf.mxu2  ;;  %v1930_v51 = vpop.f32.mrf.mxu3 }
 0x5bc   :  { %v5829_v12 = vadd.f32 %v1901_v40, %v5791_v60  ;;  %v5832_v52 = vadd.f32 %v1930_v51, %v5793_v1  ;;  %v1845_v50 = vpop.f32.mrf.mxu0  ;;  %v1874_v26 = vpop.f32.mrf.mxu1 }
 0x5bd   :  { %v5835_v56 = vadd.f32 %v1845_v50, %v5777_v23  ;;  %v5838_v35 = vadd.f32 %v1874_v26, %v5779_v18 }
 0x5be   :  { %6214 = vst [vmem:[#allocation14_spill] sm:$0xff] %v5829_v12  ;;  %v4088_v47 = vpop.eup %4087 }
 0x5bf   :  { %6215 = vst [vmem:[#allocation15_spill] sm:$0xff] %v5832_v52  ;;  %v1588_v49 = vmul.f32 %v4088_v47, %v1581_v37 }
 0x5c0   :  { %6216 = vst [vmem:[#allocation17_spill] sm:$0xff] %v5835_v56 }
 0x5c1   :  { %6217 = vst [vmem:[#allocation16_spill] sm:$0xff] %v5838_v35  ;;  %v1589_v31 = vpack.c.bf16 %v1588_v49, %v1588_v49 }
 0x5c2   :  { %3118 = vst [vmem:[%s6150_s9] sm:$0xff] %v1588_v49 }
 0x5c3   :  { %1590 = vst [vmem:[%s6147_s7 + $0x1c] sm:$0xf] %v1589_v31  ;;  %v1903_v45 = vpop.f32.mrf.mxu2  ;;  %v1932_v28 = vpop.f32.mrf.mxu3 }
 0x5c4   :  { %v5847_v5 = vadd.f32 %v1903_v45, %v5791_v60  ;;  %v5850_v2 = vadd.f32 %v1932_v28, %v5793_v1  ;;  %v1848_v53 = vpop.f32.mrf.mxu0  ;;  %v1877_v39 = vpop.f32.mrf.mxu1 }
 0x5c5   :  { %v5853_v29 = vadd.f32 %v1848_v53, %v5777_v23  ;;  %v5856_v0 = vadd.f32 %v1877_v39, %v5779_v18 }
 0x5c6   :  { %6218 = vst [vmem:[#allocation18_spill] sm:$0xff] %v5847_v5 }
 0x5c7   :  { %6219 = vst [vmem:[#allocation19_spill] sm:$0xff] %v5850_v2 }
 0x5c8   :  { %6220 = vst [vmem:[#allocation20_spill] sm:$0xff] %v5853_v29 }
 0x5c9   :  { %6221 = vst [vmem:[#allocation21_spill] sm:$0xff] %v5856_v0 }
 0x5cb   :  { %v1906_v16 = vpop.f32.mrf.mxu2  ;;  %v1935_v22 = vpop.f32.mrf.mxu3 }
 0x5cc   :  { %v5859_v40 = vadd.f32 %v1906_v16, %v5791_v60  ;;  %v5862_v51 = vadd.f32 %v1935_v22, %v5793_v1  ;;  %v1850_v20 = vpop.f32.mrf.mxu0  ;;  %v1879_v50 = vpop.f32.mrf.mxu1 }
 0x5cd   :  { %v5865_v26 = vadd.f32 %v1850_v20, %v5777_v23  ;;  %v5868_v47 = vadd.f32 %v1879_v50, %v5779_v18 }
 0x5ce   :  { %6222 = vst [vmem:[#allocation22_spill] sm:$0xff] %v5859_v40 }
 0x5cf   :  { %6223 = vst [vmem:[#allocation23_spill] sm:$0xff] %v5862_v51 }
 0x5d3   :  { %v1908_v37 = vpop.f32.mrf.mxu2  ;;  %v1937_v49 = vpop.f32.mrf.mxu3 }
 0x5d4   :  { %v5871_v31 = vadd.f32 %v1908_v37, %v5791_v60  ;;  %v5874_v45 = vadd.f32 %v1937_v49, %v5793_v1  ;;  %v1853_v28 = vpop.f32.mrf.mxu0  ;;  %v1882_v53 = vpop.f32.mrf.mxu1 }
 0x5d5   :  { %v5877_v39 = vadd.f32 %v1853_v28, %v5777_v23  ;;  %v5880_v16 = vadd.f32 %v1882_v53, %v5779_v18 }
 0x5d6   :  { %6224 = vst [vmem:[#allocation25_spill] sm:$0xff] %v5874_v45 }
 0x5db   :  { %v1911_v22 = vpop.f32.mrf.mxu2  ;;  %v1940_v20 = vpop.f32.mrf.mxu3 }
 0x5dc   :  { %v5883_v50 = vadd.f32 %v1911_v22, %v5791_v60  ;;  %v5886_v8 = vadd.f32 %v1940_v20, %v5793_v1  ;;  %v1855_v37 = vpop.f32.mrf.mxu0  ;;  %v1884_v43 = vpop.f32.mrf.mxu1 }
 0x5dd   :  { %v1856_v49 = vadd.f32 %v1855_v37, %v5777_v23  ;;  %v1885_v10 = vadd.f32 %v1884_v43, %v5779_v18 }
 0x5e3   :  { %v1913_v52 = vpop.f32.mrf.mxu2  ;;  %v1942_v28 = vpop.f32.mrf.mxu3 }
 0x5e4   :  { %v2152_v12 = vpop.f32.mrf.mxu0  ;;  %v2165_v11 = vpop.f32.mrf.mxu1  ;;  %v1914_v22 = vadd.f32 %v1913_v52, %v5791_v60 }
 0x5e5   :  { %v2195_v53 = vadd.f32 %v2152_v12, %v1856_v49  ;;  %v2196_v33 = vadd.f32 %v2165_v11, %v1885_v10 }
 0x5e7   :  { %v3801_v2 = vmul.f32 -1.442695, %v2195_v53  ;;  %v3802_v5 = vmul.f32 -1.442695, %v2196_v33  ;;  %v1943_v33 = vadd.f32 %v1942_v28, %v5793_v1 }
 0x5e9   :  { %4089 = vpow2.f32 %v3801_v2 }
 0x5ea   :  { %4091 = vpow2.f32 %v3802_v5 }
 0x5eb   :  { %v2178_v20 = vpop.f32.mrf.mxu2  ;;  %v2191_v35 = vpop.f32.mrf.mxu3 }
 0x5ec   :  { %v2197_v56 = vadd.f32 %v2178_v20, %v1914_v22  ;;  %v2154_v51 = vpop.f32.mrf.mxu0  ;;  %v2167_v40 = vpop.f32.mrf.mxu1  ;;  %v2198_v5 = vadd.f32 %v2191_v35, %v1943_v33 }
 0x5ee   :  { %v3803_v23 = vmul.f32 -1.442695, %v2197_v56 }
 0x5ef   :  { %v4090_v37 = vpop.eup %4089 }
 0x5f0   :  { %v4092_v18 = vpop.eup %4091  ;;  %v2208_v43 = vadd.f32 1.0, %v4090_v37  ;;  %4093 = vpow2.f32 %v3803_v23 }
 0x5f1   :  { %v2209_v0 = vadd.f32 1.0, %v4092_v18 }
 0x5f2   :  { %4095 = vrcp.f32 %v2208_v43  ;;  %v2222_v53 = vand.u32 2147483648, %v2208_v43  ;;  %v2220_v23 = vand.u32 2147483647, %v2208_v43  ;;  %vm2216_vm2 = vweird.f32 %v2208_v43 }
 0x5f3   :  { %4097 = vrcp.f32 %v2209_v0  ;;  %v2180_v10 = vpop.f32.mrf.mxu2  ;;  %v2193_v11 = vpop.f32.mrf.mxu3  ;;  %v2237_v22 = vand.u32 2147483648, %v2209_v0  ;;  %v2235_v18 = vand.u32 2147483647, %v2209_v0  ;;  %vm2231_vm3 = vweird.f32 %v2209_v0 }
 0x5f4   :  { %v2223_v10 = vor.u32 1.1754944e-38, %v2222_v53  ;;  %vm2221_vm6 = vcmp.eq.f32.partialorder %v2220_v23, 8.507059e+37 }
 0x5f5   :  { %v2238_v33 = vor.u32 1.1754944e-38, %v2237_v22  ;;  %vm2236_vm7 = vcmp.eq.f32.partialorder %v2235_v18, 8.507059e+37 }
 0x5f6   :  { %v4094_v12 = vpop.eup %4093 }
 0x5f7   :  { %v2210_v60 = vadd.f32 1.0, %v4094_v12  ;;  %v75_v12 = vld [vmem:[%s6146_s6 + $0x8] sm:$0xff] }
 0x5f8   :  { %v4096_v52 = vpop.eup %4095 }
 0x5f9   :  { %v4098_v2 = vpop.eup %4097  ;;  %v2212_v49 = vmul.f32 %v4096_v52, %v2208_v43  ;;  %4099 = vrcp.f32 %v2210_v60  ;;  %vm2217_vm0 = vweird.f32 %v4096_v52  ;;  %v2252_v22 = vand.u32 2147483648, %v2210_v60 }
 0x5fa   :  { %v2227_v40 = vmul.f32 %v4098_v2, %v2209_v0  ;;  %4101 = vtanh.f32 %v2198_v5  ;;  %vm2232_vm1 = vweird.f32 %v4098_v2  ;;  %vm2218_vm4 = vmor %vm2216_vm2, %vm2217_vm0  ;;  %vm2246_vm9 = vweird.f32 %v2210_v60 }
 0x5fb   :  { %v2213_v56 = vsub.f32 1.0, %v2212_v49  ;;  %vm2233_vm5 = vmor %vm2231_vm3, %vm2232_vm1  ;;  %v2253_v23 = vor.u32 1.1754944e-38, %v2252_v22 }
 0x5fc   :  { %v2228_v51 = vsub.f32 1.0, %v2227_v40 }
 0x5fd   :  { %v2214_v20 = vmul.f32 %v4096_v52, %v2213_v56 }
 0x5fe   :  { %v2229_v37 = vmul.f32 %v4098_v2, %v2228_v51 }
 0x5ff   :  { %v4100_v1 = vpop.eup %4099  ;;  %v2215_v28 = vadd.f32 %v4096_v52, %v2214_v20 }
 0x600   :  { %v2242_v35 = vmul.f32 %v4100_v1, %v2210_v60  ;;  %v2230_v11 = vadd.f32 %v4098_v2, %v2229_v37  ;;  %v4102_v49 = vpop.eup %4101  ;;  %vm2247_vm8 = vweird.f32 %v4100_v1  ;;  %v2250_v37 = vand.u32 2147483647, %v2210_v60 }
 0x601   :  { %v2219_v5 = vsel %vm2218_vm4, %v4096_v52, %v2215_v28  ;;  %vm2248_vm10 = vmor %vm2246_vm9, %vm2247_vm8 }
 0x602   :  { %v2243_v40 = vsub.f32 1.0, %v2242_v35  ;;  %v2224_v56 = vsel %vm2221_vm6, %v2223_v10, %v2219_v5  ;;  %v2234_v51 = vsel %vm2233_vm5, %v4098_v2, %v2230_v11  ;;  %vm2251_vm11 = vcmp.eq.f32.partialorder %v2250_v37, 8.507059e+37 }
 0x603   :  { %v2239_v20 = vsel %vm2236_vm7, %v2238_v33, %v2234_v51  ;;  %v2258_v43 = vmul.f32 %v4102_v49, %v2224_v56 }
 0x604   :  { %v2244_v0 = vmul.f32 %v4100_v1, %v2243_v40  ;;  %v2257_v29 = vmul.f32 %v2239_v20, %v75_v12 }
 0x606   :  { %v5895_v45 = vadd.f32 %v2258_v43, %v2257_v29  ;;  %v2245_v53 = vadd.f32 %v4100_v1, %v2244_v0 }
 0x608   :  { %4103 = vtanh.f32 %v5895_v45  ;;  %v2249_v52 = vsel %vm2248_vm10, %v4100_v1, %v2245_v53 }
 0x609   :  { %v2254_v2 = vsel %vm2251_vm11, %v2253_v23, %v2249_v52 }
 0x60e   :  { %v4104_v28 = vpop.eup %4103 }
 0x60f   :  { %v2261_v18 = vmul.f32 %v4104_v28, %v2254_v2 }
 0x611   :  { %v2262_v35 = vpack.c.bf16 %v2261_v18, %v2261_v18 }
 0x613   :  { %2263 = vst [vmem:[%s6151_s8 + $0x1c] sm:$0xf] %v2262_v35  ;;  %2272 = vmatmul.bf16.vlgmr.msrb.gmra.mxu0 %v2262_v35  ;;  %2285 = vmatmul.bf16.vlgmr.msrb.gmra.mxu1 %v2262_v35 }
 0x614   :  { %2298 = vmatmul.bf16.vlgmr.msrb.gmra.mxu2 %v2262_v35  ;;  %2311 = vmatmul.bf16.vlgmr.msrb.gmra.mxu3 %v2262_v35 }
 0x615   :  { %2506 = vmatpush.bf16.msrb.mxu0 %v5422_v17  ;;  %2519 = vmatpush.bf16.msrb.mxu1 %v5424_v30 }
 0x616   :  { %2532 = vmatpush.bf16.msrb.mxu2 %v5429_v19  ;;  %2545 = vmatpush.bf16.msrb.mxu3 %v5440_v48 }
 0x619   :  { %2507 = vmatpush.bf16.msrb.mxu0 %v5453_v59  ;;  %2520 = vmatpush.bf16.msrb.mxu1 %v5455_v34 }
 0x61a   :  { %2533 = vmatpush.bf16.msrb.mxu2 %v5467_v7  ;;  %2546 = vmatpush.bf16.msrb.mxu3 %v5485_v32 }
 0x61d   :  { %2508 = vmatpush.bf16.msrb.mxu0 %v5492_v36  ;;  %2521 = vmatpush.bf16.msrb.mxu1 %v5494_v38 }
 0x61e   :  { %2534 = vmatpush.bf16.msrb.mxu2 %v5503_v13  ;;  %2547 = vmatpush.bf16.msrb.mxu3 %v5515_v62 }
 0x621   :  { %2509 = vmatpush.bf16.msrb.mxu0 %v5525_v9  ;;  %2522 = vmatpush.bf16.msrb.mxu1 %v5527_v14 }
 0x622   :  { %2535 = vmatpush.bf16.msrb.mxu2 %v5530_v15  ;;  %2548 = vmatpush.bf16.msrb.mxu3 %v5573_v57 }
 0x625   :  { %2510 = vmatpush.bf16.msrb.mxu0 %v5548_v58  ;;  %2523 = vmatpush.bf16.msrb.mxu1 %v5559_v46 }
 0x626   :  { %2536 = vmatpush.bf16.msrb.mxu2 %v5561_v25  ;;  %2549 = vmatpush.bf16.msrb.mxu3 %v5605_v41 }
 0x629   :  { %2511 = vmatpush.bf16.msrb.mxu0 %v5586_v42  ;;  %2524 = vmatpush.bf16.msrb.mxu1 %v5588_v61 }
 0x62a   :  { %2537 = vmatpush.bf16.msrb.mxu2 %v5600_v6  ;;  %2550 = vmatpush.bf16.msrb.mxu3 %v5648_v44 }
 0x62d   :  { %2512 = vmatpush.bf16.msrb.mxu0 %v5623_v63  ;;  %2525 = vmatpush.bf16.msrb.mxu1 %v5634_v21 }
 0x62e   :  { %2538 = vmatpush.bf16.msrb.mxu2 %v5636_v24  ;;  %2551 = vmatpush.bf16.msrb.mxu3 %v5675_v54 }
 0x631   :  { %2513 = vmatpush.bf16.msrb.mxu0 %v5661_v3  ;;  %2526 = vmatpush.bf16.msrb.mxu1 %v5663_v4 }
 0x632   :  { %2539 = vmatpush.bf16.msrb.mxu2 %v5680_v27  ;;  %2552 = vmatpush.bf16.msrb.mxu3 %v5692_v55 }
 0x690   :  { %v2273_v29 = vpop.f32.mrf.mxu0  ;;  %v2286_v60 = vpop.f32.mrf.mxu1 }
 0x691   :  { %v2316_v1 = vadd.f32 %v2273_v29, %v5877_v39  ;;  %v2317_v10 = vadd.f32 %v2286_v60, %v5880_v16 }
 0x693   :  { %v3804_v11 = vmul.f32 -1.442695, %v2316_v1  ;;  %v3805_v33 = vmul.f32 -1.442695, %v2317_v10 }
 0x695   :  { %4105 = vpow2.f32 %v3804_v11 }
 0x696   :  { %4107 = vpow2.f32 %v3805_v33 }
 0x697   :  { %v2299_v12 = vpop.f32.mrf.mxu2  ;;  %v2312_v5 = vpop.f32.mrf.mxu3 }
 0x698   :  { %v2318_v49 = vadd.f32 %v2299_v12, %v5883_v50  ;;  %v2275_v40 = vpop.f32.mrf.mxu0  ;;  %v2288_v56 = vpop.f32.mrf.mxu1  ;;  %v2319_v23 = vadd.f32 %v2312_v5, %v5886_v8 }
 0x69a   :  { %v3806_v51 = vmul.f32 -1.442695, %v2318_v49 }
 0x69b   :  { %v4106_v20 = vpop.eup %4105 }
 0x69c   :  { %v4108_v43 = vpop.eup %4107  ;;  %v2329_v0 = vadd.f32 1.0, %v4106_v20  ;;  %4109 = vpow2.f32 %v3806_v51 }
 0x69d   :  { %v2330_v53 = vadd.f32 1.0, %v4108_v43 }
 0x69e   :  { %4111 = vrcp.f32 %v2329_v0  ;;  %v2343_v29 = vand.u32 2147483648, %v2329_v0  ;;  %v2341_v10 = vand.u32 2147483647, %v2329_v0  ;;  %vm2337_vm14 = vweird.f32 %v2329_v0 }
 0x69f   :  { %4113 = vrcp.f32 %v2330_v53  ;;  %v2301_v39 = vpop.f32.mrf.mxu2  ;;  %v2314_v16 = vpop.f32.mrf.mxu3  ;;  %v2358_v60 = vand.u32 2147483648, %v2330_v53  ;;  %v2356_v33 = vand.u32 2147483647, %v2330_v53  ;;  %vm2352_vm15 = vweird.f32 %v2330_v53 }
 0x6a0   :  { %v2344_v5 = vor.u32 1.1754944e-38, %v2343_v29  ;;  %vm2342_vm2 = vcmp.eq.f32.partialorder %v2341_v10, 8.507059e+37 }
 0x6a1   :  { %v2359_v56 = vor.u32 1.1754944e-38, %v2358_v60  ;;  %vm2357_vm3 = vcmp.eq.f32.partialorder %v2356_v33, 8.507059e+37 }
 0x6a2   :  { %v4110_v22 = vpop.eup %4109 }
 0x6a3   :  { %v2331_v37 = vadd.f32 1.0, %v4110_v22 }
 0x6a4   :  { %v4112_v52 = vpop.eup %4111 }
 0x6a5   :  { %v4114_v28 = vpop.eup %4113  ;;  %v2333_v2 = vmul.f32 %v4112_v52, %v2329_v0  ;;  %4115 = vrcp.f32 %v2331_v37  ;;  %vm2338_vm12 = vweird.f32 %v4112_v52  ;;  %vm2367_vm5 = vweird.f32 %v2331_v37 }
 0x6a6   :  { %v2348_v50 = vmul.f32 %v4114_v28, %v2330_v53  ;;  %4117 = vtanh.f32 %v2319_v23  ;;  %vm2353_vm13 = vweird.f32 %v4114_v28  ;;  %vm2339_vm0 = vmor %vm2337_vm14, %vm2338_vm12 }
 0x6a7   :  { %v2334_v18 = vsub.f32 1.0, %v2333_v2  ;;  %vm2354_vm1 = vmor %vm2352_vm15, %vm2353_vm13 }
 0x6a8   :  { %v2349_v35 = vsub.f32 1.0, %v2348_v50 }
 0x6a9   :  { %v2335_v1 = vmul.f32 %v4112_v52, %v2334_v18  ;;  %v2373_v18 = vand.u32 2147483648, %v2331_v37 }
 0x6aa   :  { %v2350_v11 = vmul.f32 %v4114_v28, %v2349_v35 }
 0x6ab   :  { %v4116_v12 = vpop.eup %4115  ;;  %v2336_v49 = vadd.f32 %v4112_v52, %v2335_v1  ;;  %v2374_v29 = vor.u32 1.1754944e-38, %v2373_v18 }
 0x6ac   :  { %v2363_v8 = vmul.f32 %v4116_v12, %v2331_v37  ;;  %v2351_v40 = vadd.f32 %v4114_v28, %v2350_v11  ;;  %v4118_v20 = vpop.eup %4117  ;;  %vm2368_vm4 = vweird.f32 %v4116_v12 }
 0x6ad   :  { %v2340_v51 = vsel %vm2339_vm0, %v4112_v52, %v2336_v49  ;;  %v2371_v52 = vand.u32 2147483647, %v2331_v37  ;;  %vm2369_vm6 = vmor %vm2367_vm5, %vm2368_vm4 }
 0x6ae   :  { %v2364_v43 = vsub.f32 1.0, %v2363_v8  ;;  %v2345_v39 = vsel %vm2342_vm2, %v2344_v5, %v2340_v51  ;;  %v2355_v16 = vsel %vm2354_vm1, %v4114_v28, %v2351_v40 }
 0x6af   :  { %v2360_v22 = vsel %vm2357_vm3, %v2359_v56, %v2355_v16  ;;  %v2379_v23 = vmul.f32 %v4118_v20, %v2345_v39  ;;  %vm2372_vm7 = vcmp.eq.f32.partialorder %v2371_v52, 8.507059e+37 }
 0x6b0   :  { %v2365_v2 = vmul.f32 %v4116_v12, %v2364_v43  ;;  %v2378_v50 = vmul.f32 %v2360_v22, %v5895_v45 }
 0x6b2   :  { %v5938_v0 = vadd.f32 %v2379_v23, %v2378_v50  ;;  %v2366_v53 = vadd.f32 %v4116_v12, %v2365_v2 }
 0x6b4   :  { %4119 = vtanh.f32 %v5938_v0  ;;  %v2370_v35 = vsel %vm2369_vm6, %v4116_v12, %v2366_v53  ;;  %v6225_v53 = vld [vmem:[#allocation25_spill] sm:$0xff] }
 0x6b5   :  { %v2375_v60 = vsel %vm2372_vm7, %v2374_v29, %v2370_v35 }
 0x6ba   :  { %v4120_v28 = vpop.eup %4119 }
 0x6bb   :  { %v2382_v1 = vmul.f32 %v4120_v28, %v2375_v60 }
 0x6bd   :  { %v2383_v10 = vpack.c.bf16 %v2382_v1, %v2382_v1 }
 0x6bf   :  { %2384 = vst [vmem:[%s6151_s8 + $0x18] sm:$0xf] %v2383_v10  ;;  %2393 = vmatmul.bf16.vlgmr.msra.gmra.mxu0 %v2383_v10  ;;  %2406 = vmatmul.bf16.vlgmr.msra.gmra.mxu1 %v2383_v10 }
 0x6c0   :  { %2419 = vmatmul.bf16.vlgmr.msra.gmra.mxu2 %v2383_v10  ;;  %2432 = vmatmul.bf16.vlgmr.msra.gmra.mxu3 %v2383_v10 }
 0x6c1   :  { %2627 = vmatpush.bf16.msra.mxu0 %v5422_v17  ;;  %2640 = vmatpush.bf16.msra.mxu1 %v5424_v30 }
 0x6c2   :  { %2653 = vmatpush.bf16.msra.mxu2 %v5429_v19  ;;  %2666 = vmatpush.bf16.msra.mxu3 %v5440_v48 }
 0x6c5   :  { %2628 = vmatpush.bf16.msra.mxu0 %v5453_v59  ;;  %2641 = vmatpush.bf16.msra.mxu1 %v5455_v34 }
 0x6c6   :  { %2654 = vmatpush.bf16.msra.mxu2 %v5467_v7  ;;  %2667 = vmatpush.bf16.msra.mxu3 %v5485_v32 }
 0x6c9   :  { %2629 = vmatpush.bf16.msra.mxu0 %v5492_v36  ;;  %2642 = vmatpush.bf16.msra.mxu1 %v5494_v38 }
 0x6ca   :  { %2655 = vmatpush.bf16.msra.mxu2 %v5503_v13  ;;  %2668 = vmatpush.bf16.msra.mxu3 %v5515_v62 }
 0x6cd   :  { %2630 = vmatpush.bf16.msra.mxu0 %v5525_v9  ;;  %2643 = vmatpush.bf16.msra.mxu1 %v5527_v14 }
 0x6ce   :  { %2656 = vmatpush.bf16.msra.mxu2 %v5530_v15  ;;  %2669 = vmatpush.bf16.msra.mxu3 %v5573_v57 }
 0x6d1   :  { %2631 = vmatpush.bf16.msra.mxu0 %v5548_v58  ;;  %2644 = vmatpush.bf16.msra.mxu1 %v5559_v46 }
 0x6d2   :  { %2657 = vmatpush.bf16.msra.mxu2 %v5561_v25  ;;  %2670 = vmatpush.bf16.msra.mxu3 %v5605_v41 }
 0x6d5   :  { %2632 = vmatpush.bf16.msra.mxu0 %v5586_v42  ;;  %2645 = vmatpush.bf16.msra.mxu1 %v5588_v61 }
 0x6d6   :  { %2658 = vmatpush.bf16.msra.mxu2 %v5600_v6  ;;  %2671 = vmatpush.bf16.msra.mxu3 %v5648_v44 }
 0x6d9   :  { %2633 = vmatpush.bf16.msra.mxu0 %v5623_v63  ;;  %2646 = vmatpush.bf16.msra.mxu1 %v5634_v21 }
 0x6da   :  { %2659 = vmatpush.bf16.msra.mxu2 %v5636_v24  ;;  %2672 = vmatpush.bf16.msra.mxu3 %v5675_v54 }
 0x6dd   :  { %2634 = vmatpush.bf16.msra.mxu0 %v5661_v3  ;;  %2647 = vmatpush.bf16.msra.mxu1 %v5663_v4 }
 0x6de   :  { %2660 = vmatpush.bf16.msra.mxu2 %v5680_v27  ;;  %2673 = vmatpush.bf16.msra.mxu3 %v5692_v55 }
 0x73c   :  { %v2394_v45 = vpop.f32.mrf.mxu0  ;;  %v2407_v37 = vpop.f32.mrf.mxu1 }
 0x73d   :  { %v2437_v11 = vadd.f32 %v2394_v45, %v5865_v26  ;;  %v2438_v33 = vadd.f32 %v2407_v37, %v5868_v47 }
 0x73f   :  { %v3807_v12 = vmul.f32 -1.442695, %v2437_v11  ;;  %v3808_v49 = vmul.f32 -1.442695, %v2438_v33 }
 0x741   :  { %4121 = vpow2.f32 %v3807_v12 }
 0x742   :  { %4123 = vpow2.f32 %v3808_v49 }
 0x743   :  { %v2420_v8 = vpop.f32.mrf.mxu2  ;;  %v2433_v5 = vpop.f32.mrf.mxu3 }
 0x744   :  { %v2439_v40 = vadd.f32 %v2420_v8, %v5871_v31  ;;  %v2396_v56 = vpop.f32.mrf.mxu0  ;;  %v2409_v51 = vpop.f32.mrf.mxu1  ;;  %v2440_v18 = vadd.f32 %v2433_v5, %v6225_v53 }
 0x746   :  { %v3809_v20 = vmul.f32 -1.442695, %v2439_v40 }
 0x747   :  { %v4122_v43 = vpop.eup %4121 }
 0x748   :  { %v4124_v39 = vpop.eup %4123  ;;  %v2450_v16 = vadd.f32 1.0, %v4122_v43  ;;  %4125 = vpow2.f32 %v3809_v20 }
 0x749   :  { %v2451_v22 = vadd.f32 1.0, %v4124_v39 }
 0x74a   :  { %4127 = vrcp.f32 %v2450_v16  ;;  %v2464_v60 = vand.u32 2147483648, %v2450_v16  ;;  %v2462_v45 = vand.u32 2147483647, %v2450_v16  ;;  %vm2458_vm10 = vweird.f32 %v2450_v16 }
 0x74b   :  { %4129 = vrcp.f32 %v2451_v22  ;;  %v2422_v26 = vpop.f32.mrf.mxu2  ;;  %v2435_v47 = vpop.f32.mrf.mxu3  ;;  %v2479_v1 = vand.u32 2147483648, %v2451_v22  ;;  %v2477_v11 = vand.u32 2147483647, %v2451_v22  ;;  %vm2473_vm11 = vweird.f32 %v2451_v22 }
 0x74c   :  { %v2465_v8 = vor.u32 1.1754944e-38, %v2464_v60  ;;  %vm2463_vm14 = vcmp.eq.f32.partialorder %v2462_v45, 8.507059e+37  ;;  %v6227_v45 = vld [vmem:[#allocation21_spill] sm:$0xff] }
 0x74d   :  { %v2480_v40 = vor.u32 1.1754944e-38, %v2479_v1  ;;  %vm2478_vm15 = vcmp.eq.f32.partialorder %v2477_v11, 8.507059e+37  ;;  %v6226_v1 = vld [vmem:[#allocation20_spill] sm:$0xff] }
 0x74e   :  { %v4126_v23 = vpop.eup %4125 }
 0x74f   :  { %v2452_v2 = vadd.f32 1.0, %v4126_v23 }
 0x750   :  { %v4128_v50 = vpop.eup %4127 }
 0x751   :  { %v4130_v52 = vpop.eup %4129  ;;  %v2454_v35 = vmul.f32 %v4128_v50, %v2450_v16  ;;  %4131 = vrcp.f32 %v2452_v2  ;;  %vm2459_vm8 = vweird.f32 %v4128_v50  ;;  %vm2488_vm1 = vweird.f32 %v2452_v2 }
 0x752   :  { %v2469_v31 = vmul.f32 %v4130_v52, %v2451_v22  ;;  %4133 = vtanh.f32 %v2440_v18  ;;  %vm2474_vm9 = vweird.f32 %v4130_v52  ;;  %vm2460_vm12 = vmor %vm2458_vm10, %vm2459_vm8  ;;  %v2494_v18 = vand.u32 2147483648, %v2452_v2 }
 0x753   :  { %v2455_v29 = vsub.f32 1.0, %v2454_v35  ;;  %vm2475_vm13 = vmor %vm2473_vm11, %vm2474_vm9 }
 0x754   :  { %v2470_v28 = vsub.f32 1.0, %v2469_v31  ;;  %v2495_v31 = vor.u32 1.1754944e-38, %v2494_v18 }
 0x755   :  { %v2456_v10 = vmul.f32 %v4128_v50, %v2455_v29 }
 0x756   :  { %v2471_v37 = vmul.f32 %v4130_v52, %v2470_v28 }
 0x757   :  { %v4132_v33 = vpop.eup %4131  ;;  %v2457_v12 = vadd.f32 %v4128_v50, %v2456_v10 }
 0x758   :  { %v2484_v49 = vmul.f32 %v4132_v33, %v2452_v2  ;;  %v2472_v5 = vadd.f32 %v4130_v52, %v2471_v37  ;;  %v4134_v51 = vpop.eup %4133  ;;  %vm2489_vm0 = vweird.f32 %v4132_v33 }
 0x759   :  { %v2461_v56 = vsel %vm2460_vm12, %v4128_v50, %v2457_v12  ;;  %v2492_v50 = vand.u32 2147483647, %v2452_v2  ;;  %vm2490_vm2 = vmor %vm2488_vm1, %vm2489_vm0 }
 0x75a   :  { %v2485_v20 = vsub.f32 1.0, %v2484_v49  ;;  %v2466_v43 = vsel %vm2463_vm14, %v2465_v8, %v2461_v56  ;;  %v2476_v39 = vsel %vm2475_vm13, %v4130_v52, %v2472_v5  ;;  %v6228_v8 = vld [vmem:[#allocation22_spill] sm:$0xff] }
 0x75b   :  { %v2481_v26 = vsel %vm2478_vm15, %v2480_v40, %v2476_v39  ;;  %v2500_v47 = vmul.f32 %v4134_v51, %v2466_v43  ;;  %vm2493_vm3 = vcmp.eq.f32.partialorder %v2492_v50, 8.507059e+37  ;;  %v6229_v50 = vld [vmem:[#allocation23_spill] sm:$0xff] }
 0x75c   :  { %v2486_v23 = vmul.f32 %v4132_v33, %v2485_v20  ;;  %v2499_v53 = vmul.f32 %v2481_v26, %v5938_v0 }
 0x75e   :  { %v5981_v16 = vadd.f32 %v2500_v47, %v2499_v53  ;;  %v2487_v22 = vadd.f32 %v4132_v33, %v2486_v23 }
 0x760   :  { %4135 = vtanh.f32 %v5981_v16  ;;  %v2491_v35 = vsel %vm2490_vm2, %v4132_v33, %v2487_v22 }
 0x761   :  { %v2496_v29 = vsel %vm2493_vm3, %v2495_v31, %v2491_v35 }
 0x766   :  { %v4136_v52 = vpop.eup %4135 }
 0x767   :  { %v2503_v28 = vmul.f32 %v4136_v52, %v2496_v29 }
 0x769   :  { %v2504_v60 = vpack.c.bf16 %v2503_v28, %v2503_v28 }
 0x76b   :  { %2505 = vst [vmem:[%s6151_s8 + $0x14] sm:$0xf] %v2504_v60  ;;  %2514 = vmatmul.bf16.vlgmr.msrb.gmra.mxu0 %v2504_v60  ;;  %2527 = vmatmul.bf16.vlgmr.msrb.gmra.mxu1 %v2504_v60 }
 0x76c   :  { %2540 = vmatmul.bf16.vlgmr.msrb.gmra.mxu2 %v2504_v60  ;;  %2553 = vmatmul.bf16.vlgmr.msrb.gmra.mxu3 %v2504_v60 }
 0x76d   :  { %2748 = vmatpush.bf16.msrb.mxu0 %v5422_v17  ;;  %2761 = vmatpush.bf16.msrb.mxu1 %v5424_v30 }
 0x76e   :  { %2774 = vmatpush.bf16.msrb.mxu2 %v5429_v19  ;;  %2787 = vmatpush.bf16.msrb.mxu3 %v5440_v48 }
 0x771   :  { %2749 = vmatpush.bf16.msrb.mxu0 %v5453_v59  ;;  %2762 = vmatpush.bf16.msrb.mxu1 %v5455_v34 }
 0x772   :  { %2775 = vmatpush.bf16.msrb.mxu2 %v5467_v7  ;;  %2788 = vmatpush.bf16.msrb.mxu3 %v5485_v32 }
 0x775   :  { %2750 = vmatpush.bf16.msrb.mxu0 %v5492_v36  ;;  %2763 = vmatpush.bf16.msrb.mxu1 %v5494_v38 }
 0x776   :  { %2776 = vmatpush.bf16.msrb.mxu2 %v5503_v13  ;;  %2789 = vmatpush.bf16.msrb.mxu3 %v5515_v62 }
 0x779   :  { %2751 = vmatpush.bf16.msrb.mxu0 %v5525_v9  ;;  %2764 = vmatpush.bf16.msrb.mxu1 %v5527_v14 }
 0x77a   :  { %2777 = vmatpush.bf16.msrb.mxu2 %v5530_v15  ;;  %2790 = vmatpush.bf16.msrb.mxu3 %v5573_v57 }
 0x77d   :  { %2752 = vmatpush.bf16.msrb.mxu0 %v5548_v58  ;;  %2765 = vmatpush.bf16.msrb.mxu1 %v5559_v46 }
 0x77e   :  { %2778 = vmatpush.bf16.msrb.mxu2 %v5561_v25  ;;  %2791 = vmatpush.bf16.msrb.mxu3 %v5605_v41 }
 0x781   :  { %2753 = vmatpush.bf16.msrb.mxu0 %v5586_v42  ;;  %2766 = vmatpush.bf16.msrb.mxu1 %v5588_v61 }
 0x782   :  { %2779 = vmatpush.bf16.msrb.mxu2 %v5600_v6  ;;  %2792 = vmatpush.bf16.msrb.mxu3 %v5648_v44 }
 0x785   :  { %2754 = vmatpush.bf16.msrb.mxu0 %v5623_v63  ;;  %2767 = vmatpush.bf16.msrb.mxu1 %v5634_v21 }
 0x786   :  { %2780 = vmatpush.bf16.msrb.mxu2 %v5636_v24  ;;  %2793 = vmatpush.bf16.msrb.mxu3 %v5675_v54 }
 0x789   :  { %2755 = vmatpush.bf16.msrb.mxu0 %v5661_v3  ;;  %2768 = vmatpush.bf16.msrb.mxu1 %v5663_v4 }
 0x78a   :  { %2781 = vmatpush.bf16.msrb.mxu2 %v5680_v27  ;;  %2794 = vmatpush.bf16.msrb.mxu3 %v5692_v55 }
 0x7e8   :  { %v2515_v0 = vpop.f32.mrf.mxu0  ;;  %v2528_v2 = vpop.f32.mrf.mxu1 }
 0x7e9   :  { %v2558_v10 = vadd.f32 %v2515_v0, %v6226_v1  ;;  %v2559_v37 = vadd.f32 %v2528_v2, %v6227_v45 }
 0x7eb   :  { %v3810_v11 = vmul.f32 -1.442695, %v2558_v10  ;;  %v3811_v33 = vmul.f32 -1.442695, %v2559_v37 }
 0x7ed   :  { %4137 = vpow2.f32 %v3810_v11 }
 0x7ee   :  { %4139 = vpow2.f32 %v3811_v33 }
 0x7ef   :  { %v2541_v12 = vpop.f32.mrf.mxu2  ;;  %v2554_v49 = vpop.f32.mrf.mxu3 }
 0x7f0   :  { %v2560_v5 = vadd.f32 %v2541_v12, %v6228_v8  ;;  %v2517_v40 = vpop.f32.mrf.mxu0  ;;  %v2530_v56 = vpop.f32.mrf.mxu1  ;;  %v2561_v35 = vadd.f32 %v2554_v49, %v6229_v50 }
 0x7f2   :  { %v3812_v51 = vmul.f32 -1.442695, %v2560_v5 }
 0x7f3   :  { %v4138_v20 = vpop.eup %4137 }
 0x7f4   :  { %v4140_v43 = vpop.eup %4139  ;;  %v2571_v39 = vadd.f32 1.0, %v4138_v20  ;;  %4141 = vpow2.f32 %v3812_v51 }
 0x7f5   :  { %v2572_v26 = vadd.f32 1.0, %v4140_v43 }
 0x7f6   :  { %4143 = vrcp.f32 %v2571_v39  ;;  %v2585_v0 = vand.u32 2147483648, %v2571_v39  ;;  %v2583_v10 = vand.u32 2147483647, %v2571_v39  ;;  %vm2579_vm6 = vweird.f32 %v2571_v39 }
 0x7f7   :  { %4145 = vrcp.f32 %v2572_v26  ;;  %v2543_v47 = vpop.f32.mrf.mxu2  ;;  %v2556_v23 = vpop.f32.mrf.mxu3  ;;  %v2600_v2 = vand.u32 2147483648, %v2572_v26  ;;  %v2598_v37 = vand.u32 2147483647, %v2572_v26  ;;  %vm2594_vm7 = vweird.f32 %v2572_v26 }
 0x7f8   :  { %v2586_v49 = vor.u32 1.1754944e-38, %v2585_v0  ;;  %vm2584_vm10 = vcmp.eq.f32.partialorder %v2583_v10, 8.507059e+37  ;;  %v6231_v10 = vld [vmem:[#allocation16_spill] sm:$0xff] }
 0x7f9   :  { %v2601_v5 = vor.u32 1.1754944e-38, %v2600_v2  ;;  %vm2599_vm11 = vcmp.eq.f32.partialorder %v2598_v37, 8.507059e+37  ;;  %v6230_v2 = vld [vmem:[#allocation17_spill] sm:$0xff] }
 0x7fa   :  { %v4142_v53 = vpop.eup %4141 }
 0x7fb   :  { %v2573_v22 = vadd.f32 1.0, %v4142_v53 }
 0x7fc   :  { %v4144_v18 = vpop.eup %4143 }
 0x7fd   :  { %v4146_v31 = vpop.eup %4145  ;;  %v2575_v52 = vmul.f32 %v4144_v18, %v2571_v39  ;;  %4147 = vrcp.f32 %v2573_v22  ;;  %vm2580_vm4 = vweird.f32 %v4144_v18  ;;  %vm2609_vm13 = vweird.f32 %v2573_v22 }
 0x7fe   :  { %v2590_v29 = vmul.f32 %v4146_v31, %v2572_v26  ;;  %4149 = vtanh.f32 %v2561_v35  ;;  %vm2595_vm5 = vweird.f32 %v4146_v31  ;;  %vm2581_vm8 = vmor %vm2579_vm6, %vm2580_vm4  ;;  %v2615_v35 = vand.u32 2147483648, %v2573_v22 }
 0x7ff   :  { %v2576_v28 = vsub.f32 1.0, %v2575_v52  ;;  %vm2596_vm9 = vmor %vm2594_vm7, %vm2595_vm5 }
 0x800   :  { %v2591_v60 = vsub.f32 1.0, %v2590_v29  ;;  %v2616_v29 = vor.u32 1.1754944e-38, %v2615_v35 }
 0x801   :  { %v2577_v1 = vmul.f32 %v4144_v18, %v2576_v28 }
 0x802   :  { %v2592_v45 = vmul.f32 %v4146_v31, %v2591_v60 }
 0x803   :  { %v4148_v11 = vpop.eup %4147  ;;  %v2578_v33 = vadd.f32 %v4144_v18, %v2577_v1 }
 0x804   :  { %v2605_v12 = vmul.f32 %v4148_v11, %v2573_v22  ;;  %v2593_v8 = vadd.f32 %v4146_v31, %v2592_v45  ;;  %v4150_v56 = vpop.eup %4149  ;;  %vm2610_vm12 = vweird.f32 %v4148_v11 }
 0x805   :  { %v2582_v40 = vsel %vm2581_vm8, %v4144_v18, %v2578_v33  ;;  %v2613_v18 = vand.u32 2147483647, %v2573_v22  ;;  %vm2611_vm14 = vmor %vm2609_vm13, %vm2610_vm12 }
 0x806   :  { %v2606_v51 = vsub.f32 1.0, %v2605_v12  ;;  %v2587_v20 = vsel %vm2584_vm10, %v2586_v49, %v2582_v40  ;;  %v2597_v43 = vsel %vm2596_vm9, %v4146_v31, %v2593_v8  ;;  %v6232_v49 = vld [vmem:[#allocation18_spill] sm:$0xff] }
 0x807   :  { %v2602_v47 = vsel %vm2599_vm11, %v2601_v5, %v2597_v43  ;;  %v2621_v23 = vmul.f32 %v4150_v56, %v2587_v20  ;;  %vm2614_vm15 = vcmp.eq.f32.partialorder %v2613_v18, 8.507059e+37  ;;  %v6233_v18 = vld [vmem:[#allocation19_spill] sm:$0xff] }
 0x808   :  { %v2607_v53 = vmul.f32 %v4148_v11, %v2606_v51  ;;  %v2620_v50 = vmul.f32 %v2602_v47, %v5981_v16 }
 0x80a   :  { %v6024_v39 = vadd.f32 %v2621_v23, %v2620_v50  ;;  %v2608_v26 = vadd.f32 %v4148_v11, %v2607_v53 }
 0x80c   :  { %4151 = vtanh.f32 %v6024_v39  ;;  %v2612_v52 = vsel %vm2611_vm14, %v4148_v11, %v2608_v26 }
 0x80d   :  { %v2617_v28 = vsel %vm2614_vm15, %v2616_v29, %v2612_v52 }
 0x812   :  { %v4152_v31 = vpop.eup %4151 }
 0x813   :  { %v2624_v60 = vmul.f32 %v4152_v31, %v2617_v28 }
 0x815   :  { %v2625_v0 = vpack.c.bf16 %v2624_v60, %v2624_v60 }
 0x817   :  { %2626 = vst [vmem:[%s6151_s8 + $0x10] sm:$0xf] %v2625_v0  ;;  %2635 = vmatmul.bf16.vlgmr.msra.gmra.mxu0 %v2625_v0  ;;  %2648 = vmatmul.bf16.vlgmr.msra.gmra.mxu1 %v2625_v0 }
 0x818   :  { %2661 = vmatmul.bf16.vlgmr.msra.gmra.mxu2 %v2625_v0  ;;  %2674 = vmatmul.bf16.vlgmr.msra.gmra.mxu3 %v2625_v0 }
 0x819   :  { %2869 = vmatpush.bf16.msra.mxu0 %v5422_v17  ;;  %2882 = vmatpush.bf16.msra.mxu1 %v5424_v30 }
 0x81a   :  { %2895 = vmatpush.bf16.msra.mxu2 %v5429_v19  ;;  %2908 = vmatpush.bf16.msra.mxu3 %v5440_v48 }
 0x81d   :  { %2870 = vmatpush.bf16.msra.mxu0 %v5453_v59  ;;  %2883 = vmatpush.bf16.msra.mxu1 %v5455_v34 }
 0x81e   :  { %2896 = vmatpush.bf16.msra.mxu2 %v5467_v7  ;;  %2909 = vmatpush.bf16.msra.mxu3 %v5485_v32 }
 0x821   :  { %2871 = vmatpush.bf16.msra.mxu0 %v5492_v36  ;;  %2884 = vmatpush.bf16.msra.mxu1 %v5494_v38 }
 0x822   :  { %2897 = vmatpush.bf16.msra.mxu2 %v5503_v13  ;;  %2910 = vmatpush.bf16.msra.mxu3 %v5515_v62 }
 0x825   :  { %2872 = vmatpush.bf16.msra.mxu0 %v5525_v9  ;;  %2885 = vmatpush.bf16.msra.mxu1 %v5527_v14 }
 0x826   :  { %2898 = vmatpush.bf16.msra.mxu2 %v5530_v15  ;;  %2911 = vmatpush.bf16.msra.mxu3 %v5573_v57 }
 0x829   :  { %2873 = vmatpush.bf16.msra.mxu0 %v5548_v58  ;;  %2886 = vmatpush.bf16.msra.mxu1 %v5559_v46 }
 0x82a   :  { %2899 = vmatpush.bf16.msra.mxu2 %v5561_v25  ;;  %2912 = vmatpush.bf16.msra.mxu3 %v5605_v41 }
 0x82d   :  { %2874 = vmatpush.bf16.msra.mxu0 %v5586_v42  ;;  %2887 = vmatpush.bf16.msra.mxu1 %v5588_v61 }
 0x82e   :  { %2900 = vmatpush.bf16.msra.mxu2 %v5600_v6  ;;  %2913 = vmatpush.bf16.msra.mxu3 %v5648_v44 }
 0x831   :  { %2875 = vmatpush.bf16.msra.mxu0 %v5623_v63  ;;  %2888 = vmatpush.bf16.msra.mxu1 %v5634_v21 }
 0x832   :  { %2901 = vmatpush.bf16.msra.mxu2 %v5636_v24  ;;  %2914 = vmatpush.bf16.msra.mxu3 %v5675_v54 }
 0x835   :  { %2876 = vmatpush.bf16.msra.mxu0 %v5661_v3  ;;  %2889 = vmatpush.bf16.msra.mxu1 %v5663_v4 }
 0x836   :  { %2902 = vmatpush.bf16.msra.mxu2 %v5680_v27  ;;  %2915 = vmatpush.bf16.msra.mxu3 %v5692_v55 }
 0x894   :  { %v2636_v16 = vpop.f32.mrf.mxu0  ;;  %v2649_v22 = vpop.f32.mrf.mxu1 }
 0x895   :  { %v2679_v1 = vadd.f32 %v2636_v16, %v6230_v2  ;;  %v2680_v45 = vadd.f32 %v2649_v22, %v6231_v10 }
 0x897   :  { %v3813_v37 = vmul.f32 -1.442695, %v2679_v1  ;;  %v3814_v11 = vmul.f32 -1.442695, %v2680_v45 }
 0x899   :  { %4153 = vpow2.f32 %v3813_v37 }
 0x89a   :  { %4155 = vpow2.f32 %v3814_v11 }
 0x89b   :  { %v2662_v33 = vpop.f32.mrf.mxu2  ;;  %v2675_v12 = vpop.f32.mrf.mxu3 }
 0x89c   :  { %v2681_v8 = vadd.f32 %v2662_v33, %v6232_v49  ;;  %v2638_v5 = vpop.f32.mrf.mxu0  ;;  %v2651_v40 = vpop.f32.mrf.mxu1  ;;  %v2682_v52 = vadd.f32 %v2675_v12, %v6233_v18 }
 0x89e   :  { %v3815_v56 = vmul.f32 -1.442695, %v2681_v8 }
 0x89f   :  { %v4154_v51 = vpop.eup %4153 }
 0x8a0   :  { %v4156_v20 = vpop.eup %4155  ;;  %v2692_v43 = vadd.f32 1.0, %v4154_v51  ;;  %4157 = vpow2.f32 %v3815_v56 }
 0x8a1   :  { %v2693_v47 = vadd.f32 1.0, %v4156_v20 }
 0x8a2   :  { %4159 = vrcp.f32 %v2692_v43  ;;  %v2706_v16 = vand.u32 2147483648, %v2692_v43  ;;  %v2704_v1 = vand.u32 2147483647, %v2692_v43  ;;  %vm2700_vm2 = vweird.f32 %v2692_v43 }
 0x8a3   :  { %4161 = vrcp.f32 %v2693_v47  ;;  %v2664_v23 = vpop.f32.mrf.mxu2  ;;  %v2677_v53 = vpop.f32.mrf.mxu3  ;;  %v2721_v22 = vand.u32 2147483648, %v2693_v47  ;;  %v2719_v45 = vand.u32 2147483647, %v2693_v47  ;;  %vm2715_vm3 = vweird.f32 %v2693_v47 }
 0x8a4   :  { %v2707_v12 = vor.u32 1.1754944e-38, %v2706_v16  ;;  %vm2705_vm6 = vcmp.eq.f32.partialorder %v2704_v1, 8.507059e+37 }
 0x8a5   :  { %v2722_v8 = vor.u32 1.1754944e-38, %v2721_v22  ;;  %vm2720_vm7 = vcmp.eq.f32.partialorder %v2719_v45, 8.507059e+37 }
 0x8a6   :  { %v4158_v50 = vpop.eup %4157 }
 0x8a7   :  { %v2694_v26 = vadd.f32 1.0, %v4158_v50 }
 0x8a8   :  { %v4160_v35 = vpop.eup %4159 }
 0x8a9   :  { %v4162_v29 = vpop.eup %4161  ;;  %v2696_v31 = vmul.f32 %v4160_v35, %v2692_v43  ;;  %4163 = vrcp.f32 %v2694_v26  ;;  %vm2701_vm0 = vweird.f32 %v4160_v35  ;;  %vm2730_vm9 = vweird.f32 %v2694_v26 }
 0x8aa   :  { %v2711_v28 = vmul.f32 %v4162_v29, %v2693_v47  ;;  %4165 = vtanh.f32 %v2682_v52  ;;  %vm2716_vm1 = vweird.f32 %v4162_v29  ;;  %vm2702_vm4 = vmor %vm2700_vm2, %vm2701_vm0  ;;  %v2736_v52 = vand.u32 2147483648, %v2694_v26 }
 0x8ab   :  { %v2697_v60 = vsub.f32 1.0, %v2696_v31  ;;  %vm2717_vm5 = vmor %vm2715_vm3, %vm2716_vm1 }
 0x8ac   :  { %v2712_v0 = vsub.f32 1.0, %v2711_v28  ;;  %v2737_v28 = vor.u32 1.1754944e-38, %v2736_v52 }
 0x8ad   :  { %v2698_v2 = vmul.f32 %v4160_v35, %v2697_v60 }
 0x8ae   :  { %v2713_v10 = vmul.f32 %v4162_v29, %v2712_v0 }
 0x8af   :  { %v4164_v37 = vpop.eup %4163  ;;  %v2699_v11 = vadd.f32 %v4160_v35, %v2698_v2 }
 0x8b0   :  { %v2726_v33 = vmul.f32 %v4164_v37, %v2694_v26  ;;  %v2714_v49 = vadd.f32 %v4162_v29, %v2713_v10  ;;  %v4166_v40 = vpop.eup %4165  ;;  %vm2731_vm8 = vweird.f32 %v4164_v37 }
 0x8b1   :  { %v2703_v5 = vsel %vm2702_vm4, %v4160_v35, %v2699_v11  ;;  %v2734_v35 = vand.u32 2147483647, %v2694_v26  ;;  %vm2732_vm10 = vmor %vm2730_vm9, %vm2731_vm8 }
 0x8b2   :  { %v2727_v56 = vsub.f32 1.0, %v2726_v33  ;;  %v2708_v51 = vsel %vm2705_vm6, %v2707_v12, %v2703_v5  ;;  %v2718_v20 = vsel %vm2717_vm5, %v4162_v29, %v2714_v49 }
 0x8b3   :  { %v2723_v23 = vsel %vm2720_vm7, %v2722_v8, %v2718_v20  ;;  %v2742_v53 = vmul.f32 %v4166_v40, %v2708_v51  ;;  %vm2735_vm11 = vcmp.eq.f32.partialorder %v2734_v35, 8.507059e+37 }
 0x8b4   :  { %v2728_v50 = vmul.f32 %v4164_v37, %v2727_v56  ;;  %v2741_v18 = vmul.f32 %v2723_v23, %v6024_v39 }
 0x8b6   :  { %v6067_v43 = vadd.f32 %v2742_v53, %v2741_v18  ;;  %v2729_v47 = vadd.f32 %v4164_v37, %v2728_v50 }
 0x8b8   :  { %4167 = vtanh.f32 %v6067_v43  ;;  %v2733_v31 = vsel %vm2732_vm10, %v4164_v37, %v2729_v47 }
 0x8b9   :  { %v2738_v60 = vsel %vm2735_vm11, %v2737_v28, %v2733_v31 }
 0x8be   :  { %v4168_v29 = vpop.eup %4167 }
 0x8bf   :  { %v2745_v0 = vmul.f32 %v4168_v29, %v2738_v60 }
 0x8c1   :  { %v2746_v16 = vpack.c.bf16 %v2745_v0, %v2745_v0 }
 0x8c3   :  { %2747 = vst [vmem:[%s6151_s8 + $0xc] sm:$0xf] %v2746_v16  ;;  %2756 = vmatmul.bf16.vlgmr.msrb.gmra.mxu0 %v2746_v16  ;;  %2769 = vmatmul.bf16.vlgmr.msrb.gmra.mxu1 %v2746_v16 }
 0x8c4   :  { %2782 = vmatmul.bf16.vlgmr.msrb.gmra.mxu2 %v2746_v16  ;;  %2795 = vmatmul.bf16.vlgmr.msrb.gmra.mxu3 %v2746_v16 }
 0x8c5   :  { %2990 = vmatpush.bf16.msrb.mxu0 %v5422_v17  ;;  %3003 = vmatpush.bf16.msrb.mxu1 %v5424_v30 }
 0x8c6   :  { %3016 = vmatpush.bf16.msrb.mxu2 %v5429_v19  ;;  %3029 = vmatpush.bf16.msrb.mxu3 %v5440_v48  ;;  %v6234_v19 = vld [vmem:[#allocation12_spill] sm:$0xff] }
 0x8c9   :  { %2991 = vmatpush.bf16.msrb.mxu0 %v5453_v59  ;;  %3004 = vmatpush.bf16.msrb.mxu1 %v5455_v34  ;;  %v6235_v59 = vld [vmem:[#allocation13_spill] sm:$0xff] }
 0x8ca   :  { %3017 = vmatpush.bf16.msrb.mxu2 %v5467_v7  ;;  %3030 = vmatpush.bf16.msrb.mxu3 %v5485_v32 }
 0x8cd   :  { %2992 = vmatpush.bf16.msrb.mxu0 %v5492_v36  ;;  %3005 = vmatpush.bf16.msrb.mxu1 %v5494_v38 }
 0x8ce   :  { %3018 = vmatpush.bf16.msrb.mxu2 %v5503_v13  ;;  %3031 = vmatpush.bf16.msrb.mxu3 %v5515_v62  ;;  %v6236_v13 = vld [vmem:[#allocation14_spill] sm:$0xff] }
 0x8d1   :  { %2993 = vmatpush.bf16.msrb.mxu0 %v5525_v9  ;;  %3006 = vmatpush.bf16.msrb.mxu1 %v5527_v14 }
 0x8d2   :  { %3019 = vmatpush.bf16.msrb.mxu2 %v5530_v15  ;;  %3032 = vmatpush.bf16.msrb.mxu3 %v5573_v57 }
 0x8d5   :  { %2994 = vmatpush.bf16.msrb.mxu0 %v5548_v58  ;;  %3007 = vmatpush.bf16.msrb.mxu1 %v5559_v46 }
 0x8d6   :  { %3020 = vmatpush.bf16.msrb.mxu2 %v5561_v25  ;;  %3033 = vmatpush.bf16.msrb.mxu3 %v5605_v41 }
 0x8d9   :  { %2995 = vmatpush.bf16.msrb.mxu0 %v5586_v42  ;;  %3008 = vmatpush.bf16.msrb.mxu1 %v5588_v61 }
 0x8da   :  { %3021 = vmatpush.bf16.msrb.mxu2 %v5600_v6  ;;  %3034 = vmatpush.bf16.msrb.mxu3 %v5648_v44 }
 0x8dd   :  { %2996 = vmatpush.bf16.msrb.mxu0 %v5623_v63  ;;  %3009 = vmatpush.bf16.msrb.mxu1 %v5634_v21  ;;  %v6237_v21 = vld [vmem:[#allocation15_spill] sm:$0xff] }
 0x8de   :  { %3022 = vmatpush.bf16.msrb.mxu2 %v5636_v24  ;;  %3035 = vmatpush.bf16.msrb.mxu3 %v5675_v54 }
 0x8e1   :  { %2997 = vmatpush.bf16.msrb.mxu0 %v5661_v3  ;;  %3010 = vmatpush.bf16.msrb.mxu1 %v5663_v4 }
 0x8e2   :  { %3023 = vmatpush.bf16.msrb.mxu2 %v5680_v27  ;;  %3036 = vmatpush.bf16.msrb.mxu3 %v5692_v55 }
 0x940   :  { %v2757_v17 = vpop.f32.mrf.mxu0  ;;  %v2770_v30 = vpop.f32.mrf.mxu1 }
 0x941   :  { %v2800_v48 = vadd.f32 %v2757_v17, %v6234_v19  ;;  %v2801_v34 = vadd.f32 %v2770_v30, %v6235_v59  ;;  %v6238_v17 = vld [vmem:[#allocation9_spill] sm:$0xff]  ;;  %v6239_v19 = vld [vmem:[#allocation8_spill] sm:$0xff] }
 0x943   :  { %v3816_v7 = vmul.f32 -1.442695, %v2800_v48  ;;  %v3817_v32 = vmul.f32 -1.442695, %v2801_v34 }
 0x945   :  { %4169 = vpow2.f32 %v3816_v7 }
 0x946   :  { %4171 = vpow2.f32 %v3817_v32 }
 0x947   :  { %v2783_v36 = vpop.f32.mrf.mxu2  ;;  %v2796_v38 = vpop.f32.mrf.mxu3 }
 0x948   :  { %v2802_v62 = vadd.f32 %v2783_v36, %v6236_v13  ;;  %v2759_v9 = vpop.f32.mrf.mxu0  ;;  %v2772_v14 = vpop.f32.mrf.mxu1  ;;  %v2803_v24 = vadd.f32 %v2796_v38, %v6237_v21  ;;  %v6240_v36 = vld [vmem:[#allocation10_spill] sm:$0xff] }
 0x94a   :  { %v3818_v15 = vmul.f32 -1.442695, %v2802_v62 }
 0x94b   :  { %v4170_v58 = vpop.eup %4169 }
 0x94c   :  { %v4172_v46 = vpop.eup %4171  ;;  %v2813_v25 = vadd.f32 1.0, %v4170_v58  ;;  %4173 = vpow2.f32 %v3818_v15 }
 0x94d   :  { %v2814_v57 = vadd.f32 1.0, %v4172_v46 }
 0x94e   :  { %4175 = vrcp.f32 %v2813_v25  ;;  %v2827_v55 = vand.u32 2147483648, %v2813_v25  ;;  %v2825_v22 = vand.u32 2147483647, %v2813_v25  ;;  %vm2821_vm14 = vweird.f32 %v2813_v25 }
 0x94f   :  { %4177 = vrcp.f32 %v2814_v57  ;;  %v2785_v42 = vpop.f32.mrf.mxu2  ;;  %v2798_v61 = vpop.f32.mrf.mxu3  ;;  %v2842_v39 = vand.u32 2147483648, %v2814_v57  ;;  %v2840_v1 = vand.u32 2147483647, %v2814_v57  ;;  %vm2836_vm15 = vweird.f32 %v2814_v57 }
 0x950   :  { %v2828_v11 = vor.u32 1.1754944e-38, %v2827_v55  ;;  %vm2826_vm2 = vcmp.eq.f32.partialorder %v2825_v22, 8.507059e+37 }
 0x951   :  { %v2843_v12 = vor.u32 1.1754944e-38, %v2842_v39  ;;  %vm2841_vm3 = vcmp.eq.f32.partialorder %v2840_v1, 8.507059e+37 }
 0x952   :  { %v4174_v6 = vpop.eup %4173 }
 0x953   :  { %v2815_v41 = vadd.f32 1.0, %v4174_v6 }
 0x954   :  { %v4176_v63 = vpop.eup %4175 }
 0x955   :  { %v4178_v44 = vpop.eup %4177  ;;  %v2817_v3 = vmul.f32 %v4176_v63, %v2813_v25  ;;  %4179 = vrcp.f32 %v2815_v41  ;;  %vm2822_vm12 = vweird.f32 %v4176_v63  ;;  %v2857_v47 = vand.u32 2147483648, %v2815_v41 }
 0x956   :  { %v2832_v4 = vmul.f32 %v4178_v44, %v2814_v57  ;;  %4181 = vtanh.f32 %v2803_v24  ;;  %vm2837_vm13 = vweird.f32 %v4178_v44  ;;  %vm2823_vm0 = vmor %vm2821_vm14, %vm2822_vm12  ;;  %vm2851_vm5 = vweird.f32 %v2815_v41 }
 0x957   :  { %v2818_v54 = vsub.f32 1.0, %v2817_v3  ;;  %vm2838_vm1 = vmor %vm2836_vm15, %vm2837_vm13  ;;  %v2855_v52 = vand.u32 2147483647, %v2815_v41  ;;  %v2858_v31 = vor.u32 1.1754944e-38, %v2857_v47 }
 0x958   :  { %v2833_v27 = vsub.f32 1.0, %v2832_v4 }
 0x959   :  { %v2819_v26 = vmul.f32 %v4176_v63, %v2818_v54  ;;  %vm2856_vm7 = vcmp.eq.f32.partialorder %v2855_v52, 8.507059e+37 }
 0x95a   :  { %v2834_v2 = vmul.f32 %v4178_v44, %v2833_v27 }
 0x95b   :  { %v4180_v10 = vpop.eup %4179  ;;  %v2820_v45 = vadd.f32 %v4176_v63, %v2819_v26 }
 0x95c   :  { %v2847_v37 = vmul.f32 %v4180_v10, %v2815_v41  ;;  %v2835_v33 = vadd.f32 %v4178_v44, %v2834_v2  ;;  %v4182_v8 = vpop.eup %4181  ;;  %vm2852_vm4 = vweird.f32 %v4180_v10  ;;  %v6241_v41 = vld [vmem:[#allocation11_spill] sm:$0xff] }
 0x95d   :  { %v2824_v49 = vsel %vm2823_vm0, %v4176_v63, %v2820_v45  ;;  %vm2853_vm6 = vmor %vm2851_vm5, %vm2852_vm4 }
 0x95e   :  { %v2848_v5 = vsub.f32 1.0, %v2847_v37  ;;  %v2829_v40 = vsel %vm2826_vm2, %v2828_v11, %v2824_v49  ;;  %v2839_v56 = vsel %vm2838_vm1, %v4178_v44, %v2835_v33 }
 0x95f   :  { %v2844_v51 = vsel %vm2841_vm3, %v2843_v12, %v2839_v56  ;;  %v2863_v20 = vmul.f32 %v4182_v8, %v2829_v40 }
 0x960   :  { %v2849_v23 = vmul.f32 %v4180_v10, %v2848_v5  ;;  %v2862_v53 = vmul.f32 %v2844_v51, %v6067_v43 }
 0x962   :  { %v6110_v50 = vadd.f32 %v2863_v20, %v2862_v53  ;;  %v2850_v18 = vadd.f32 %v4180_v10, %v2849_v23 }
 0x964   :  { %4183 = vtanh.f32 %v6110_v50  ;;  %v2854_v35 = vsel %vm2853_vm6, %v4180_v10, %v2850_v18 }
 0x965   :  { %v2859_v29 = vsel %vm2856_vm7, %v2858_v31, %v2854_v35 }
 0x96a   :  { %v4184_v28 = vpop.eup %4183 }
 0x96b   :  { %v2866_v60 = vmul.f32 %v4184_v28, %v2859_v29 }
 0x96d   :  { %v2867_v0 = vpack.c.bf16 %v2866_v60, %v2866_v60 }
 0x96f   :  { %2868 = vst [vmem:[%s6151_s8 + $0x8] sm:$0xf] %v2867_v0  ;;  %2877 = vmatmul.bf16.vlgmr.msra.gmra.mxu0 %v2867_v0  ;;  %2890 = vmatmul.bf16.vlgmr.msra.gmra.mxu1 %v2867_v0 }
 0x970   :  { %2903 = vmatmul.bf16.vlgmr.msra.gmra.mxu2 %v2867_v0  ;;  %2916 = vmatmul.bf16.vlgmr.msra.gmra.mxu3 %v2867_v0 }
 0x9ec   :  { %v2878_v43 = vpop.f32.mrf.mxu0  ;;  %v2891_v16 = vpop.f32.mrf.mxu1 }
 0x9ed   :  { %v2921_v30 = vadd.f32 %v2878_v43, %v6238_v17  ;;  %v2922_v48 = vadd.f32 %v2891_v16, %v6239_v19  ;;  %v6242_v43 = vld [vmem:[#allocation4_spill] sm:$0xff]  ;;  %v6243_v17 = vld [vmem:[#allocation5_spill] sm:$0xff] }
 0x9ef   :  { %v3819_v59 = vmul.f32 -1.442695, %v2921_v30  ;;  %v3820_v34 = vmul.f32 -1.442695, %v2922_v48 }
 0x9f1   :  { %4185 = vpow2.f32 %v3819_v59 }
 0x9f2   :  { %4187 = vpow2.f32 %v3820_v34 }
 0x9f3   :  { %v2904_v7 = vpop.f32.mrf.mxu2  ;;  %v2917_v32 = vpop.f32.mrf.mxu3 }
 0x9f4   :  { %v2923_v38 = vadd.f32 %v2904_v7, %v6240_v36  ;;  %v2880_v13 = vpop.f32.mrf.mxu0  ;;  %v2893_v62 = vpop.f32.mrf.mxu1  ;;  %v2924_v63 = vadd.f32 %v2917_v32, %v6241_v41  ;;  %v6244_v7 = vld [vmem:[#allocation6_spill] sm:$0xff] }
 0x9f6   :  { %v3821_v9 = vmul.f32 -1.442695, %v2923_v38 }
 0x9f7   :  { %v4186_v14 = vpop.eup %4185 }
 0x9f8   :  { %v4188_v15 = vpop.eup %4187  ;;  %v2934_v58 = vadd.f32 1.0, %v4186_v14  ;;  %4189 = vpow2.f32 %v3821_v9 }
 0x9f9   :  { %v2935_v46 = vadd.f32 1.0, %v4188_v15 }
 0x9fa   :  { %4191 = vrcp.f32 %v2934_v58  ;;  %v2948_v54 = vand.u32 2147483648, %v2934_v58  ;;  %v2946_v39 = vand.u32 2147483647, %v2934_v58  ;;  %vm2942_vm10 = vweird.f32 %v2934_v58 }
 0x9fb   :  { %4193 = vrcp.f32 %v2935_v46  ;;  %v2906_v25 = vpop.f32.mrf.mxu2  ;;  %v2919_v57 = vpop.f32.mrf.mxu3  ;;  %v2963_v27 = vand.u32 2147483648, %v2935_v46  ;;  %v2961_v22 = vand.u32 2147483647, %v2935_v46  ;;  %vm2957_vm11 = vweird.f32 %v2935_v46 }
 0x9fc   :  { %v2949_v45 = vor.u32 1.1754944e-38, %v2948_v54  ;;  %vm2947_vm14 = vcmp.eq.f32.partialorder %v2946_v39, 8.507059e+37 }
 0x9fd   :  { %v2964_v11 = vor.u32 1.1754944e-38, %v2963_v27  ;;  %vm2962_vm15 = vcmp.eq.f32.partialorder %v2961_v22, 8.507059e+37 }
 0x9fe   :  { %v4190_v42 = vpop.eup %4189 }
 0x9ff   :  { %v2936_v61 = vadd.f32 1.0, %v4190_v42 }
 0xa00   :  { %v4192_v6 = vpop.eup %4191 }
 0xa01   :  { %v4194_v21 = vpop.eup %4193  ;;  %v2938_v24 = vmul.f32 %v4192_v6, %v2934_v58  ;;  %4195 = vrcp.f32 %v2936_v61  ;;  %vm2943_vm8 = vweird.f32 %v4192_v6  ;;  %v2978_v18 = vand.u32 2147483648, %v2936_v61 }
 0xa02   :  { %v2953_v44 = vmul.f32 %v4194_v21, %v2935_v46  ;;  %4197 = vtanh.f32 %v2924_v63  ;;  %vm2958_vm9 = vweird.f32 %v4194_v21  ;;  %vm2944_vm12 = vmor %vm2942_vm10, %vm2943_vm8  ;;  %vm2972_vm1 = vweird.f32 %v2936_v61 }
 0xa03   :  { %v2939_v3 = vsub.f32 1.0, %v2938_v24  ;;  %vm2959_vm13 = vmor %vm2957_vm11, %vm2958_vm9  ;;  %v2976_v47 = vand.u32 2147483647, %v2936_v61  ;;  %v2979_v35 = vor.u32 1.1754944e-38, %v2978_v18 }
 0xa04   :  { %v2954_v4 = vsub.f32 1.0, %v2953_v44 }
 0xa05   :  { %v2940_v55 = vmul.f32 %v4192_v6, %v2939_v3  ;;  %vm2977_vm3 = vcmp.eq.f32.partialorder %v2976_v47, 8.507059e+37 }
 0xa06   :  { %v2955_v26 = vmul.f32 %v4194_v21, %v2954_v4 }
 0xa07   :  { %v4196_v2 = vpop.eup %4195  ;;  %v2941_v1 = vadd.f32 %v4192_v6, %v2940_v55 }
 0xa08   :  { %v2968_v10 = vmul.f32 %v4196_v2, %v2936_v61  ;;  %v2956_v37 = vadd.f32 %v4194_v21, %v2955_v26  ;;  %v4198_v12 = vpop.eup %4197  ;;  %vm2973_vm0 = vweird.f32 %v4196_v2  ;;  %v6245_v61 = vld [vmem:[#allocation7_spill] sm:$0xff] }
 0xa09   :  { %v2945_v33 = vsel %vm2944_vm12, %v4192_v6, %v2941_v1  ;;  %vm2974_vm2 = vmor %vm2972_vm1, %vm2973_vm0 }
 0xa0a   :  { %v2969_v49 = vsub.f32 1.0, %v2968_v10  ;;  %v2950_v8 = vsel %vm2947_vm14, %v2949_v45, %v2945_v33  ;;  %v2960_v5 = vsel %vm2959_vm13, %v4194_v21, %v2956_v37 }
 0xa0b   :  { %v2965_v40 = vsel %vm2962_vm15, %v2964_v11, %v2960_v5  ;;  %v2984_v56 = vmul.f32 %v4198_v12, %v2950_v8 }
 0xa0c   :  { %v2970_v51 = vmul.f32 %v4196_v2, %v2969_v49  ;;  %v2983_v20 = vmul.f32 %v2965_v40, %v6110_v50 }
 0xa0e   :  { %v6121_v23 = vadd.f32 %v2984_v56, %v2983_v20  ;;  %v2971_v53 = vadd.f32 %v4196_v2, %v2970_v51 }
 0xa10   :  { %4199 = vtanh.f32 %v6121_v23  ;;  %v2975_v52 = vsel %vm2974_vm2, %v4196_v2, %v2971_v53 }
 0xa11   :  { %v2980_v28 = vsel %vm2977_vm3, %v2979_v35, %v2975_v52 }
 0xa16   :  { %v4200_v31 = vpop.eup %4199 }
 0xa17   :  { %v2987_v29 = vmul.f32 %v4200_v31, %v2980_v28 }
 0xa19   :  { %v2988_v60 = vpack.c.bf16 %v2987_v29, %v2987_v29 }
 0xa1b   :  { %2989 = vst [vmem:[%s6151_s8 + $0x4] sm:$0xf] %v2988_v60  ;;  %2998 = vmatmul.bf16.vlgmr.msrb.gmra.mxu0 %v2988_v60  ;;  %3011 = vmatmul.bf16.vlgmr.msrb.gmra.mxu1 %v2988_v60 }
 0xa1c   :  { %3024 = vmatmul.bf16.vlgmr.msrb.gmra.mxu2 %v2988_v60  ;;  %3037 = vmatmul.bf16.vlgmr.msrb.gmra.mxu3 %v2988_v60 }
 0xa98   :  { %v2999_v50 = vpop.f32.mrf.mxu0  ;;  %v3012_v0 = vpop.f32.mrf.mxu1 }
 0xa99   :  { %v3042_v16 = vadd.f32 %v2999_v50, %v6242_v43  ;;  %v3043_v30 = vadd.f32 %v3012_v0, %v6243_v17 }
 0xa9b   :  { %v3822_v19 = vmul.f32 -1.442695, %v3042_v16  ;;  %v3823_v48 = vmul.f32 -1.442695, %v3043_v30 }
 0xa9d   :  { %4201 = vpow2.f32 %v3822_v19 }
 0xa9e   :  { %4203 = vpow2.f32 %v3823_v48 }
 0xa9f   :  { %v3025_v59 = vpop.f32.mrf.mxu2  ;;  %v3038_v34 = vpop.f32.mrf.mxu3 }
 0xaa0   :  { %v3044_v32 = vadd.f32 %v3025_v59, %v6244_v7  ;;  %v3001_v36 = vpop.f32.mrf.mxu0  ;;  %v3014_v38 = vpop.f32.mrf.mxu1  ;;  %v3045_v6 = vadd.f32 %v3038_v34, %v6245_v61 }
 0xaa2   :  { %v3824_v13 = vmul.f32 -1.442695, %v3044_v32 }
 0xaa3   :  { %v4202_v62 = vpop.eup %4201 }
 0xaa4   :  { %v4204_v9 = vpop.eup %4203  ;;  %v3055_v14 = vadd.f32 1.0, %v4202_v62  ;;  %4205 = vpow2.f32 %v3824_v13 }
 0xaa5   :  { %v3056_v15 = vadd.f32 1.0, %v4204_v9 }
 0xaa6   :  { %4207 = vrcp.f32 %v3055_v14  ;;  %v3069_v3 = vand.u32 2147483648, %v3055_v14  ;;  %v3067_v27 = vand.u32 2147483647, %v3055_v14  ;;  %vm3063_vm6 = vweird.f32 %v3055_v14 }
 0xaa7   :  { %4209 = vrcp.f32 %v3056_v15  ;;  %v3027_v58 = vpop.f32.mrf.mxu2  ;;  %v3040_v46 = vpop.f32.mrf.mxu3  ;;  %v3084_v4 = vand.u32 2147483648, %v3056_v15  ;;  %v3082_v39 = vand.u32 2147483647, %v3056_v15  ;;  %vm3078_vm7 = vweird.f32 %v3056_v15 }
 0xaa8   :  { %v3070_v1 = vor.u32 1.1754944e-38, %v3069_v3  ;;  %vm3068_vm10 = vcmp.eq.f32.partialorder %v3067_v27, 8.507059e+37 }
 0xaa9   :  { %v3085_v45 = vor.u32 1.1754944e-38, %v3084_v4  ;;  %vm3083_vm11 = vcmp.eq.f32.partialorder %v3082_v39, 8.507059e+37 }
 0xaaa   :  { %v4206_v25 = vpop.eup %4205 }
 0xaab   :  { %v3057_v57 = vadd.f32 1.0, %v4206_v25 }
 0xaac   :  { %v4208_v42 = vpop.eup %4207 }
 0xaad   :  { %v4210_v41 = vpop.eup %4209  ;;  %v3059_v63 = vmul.f32 %v4208_v42, %v3055_v14  ;;  %4211 = vrcp.f32 %v3057_v57  ;;  %vm3064_vm4 = vweird.f32 %v4208_v42  ;;  %v3099_v53 = vand.u32 2147483648, %v3057_v57 }
 0xaae   :  { %v3074_v21 = vmul.f32 %v4210_v41, %v3056_v15  ;;  %4213 = vtanh.f32 %v3045_v6  ;;  %vm3079_vm5 = vweird.f32 %v4210_v41  ;;  %vm3065_vm8 = vmor %vm3063_vm6, %vm3064_vm4  ;;  %vm3093_vm13 = vweird.f32 %v3057_v57 }
 0xaaf   :  { %v3060_v24 = vsub.f32 1.0, %v3059_v63  ;;  %vm3080_vm9 = vmor %vm3078_vm7, %vm3079_vm5  ;;  %v3097_v18 = vand.u32 2147483647, %v3057_v57  ;;  %v3100_v52 = vor.u32 1.1754944e-38, %v3099_v53 }
 0xab0   :  { %v3075_v44 = vsub.f32 1.0, %v3074_v21 }
 0xab1   :  { %v3061_v54 = vmul.f32 %v4208_v42, %v3060_v24  ;;  %vm3098_vm15 = vcmp.eq.f32.partialorder %v3097_v18, 8.507059e+37 }
 0xab2   :  { %v3076_v55 = vmul.f32 %v4210_v41, %v3075_v44 }
 0xab3   :  { %v4212_v26 = vpop.eup %4211  ;;  %v3062_v22 = vadd.f32 %v4208_v42, %v3061_v54 }
 0xab4   :  { %v3089_v2 = vmul.f32 %v4212_v26, %v3057_v57  ;;  %v3077_v10 = vadd.f32 %v4210_v41, %v3076_v55  ;;  %v4214_v11 = vpop.eup %4213  ;;  %vm3094_vm12 = vweird.f32 %v4212_v26 }
 0xab5   :  { %v3066_v37 = vsel %vm3065_vm8, %v4208_v42, %v3062_v22  ;;  %vm3095_vm14 = vmor %vm3093_vm13, %vm3094_vm12 }
 0xab6   :  { %v3090_v33 = vsub.f32 1.0, %v3089_v2  ;;  %v3071_v12 = vsel %vm3068_vm10, %v3070_v1, %v3066_v37  ;;  %v3081_v49 = vsel %vm3080_vm9, %v4210_v41, %v3077_v10 }
 0xab7   :  { %v3086_v8 = vsel %vm3083_vm11, %v3085_v45, %v3081_v49  ;;  %v3105_v5 = vmul.f32 %v4214_v11, %v3071_v12 }
 0xab8   :  { %v3091_v40 = vmul.f32 %v4212_v26, %v3090_v33  ;;  %v3104_v56 = vmul.f32 %v3086_v8, %v6121_v23 }
 0xaba   :  { %v3106_v51 = vadd.f32 %v3105_v5, %v3104_v56  ;;  %v3092_v20 = vadd.f32 %v4212_v26, %v3091_v40 }
 0xabc   :  { %4215 = vtanh.f32 %v3106_v51  ;;  %3123 = vst [vmem:[%s6149_s10 + $0x8] sm:$0xff] %v3106_v51  ;;  %v3096_v47 = vsel %vm3095_vm14, %v4212_v26, %v3092_v20 }
 0xabd   :  { %v3101_v31 = vsel %vm3098_vm15, %v3100_v52, %v3096_v47 }
 0xac2   :  { %v4216_v35 = vpop.eup %4215 }
 0xac3   :  { %v3108_v28 = vmul.f32 %v4216_v35, %v3101_v31 }
 0xac5   :  { %v3109_v29 = vpack.c.bf16 %v3108_v28, %v3108_v28  ;;  %3119 = vst [vmem:[%s6150_s9 + $0x8] sm:$0xff] %v3108_v28 }
 0xac7   :  { %3110 = vst [vmem:[%s6151_s8] sm:$0xf] %v3109_v29 }

// kernel: encoder_forward.3
= control target key start
LH: loop header
LB: loop body
LE: loop exit
PB: predicated region body
PF: predicated region fallthrough
CT: control target
= control target key end

     0   :  { %s7814_s4 = inlined_call_operand.vmem [shape: bf16[4,128,512], index: 4, kind: input, shape index: {}]   ;;  %s7815_s1 = inlined_call_operand.vmem [shape: bf16[64,128], index: 1, kind: input, shape index: {}, may-alias: {1,3}]   ;;  %s7816_s5 = inlined_call_operand.vmem [shape: bf16[2,128,512], index: 5, kind: input, shape index: {}]   ;;  %s7817_s0 = inlined_call_operand.vmem [shape: bf16[64,128], index: 0, kind: input, shape index: {}, may-alias: {0,2}]   ;;  %s7818_s7 = inlined_call_operand.vmem [shape: f32[2,8,128], index: 7, kind: input, shape index: {}]   ;;  %s7819_s6 = inlined_call_operand.vmem [shape: f32[2,1,512], index: 6, kind: input, shape index: {}]   ;;  %s7820_s8 = inlined_call_operand.vmem [shape: f32[2,8,128], index: 8, kind: input, shape index: {}]   ;;  %s7821_s3 = inlined_call_operand.vmem [shape: bf16[64,128], index: 3, kind: input, shape index: {}, may-alias: {1,3}]   ;;  %s7822_s2 = inlined_call_operand.vmem [shape: bf16[64,128], index: 2, kind: input, shape index: {}, may-alias: {0,2}]   ;;  %s7823_s10 = inlined_call_operand.vmem [shape: f32[2,8,128], index: 10, kind: output, shape index: {1}]   ;;  %s7824_s9 = inlined_call_operand.vmem [shape: f32[2,8,128], index: 9, kind: output, shape index: {0}]  }
   0x1   :  { %v4046_v0 = vld [vmem:[%s7814_s4 + $0x1e0] sm:$0xf]  ;;  %v4963_v1 = vld [vmem:[%s7814_s4 + $0x1ec] sm:$0xf0]  ;;  %v4961_v2 = vld [vmem:[%s7814_s4 + $0x1e4] sm:$0xf] }
   0x2   :  { %v4047_v3 = vor.u32 %v4963_v1, %v4046_v0  ;;  %v4048_v4 = vld [vmem:[%s7814_s4 + $0x1f0] sm:$0xf0]  ;;  %v4054_v5 = vld [vmem:[%s7814_s4 + $0x1e8] sm:$0xf]  ;;  %v4964_v6 = vld [vmem:[%s7814_s4 + $0x1f4] sm:$0xf0] }
   0x3   :  { %v4051_v7 = vor.u32 %v4961_v2, %v4048_v4  ;;  %v4055_v8 = vor.u32 %v4964_v6, %v4054_v5  ;;  %v4962_v9 = vld [vmem:[%s7814_s4 + $0x1ec] sm:$0xf]  ;;  %v4056_v10 = vld [vmem:[%s7814_s4 + $0x1f8] sm:$0xf0]  ;;  %v4030_v11 = vld [vmem:[%s7814_s4 + $0x1c0] sm:$0xf] }
   0x4   :  { %355 = vmatpush.bf16.msra.mxu0 %v4047_v3  ;;  %v4059_v12 = vor.u32 %v4962_v9, %v4056_v10  ;;  %v4959_v13 = vld [vmem:[%s7814_s4 + $0x1cc] sm:$0xf0]  ;;  %v4957_v14 = vld [vmem:[%s7814_s4 + $0x1c4] sm:$0xf]  ;;  %v4032_v15 = vld [vmem:[%s7814_s4 + $0x1d0] sm:$0xf0] }
   0x5   :  { %384 = vmatpush.bf16.msra.mxu1 %v4051_v7  ;;  %413 = vmatpush.bf16.msra.mxu2 %v4055_v8  ;;  %v4031_v16 = vor.u32 %v4959_v13, %v4030_v11  ;;  %v4035_v17 = vor.u32 %v4957_v14, %v4032_v15  ;;  %v4038_v18 = vld [vmem:[%s7814_s4 + $0x1c8] sm:$0xf]  ;;  %v4960_v19 = vld [vmem:[%s7814_s4 + $0x1d4] sm:$0xf0]  ;;  %v4958_v20 = vld [vmem:[%s7814_s4 + $0x1cc] sm:$0xf] }
   0x6   :  { %442 = vmatpush.bf16.msra.mxu3 %v4059_v12  ;;  %v4039_v21 = vor.u32 %v4960_v19, %v4038_v18  ;;  %v4040_v22 = vld [vmem:[%s7814_s4 + $0x1d8] sm:$0xf0]  ;;  %v4014_v23 = vld [vmem:[%s7814_s4 + $0x1a0] sm:$0xf]  ;;  %v4955_v24 = vld [vmem:[%s7814_s4 + $0x1ac] sm:$0xf0] }
   0x7   :  { %v4043_v25 = vor.u32 %v4958_v20, %v4040_v22  ;;  %v4953_v26 = vld [vmem:[%s7814_s4 + $0x1a4] sm:$0xf]  ;;  %v4016_v27 = vld [vmem:[%s7814_s4 + $0x1b0] sm:$0xf0]  ;;  %v4022_v28 = vld [vmem:[%s7814_s4 + $0x1a8] sm:$0xf]  ;;  %v4015_v29 = vor.u32 %v4955_v24, %v4014_v23 }
   0x8   :  { %356 = vmatpush.bf16.msra.mxu0 %v4031_v16  ;;  %v4956_v30 = vld [vmem:[%s7814_s4 + $0x1b4] sm:$0xf0]  ;;  %v4954_v31 = vld [vmem:[%s7814_s4 + $0x1ac] sm:$0xf]  ;;  %v4024_v32 = vld [vmem:[%s7814_s4 + $0x1b8] sm:$0xf0]  ;;  %v4019_v33 = vor.u32 %v4953_v26, %v4016_v27 }
   0x9   :  { %385 = vmatpush.bf16.msra.mxu1 %v4035_v17  ;;  %414 = vmatpush.bf16.msra.mxu2 %v4039_v21  ;;  %v4023_v34 = vor.u32 %v4956_v30, %v4022_v28  ;;  %v3998_v35 = vld [vmem:[%s7814_s4 + $0x180] sm:$0xf]  ;;  %v4951_v36 = vld [vmem:[%s7814_s4 + $0x18c] sm:$0xf0]  ;;  %v4949_v37 = vld [vmem:[%s7814_s4 + $0x184] sm:$0xf]  ;;  %v4027_v38 = vor.u32 %v4954_v31, %v4024_v32 }
   0xa   :  { %443 = vmatpush.bf16.msra.mxu3 %v4043_v25  ;;  %v4000_v39 = vld [vmem:[%s7814_s4 + $0x190] sm:$0xf0]  ;;  %v4006_v40 = vld [vmem:[%s7814_s4 + $0x188] sm:$0xf]  ;;  %v4952_v41 = vld [vmem:[%s7814_s4 + $0x194] sm:$0xf0]  ;;  %v3999_v44 = vor.u32 %v4951_v36, %v3998_v35 }
   0xb   :  { %v4950_v42 = vld [vmem:[%s7814_s4 + $0x18c] sm:$0xf]  ;;  %v4008_v43 = vld [vmem:[%s7814_s4 + $0x198] sm:$0xf0]  ;;  %v4003_v45 = vor.u32 %v4949_v37, %v4000_v39  ;;  %v4007_v46 = vor.u32 %v4952_v41, %v4006_v40  ;;  %v3982_v47 = vld [vmem:[%s7814_s4 + $0x160] sm:$0xf] }
   0xc   :  { %357 = vmatpush.bf16.msra.mxu0 %v4015_v29  ;;  %v4947_v48 = vld [vmem:[%s7814_s4 + $0x16c] sm:$0xf0]  ;;  %v4945_v49 = vld [vmem:[%s7814_s4 + $0x164] sm:$0xf]  ;;  %v4011_v50 = vor.u32 %v4950_v42, %v4008_v43  ;;  %v3984_v51 = vld [vmem:[%s7814_s4 + $0x170] sm:$0xf0] }
   0xd   :  { %386 = vmatpush.bf16.msra.mxu1 %v4019_v33  ;;  %415 = vmatpush.bf16.msra.mxu2 %v4023_v34  ;;  %v3990_v52 = vld [vmem:[%s7814_s4 + $0x168] sm:$0xf]  ;;  %v4948_v53 = vld [vmem:[%s7814_s4 + $0x174] sm:$0xf0]  ;;  %v4946_v54 = vld [vmem:[%s7814_s4 + $0x16c] sm:$0xf]  ;;  %v3983_v56 = vor.u32 %v4947_v48, %v3982_v47  ;;  %v3987_v57 = vor.u32 %v4945_v49, %v3984_v51 }
   0xe   :  { %444 = vmatpush.bf16.msra.mxu3 %v4027_v38  ;;  %v3992_v55 = vld [vmem:[%s7814_s4 + $0x178] sm:$0xf0]  ;;  %v3991_v58 = vor.u32 %v4948_v53, %v3990_v52  ;;  %v3966_v59 = vld [vmem:[%s7814_s4 + $0x140] sm:$0xf]  ;;  %v4943_v60 = vld [vmem:[%s7814_s4 + $0x14c] sm:$0xf0] }
   0xf   :  { %v4941_v61 = vld [vmem:[%s7814_s4 + $0x144] sm:$0xf]  ;;  %v3995_v62 = vor.u32 %v4946_v54, %v3992_v55  ;;  %v3968_v63 = vld [vmem:[%s7814_s4 + $0x150] sm:$0xf0]  ;;  %v3974_v0 = vld [vmem:[%s7814_s4 + $0x148] sm:$0xf]  ;;  %v3967_v4 = vor.u32 %v4943_v60, %v3966_v59 }
  0x10   :  { %358 = vmatpush.bf16.msra.mxu0 %v3999_v44  ;;  %v4944_v1 = vld [vmem:[%s7814_s4 + $0x154] sm:$0xf0]  ;;  %v4942_v2 = vld [vmem:[%s7814_s4 + $0x14c] sm:$0xf]  ;;  %v3976_v3 = vld [vmem:[%s7814_s4 + $0x158] sm:$0xf0]  ;;  %v3971_v5 = vor.u32 %v4941_v61, %v3968_v63 }
  0x11   :  { %387 = vmatpush.bf16.msra.mxu1 %v4003_v45  ;;  %416 = vmatpush.bf16.msra.mxu2 %v4007_v46  ;;  %v3975_v6 = vor.u32 %v4944_v1, %v3974_v0  ;;  %v3950_v7 = vld [vmem:[%s7814_s4 + $0x120] sm:$0xf]  ;;  %v4939_v8 = vld [vmem:[%s7814_s4 + $0x12c] sm:$0xf0]  ;;  %v4937_v9 = vld [vmem:[%s7814_s4 + $0x124] sm:$0xf]  ;;  %v3979_v10 = vor.u32 %v4942_v2, %v3976_v3 }
  0x12   :  { %445 = vmatpush.bf16.msra.mxu3 %v4011_v50  ;;  %v3952_v11 = vld [vmem:[%s7814_s4 + $0x130] sm:$0xf0]  ;;  %v3958_v12 = vld [vmem:[%s7814_s4 + $0x128] sm:$0xf]  ;;  %v4940_v13 = vld [vmem:[%s7814_s4 + $0x134] sm:$0xf0]  ;;  %v3951_v16 = vor.u32 %v4939_v8, %v3950_v7 }
  0x13   :  { %v4938_v14 = vld [vmem:[%s7814_s4 + $0x12c] sm:$0xf]  ;;  %v3960_v15 = vld [vmem:[%s7814_s4 + $0x138] sm:$0xf0]  ;;  %v3934_v17 = vld [vmem:[%s7814_s4 + $0x100] sm:$0xf]  ;;  %v3955_v18 = vor.u32 %v4937_v9, %v3952_v11  ;;  %v3959_v19 = vor.u32 %v4940_v13, %v3958_v12 }
  0x14   :  { %359 = vmatpush.bf16.msra.mxu0 %v3983_v56  ;;  %v4935_v20 = vld [vmem:[%s7814_s4 + $0x10c] sm:$0xf0]  ;;  %v4933_v21 = vld [vmem:[%s7814_s4 + $0x104] sm:$0xf]  ;;  %v3936_v22 = vld [vmem:[%s7814_s4 + $0x110] sm:$0xf0]  ;;  %v3963_v23 = vor.u32 %v4938_v14, %v3960_v15 }
  0x15   :  { %388 = vmatpush.bf16.msra.mxu1 %v3987_v57  ;;  %417 = vmatpush.bf16.msra.mxu2 %v3991_v58  ;;  %v3942_v24 = vld [vmem:[%s7814_s4 + $0x108] sm:$0xf]  ;;  %v4936_v25 = vld [vmem:[%s7814_s4 + $0x114] sm:$0xf0]  ;;  %v4934_v26 = vld [vmem:[%s7814_s4 + $0x10c] sm:$0xf]  ;;  %v3935_v30 = vor.u32 %v4935_v20, %v3934_v17  ;;  %v3939_v33 = vor.u32 %v4933_v21, %v3936_v22 }
  0x16   :  { %446 = vmatpush.bf16.msra.mxu3 %v3995_v62  ;;  %v3944_v27 = vld [vmem:[%s7814_s4 + $0x118] sm:$0xf0]  ;;  %v4190_v28 = vld [vmem:[%s7814_s4 + $0xe0] sm:$0xf]  ;;  %v4927_v29 = vld [vmem:[%s7814_s4 + $0xec] sm:$0xf0]  ;;  %v3943_v34 = vor.u32 %v4936_v25, %v3942_v24 }
  0x17   :  { %v4925_v31 = vld [vmem:[%s7814_s4 + $0xe4] sm:$0xf]  ;;  %v4192_v32 = vld [vmem:[%s7814_s4 + $0xf0] sm:$0xf0]  ;;  %v3947_v36 = vor.u32 %v4934_v26, %v3944_v27  ;;  %v4191_v37 = vor.u32 %v4927_v29, %v4190_v28  ;;  %v4198_v38 = vld [vmem:[%s7814_s4 + $0xe8] sm:$0xf] }
  0x18   :  { %360 = vmatpush.bf16.msra.mxu0 %v3967_v4  ;;  %v4929_v35 = vld [vmem:[%s7815_s1] sm:$0xff]  ;;  %v4928_v39 = vld [vmem:[%s7814_s4 + $0xf4] sm:$0xf0]  ;;  %v4195_v41 = vor.u32 %v4925_v31, %v4192_v32  ;;  %v4923_v42 = vld [vmem:[%s7814_s4 + $0xcc] sm:$0xf0] }
  0x19   :  { %389 = vmatpush.bf16.msra.mxu1 %v3971_v5  ;;  %418 = vmatpush.bf16.msra.mxu2 %v3975_v6  ;;  %v4174_v40 = vld [vmem:[%s7814_s4 + $0xc0] sm:$0xf]  ;;  %v4926_v43 = vld [vmem:[%s7814_s4 + $0xec] sm:$0xf]  ;;  %v4200_v44 = vld [vmem:[%s7814_s4 + $0xf8] sm:$0xf0]  ;;  %v4199_v47 = vor.u32 %v4928_v39, %v4198_v38 }
  0x1a   :  { %447 = vmatpush.bf16.msra.mxu3 %v3979_v10  ;;  %v4921_v45 = vld [vmem:[%s7814_s4 + $0xc4] sm:$0xf]  ;;  %v4176_v46 = vld [vmem:[%s7814_s4 + $0xd0] sm:$0xf0]  ;;  %v4175_v48 = vor.u32 %v4923_v42, %v4174_v40  ;;  %v4182_v49 = vld [vmem:[%s7814_s4 + $0xc8] sm:$0xf]  ;;  %v4203_v51 = vor.u32 %v4926_v43, %v4200_v44 }
  0x1b   :  { %v4924_v50 = vld [vmem:[%s7814_s4 + $0xd4] sm:$0xf0]  ;;  %v4158_v52 = vld [vmem:[%s7814_s4 + $0xa0] sm:$0xf]  ;;  %v4179_v53 = vor.u32 %v4921_v45, %v4176_v46  ;;  %v4919_v54 = vld [vmem:[%s7814_s4 + $0xac] sm:$0xf0] }
  0x1c   :  { %361 = vmatpush.bf16.msra.mxu0 %v3951_v16  ;;  %v4922_v55 = vld [vmem:[%s7814_s4 + $0xcc] sm:$0xf]  ;;  %v4184_v56 = vld [vmem:[%s7814_s4 + $0xd8] sm:$0xf0]  ;;  %v4917_v57 = vld [vmem:[%s7814_s4 + $0xa4] sm:$0xf]  ;;  %v4183_v59 = vor.u32 %v4924_v50, %v4182_v49  ;;  %v4159_v60 = vor.u32 %v4919_v54, %v4158_v52 }
  0x1d   :  { %390 = vmatpush.bf16.msra.mxu1 %v3955_v18  ;;  %419 = vmatpush.bf16.msra.mxu2 %v3959_v19  ;;  %v4160_v58 = vld [vmem:[%s7814_s4 + $0xb0] sm:$0xf0]  ;;  %v4166_v61 = vld [vmem:[%s7814_s4 + $0xa8] sm:$0xf]  ;;  %v4920_v62 = vld [vmem:[%s7814_s4 + $0xb4] sm:$0xf0]  ;;  %v4187_v63 = vor.u32 %v4922_v55, %v4184_v56 }
  0x1e   :  { %448 = vmatpush.bf16.msra.mxu3 %v3963_v23  ;;  %v4142_v0 = vld [vmem:[%s7814_s4 + $0x80] sm:$0xf]  ;;  %v4163_v1 = vor.u32 %v4917_v57, %v4160_v58  ;;  %v4915_v2 = vld [vmem:[%s7814_s4 + $0x8c] sm:$0xf0]  ;;  %v4918_v3 = vld [vmem:[%s7814_s4 + $0xac] sm:$0xf]  ;;  %v4167_v7 = vor.u32 %v4920_v62, %v4166_v61 }
  0x1f   :  { %v4168_v4 = vld [vmem:[%s7814_s4 + $0xb8] sm:$0xf0]  ;;  %v4913_v5 = vld [vmem:[%s7814_s4 + $0x84] sm:$0xf]  ;;  %v4144_v6 = vld [vmem:[%s7814_s4 + $0x90] sm:$0xf0]  ;;  %v4143_v8 = vor.u32 %v4915_v2, %v4142_v0 }
  0x20   :  { %362 = vmatpush.bf16.msra.mxu0 %v3935_v30  ;;  %v4150_v9 = vld [vmem:[%s7814_s4 + $0x88] sm:$0xf]  ;;  %v4916_v10 = vld [vmem:[%s7814_s4 + $0x94] sm:$0xf0]  ;;  %v4171_v11 = vor.u32 %v4918_v3, %v4168_v4  ;;  %v4126_v12 = vld [vmem:[%s7814_s4 + $0x60] sm:$0xf]  ;;  %v4147_v13 = vor.u32 %v4913_v5, %v4144_v6 }
  0x21   :  { %391 = vmatpush.bf16.msra.mxu1 %v3939_v33  ;;  %420 = vmatpush.bf16.msra.mxu2 %v3943_v34  ;;  %v4911_v14 = vld [vmem:[%s7814_s4 + $0x6c] sm:$0xf0]  ;;  %v4914_v15 = vld [vmem:[%s7814_s4 + $0x8c] sm:$0xf]  ;;  %v4152_v16 = vld [vmem:[%s7814_s4 + $0x98] sm:$0xf0]  ;;  %v4151_v20 = vor.u32 %v4916_v10, %v4150_v9 }
  0x22   :  { %449 = vmatpush.bf16.msra.mxu3 %v3947_v36  ;;  %v4909_v17 = vld [vmem:[%s7814_s4 + $0x64] sm:$0xf]  ;;  %v4128_v18 = vld [vmem:[%s7814_s4 + $0x70] sm:$0xf0]  ;;  %v4930_v19 = vld [vmem:[%s7815_s1 + $0x8] sm:$0xff]  ;;  %v4127_v21 = vor.u32 %v4911_v14, %v4126_v12  ;;  %v4155_v24 = vor.u32 %v4914_v15, %v4152_v16 }
  0x23   :  { %363 = vmatmul.bf16.vlgmr.msra.gmra.mxu0 %v4929_v35  ;;  %v4134_v22 = vld [vmem:[%s7814_s4 + $0x68] sm:$0xf]  ;;  %v4912_v23 = vld [vmem:[%s7814_s4 + $0x74] sm:$0xf0]  ;;  %v4110_v25 = vld [vmem:[%s7814_s4 + $0x40] sm:$0xf]  ;;  %v4131_v26 = vor.u32 %v4909_v17, %v4128_v18 }
  0x24   :  { %655 = vmatpush.bf16.msrb.mxu0 %v4191_v37  ;;  %392 = vmatmul.bf16.vlgmr.msra.gmra.mxu1 %v4929_v35  ;;  %v4907_v27 = vld [vmem:[%s7814_s4 + $0x4c] sm:$0xf0]  ;;  %v4910_v28 = vld [vmem:[%s7814_s4 + $0x6c] sm:$0xf]  ;;  %v4136_v29 = vld [vmem:[%s7814_s4 + $0x78] sm:$0xf0]  ;;  %v4135_v32 = vor.u32 %v4912_v23, %v4134_v22 }
  0x25   :  { %684 = vmatpush.bf16.msrb.mxu1 %v4195_v41  ;;  %421 = vmatmul.bf16.vlgmr.msra.gmra.mxu2 %v4929_v35  ;;  %v4905_v30 = vld [vmem:[%s7814_s4 + $0x44] sm:$0xf]  ;;  %v4112_v31 = vld [vmem:[%s7814_s4 + $0x50] sm:$0xf0]  ;;  %v4111_v33 = vor.u32 %v4907_v27, %v4110_v25  ;;  %v4118_v34 = vld [vmem:[%s7814_s4 + $0x48] sm:$0xf]  ;;  %v4139_v36 = vor.u32 %v4910_v28, %v4136_v29 }
  0x26   :  { %450 = vmatmul.bf16.vlgmr.msra.gmra.mxu3 %v4929_v35  ;;  %713 = vmatpush.bf16.msrb.mxu2 %v4199_v47  ;;  %v4908_v35 = vld [vmem:[%s7814_s4 + $0x54] sm:$0xf0]  ;;  %v4115_v37 = vor.u32 %v4905_v30, %v4112_v31  ;;  %v4094_v39 = vld [vmem:[%s7814_s4 + $0x20] sm:$0xf]  ;;  %v4903_v40 = vld [vmem:[%s7814_s4 + $0x2c] sm:$0xf0] }
  0x27   :  { %742 = vmatpush.bf16.msrb.mxu3 %v4203_v51  ;;  %v4119_v38 = vor.u32 %v4908_v35, %v4118_v34  ;;  %v4901_v41 = vld [vmem:[%s7814_s4 + $0x24] sm:$0xf]  ;;  %v4095_v42 = vor.u32 %v4903_v40, %v4094_v39  ;;  %v4096_v43 = vld [vmem:[%s7814_s4 + $0x30] sm:$0xf0]  ;;  %v4102_v44 = vld [vmem:[%s7814_s4 + $0x28] sm:$0xf] }
  0x28   :  { %656 = vmatpush.bf16.msrb.mxu0 %v4175_v48  ;;  %v4904_v45 = vld [vmem:[%s7814_s4 + $0x34] sm:$0xf0]  ;;  %v4099_v46 = vor.u32 %v4901_v41, %v4096_v43  ;;  %v4906_v47 = vld [vmem:[%s7814_s4 + $0x4c] sm:$0xf]  ;;  %v4120_v48 = vld [vmem:[%s7814_s4 + $0x58] sm:$0xf0] }
  0x29   :  { %685 = vmatpush.bf16.msrb.mxu1 %v4179_v53  ;;  %v4078_v49 = vld [vmem:[%s7814_s4] sm:$0xf]  ;;  %v4123_v50 = vor.u32 %v4906_v47, %v4120_v48  ;;  %v4899_v51 = vld [vmem:[%s7814_s4 + $0xc] sm:$0xf0]  ;;  %v4897_v52 = vld [vmem:[%s7814_s4 + $0x4] sm:$0xf]  ;;  %v4103_v54 = vor.u32 %v4904_v45, %v4102_v44 }
  0x2a   :  { %714 = vmatpush.bf16.msrb.mxu2 %v4183_v59  ;;  %v4080_v53 = vld [vmem:[%s7814_s4 + $0x10] sm:$0xf0]  ;;  %v4902_v55 = vld [vmem:[%s7814_s4 + $0x2c] sm:$0xf]  ;;  %v4104_v56 = vld [vmem:[%s7814_s4 + $0x38] sm:$0xf0]  ;;  %v4079_v57 = vor.u32 %v4899_v51, %v4078_v49 }
  0x2b   :  { %743 = vmatpush.bf16.msrb.mxu3 %v4187_v63  ;;  %v4107_v58 = vor.u32 %v4902_v55, %v4104_v56  ;;  %v4086_v59 = vld [vmem:[%s7814_s4 + $0x8] sm:$0xf]  ;;  %v4083_v61 = vor.u32 %v4897_v52, %v4080_v53  ;;  %v4898_v62 = vld [vmem:[%s7814_s4 + $0xc] sm:$0xf]  ;;  %v4088_v63 = vld [vmem:[%s7814_s4 + $0x18] sm:$0xf0] }
  0x2c   :  { %657 = vmatpush.bf16.msrb.mxu0 %v4159_v60  ;;  %v4900_v60 = vld [vmem:[%s7814_s4 + $0x14] sm:$0xf0]  ;;  %v4931_v2 = vld [vmem:[%s7815_s1 + $0x10] sm:$0xff]  ;;  %v4318_v3 = vld [vmem:[%s7816_s5 + $0xe0] sm:$0xf] }
  0x2d   :  { %686 = vmatpush.bf16.msrb.mxu1 %v4163_v1  ;;  %v4087_v0 = vor.u32 %v4900_v60, %v4086_v59  ;;  %v4091_v1 = vor.u32 %v4898_v62, %v4088_v63  ;;  %v4995_v4 = vld [vmem:[%s7816_s5 + $0xec] sm:$0xf0]  ;;  %v4993_v5 = vld [vmem:[%s7816_s5 + $0xe4] sm:$0xf]  ;;  %v4996_v9 = vld [vmem:[%s7816_s5 + $0xf4] sm:$0xf0] }
  0x2e   :  { %715 = vmatpush.bf16.msrb.mxu2 %v4167_v7  ;;  %v5814_v6 = vor.u32 %v4995_v4, %v4318_v3  ;;  %v4320_v7 = vld [vmem:[%s7816_s5 + $0xf0] sm:$0xf0]  ;;  %v4302_v12 = vld [vmem:[%s7816_s5 + $0xc0] sm:$0xf]  ;;  %v4989_v14 = vld [vmem:[%s7816_s5 + $0xc4] sm:$0xf] }
  0x2f   :  { %744 = vmatpush.bf16.msrb.mxu3 %v4171_v11  ;;  %v5825_v10 = vor.u32 %v4993_v5, %v4320_v7  ;;  %v4304_v16 = vld [vmem:[%s7816_s5 + $0xd0] sm:$0xf0]  ;;  %v4310_v17 = vld [vmem:[%s7816_s5 + $0xc8] sm:$0xf]  ;;  %v4992_v18 = vld [vmem:[%s7816_s5 + $0xd4] sm:$0xf0] }
  0x30   :  { %658 = vmatpush.bf16.msrb.mxu0 %v4143_v8  ;;  %v4326_v8 = vld [vmem:[%s7816_s5 + $0xe8] sm:$0xf]  ;;  %v4328_v22 = vld [vmem:[%s7816_s5 + $0xf8] sm:$0xf0]  ;;  %v4286_v25 = vld [vmem:[%s7816_s5 + $0xa0] sm:$0xf] }
  0x31   :  { %687 = vmatpush.bf16.msrb.mxu1 %v4147_v13  ;;  %v5827_v11 = vor.u32 %v4996_v9, %v4326_v8  ;;  %v4991_v13 = vld [vmem:[%s7816_s5 + $0xcc] sm:$0xf0]  ;;  %v4985_v27 = vld [vmem:[%s7816_s5 + $0xa4] sm:$0xf]  ;;  %v4288_v29 = vld [vmem:[%s7816_s5 + $0xb0] sm:$0xf0] }
  0x32   :  { %716 = vmatpush.bf16.msrb.mxu2 %v4151_v20  ;;  %v5839_v15 = vor.u32 %v4991_v13, %v4302_v12  ;;  %v5854_v20 = vor.u32 %v4992_v18, %v4310_v17  ;;  %v4294_v30 = vld [vmem:[%s7816_s5 + $0xa8] sm:$0xf]  ;;  %v4988_v31 = vld [vmem:[%s7816_s5 + $0xb4] sm:$0xf0]  ;;  %v4990_v34 = vld [vmem:[%s7816_s5 + $0xcc] sm:$0xf] }
  0x33   :  { %745 = vmatpush.bf16.msrb.mxu3 %v4155_v24  ;;  %368 = vmatmul.bf16.gmra.mxu0 %v4930_v19  ;;  %v4932_v24 = vld [vmem:[%s7815_s1 + $0x18] sm:$0xff]  ;;  %v4981_v39 = vld [vmem:[%s7816_s5 + $0x84] sm:$0xf]  ;;  %v4272_v40 = vld [vmem:[%s7816_s5 + $0x90] sm:$0xf0] }
  0x34   :  { %659 = vmatpush.bf16.msrb.mxu0 %v4127_v21  ;;  %397 = vmatmul.bf16.gmra.mxu1 %v4930_v19  ;;  %v4994_v21 = vld [vmem:[%s7816_s5 + $0xec] sm:$0xf]  ;;  %v4312_v35 = vld [vmem:[%s7816_s5 + $0xd8] sm:$0xf0]  ;;  %v4278_v43 = vld [vmem:[%s7816_s5 + $0x88] sm:$0xf] }
  0x35   :  { %688 = vmatpush.bf16.msrb.mxu1 %v4131_v26  ;;  %426 = vmatmul.bf16.gmra.mxu2 %v4930_v19  ;;  %v5862_v23 = vor.u32 %v4994_v21, %v4328_v22  ;;  %v4987_v26 = vld [vmem:[%s7816_s5 + $0xac] sm:$0xf0]  ;;  %v4984_v44 = vld [vmem:[%s7816_s5 + $0x94] sm:$0xf0]  ;;  %v4986_v45 = vld [vmem:[%s7816_s5 + $0xac] sm:$0xf] }
  0x36   :  { %455 = vmatmul.bf16.gmra.mxu3 %v4930_v19  ;;  %717 = vmatpush.bf16.msrb.mxu2 %v4135_v32  ;;  %v5852_v19 = vor.u32 %v4989_v14, %v4304_v16  ;;  %v5880_v28 = vor.u32 %v4987_v26, %v4286_v25  ;;  %v5891_v32 = vor.u32 %v4985_v27, %v4288_v29  ;;  %v4296_v47 = vld [vmem:[%s7816_s5 + $0xb8] sm:$0xf0]  ;;  %v4893_v49 = vld [vmem:[%s7817_s0] sm:$0xff]  ;;  %v4979_v51 = vld [vmem:[%s7816_s5 + $0x6c] sm:$0xf0] }
  0x37   :  { %746 = vmatpush.bf16.msrb.mxu3 %v4139_v36  ;;  %v4270_v36 = vld [vmem:[%s7816_s5 + $0x80] sm:$0xf]  ;;  %v5937_v48 = vor.u32 %v4986_v45, %v4296_v47  ;;  %v4977_v52 = vld [vmem:[%s7816_s5 + $0x64] sm:$0xf]  ;;  %v4262_v55 = vld [vmem:[%s7816_s5 + $0x68] sm:$0xf] }
  0x38   :  { %660 = vmatpush.bf16.msrb.mxu0 %v4111_v33  ;;  %v5893_v33 = vor.u32 %v4988_v31, %v4294_v30  ;;  %v4980_v56 = vld [vmem:[%s7816_s5 + $0x74] sm:$0xf0]  ;;  %v4982_v59 = vld [vmem:[%s7816_s5 + $0x8c] sm:$0xf]  ;;  %v4280_v60 = vld [vmem:[%s7816_s5 + $0x98] sm:$0xf0] }
  0x39   :  { %689 = vmatpush.bf16.msrb.mxu1 %v4115_v37  ;;  %v5905_v37 = vor.u32 %v4990_v34, %v4312_v35  ;;  %v5980_v62 = vor.u32 %v4982_v59, %v4280_v60  ;;  %v4975_v63 = vld [vmem:[%s7816_s5 + $0x4c] sm:$0xf0]  ;;  %v4246_v4 = vld [vmem:[%s7816_s5 + $0x48] sm:$0xf]  ;;  %v4976_v5 = vld [vmem:[%s7816_s5 + $0x54] sm:$0xf0] }
  0x3a   :  { %718 = vmatpush.bf16.msrb.mxu2 %v4119_v38  ;;  %v4983_v38 = vld [vmem:[%s7816_s5 + $0x8c] sm:$0xf0]  ;;  %v4978_v7 = vld [vmem:[%s7816_s5 + $0x6c] sm:$0xf]  ;;  %v6007_v8 = vor.u32 %v4976_v5, %v4246_v4  ;;  %v4264_v9 = vld [vmem:[%s7816_s5 + $0x78] sm:$0xf0] }
  0x3b   :  { %747 = vmatpush.bf16.msrb.mxu3 %v4123_v50  ;;  %v5918_v41 = vor.u32 %v4983_v38, %v4270_v36  ;;  %v4254_v50 = vld [vmem:[%s7816_s5 + $0x60] sm:$0xf]  ;;  %v6012_v12 = vor.u32 %v4978_v7, %v4264_v9  ;;  %v4894_v13 = vld [vmem:[%s7817_s0 + $0x8] sm:$0xff]  ;;  %v4971_v16 = vld [vmem:[%s7816_s5 + $0x2c] sm:$0xf0] }
  0x3c   :  { %661 = vmatpush.bf16.msrb.mxu0 %v4095_v42  ;;  %v5920_v42 = vor.u32 %v4981_v39, %v4272_v40  ;;  %v5955_v53 = vor.u32 %v4979_v51, %v4254_v50  ;;  %v4222_v14 = vld [vmem:[%s7816_s5 + $0x20] sm:$0xf]  ;;  %v4969_v17 = vld [vmem:[%s7816_s5 + $0x24] sm:$0xf]  ;;  %v4224_v21 = vld [vmem:[%s7816_s5 + $0x30] sm:$0xf0] }
  0x3d   :  { %690 = vmatpush.bf16.msrb.mxu1 %v4099_v46  ;;  %v5932_v46 = vor.u32 %v4984_v44, %v4278_v43  ;;  %v6030_v18 = vor.u32 %v4971_v16, %v4222_v14  ;;  %v4230_v22 = vld [vmem:[%s7816_s5 + $0x28] sm:$0xf]  ;;  %v6041_v25 = vor.u32 %v4969_v17, %v4224_v21  ;;  %v4974_v27 = vld [vmem:[%s7816_s5 + $0x4c] sm:$0xf]  ;;  %v4248_v29 = vld [vmem:[%s7816_s5 + $0x58] sm:$0xf0] }
  0x3e   :  { %719 = vmatpush.bf16.msrb.mxu2 %v4103_v54  ;;  %v4256_v54 = vld [vmem:[%s7816_s5 + $0x70] sm:$0xf0]  ;;  %v4206_v30 = vld [vmem:[%s7816_s5] sm:$0xf]  ;;  %v6055_v31 = vor.u32 %v4974_v27, %v4248_v29  ;;  %v4967_v34 = vld [vmem:[%s7816_s5 + $0xc] sm:$0xf0] }
  0x3f   :  { %748 = vmatpush.bf16.msrb.mxu3 %v4107_v58  ;;  %v5968_v58 = vor.u32 %v4980_v56, %v4262_v55  ;;  %v4965_v35 = vld [vmem:[%s7816_s5 + $0x4] sm:$0xf]  ;;  %v4208_v36 = vld [vmem:[%s7816_s5 + $0x10] sm:$0xf0]  ;;  %v6068_v38 = vor.u32 %v4967_v34, %v4206_v30  ;;  %v4970_v40 = vld [vmem:[%s7816_s5 + $0x2c] sm:$0xf] }
  0x40   :  { %662 = vmatpush.bf16.msrb.mxu0 %v4079_v57  ;;  %v5966_v57 = vor.u32 %v4977_v52, %v4256_v54  ;;  %v6070_v39 = vor.u32 %v4965_v35, %v4208_v36  ;;  %v4232_v43 = vld [vmem:[%s7816_s5 + $0x38] sm:$0xf0]  ;;  %v4895_v45 = vld [vmem:[%s7817_s0 + $0x10] sm:$0xff]  ;;  %v4214_v47 = vld [vmem:[%s7816_s5 + $0x8] sm:$0xf] }
  0x41   :  { %691 = vmatpush.bf16.msrb.mxu1 %v4083_v61  ;;  %v4238_v61 = vld [vmem:[%s7816_s5 + $0x40] sm:$0xf]  ;;  %v6079_v44 = vor.u32 %v4970_v40, %v4232_v43  ;;  %v4966_v50 = vld [vmem:[%s7816_s5 + $0xc] sm:$0xf]  ;;  %v4216_v52 = vld [vmem:[%s7816_s5 + $0x18] sm:$0xf0] }
  0x42   :  { %720 = vmatpush.bf16.msrb.mxu2 %v4087_v0  ;;  %v4973_v0 = vld [vmem:[%s7816_s5 + $0x44] sm:$0xf]  ;;  %v6103_v54 = vor.u32 %v4966_v50, %v4216_v52  ;;  %v4896_v55 = vld [vmem:[%s7817_s0 + $0x18] sm:$0xff] }
  0x43   :  { %749 = vmatpush.bf16.msrb.mxu3 %v4091_v1  ;;  %373 = vmatmul.bf16.gmra.mxu0 %v4931_v2  ;;  %v4240_v1 = vld [vmem:[%s7816_s5 + $0x50] sm:$0xf0]  ;;  %v82_v56 = vld [vmem:[%s7818_s7] sm:$0xff] }
  0x44   :  { %402 = vmatmul.bf16.gmra.mxu1 %v4931_v2  ;;  %1008 = vmatpush.bf16.msra.mxu0 %v5814_v6  ;;  %v5995_v3 = vor.u32 %v4973_v0, %v4240_v1  ;;  %7859 = vst [vmem:[#allocation4_spill] sm:$0xff] %v6103_v54  ;;  %v847_v59 = vpack.c.bf16 %v82_v56, %v82_v56 }
  0x45   :  { %431 = vmatmul.bf16.gmra.mxu2 %v4931_v2  ;;  %1021 = vmatpush.bf16.msra.mxu1 %v5825_v10 }
  0x46   :  { %460 = vmatmul.bf16.gmra.mxu3 %v4931_v2  ;;  %1034 = vmatpush.bf16.msra.mxu2 %v5827_v11  ;;  %v5993_v2 = vor.u32 %v4975_v63, %v4238_v61 }
  0x47   :  { %1047 = vmatpush.bf16.msra.mxu3 %v5862_v23 }
  0x48   :  { %1009 = vmatpush.bf16.msra.mxu0 %v5839_v15 }
  0x49   :  { %1022 = vmatpush.bf16.msra.mxu1 %v5852_v19 }
  0x4a   :  { %1035 = vmatpush.bf16.msra.mxu2 %v5854_v20 }
  0x4b   :  { %1048 = vmatpush.bf16.msra.mxu3 %v5905_v37 }
  0x4c   :  { %1010 = vmatpush.bf16.msra.mxu0 %v5880_v28 }
  0x4d   :  { %1023 = vmatpush.bf16.msra.mxu1 %v5891_v32 }
  0x4e   :  { %1036 = vmatpush.bf16.msra.mxu2 %v5893_v33 }
  0x4f   :  { %1049 = vmatpush.bf16.msra.mxu3 %v5937_v48 }
  0x50   :  { %1011 = vmatpush.bf16.msra.mxu0 %v5918_v41 }
  0x51   :  { %1024 = vmatpush.bf16.msra.mxu1 %v5920_v42 }
  0x52   :  { %1037 = vmatpush.bf16.msra.mxu2 %v5932_v46 }
  0x53   :  { %378 = vmatmul.bf16.gmra.mxu0 %v4932_v24  ;;  %1050 = vmatpush.bf16.msra.mxu3 %v5980_v62 }
  0x54   :  { %407 = vmatmul.bf16.gmra.mxu1 %v4932_v24  ;;  %1012 = vmatpush.bf16.msra.mxu0 %v5955_v53 }
  0x55   :  { %436 = vmatmul.bf16.gmra.mxu2 %v4932_v24  ;;  %1025 = vmatpush.bf16.msra.mxu1 %v5966_v57 }
  0x56   :  { %465 = vmatmul.bf16.gmra.mxu3 %v4932_v24  ;;  %1038 = vmatpush.bf16.msra.mxu2 %v5968_v58  ;;  %v4972_v24 = vld [vmem:[%s7816_s5 + $0x34] sm:$0xf0] }
  0x57   :  { %1051 = vmatpush.bf16.msra.mxu3 %v6012_v12  ;;  %v6043_v26 = vor.u32 %v4972_v24, %v4230_v22 }
  0x58   :  { %1013 = vmatpush.bf16.msra.mxu0 %v5993_v2 }
  0x59   :  { %1026 = vmatpush.bf16.msra.mxu1 %v5995_v3 }
  0x5a   :  { %1039 = vmatpush.bf16.msra.mxu2 %v6007_v8 }
  0x5b   :  { %1052 = vmatpush.bf16.msra.mxu3 %v6055_v31 }
  0x5c   :  { %1014 = vmatpush.bf16.msra.mxu0 %v6030_v18 }
  0x5d   :  { %1027 = vmatpush.bf16.msra.mxu1 %v6041_v25 }
  0x5e   :  { %1040 = vmatpush.bf16.msra.mxu2 %v6043_v26 }
  0x5f   :  { %1053 = vmatpush.bf16.msra.mxu3 %v6079_v44 }
  0x60   :  { %1015 = vmatpush.bf16.msra.mxu0 %v6068_v38 }
  0x61   :  { %1028 = vmatpush.bf16.msra.mxu1 %v6070_v39 }
  0x63   :  { %663 = vmatmul.bf16.vlgmr.msrb.gmra.mxu0 %v4893_v49  ;;  %1054 = vmatpush.bf16.msra.mxu3 %v6103_v54 }
  0x64   :  { %692 = vmatmul.bf16.vlgmr.msrb.gmra.mxu1 %v4893_v49  ;;  %1128 = vmatpush.bf16.msrb.mxu0 %v5814_v6 }
  0x65   :  { %721 = vmatmul.bf16.vlgmr.msrb.gmra.mxu2 %v4893_v49  ;;  %1141 = vmatpush.bf16.msrb.mxu1 %v5825_v10 }
  0x66   :  { %750 = vmatmul.bf16.vlgmr.msrb.gmra.mxu3 %v4893_v49  ;;  %v4968_v49 = vld [vmem:[%s7816_s5 + $0x14] sm:$0xf0] }
  0x67   :  { %v6098_v51 = vor.u32 %v4968_v49, %v4214_v47  ;;  %1167 = vmatpush.bf16.msrb.mxu3 %v5862_v23 }
  0x68   :  { %1129 = vmatpush.bf16.msrb.mxu0 %v5839_v15 }
  0x69   :  { %1041 = vmatpush.bf16.msra.mxu2 %v6098_v51  ;;  %1142 = vmatpush.bf16.msrb.mxu1 %v5852_v19 }
  0x6b   :  { %1168 = vmatpush.bf16.msrb.mxu3 %v5905_v37 }
  0x6c   :  { %1130 = vmatpush.bf16.msrb.mxu0 %v5880_v28 }
  0x6d   :  { %1154 = vmatpush.bf16.msrb.mxu2 %v5827_v11  ;;  %1143 = vmatpush.bf16.msrb.mxu1 %v5891_v32 }
  0x6f   :  { %1169 = vmatpush.bf16.msrb.mxu3 %v5937_v48 }
  0x70   :  { %1131 = vmatpush.bf16.msrb.mxu0 %v5918_v41 }
  0x71   :  { %1155 = vmatpush.bf16.msrb.mxu2 %v5854_v20  ;;  %1144 = vmatpush.bf16.msrb.mxu1 %v5920_v42 }
  0x73   :  { %668 = vmatmul.bf16.gmra.mxu0 %v4894_v13  ;;  %1170 = vmatpush.bf16.msrb.mxu3 %v5980_v62 }
  0x74   :  { %697 = vmatmul.bf16.gmra.mxu1 %v4894_v13  ;;  %1132 = vmatpush.bf16.msrb.mxu0 %v5955_v53 }
  0x75   :  { %726 = vmatmul.bf16.gmra.mxu2 %v4894_v13  ;;  %1145 = vmatpush.bf16.msrb.mxu1 %v5966_v57 }
  0x76   :  { %755 = vmatmul.bf16.gmra.mxu3 %v4894_v13  ;;  %1156 = vmatpush.bf16.msrb.mxu2 %v5893_v33 }
  0x77   :  { %1171 = vmatpush.bf16.msrb.mxu3 %v6012_v12 }
  0x78   :  { %1133 = vmatpush.bf16.msrb.mxu0 %v5993_v2 }
  0x79   :  { %1146 = vmatpush.bf16.msrb.mxu1 %v5995_v3 }
  0x7a   :  { %1157 = vmatpush.bf16.msrb.mxu2 %v5932_v46 }
  0x7b   :  { %1172 = vmatpush.bf16.msrb.mxu3 %v6055_v31 }
  0x7c   :  { %1134 = vmatpush.bf16.msrb.mxu0 %v6030_v18 }
  0x7d   :  { %1147 = vmatpush.bf16.msrb.mxu1 %v6041_v25 }
  0x7e   :  { %1158 = vmatpush.bf16.msrb.mxu2 %v5968_v58 }
  0x7f   :  { %1173 = vmatpush.bf16.msrb.mxu3 %v6079_v44 }
  0x80   :  { %1135 = vmatpush.bf16.msrb.mxu0 %v6068_v38 }
  0x81   :  { %1148 = vmatpush.bf16.msrb.mxu1 %v6070_v39 }
  0x82   :  { %1159 = vmatpush.bf16.msrb.mxu2 %v6007_v8 }
  0x83   :  { %673 = vmatmul.bf16.gmra.mxu0 %v4895_v45  ;;  %1174 = vmatpush.bf16.msrb.mxu3 %v6103_v54 }
  0x84   :  { %702 = vmatmul.bf16.gmra.mxu1 %v4895_v45 }
  0x85   :  { %731 = vmatmul.bf16.gmra.mxu2 %v4895_v45 }
  0x86   :  { %760 = vmatmul.bf16.gmra.mxu3 %v4895_v45  ;;  %1160 = vmatpush.bf16.msrb.mxu2 %v6043_v26 }
  0x8a   :  { %1161 = vmatpush.bf16.msrb.mxu2 %v6098_v51 }
  0x93   :  { %678 = vmatmul.bf16.gmra.mxu0 %v4896_v55 }
  0x94   :  { %707 = vmatmul.bf16.gmra.mxu1 %v4896_v55 }
  0x95   :  { %736 = vmatmul.bf16.gmra.mxu2 %v4896_v55 }
  0x96   :  { %765 = vmatmul.bf16.gmra.mxu3 %v4896_v55 }
  0xa0   :  { %v6141_v60 = vpop.f32.mrf.mxu0 }
  0xa1   :  { %v6143_v61 = vpop.f32.mrf.mxu1 }
  0xa3   :  { %1016 = vmatmul.bf16.vlgmr.msra.gmra.mxu0 %v847_v59 }
  0xa4   :  { %1029 = vmatmul.bf16.vlgmr.msra.gmra.mxu1 %v847_v59  ;;  %1248 = vmatpush.bf16.msra.mxu0 %v5814_v6 }
  0xa5   :  { %1042 = vmatmul.bf16.vlgmr.msra.gmra.mxu2 %v847_v59  ;;  %1261 = vmatpush.bf16.msra.mxu1 %v5825_v10 }
  0xa6   :  { %1055 = vmatmul.bf16.vlgmr.msra.gmra.mxu3 %v847_v59  ;;  %1274 = vmatpush.bf16.msra.mxu2 %v5827_v11 }
  0xa7   :  { %1287 = vmatpush.bf16.msra.mxu3 %v5862_v23 }
  0xa8   :  { %v422_v63 = vpop.f32.mrf.mxu2  ;;  %v6153_v1 = vpop.f32.mrf.mxu0  ;;  %1249 = vmatpush.bf16.msra.mxu0 %v5839_v15 }
  0xa9   :  { %v6151_v0 = vpop.f32.mrf.mxu3  ;;  %7860 = vst [vmem:[#allocation5_spill] sm:$0xff] %v6153_v1  ;;  %v6155_v4 = vpop.f32.mrf.mxu1  ;;  %1262 = vmatpush.bf16.msra.mxu1 %v5852_v19 }
  0xaa   :  { %7861 = vst [vmem:[#allocation6_spill] sm:$0xff] %v6155_v4  ;;  %1275 = vmatpush.bf16.msra.mxu2 %v5854_v20 }
  0xab   :  { %1288 = vmatpush.bf16.msra.mxu3 %v5905_v37 }
  0xac   :  { %1250 = vmatpush.bf16.msra.mxu0 %v5880_v28 }
  0xad   :  { %1263 = vmatpush.bf16.msra.mxu1 %v5891_v32 }
  0xae   :  { %1276 = vmatpush.bf16.msra.mxu2 %v5893_v33 }
  0xaf   :  { %1289 = vmatpush.bf16.msra.mxu3 %v5937_v48 }
  0xb0   :  { %v6164_v5 = vpop.f32.mrf.mxu2  ;;  %v369_v9 = vpop.f32.mrf.mxu0  ;;  %1251 = vmatpush.bf16.msra.mxu0 %v5918_v41 }
  0xb1   :  { %7862 = vst [vmem:[#allocation7_spill] sm:$0xff] %v6164_v5  ;;  %v6167_v7 = vpop.f32.mrf.mxu3  ;;  %v398_v13 = vpop.f32.mrf.mxu1  ;;  %1264 = vmatpush.bf16.msra.mxu1 %v5920_v42 }
  0xb2   :  { %7863 = vst [vmem:[#allocation8_spill] sm:$0xff] %v6167_v7  ;;  %1277 = vmatpush.bf16.msra.mxu2 %v5932_v46 }
  0xb3   :  { %1290 = vmatpush.bf16.msra.mxu3 %v5980_v62 }
  0xb4   :  { %1252 = vmatpush.bf16.msra.mxu0 %v5955_v53 }
  0xb5   :  { %1265 = vmatpush.bf16.msra.mxu1 %v5966_v57 }
  0xb6   :  { %1278 = vmatpush.bf16.msra.mxu2 %v5968_v58 }
  0xb7   :  { %1291 = vmatpush.bf16.msra.mxu3 %v6012_v12 }
  0xb8   :  { %v427_v14 = vpop.f32.mrf.mxu2  ;;  %v6177_v17 = vpop.f32.mrf.mxu0  ;;  %1253 = vmatpush.bf16.msra.mxu0 %v5993_v2 }
  0xb9   :  { %v456_v16 = vpop.f32.mrf.mxu3  ;;  %7864 = vst [vmem:[#allocation9_spill] sm:$0xff] %v6177_v17  ;;  %v6179_v21 = vpop.f32.mrf.mxu1  ;;  %1266 = vmatpush.bf16.msra.mxu1 %v5995_v3 }
  0xba   :  { %7865 = vst [vmem:[#allocation10_spill] sm:$0xff] %v6179_v21  ;;  %1279 = vmatpush.bf16.msra.mxu2 %v6007_v8 }
  0xbb   :  { %1292 = vmatpush.bf16.msra.mxu3 %v6055_v31 }
  0xbc   :  { %1254 = vmatpush.bf16.msra.mxu0 %v6030_v18 }
  0xbd   :  { %1267 = vmatpush.bf16.msra.mxu1 %v6041_v25 }
  0xbe   :  { %1280 = vmatpush.bf16.msra.mxu2 %v6043_v26 }
  0xbf   :  { %1293 = vmatpush.bf16.msra.mxu3 %v6079_v44 }
  0xc0   :  { %v6188_v22 = vpop.f32.mrf.mxu2  ;;  %v374_v27 = vpop.f32.mrf.mxu0  ;;  %1255 = vmatpush.bf16.msra.mxu0 %v6068_v38 }
  0xc1   :  { %7866 = vst [vmem:[#allocation11_spill] sm:$0xff] %v6188_v22  ;;  %v6191_v24 = vpop.f32.mrf.mxu3  ;;  %v403_v29 = vpop.f32.mrf.mxu1  ;;  %1268 = vmatpush.bf16.msra.mxu1 %v6070_v39 }
  0xc2   :  { %7867 = vst [vmem:[#allocation12_spill] sm:$0xff] %v6191_v24  ;;  %1281 = vmatpush.bf16.msra.mxu2 %v6098_v51 }
  0xc3   :  { %1294 = vmatpush.bf16.msra.mxu3 %v6103_v54 }
  0xc8   :  { %v432_v30 = vpop.f32.mrf.mxu2  ;;  %v6197_v35 = vpop.f32.mrf.mxu0 }
  0xc9   :  { %v461_v34 = vpop.f32.mrf.mxu3  ;;  %7868 = vst [vmem:[#allocation13_spill] sm:$0xff] %v6197_v35  ;;  %v6199_v36 = vpop.f32.mrf.mxu1 }
  0xca   :  { %7869 = vst [vmem:[#allocation14_spill] sm:$0xff] %v6199_v36 }
  0xd0   :  { %v6201_v40 = vpop.f32.mrf.mxu2  ;;  %v379_v45 = vpop.f32.mrf.mxu0 }
  0xd1   :  { %7870 = vst [vmem:[#allocation15_spill] sm:$0xff] %v6201_v40  ;;  %v6203_v43 = vpop.f32.mrf.mxu3  ;;  %v408_v47 = vpop.f32.mrf.mxu1 }
  0xd2   :  { %7871 = vst [vmem:[#allocation16_spill] sm:$0xff] %v6203_v43 }
  0xd8   :  { %v437_v49 = vpop.f32.mrf.mxu2  ;;  %v6207_v52 = vpop.f32.mrf.mxu0 }
  0xd9   :  { %v6205_v50 = vpop.f32.mrf.mxu3  ;;  %7872 = vst [vmem:[#allocation17_spill] sm:$0xff] %v6207_v52  ;;  %v6209_v55 = vpop.f32.mrf.mxu1 }
  0xda   :  { %7873 = vst [vmem:[#allocation18_spill] sm:$0xff] %v6209_v55  ;;  %v771_v55 = vld [vmem:[%s7819_s6] sm:$0xf] }
  0xdb   :  { %v6233_v4 = vperm.slane %v771_v55, 1  ;;  %v6247_v54 = vperm.slane %v771_v55, 3 }
  0xe0   :  { %v6211_v56 = vpop.f32.mrf.mxu2  ;;  %v664_v35 = vpop.f32.mrf.mxu0 }
  0xe1   :  { %7874 = vst [vmem:[#allocation19_spill] sm:$0xff] %v6211_v56  ;;  %v6213_v59 = vpop.f32.mrf.mxu3  ;;  %v693_v24 = vpop.f32.mrf.mxu1 }
  0xe2   :  { %7875 = vst [vmem:[#allocation20_spill] sm:$0xff] %v6213_v59 }
  0xe8   :  { %v722_v36 = vpop.f32.mrf.mxu2  ;;  %v6217_v43 = vpop.f32.mrf.mxu0 }
  0xe9   :  { %v6215_v22 = vadd.f32 %v722_v36, %v422_v63  ;;  %v751_v40 = vpop.f32.mrf.mxu3  ;;  %7876 = vst [vmem:[#allocation21_spill] sm:$0xff] %v6217_v43  ;;  %v6222_v17 = vpop.f32.mrf.mxu1  ;;  %v6231_v36 = vperm.slane %v771_v55, 0 }
  0xea   :  { %v6220_v21 = vadd.f32 %v751_v40, %v6151_v0  ;;  %7877 = vst [vmem:[#allocation22_spill] sm:$0xff] %v6222_v17 }
  0xf0   :  { %v6227_v56 = vpop.f32.mrf.mxu2  ;;  %v669_v52 = vpop.f32.mrf.mxu0 }
  0xf1   :  { %7878 = vst [vmem:[#allocation23_spill] sm:$0xff] %v6227_v56  ;;  %v6229_v59 = vpop.f32.mrf.mxu3  ;;  %v670_v7 = vadd.f32 %v669_v52, %v369_v9  ;;  %v698_v63 = vpop.f32.mrf.mxu1 }
  0xf2   :  { %7879 = vst [vmem:[#allocation24_spill] sm:$0xff] %v6229_v59  ;;  %v699_v5 = vadd.f32 %v698_v63, %v398_v13  ;;  %v6243_v59 = vperm.slane %v771_v55, 2 }
  0xf3   :  { %v6236_v0 = vadd.f32 %v6231_v36, %v670_v7 }
  0xf4   :  { %v6239_v40 = vadd.f32 %v6233_v4, %v699_v5 }
  0xf6   :  { %7880 = vst [vmem:[#allocation25_spill] sm:$0xff] %v6239_v40 }
  0xf8   :  { %v727_v17 = vpop.f32.mrf.mxu2  ;;  %v6241_v56 = vpop.f32.mrf.mxu0 }
  0xf9   :  { %v728_v43 = vadd.f32 %v727_v17, %v427_v14  ;;  %v756_v1 = vpop.f32.mrf.mxu3  ;;  %7881 = vst [vmem:[#allocation26_spill] sm:$0xff] %v6241_v56  ;;  %v6245_v52 = vpop.f32.mrf.mxu1 }
  0xfa   :  { %v757_v9 = vadd.f32 %v756_v1, %v456_v16  ;;  %7882 = vst [vmem:[#allocation27_spill] sm:$0xff] %v6245_v52 }
  0xfb   :  { %v6250_v13 = vadd.f32 %v6243_v59, %v728_v43 }
  0xfc   :  { %v6253_v7 = vadd.f32 %v6247_v54, %v757_v9 }
  0xfd   :  { %7883 = vst [vmem:[#allocation28_spill] sm:$0xff] %v6250_v13 }
  0xfe   :  { %7884 = vst [vmem:[#allocation29_spill] sm:$0xff] %v6253_v7 }
 0x100   :  { %v6255_v5 = vpop.f32.mrf.mxu2  ;;  %v674_v14 = vpop.f32.mrf.mxu0 }
 0x101   :  { %v6257_v63 = vpop.f32.mrf.mxu3  ;;  %v675_v17 = vadd.f32 %v674_v14, %v374_v27  ;;  %v703_v56 = vpop.f32.mrf.mxu1 }
 0x102   :  { %7885 = vst [vmem:[#allocation30_spill] sm:$0xff] %v6257_v63  ;;  %v704_v40 = vadd.f32 %v703_v56, %v403_v29 }
 0x103   :  { %v6260_v1 = vadd.f32 %v6231_v36, %v675_v17 }
 0x104   :  { %v6263_v16 = vadd.f32 %v6233_v4, %v704_v40 }
 0x105   :  { %7886 = vst [vmem:[#allocation31_spill] sm:$0xff] %v6260_v1 }
 0x106   :  { %7887 = vst [vmem:[#allocation32_spill] sm:$0xff] %v6263_v16 }
 0x108   :  { %v732_v55 = vpop.f32.mrf.mxu2  ;;  %v6265_v13 = vpop.f32.mrf.mxu0 }
 0x109   :  { %v733_v43 = vadd.f32 %v732_v55, %v432_v30  ;;  %v761_v52 = vpop.f32.mrf.mxu3  ;;  %7888 = vst [vmem:[#allocation33_spill] sm:$0xff] %v6265_v13  ;;  %v6267_v7 = vpop.f32.mrf.mxu1 }
 0x10a   :  { %v762_v9 = vadd.f32 %v761_v52, %v461_v34  ;;  %7889 = vst [vmem:[#allocation34_spill] sm:$0xff] %v6267_v7 }
 0x10b   :  { %v6270_v63 = vadd.f32 %v6243_v59, %v733_v43 }
 0x10c   :  { %v6273_v27 = vadd.f32 %v6247_v54, %v762_v9 }
 0x10d   :  { %7890 = vst [vmem:[#allocation35_spill] sm:$0xff] %v6270_v63 }
 0x10e   :  { %7891 = vst [vmem:[#allocation36_spill] sm:$0xff] %v6273_v27 }
 0x110   :  { %v6275_v29 = vpop.f32.mrf.mxu2  ;;  %v679_v40 = vpop.f32.mrf.mxu0 }
 0x111   :  { %7892 = vst [vmem:[#allocation37_spill] sm:$0xff] %v6275_v29  ;;  %v6277_v56 = vpop.f32.mrf.mxu3  ;;  %v680_v14 = vadd.f32 %v679_v40, %v379_v45  ;;  %v708_v17 = vpop.f32.mrf.mxu1  ;;  %v665_v45 = vadd.f32 %v664_v35, %v6141_v60  ;;  %v694_v40 = vadd.f32 %v693_v24, %v6143_v61  ;;  %v783_v60 = vadd.f32 %v6243_v59, %v6215_v22 }
 0x112   :  { %7893 = vst [vmem:[#allocation38_spill] sm:$0xff] %v6277_v56  ;;  %v709_v30 = vadd.f32 %v708_v17, %v408_v47 }
 0x113   :  { %v6280_v55 = vadd.f32 %v6231_v36, %v680_v14 }
 0x114   :  { %v6283_v34 = vadd.f32 %v6233_v4, %v709_v30 }
 0x115   :  { %7894 = vst [vmem:[#allocation39_spill] sm:$0xff] %v6280_v55 }
 0x116   :  { %7895 = vst [vmem:[#allocation40_spill] sm:$0xff] %v6283_v34 }
 0x118   :  { %v737_v52 = vpop.f32.mrf.mxu2  ;;  %v6285_v13 = vpop.f32.mrf.mxu0 }
 0x119   :  { %v738_v43 = vadd.f32 %v737_v52, %v437_v49  ;;  %v766_v7 = vpop.f32.mrf.mxu3  ;;  %7896 = vst [vmem:[#allocation41_spill] sm:$0xff] %v6285_v13  ;;  %v6288_v29 = vpop.f32.mrf.mxu1  ;;  %v781_v49 = vadd.f32 %v6231_v36, %v665_v45 }
 0x11a   :  { %v767_v9 = vadd.f32 %v766_v7, %v6205_v50  ;;  %7897 = vst [vmem:[#allocation42_spill] sm:$0xff] %v6288_v29  ;;  %v782_v50 = vadd.f32 %v6233_v4, %v694_v40 }
 0x11b   :  { %v6291_v56 = vadd.f32 %v6243_v59, %v738_v43 }
 0x11c   :  { %v6295_v47 = vadd.f32 %v6247_v54, %v767_v9 }
 0x11d   :  { %7898 = vst [vmem:[#allocation43_spill] sm:$0xff] %v6291_v56 }
 0x11e   :  { %7899 = vst [vmem:[#allocation44_spill] sm:$0xff] %v6295_v47 }
 0x120   :  { %v6298_v14 = vpop.f32.mrf.mxu2  ;;  %v1017_v30 = vpop.f32.mrf.mxu0 }
 0x121   :  { %7900 = vst [vmem:[#allocation45_spill] sm:$0xff] %v6298_v14  ;;  %v6301_v17 = vpop.f32.mrf.mxu3  ;;  %v1060_v7 = vadd.f32 %v1017_v30, %v781_v49  ;;  %v1030_v52 = vpop.f32.mrf.mxu1 }
 0x122   :  { %7901 = vst [vmem:[#allocation46_spill] sm:$0xff] %v6301_v17  ;;  %v1061_v43 = vadd.f32 %v1030_v52, %v782_v50 }
 0x123   :  { %v4332_v29 = vmul.f32 -1.442695, %v1060_v7 }
 0x124   :  { %v4333_v13 = vmul.f32 -1.442695, %v1061_v43 }
 0x125   :  { %5101 = vpow2.f32 %v4332_v29 }
 0x126   :  { %5103 = vpow2.f32 %v4333_v13  ;;  %v784_v13 = vadd.f32 %v6247_v54, %v6220_v21 }
 0x128   :  { %v1043_v61 = vpop.f32.mrf.mxu2  ;;  %v1019_v9 = vpop.f32.mrf.mxu0 }
 0x129   :  { %v1062_v24 = vadd.f32 %v1043_v61, %v783_v60  ;;  %v1056_v35 = vpop.f32.mrf.mxu3  ;;  %v1032_v45 = vpop.f32.mrf.mxu1 }
 0x12a   :  { %v1063_v7 = vadd.f32 %v1056_v35, %v784_v13 }
 0x12b   :  { %v4334_v14 = vmul.f32 -1.442695, %v1062_v24  ;;  %v5102_v17 = vpop.eup %5101 }
 0x12c   :  { %v5104_v47 = vpop.eup %5103  ;;  %v1073_v56 = vadd.f32 1.0, %v5102_v17 }
 0x12d   :  { %5105 = vpow2.f32 %v4334_v14  ;;  %v1074_v40 = vadd.f32 1.0, %v5104_v47 }
 0x12e   :  { %5107 = vrcp.f32 %v1073_v56  ;;  %v1087_v17 = vand.u32 2147483648, %v1073_v56  ;;  %v1085_v9 = vand.u32 2147483647, %v1073_v56  ;;  %vm1081_vm2 = vweird.f32 %v1073_v56 }
 0x12f   :  { %5109 = vrcp.f32 %v1074_v40  ;;  %v1102_v47 = vand.u32 2147483648, %v1074_v40  ;;  %vm1096_vm3 = vweird.f32 %v1074_v40 }
 0x130   :  { %v1045_v49 = vpop.f32.mrf.mxu2  ;;  %vm1086_vm6 = vcmp.eq.f32.partialorder %v1085_v9, 8.507059e+37 }
 0x131   :  { %v1058_v30 = vpop.f32.mrf.mxu3  ;;  %v1100_v49 = vand.u32 2147483647, %v1074_v40 }
 0x133   :  { %v5106_v29 = vpop.eup %5105  ;;  %vm1101_vm7 = vcmp.eq.f32.partialorder %v1100_v49, 8.507059e+37 }
 0x134   :  { %v1075_v22 = vadd.f32 1.0, %v5106_v29  ;;  %v5108_v50 = vpop.eup %5107  ;;  %v1088_v29 = vor.u32 1.1754944e-38, %v1087_v17 }
 0x135   :  { %v5110_v52 = vpop.eup %5109  ;;  %v1077_v43 = vmul.f32 %v5108_v50, %v1073_v56  ;;  %vm1082_vm0 = vweird.f32 %v5108_v50 }
 0x136   :  { %5111 = vrcp.f32 %v1075_v22  ;;  %v1092_v60 = vmul.f32 %v5110_v52, %v1074_v40  ;;  %vm1097_vm1 = vweird.f32 %v5110_v52  ;;  %vm1083_vm4 = vmor %vm1081_vm2, %vm1082_vm0  ;;  %vm1111_vm9 = vweird.f32 %v1075_v22 }
 0x137   :  { %v1078_v61 = vsub.f32 1.0, %v1077_v43  ;;  %5113 = vtanh.f32 %v1063_v7  ;;  %vm1098_vm5 = vmor %vm1096_vm3, %vm1097_vm1  ;;  %v1103_v43 = vor.u32 1.1754944e-38, %v1102_v47  ;;  %v86_v7 = vld [vmem:[%s7820_s8] sm:$0xff]  ;;  %v1117_v47 = vand.u32 2147483648, %v1075_v22 }
 0x138   :  { %v1093_v24 = vsub.f32 1.0, %v1092_v60 }
 0x139   :  { %v1079_v14 = vmul.f32 %v5108_v50, %v1078_v61  ;;  %v1118_v9 = vor.u32 1.1754944e-38, %v1117_v47 }
 0x13a   :  { %v1094_v45 = vmul.f32 %v5110_v52, %v1093_v24 }
 0x13b   :  { %v1080_v21 = vadd.f32 %v5108_v50, %v1079_v14 }
 0x13c   :  { %v5112_v30 = vpop.eup %5111  ;;  %v1095_v13 = vadd.f32 %v5110_v52, %v1094_v45  ;;  %v1115_v45 = vand.u32 2147483647, %v1075_v22 }
 0x13d   :  { %v1107_v35 = vmul.f32 %v5112_v30, %v1075_v22  ;;  %v1084_v60 = vsel %vm1083_vm4, %v5108_v50, %v1080_v21  ;;  %v5114_v61 = vpop.eup %5113  ;;  %vm1112_vm8 = vweird.f32 %v5112_v30  ;;  %v7904_v22 = vld [vmem:[#allocation21_spill] sm:$0xff] }
 0x13e   :  { %v1089_v34 = vsel %vm1086_vm6, %v1088_v29, %v1084_v60  ;;  %v1099_v55 = vsel %vm1098_vm5, %v5110_v52, %v1095_v13  ;;  %vm1113_vm10 = vmor %vm1111_vm9, %vm1112_vm8  ;;  %vm1116_vm11 = vcmp.eq.f32.partialorder %v1115_v45, 8.507059e+37  ;;  %v7906_v29 = vld [vmem:[#allocation22_spill] sm:$0xff] }
 0x13f   :  { %v1108_v24 = vsub.f32 1.0, %v1107_v35  ;;  %v1104_v14 = vsel %vm1101_vm7, %v1103_v43, %v1099_v55  ;;  %v1123_v56 = vmul.f32 %v5114_v61, %v1089_v34  ;;  %v7903_v34 = vld [vmem:[#allocation5_spill] sm:$0xff]  ;;  %v7905_v35 = vld [vmem:[#allocation6_spill] sm:$0xff] }
 0x140   :  { %v1122_v40 = vmul.f32 %v1104_v14, %v86_v7  ;;  %v696_v13 = vadd.f32 %v7906_v29, %v7905_v35 }
 0x141   :  { %v1109_v27 = vmul.f32 %v5112_v30, %v1108_v24 }
 0x142   :  { %v6311_v63 = vadd.f32 %v1123_v56, %v1122_v40  ;;  %v786_v7 = vadd.f32 %v6233_v4, %v696_v13  ;;  %v7907_v56 = vld [vmem:[#allocation7_spill] sm:$0xff]  ;;  %v7909_v13 = vld [vmem:[#allocation8_spill] sm:$0xff] }
 0x143   :  { %v1110_v17 = vadd.f32 %v5112_v30, %v1109_v27  ;;  %v7902_v27 = vld [vmem:[#allocation4_spill] sm:$0xff]  ;;  %v7908_v40 = vld [vmem:[#allocation23_spill] sm:$0xff] }
 0x144   :  { %5115 = vtanh.f32 %v6311_v63 }
 0x145   :  { %v1114_v50 = vsel %vm1113_vm10, %v5112_v30, %v1110_v17  ;;  %v667_v30 = vadd.f32 %v7904_v22, %v7903_v34  ;;  %v725_v17 = vadd.f32 %v7908_v40, %v7907_v56 }
 0x146   :  { %v1119_v52 = vsel %vm1116_vm11, %v1118_v9, %v1114_v50 }
 0x147   :  { %v785_v43 = vadd.f32 %v6231_v36, %v667_v30  ;;  %v787_v50 = vadd.f32 %v6243_v59, %v725_v17 }
 0x14a   :  { %v5116_v21 = vpop.eup %5115 }
 0x14b   :  { %v1126_v49 = vmul.f32 %v5116_v21, %v1119_v52 }
 0x14d   :  { %v1127_v55 = vpack.c.bf16 %v1126_v49, %v1126_v49 }
 0x14f   :  { %1136 = vmatmul.bf16.vlgmr.msrb.gmra.mxu0 %v1127_v55  ;;  %1149 = vmatmul.bf16.vlgmr.msrb.gmra.mxu1 %v1127_v55 }
 0x150   :  { %1162 = vmatmul.bf16.vlgmr.msrb.gmra.mxu2 %v1127_v55  ;;  %1175 = vmatmul.bf16.vlgmr.msrb.gmra.mxu3 %v1127_v55 }
 0x151   :  { %1368 = vmatpush.bf16.msrb.mxu0 %v5814_v6  ;;  %1381 = vmatpush.bf16.msrb.mxu1 %v5825_v10 }
 0x152   :  { %1394 = vmatpush.bf16.msrb.mxu2 %v5827_v11  ;;  %1407 = vmatpush.bf16.msrb.mxu3 %v5862_v23 }
 0x155   :  { %1369 = vmatpush.bf16.msrb.mxu0 %v5839_v15  ;;  %1382 = vmatpush.bf16.msrb.mxu1 %v5852_v19 }
 0x156   :  { %1395 = vmatpush.bf16.msrb.mxu2 %v5854_v20  ;;  %1408 = vmatpush.bf16.msrb.mxu3 %v5905_v37 }
 0x159   :  { %1370 = vmatpush.bf16.msrb.mxu0 %v5880_v28  ;;  %1383 = vmatpush.bf16.msrb.mxu1 %v5891_v32 }
 0x15a   :  { %1396 = vmatpush.bf16.msrb.mxu2 %v5893_v33  ;;  %1409 = vmatpush.bf16.msrb.mxu3 %v5937_v48 }
 0x15d   :  { %1371 = vmatpush.bf16.msrb.mxu0 %v5918_v41  ;;  %1384 = vmatpush.bf16.msrb.mxu1 %v5920_v42 }
 0x15e   :  { %1397 = vmatpush.bf16.msrb.mxu2 %v5932_v46  ;;  %1410 = vmatpush.bf16.msrb.mxu3 %v5980_v62 }
 0x161   :  { %1372 = vmatpush.bf16.msrb.mxu0 %v5955_v53  ;;  %1385 = vmatpush.bf16.msrb.mxu1 %v5966_v57 }
 0x162   :  { %1398 = vmatpush.bf16.msrb.mxu2 %v5968_v58  ;;  %1411 = vmatpush.bf16.msrb.mxu3 %v6012_v12 }
 0x165   :  { %1373 = vmatpush.bf16.msrb.mxu0 %v5993_v2  ;;  %1386 = vmatpush.bf16.msrb.mxu1 %v5995_v3 }
 0x166   :  { %1399 = vmatpush.bf16.msrb.mxu2 %v6007_v8  ;;  %1412 = vmatpush.bf16.msrb.mxu3 %v6055_v31 }
 0x169   :  { %1374 = vmatpush.bf16.msrb.mxu0 %v6030_v18  ;;  %1387 = vmatpush.bf16.msrb.mxu1 %v6041_v25 }
 0x16a   :  { %1400 = vmatpush.bf16.msrb.mxu2 %v6043_v26  ;;  %1413 = vmatpush.bf16.msrb.mxu3 %v6079_v44 }
 0x16d   :  { %1375 = vmatpush.bf16.msrb.mxu0 %v6068_v38  ;;  %1388 = vmatpush.bf16.msrb.mxu1 %v6070_v39 }
 0x16e   :  { %1401 = vmatpush.bf16.msrb.mxu2 %v6098_v51  ;;  %1414 = vmatpush.bf16.msrb.mxu3 %v7902_v27 }
 0x1cc   :  { %v1137_v60 = vpop.f32.mrf.mxu0  ;;  %v1150_v61 = vpop.f32.mrf.mxu1 }
 0x1cd   :  { %v1180_v24 = vadd.f32 %v1137_v60, %v785_v43  ;;  %v1181_v14 = vadd.f32 %v1150_v61, %v786_v7  ;;  %v7910_v43 = vld [vmem:[#allocation24_spill] sm:$0xff] }
 0x1ce   :  { %v754_v7 = vadd.f32 %v7910_v43, %v7909_v13 }
 0x1cf   :  { %v4335_v47 = vmul.f32 -1.442695, %v1180_v24  ;;  %v4336_v45 = vmul.f32 -1.442695, %v1181_v14 }
 0x1d0   :  { %v788_v14 = vadd.f32 %v6247_v54, %v754_v7 }
 0x1d1   :  { %5117 = vpow2.f32 %v4335_v47 }
 0x1d2   :  { %5119 = vpow2.f32 %v4336_v45 }
 0x1d3   :  { %v1163_v9 = vpop.f32.mrf.mxu2  ;;  %v1176_v21 = vpop.f32.mrf.mxu3 }
 0x1d4   :  { %v1182_v52 = vadd.f32 %v1163_v9, %v787_v50  ;;  %v1139_v49 = vpop.f32.mrf.mxu0  ;;  %v1152_v55 = vpop.f32.mrf.mxu1  ;;  %v1183_v17 = vadd.f32 %v1176_v21, %v788_v14 }
 0x1d6   :  { %v4337_v34 = vmul.f32 -1.442695, %v1182_v52 }
 0x1d7   :  { %v5118_v22 = vpop.eup %5117 }
 0x1d8   :  { %v5120_v30 = vpop.eup %5119  ;;  %v1193_v35 = vadd.f32 1.0, %v5118_v22  ;;  %5121 = vpow2.f32 %v4337_v34 }
 0x1d9   :  { %v1194_v29 = vadd.f32 1.0, %v5120_v30 }
 0x1da   :  { %5123 = vrcp.f32 %v1193_v35  ;;  %v1207_v49 = vand.u32 2147483648, %v1193_v35  ;;  %v1205_v22 = vand.u32 2147483647, %v1193_v35  ;;  %vm1201_vm14 = vweird.f32 %v1193_v35 }
 0x1db   :  { %5125 = vrcp.f32 %v1194_v29  ;;  %v1165_v60 = vpop.f32.mrf.mxu2  ;;  %v1178_v61 = vpop.f32.mrf.mxu3  ;;  %v1222_v55 = vand.u32 2147483648, %v1194_v29  ;;  %v1220_v13 = vand.u32 2147483647, %v1194_v29  ;;  %vm1216_vm15 = vweird.f32 %v1194_v29 }
 0x1dc   :  { %v1208_v60 = vor.u32 1.1754944e-38, %v1207_v49  ;;  %vm1206_vm2 = vcmp.eq.f32.partialorder %v1205_v22, 8.507059e+37 }
 0x1dd   :  { %vm1221_vm3 = vcmp.eq.f32.partialorder %v1220_v13, 8.507059e+37 }
 0x1de   :  { %v5122_v24 = vpop.eup %5121 }
 0x1df   :  { %v1195_v56 = vadd.f32 1.0, %v5122_v24  ;;  %v1223_v24 = vor.u32 1.1754944e-38, %v1222_v55 }
 0x1e0   :  { %v5124_v40 = vpop.eup %5123 }
 0x1e1   :  { %v5126_v47 = vpop.eup %5125  ;;  %v1197_v45 = vmul.f32 %v5124_v40, %v1193_v35  ;;  %5127 = vrcp.f32 %v1195_v56  ;;  %vm1202_vm12 = vweird.f32 %v5124_v40  ;;  %v1237_v49 = vand.u32 2147483648, %v1195_v56 }
 0x1e2   :  { %v1212_v50 = vmul.f32 %v5126_v47, %v1194_v29  ;;  %5129 = vtanh.f32 %v1183_v17  ;;  %vm1217_vm13 = vweird.f32 %v5126_v47  ;;  %vm1203_vm0 = vmor %vm1201_vm14, %vm1202_vm12  ;;  %vm1231_vm5 = vweird.f32 %v1195_v56 }
 0x1e3   :  { %v1198_v9 = vsub.f32 1.0, %v1197_v45  ;;  %vm1218_vm1 = vmor %vm1216_vm15, %vm1217_vm13  ;;  %v1238_v22 = vor.u32 1.1754944e-38, %v1237_v49 }
 0x1e4   :  { %v1213_v52 = vsub.f32 1.0, %v1212_v50 }
 0x1e5   :  { %v1199_v34 = vmul.f32 %v5124_v40, %v1198_v9 }
 0x1e6   :  { %v1214_v30 = vmul.f32 %v5126_v47, %v1213_v52 }
 0x1e7   :  { %v5128_v43 = vpop.eup %5127  ;;  %v1200_v7 = vadd.f32 %v5124_v40, %v1199_v34 }
 0x1e8   :  { %v1227_v21 = vmul.f32 %v5128_v43, %v1195_v56  ;;  %v1215_v61 = vadd.f32 %v5126_v47, %v1214_v30  ;;  %v5130_v17 = vpop.eup %5129  ;;  %vm1232_vm4 = vweird.f32 %v5128_v43 }
 0x1e9   :  { %v1204_v14 = vsel %vm1203_vm0, %v5124_v40, %v1200_v7  ;;  %v1235_v40 = vand.u32 2147483647, %v1195_v56  ;;  %vm1233_vm6 = vmor %vm1231_vm5, %vm1232_vm4  ;;  %v7911_v56 = vld [vmem:[#allocation25_spill] sm:$0xff] }
 0x1ea   :  { %v1228_v45 = vsub.f32 1.0, %v1227_v21  ;;  %v1209_v50 = vsel %vm1206_vm2, %v1208_v60, %v1204_v14  ;;  %v1219_v9 = vsel %vm1218_vm1, %v5126_v47, %v1215_v61  ;;  %v7912_v14 = vld [vmem:[#allocation28_spill] sm:$0xff] }
 0x1eb   :  { %v1224_v52 = vsel %vm1221_vm3, %v1223_v24, %v1219_v9  ;;  %v1243_v16 = vmul.f32 %v5130_v17, %v1209_v50  ;;  %vm1236_vm7 = vcmp.eq.f32.partialorder %v1235_v40, 8.507059e+37 }
 0x1ec   :  { %v1242_v1 = vmul.f32 %v1224_v52, %v6311_v63  ;;  %v1229_v34 = vmul.f32 %v5128_v43, %v1228_v45 }
 0x1ee   :  { %v6359_v35 = vadd.f32 %v1243_v16, %v1242_v1  ;;  %v1230_v29 = vadd.f32 %v5128_v43, %v1229_v34 }
 0x1f0   :  { %5131 = vtanh.f32 %v6359_v35  ;;  %v1234_v55 = vsel %vm1233_vm6, %v5128_v43, %v1230_v29 }
 0x1f1   :  { %v1239_v30 = vsel %vm1236_vm7, %v1238_v22, %v1234_v55 }
 0x1f6   :  { %v5132_v47 = vpop.eup %5131 }
 0x1f7   :  { %v1246_v13 = vmul.f32 %v5132_v47, %v1239_v30  ;;  %v7913_v30 = vld [vmem:[#allocation29_spill] sm:$0xff] }
 0x1f9   :  { %v1247_v7 = vpack.c.bf16 %v1246_v13, %v1246_v13 }
 0x1fb   :  { %1256 = vmatmul.bf16.vlgmr.msra.gmra.mxu0 %v1247_v7  ;;  %1269 = vmatmul.bf16.vlgmr.msra.gmra.mxu1 %v1247_v7 }
 0x1fc   :  { %1282 = vmatmul.bf16.vlgmr.msra.gmra.mxu2 %v1247_v7  ;;  %1295 = vmatmul.bf16.vlgmr.msra.gmra.mxu3 %v1247_v7 }
 0x1fd   :  { %1488 = vmatpush.bf16.msra.mxu0 %v5814_v6  ;;  %1501 = vmatpush.bf16.msra.mxu1 %v5825_v10 }
 0x1fe   :  { %1514 = vmatpush.bf16.msra.mxu2 %v5827_v11  ;;  %1527 = vmatpush.bf16.msra.mxu3 %v5862_v23 }
 0x201   :  { %1489 = vmatpush.bf16.msra.mxu0 %v5839_v15  ;;  %1502 = vmatpush.bf16.msra.mxu1 %v5852_v19 }
 0x202   :  { %1515 = vmatpush.bf16.msra.mxu2 %v5854_v20  ;;  %1528 = vmatpush.bf16.msra.mxu3 %v5905_v37 }
 0x205   :  { %1490 = vmatpush.bf16.msra.mxu0 %v5880_v28  ;;  %1503 = vmatpush.bf16.msra.mxu1 %v5891_v32 }
 0x206   :  { %1516 = vmatpush.bf16.msra.mxu2 %v5893_v33  ;;  %1529 = vmatpush.bf16.msra.mxu3 %v5937_v48 }
 0x209   :  { %1491 = vmatpush.bf16.msra.mxu0 %v5918_v41  ;;  %1504 = vmatpush.bf16.msra.mxu1 %v5920_v42 }
 0x20a   :  { %1517 = vmatpush.bf16.msra.mxu2 %v5932_v46  ;;  %1530 = vmatpush.bf16.msra.mxu3 %v5980_v62 }
 0x20d   :  { %1492 = vmatpush.bf16.msra.mxu0 %v5955_v53  ;;  %1505 = vmatpush.bf16.msra.mxu1 %v5966_v57 }
 0x20e   :  { %1518 = vmatpush.bf16.msra.mxu2 %v5968_v58  ;;  %1531 = vmatpush.bf16.msra.mxu3 %v6012_v12 }
 0x211   :  { %1493 = vmatpush.bf16.msra.mxu0 %v5993_v2  ;;  %1506 = vmatpush.bf16.msra.mxu1 %v5995_v3 }
 0x212   :  { %1519 = vmatpush.bf16.msra.mxu2 %v6007_v8  ;;  %1532 = vmatpush.bf16.msra.mxu3 %v6055_v31 }
 0x215   :  { %1494 = vmatpush.bf16.msra.mxu0 %v6030_v18  ;;  %1507 = vmatpush.bf16.msra.mxu1 %v6041_v25 }
 0x216   :  { %1520 = vmatpush.bf16.msra.mxu2 %v6043_v26  ;;  %1533 = vmatpush.bf16.msra.mxu3 %v6079_v44 }
 0x219   :  { %1495 = vmatpush.bf16.msra.mxu0 %v6068_v38  ;;  %1508 = vmatpush.bf16.msra.mxu1 %v6070_v39 }
 0x21a   :  { %1521 = vmatpush.bf16.msra.mxu2 %v6098_v51  ;;  %1534 = vmatpush.bf16.msra.mxu3 %v7902_v27 }
 0x278   :  { %v1257_v63 = vpop.f32.mrf.mxu0  ;;  %v1270_v1 = vpop.f32.mrf.mxu1 }
 0x279   :  { %v1300_v16 = vadd.f32 %v1257_v63, %v6236_v0  ;;  %v1301_v43 = vadd.f32 %v1270_v1, %v7911_v56 }
 0x27b   :  { %v4338_v21 = vmul.f32 -1.442695, %v1300_v16  ;;  %v4339_v60 = vmul.f32 -1.442695, %v1301_v43 }
 0x27d   :  { %5133 = vpow2.f32 %v4338_v21 }
 0x27e   :  { %5135 = vpow2.f32 %v4339_v60 }
 0x27f   :  { %v1283_v61 = vpop.f32.mrf.mxu2  ;;  %v1296_v24 = vpop.f32.mrf.mxu3 }
 0x280   :  { %v1302_v17 = vadd.f32 %v1283_v61, %v7912_v14  ;;  %v1259_v45 = vpop.f32.mrf.mxu0  ;;  %v1272_v50 = vpop.f32.mrf.mxu1  ;;  %v1303_v13 = vadd.f32 %v1296_v24, %v7913_v30 }
 0x282   :  { %v4340_v9 = vmul.f32 -1.442695, %v1302_v17 }
 0x283   :  { %v5134_v52 = vpop.eup %5133 }
 0x284   :  { %v5136_v34 = vpop.eup %5135  ;;  %v1313_v29 = vadd.f32 1.0, %v5134_v52  ;;  %5137 = vpow2.f32 %v4340_v9 }
 0x285   :  { %v1314_v49 = vadd.f32 1.0, %v5136_v34 }
 0x286   :  { %5139 = vrcp.f32 %v1313_v29  ;;  %v1327_v43 = vand.u32 2147483648, %v1313_v29  ;;  %v1325_v61 = vand.u32 2147483647, %v1313_v29  ;;  %vm1321_vm10 = vweird.f32 %v1313_v29 }
 0x287   :  { %5141 = vrcp.f32 %v1314_v49  ;;  %v1285_v0 = vpop.f32.mrf.mxu2  ;;  %v1298_v40 = vpop.f32.mrf.mxu3  ;;  %v1342_v21 = vand.u32 2147483648, %v1314_v49  ;;  %v1340_v17 = vand.u32 2147483647, %v1314_v49  ;;  %vm1336_vm11 = vweird.f32 %v1314_v49 }
 0x288   :  { %v1328_v9 = vor.u32 1.1754944e-38, %v1327_v43  ;;  %vm1326_vm14 = vcmp.eq.f32.partialorder %v1325_v61, 8.507059e+37 }
 0x289   :  { %v1343_v34 = vor.u32 1.1754944e-38, %v1342_v21  ;;  %vm1341_vm15 = vcmp.eq.f32.partialorder %v1340_v17, 8.507059e+37 }
 0x28a   :  { %v5138_v55 = vpop.eup %5137 }
 0x28b   :  { %v1315_v22 = vadd.f32 1.0, %v5138_v55 }
 0x28c   :  { %v5140_v47 = vpop.eup %5139 }
 0x28d   :  { %v5142_v7 = vpop.eup %5141  ;;  %v1317_v63 = vmul.f32 %v5140_v47, %v1313_v29  ;;  %5143 = vrcp.f32 %v1315_v22  ;;  %vm1322_vm8 = vweird.f32 %v5140_v47  ;;  %v1357_v43 = vand.u32 2147483648, %v1315_v22 }
 0x28e   :  { %v1332_v1 = vmul.f32 %v5142_v7, %v1314_v49  ;;  %5145 = vtanh.f32 %v1303_v13  ;;  %vm1337_vm9 = vweird.f32 %v5142_v7  ;;  %vm1323_vm12 = vmor %vm1321_vm10, %vm1322_vm8  ;;  %vm1351_vm1 = vweird.f32 %v1315_v22 }
 0x28f   :  { %v1318_v16 = vsub.f32 1.0, %v1317_v63  ;;  %vm1338_vm13 = vmor %vm1336_vm11, %vm1337_vm9 }
 0x290   :  { %v1333_v56 = vsub.f32 1.0, %v1332_v1 }
 0x291   :  { %v1319_v60 = vmul.f32 %v5140_v47, %v1318_v16 }
 0x292   :  { %v1334_v14 = vmul.f32 %v5142_v7, %v1333_v56 }
 0x293   :  { %v5144_v45 = vpop.eup %5143  ;;  %v1320_v50 = vadd.f32 %v5140_v47, %v1319_v60  ;;  %v1358_v60 = vor.u32 1.1754944e-38, %v1357_v43 }
 0x294   :  { %v1347_v24 = vmul.f32 %v5144_v45, %v1315_v22  ;;  %v1335_v52 = vadd.f32 %v5142_v7, %v1334_v14  ;;  %v5146_v40 = vpop.eup %5145  ;;  %vm1352_vm0 = vweird.f32 %v5144_v45 }
 0x295   :  { %v1324_v0 = vsel %vm1323_vm12, %v5140_v47, %v1320_v50  ;;  %v1355_v47 = vand.u32 2147483647, %v1315_v22  ;;  %vm1353_vm2 = vmor %vm1351_vm1, %vm1352_vm0  ;;  %v7915_v22 = vld [vmem:[#allocation26_spill] sm:$0xff] }
 0x296   :  { %v1348_v55 = vsub.f32 1.0, %v1347_v24  ;;  %v1329_v30 = vsel %vm1326_vm14, %v1328_v9, %v1324_v0  ;;  %v1339_v13 = vsel %vm1338_vm13, %v5142_v7, %v1335_v52  ;;  %v7916_v50 = vld [vmem:[#allocation10_spill] sm:$0xff]  ;;  %v7917_v24 = vld [vmem:[#allocation27_spill] sm:$0xff] }
 0x297   :  { %v1344_v63 = vsel %vm1341_vm15, %v1343_v34, %v1339_v13  ;;  %v1363_v1 = vmul.f32 %v5146_v40, %v1329_v30  ;;  %vm1356_vm3 = vcmp.eq.f32.partialorder %v1355_v47, 8.507059e+37  ;;  %v701_v9 = vadd.f32 %v7917_v24, %v7916_v50  ;;  %v7918_v13 = vld [vmem:[#allocation11_spill] sm:$0xff] }
 0x298   :  { %v1362_v16 = vmul.f32 %v1344_v63, %v6359_v35  ;;  %v1349_v56 = vmul.f32 %v5144_v45, %v1348_v55  ;;  %v7914_v35 = vld [vmem:[#allocation9_spill] sm:$0xff]  ;;  %v730_v63 = vadd.f32 %v6255_v5, %v7918_v13 }
 0x299   :  { %v794_v34 = vadd.f32 %v6233_v4, %v701_v9 }
 0x29a   :  { %v6399_v29 = vadd.f32 %v1363_v1, %v1362_v16  ;;  %v1350_v49 = vadd.f32 %v5144_v45, %v1349_v56  ;;  %v795_v56 = vadd.f32 %v6243_v59, %v730_v63 }
 0x29c   :  { %5147 = vtanh.f32 %v6399_v29  ;;  %v1354_v21 = vsel %vm1353_vm2, %v5144_v45, %v1350_v49  ;;  %v672_v45 = vadd.f32 %v7915_v22, %v7914_v35  ;;  %v7919_v22 = vld [vmem:[#allocation12_spill] sm:$0xff] }
 0x29d   :  { %v1359_v61 = vsel %vm1356_vm3, %v1358_v60, %v1354_v21 }
 0x29e   :  { %v793_v52 = vadd.f32 %v6231_v36, %v672_v45  ;;  %v7920_v45 = vld [vmem:[#allocation30_spill] sm:$0xff] }
 0x29f   :  { %v759_v5 = vadd.f32 %v7920_v45, %v7919_v22 }
 0x2a2   :  { %v5148_v7 = vpop.eup %5147 }
 0x2a3   :  { %v1366_v14 = vmul.f32 %v5148_v7, %v1359_v61 }
 0x2a5   :  { %v1367_v17 = vpack.c.bf16 %v1366_v14, %v1366_v14 }
 0x2a7   :  { %1376 = vmatmul.bf16.vlgmr.msrb.gmra.mxu0 %v1367_v17  ;;  %1389 = vmatmul.bf16.vlgmr.msrb.gmra.mxu1 %v1367_v17 }
 0x2a8   :  { %1402 = vmatmul.bf16.vlgmr.msrb.gmra.mxu2 %v1367_v17  ;;  %1415 = vmatmul.bf16.vlgmr.msrb.gmra.mxu3 %v1367_v17 }
 0x2a9   :  { %1608 = vmatpush.bf16.msrb.mxu0 %v5814_v6  ;;  %1621 = vmatpush.bf16.msrb.mxu1 %v5825_v10 }
 0x2aa   :  { %1634 = vmatpush.bf16.msrb.mxu2 %v5827_v11  ;;  %1647 = vmatpush.bf16.msrb.mxu3 %v5862_v23 }
 0x2ad   :  { %1609 = vmatpush.bf16.msrb.mxu0 %v5839_v15  ;;  %1622 = vmatpush.bf16.msrb.mxu1 %v5852_v19 }
 0x2ae   :  { %1635 = vmatpush.bf16.msrb.mxu2 %v5854_v20  ;;  %1648 = vmatpush.bf16.msrb.mxu3 %v5905_v37 }
 0x2b1   :  { %1610 = vmatpush.bf16.msrb.mxu0 %v5880_v28  ;;  %1623 = vmatpush.bf16.msrb.mxu1 %v5891_v32 }
 0x2b2   :  { %1636 = vmatpush.bf16.msrb.mxu2 %v5893_v33  ;;  %1649 = vmatpush.bf16.msrb.mxu3 %v5937_v48 }
 0x2b5   :  { %1611 = vmatpush.bf16.msrb.mxu0 %v5918_v41  ;;  %1624 = vmatpush.bf16.msrb.mxu1 %v5920_v42 }
 0x2b6   :  { %1637 = vmatpush.bf16.msrb.mxu2 %v5932_v46  ;;  %1650 = vmatpush.bf16.msrb.mxu3 %v5980_v62 }
 0x2b9   :  { %1612 = vmatpush.bf16.msrb.mxu0 %v5955_v53  ;;  %1625 = vmatpush.bf16.msrb.mxu1 %v5966_v57 }
 0x2ba   :  { %1638 = vmatpush.bf16.msrb.mxu2 %v5968_v58  ;;  %1651 = vmatpush.bf16.msrb.mxu3 %v6012_v12 }
 0x2bd   :  { %1613 = vmatpush.bf16.msrb.mxu0 %v5993_v2  ;;  %1626 = vmatpush.bf16.msrb.mxu1 %v5995_v3 }
 0x2be   :  { %1639 = vmatpush.bf16.msrb.mxu2 %v6007_v8  ;;  %1652 = vmatpush.bf16.msrb.mxu3 %v6055_v31 }
 0x2c1   :  { %1614 = vmatpush.bf16.msrb.mxu0 %v6030_v18  ;;  %1627 = vmatpush.bf16.msrb.mxu1 %v6041_v25 }
 0x2c2   :  { %1640 = vmatpush.bf16.msrb.mxu2 %v6043_v26  ;;  %1653 = vmatpush.bf16.msrb.mxu3 %v6079_v44 }
 0x2c5   :  { %1615 = vmatpush.bf16.msrb.mxu0 %v6068_v38  ;;  %1628 = vmatpush.bf16.msrb.mxu1 %v6070_v39 }
 0x2c6   :  { %1641 = vmatpush.bf16.msrb.mxu2 %v6098_v51  ;;  %1654 = vmatpush.bf16.msrb.mxu3 %v7902_v27 }
 0x324   :  { %v1377_v0 = vpop.f32.mrf.mxu0  ;;  %v1390_v40 = vpop.f32.mrf.mxu1 }
 0x325   :  { %v1420_v55 = vadd.f32 %v1377_v0, %v793_v52  ;;  %v1421_v30 = vadd.f32 %v1390_v40, %v794_v34  ;;  %v796_v52 = vadd.f32 %v6247_v54, %v759_v5 }
 0x327   :  { %v4341_v1 = vmul.f32 -1.442695, %v1420_v55  ;;  %v4342_v16 = vmul.f32 -1.442695, %v1421_v30 }
 0x329   :  { %5149 = vpow2.f32 %v4341_v1 }
 0x32a   :  { %5151 = vpow2.f32 %v4342_v16 }
 0x32b   :  { %v1403_v49 = vpop.f32.mrf.mxu2  ;;  %v1416_v43 = vpop.f32.mrf.mxu3 }
 0x32c   :  { %v1422_v47 = vadd.f32 %v1403_v49, %v795_v56  ;;  %v1379_v21 = vpop.f32.mrf.mxu0  ;;  %v1392_v60 = vpop.f32.mrf.mxu1  ;;  %v1423_v40 = vadd.f32 %v1416_v43, %v796_v52 }
 0x32e   :  { %v4343_v7 = vmul.f32 -1.442695, %v1422_v47 }
 0x32f   :  { %v5150_v61 = vpop.eup %5149 }
 0x330   :  { %v5152_v14 = vpop.eup %5151  ;;  %v1433_v17 = vadd.f32 1.0, %v5150_v61  ;;  %5153 = vpow2.f32 %v4343_v7 }
 0x331   :  { %v1434_v35 = vadd.f32 1.0, %v5152_v14 }
 0x332   :  { %5155 = vrcp.f32 %v1433_v17  ;;  %v1447_v16 = vand.u32 2147483648, %v1433_v17  ;;  %v1445_v47 = vand.u32 2147483647, %v1433_v17  ;;  %vm1441_vm6 = vweird.f32 %v1433_v17 }
 0x333   :  { %5157 = vrcp.f32 %v1434_v35  ;;  %v1405_v50 = vpop.f32.mrf.mxu2  ;;  %v1418_v24 = vpop.f32.mrf.mxu3  ;;  %v1462_v56 = vand.u32 2147483648, %v1434_v35  ;;  %v1460_v60 = vand.u32 2147483647, %v1434_v35  ;;  %vm1456_vm7 = vweird.f32 %v1434_v35 }
 0x334   :  { %v1448_v14 = vor.u32 1.1754944e-38, %v1447_v16  ;;  %vm1446_vm10 = vcmp.eq.f32.partialorder %v1445_v47, 8.507059e+37 }
 0x335   :  { %v1463_v45 = vor.u32 1.1754944e-38, %v1462_v56  ;;  %vm1461_vm11 = vcmp.eq.f32.partialorder %v1460_v60, 8.507059e+37  ;;  %v7921_v60 = vld [vmem:[#allocation31_spill] sm:$0xff] }
 0x336   :  { %v5154_v9 = vpop.eup %5153 }
 0x337   :  { %v1435_v34 = vadd.f32 1.0, %v5154_v9 }
 0x338   :  { %v5156_v0 = vpop.eup %5155 }
 0x339   :  { %v5158_v55 = vpop.eup %5157  ;;  %v1437_v30 = vmul.f32 %v5156_v0, %v1433_v17  ;;  %5159 = vrcp.f32 %v1435_v34  ;;  %vm1442_vm4 = vweird.f32 %v5156_v0  ;;  %vm1471_vm13 = vweird.f32 %v1435_v34 }
 0x33a   :  { %v1452_v13 = vmul.f32 %v5158_v55, %v1434_v35  ;;  %5161 = vtanh.f32 %v1423_v40  ;;  %vm1457_vm5 = vweird.f32 %v5158_v55  ;;  %vm1443_vm8 = vmor %vm1441_vm6, %vm1442_vm4 }
 0x33b   :  { %v1438_v63 = vsub.f32 1.0, %v1437_v30  ;;  %vm1458_vm9 = vmor %vm1456_vm7, %vm1457_vm5 }
 0x33c   :  { %v1453_v1 = vsub.f32 1.0, %v1452_v13 }
 0x33d   :  { %v1439_v49 = vmul.f32 %v5156_v0, %v1438_v63 }
 0x33e   :  { %v1454_v21 = vmul.f32 %v5158_v55, %v1453_v1  ;;  %v1477_v1 = vand.u32 2147483648, %v1435_v34 }
 0x33f   :  { %v5160_v7 = vpop.eup %5159  ;;  %v1440_v61 = vadd.f32 %v5156_v0, %v1439_v49 }
 0x340   :  { %v1467_v43 = vmul.f32 %v5160_v7, %v1435_v34  ;;  %v1455_v22 = vadd.f32 %v5158_v55, %v1454_v21  ;;  %v5162_v50 = vpop.eup %5161  ;;  %vm1472_vm12 = vweird.f32 %v5160_v7  ;;  %v1478_v56 = vor.u32 1.1754944e-38, %v1477_v1 }
 0x341   :  { %v1444_v5 = vsel %vm1443_vm8, %v5156_v0, %v1440_v61  ;;  %v1475_v0 = vand.u32 2147483647, %v1435_v34  ;;  %vm1473_vm14 = vmor %vm1471_vm13, %vm1472_vm12  ;;  %v7922_v61 = vld [vmem:[#allocation32_spill] sm:$0xff] }
 0x342   :  { %v1468_v24 = vsub.f32 1.0, %v1467_v43  ;;  %v1449_v9 = vsel %vm1446_vm10, %v1448_v14, %v1444_v5  ;;  %v1459_v52 = vsel %vm1458_vm9, %v5158_v55, %v1455_v22 }
 0x343   :  { %v1464_v40 = vsel %vm1461_vm11, %v1463_v45, %v1459_v52  ;;  %v1483_v30 = vmul.f32 %v5162_v50, %v1449_v9  ;;  %vm1476_vm15 = vcmp.eq.f32.partialorder %v1475_v0, 8.507059e+37  ;;  %v7923_v50 = vld [vmem:[#allocation35_spill] sm:$0xff] }
 0x344   :  { %v1469_v13 = vmul.f32 %v5160_v7, %v1468_v24  ;;  %v1482_v63 = vmul.f32 %v1464_v40, %v6399_v29 }
 0x346   :  { %v6447_v17 = vadd.f32 %v1483_v30, %v1482_v63  ;;  %v1470_v35 = vadd.f32 %v5160_v7, %v1469_v13 }
 0x348   :  { %5163 = vtanh.f32 %v6447_v17  ;;  %v1474_v16 = vsel %vm1473_vm14, %v5160_v7, %v1470_v35 }
 0x349   :  { %v1479_v49 = vsel %vm1476_vm15, %v1478_v56, %v1474_v16 }
 0x34e   :  { %v5164_v55 = vpop.eup %5163 }
 0x34f   :  { %v1486_v47 = vmul.f32 %v5164_v55, %v1479_v49  ;;  %v7924_v49 = vld [vmem:[#allocation36_spill] sm:$0xff] }
 0x351   :  { %v1487_v21 = vpack.c.bf16 %v1486_v47, %v1486_v47 }
 0x353   :  { %1496 = vmatmul.bf16.vlgmr.msra.gmra.mxu0 %v1487_v21  ;;  %1509 = vmatmul.bf16.vlgmr.msra.gmra.mxu1 %v1487_v21 }
 0x354   :  { %1522 = vmatmul.bf16.vlgmr.msra.gmra.mxu2 %v1487_v21  ;;  %1535 = vmatmul.bf16.vlgmr.msra.gmra.mxu3 %v1487_v21 }
 0x355   :  { %1728 = vmatpush.bf16.msra.mxu0 %v5814_v6  ;;  %1741 = vmatpush.bf16.msra.mxu1 %v5825_v10 }
 0x356   :  { %1754 = vmatpush.bf16.msra.mxu2 %v5827_v11  ;;  %1767 = vmatpush.bf16.msra.mxu3 %v5862_v23 }
 0x359   :  { %1729 = vmatpush.bf16.msra.mxu0 %v5839_v15  ;;  %1742 = vmatpush.bf16.msra.mxu1 %v5852_v19 }
 0x35a   :  { %1755 = vmatpush.bf16.msra.mxu2 %v5854_v20  ;;  %1768 = vmatpush.bf16.msra.mxu3 %v5905_v37 }
 0x35d   :  { %1730 = vmatpush.bf16.msra.mxu0 %v5880_v28  ;;  %1743 = vmatpush.bf16.msra.mxu1 %v5891_v32 }
 0x35e   :  { %1756 = vmatpush.bf16.msra.mxu2 %v5893_v33  ;;  %1769 = vmatpush.bf16.msra.mxu3 %v5937_v48 }
 0x361   :  { %1731 = vmatpush.bf16.msra.mxu0 %v5918_v41  ;;  %1744 = vmatpush.bf16.msra.mxu1 %v5920_v42 }
 0x362   :  { %1757 = vmatpush.bf16.msra.mxu2 %v5932_v46  ;;  %1770 = vmatpush.bf16.msra.mxu3 %v5980_v62 }
 0x365   :  { %1732 = vmatpush.bf16.msra.mxu0 %v5955_v53  ;;  %1745 = vmatpush.bf16.msra.mxu1 %v5966_v57 }
 0x366   :  { %1758 = vmatpush.bf16.msra.mxu2 %v5968_v58  ;;  %1771 = vmatpush.bf16.msra.mxu3 %v6012_v12 }
 0x369   :  { %1733 = vmatpush.bf16.msra.mxu0 %v5993_v2  ;;  %1746 = vmatpush.bf16.msra.mxu1 %v5995_v3 }
 0x36a   :  { %1759 = vmatpush.bf16.msra.mxu2 %v6007_v8  ;;  %1772 = vmatpush.bf16.msra.mxu3 %v6055_v31 }
 0x36d   :  { %1734 = vmatpush.bf16.msra.mxu0 %v6030_v18  ;;  %1747 = vmatpush.bf16.msra.mxu1 %v6041_v25 }
 0x36e   :  { %1760 = vmatpush.bf16.msra.mxu2 %v6043_v26  ;;  %1773 = vmatpush.bf16.msra.mxu3 %v6079_v44 }
 0x371   :  { %1735 = vmatpush.bf16.msra.mxu0 %v6068_v38  ;;  %1748 = vmatpush.bf16.msra.mxu1 %v6070_v39 }
 0x372   :  { %1761 = vmatpush.bf16.msra.mxu2 %v6098_v51  ;;  %1774 = vmatpush.bf16.msra.mxu3 %v7902_v27 }
 0x3d0   :  { %v1497_v29 = vpop.f32.mrf.mxu0  ;;  %v1510_v34 = vpop.f32.mrf.mxu1 }
 0x3d1   :  { %v1540_v7 = vadd.f32 %v1497_v29, %v7921_v60  ;;  %v1541_v43 = vadd.f32 %v1510_v34, %v7922_v61 }
 0x3d3   :  { %v4344_v14 = vmul.f32 -1.442695, %v1540_v7  ;;  %v4345_v22 = vmul.f32 -1.442695, %v1541_v43 }
 0x3d5   :  { %5165 = vpow2.f32 %v4344_v14 }
 0x3d6   :  { %5167 = vpow2.f32 %v4345_v22 }
 0x3d7   :  { %v1523_v45 = vpop.f32.mrf.mxu2  ;;  %v1536_v5 = vpop.f32.mrf.mxu3 }
 0x3d8   :  { %v1542_v24 = vadd.f32 %v1523_v45, %v7923_v50  ;;  %v1499_v9 = vpop.f32.mrf.mxu0  ;;  %v1512_v52 = vpop.f32.mrf.mxu1  ;;  %v1543_v47 = vadd.f32 %v1536_v5, %v7924_v49 }
 0x3da   :  { %v4346_v40 = vmul.f32 -1.442695, %v1542_v24 }
 0x3db   :  { %v5166_v30 = vpop.eup %5165 }
 0x3dc   :  { %v5168_v13 = vpop.eup %5167  ;;  %v1553_v63 = vadd.f32 1.0, %v5166_v30  ;;  %5169 = vpow2.f32 %v4346_v40 }
 0x3dd   :  { %v1554_v35 = vadd.f32 1.0, %v5168_v13 }
 0x3de   :  { %5171 = vrcp.f32 %v1553_v63  ;;  %v1567_v61 = vand.u32 2147483648, %v1553_v63  ;;  %v1565_v22 = vand.u32 2147483647, %v1553_v63  ;;  %vm1561_vm2 = vweird.f32 %v1553_v63 }
 0x3df   :  { %5173 = vrcp.f32 %v1554_v35  ;;  %v1525_v1 = vpop.f32.mrf.mxu2  ;;  %v1538_v0 = vpop.f32.mrf.mxu3  ;;  %v1582_v43 = vand.u32 2147483648, %v1554_v35  ;;  %v1580_v50 = vand.u32 2147483647, %v1554_v35  ;;  %vm1576_vm3 = vweird.f32 %v1554_v35 }
 0x3e0   :  { %v1568_v52 = vor.u32 1.1754944e-38, %v1567_v61  ;;  %vm1566_vm6 = vcmp.eq.f32.partialorder %v1565_v22, 8.507059e+37 }
 0x3e1   :  { %v1583_v30 = vor.u32 1.1754944e-38, %v1582_v43  ;;  %vm1581_vm7 = vcmp.eq.f32.partialorder %v1580_v50, 8.507059e+37 }
 0x3e2   :  { %v5170_v16 = vpop.eup %5169 }
 0x3e3   :  { %v1555_v56 = vadd.f32 1.0, %v5170_v16 }
 0x3e4   :  { %v5172_v55 = vpop.eup %5171 }
 0x3e5   :  { %v5174_v21 = vpop.eup %5173  ;;  %v1557_v29 = vmul.f32 %v5172_v55, %v1553_v63  ;;  %5175 = vrcp.f32 %v1555_v56  ;;  %vm1562_vm0 = vweird.f32 %v5172_v55  ;;  %vm1591_vm9 = vweird.f32 %v1555_v56 }
 0x3e6   :  { %v1572_v34 = vmul.f32 %v5174_v21, %v1554_v35  ;;  %5177 = vtanh.f32 %v1543_v47  ;;  %vm1577_vm1 = vweird.f32 %v5174_v21  ;;  %vm1563_vm4 = vmor %vm1561_vm2, %vm1562_vm0 }
 0x3e7   :  { %v1558_v60 = vsub.f32 1.0, %v1557_v29  ;;  %vm1578_vm5 = vmor %vm1576_vm3, %vm1577_vm1 }
 0x3e8   :  { %v1573_v7 = vsub.f32 1.0, %v1572_v34 }
 0x3e9   :  { %v1559_v14 = vmul.f32 %v5172_v55, %v1558_v60 }
 0x3ea   :  { %v1574_v45 = vmul.f32 %v5174_v21, %v1573_v7  ;;  %v1597_v7 = vand.u32 2147483648, %v1555_v56 }
 0x3eb   :  { %v5176_v24 = vpop.eup %5175  ;;  %v1560_v9 = vadd.f32 %v5172_v55, %v1559_v14 }
 0x3ec   :  { %v1587_v5 = vmul.f32 %v5176_v24, %v1555_v56  ;;  %v1575_v40 = vadd.f32 %v5174_v21, %v1574_v45  ;;  %v5178_v1 = vpop.eup %5177  ;;  %vm1592_vm8 = vweird.f32 %v5176_v24  ;;  %v1598_v43 = vor.u32 1.1754944e-38, %v1597_v7 }
 0x3ed   :  { %v1564_v13 = vsel %vm1563_vm4, %v5172_v55, %v1560_v9  ;;  %v1595_v55 = vand.u32 2147483647, %v1555_v56  ;;  %vm1593_vm10 = vmor %vm1591_vm9, %vm1592_vm8 }
 0x3ee   :  { %v1588_v0 = vsub.f32 1.0, %v1587_v5  ;;  %v1569_v16 = vsel %vm1566_vm6, %v1568_v52, %v1564_v13  ;;  %v1579_v49 = vsel %vm1578_vm5, %v5174_v21, %v1575_v40 }
 0x3ef   :  { %v1584_v47 = vsel %vm1581_vm7, %v1583_v30, %v1579_v49  ;;  %v1603_v29 = vmul.f32 %v5178_v1, %v1569_v16  ;;  %vm1596_vm11 = vcmp.eq.f32.partialorder %v1595_v55, 8.507059e+37 }
 0x3f0   :  { %v1589_v34 = vmul.f32 %v5176_v24, %v1588_v0  ;;  %v1602_v60 = vmul.f32 %v1584_v47, %v6447_v17 }
 0x3f2   :  { %v6487_v63 = vadd.f32 %v1603_v29, %v1602_v60  ;;  %v1590_v35 = vadd.f32 %v5176_v24, %v1589_v34 }
 0x3f4   :  { %5179 = vtanh.f32 %v6487_v63  ;;  %v1594_v61 = vsel %vm1593_vm10, %v5176_v24, %v1590_v35 }
 0x3f5   :  { %v1599_v14 = vsel %vm1596_vm11, %v1598_v43, %v1594_v61 }
 0x3fa   :  { %v5180_v21 = vpop.eup %5179 }
 0x3fb   :  { %v1606_v22 = vmul.f32 %v5180_v21, %v1599_v14 }
 0x3fd   :  { %v1607_v45 = vpack.c.bf16 %v1606_v22, %v1606_v22 }
 0x3ff   :  { %1616 = vmatmul.bf16.vlgmr.msrb.gmra.mxu0 %v1607_v45  ;;  %1629 = vmatmul.bf16.vlgmr.msrb.gmra.mxu1 %v1607_v45 }
 0x400   :  { %1642 = vmatmul.bf16.vlgmr.msrb.gmra.mxu2 %v1607_v45  ;;  %1655 = vmatmul.bf16.vlgmr.msrb.gmra.mxu3 %v1607_v45 }
 0x401   :  { %1848 = vmatpush.bf16.msrb.mxu0 %v5814_v6  ;;  %1861 = vmatpush.bf16.msrb.mxu1 %v5825_v10  ;;  %v7925_v6 = vld [vmem:[#allocation13_spill] sm:$0xff] }
 0x402   :  { %1874 = vmatpush.bf16.msrb.mxu2 %v5827_v11  ;;  %1887 = vmatpush.bf16.msrb.mxu3 %v5862_v23  ;;  %v7926_v10 = vld [vmem:[#allocation33_spill] sm:$0xff] }
 0x403   :  { %v677_v11 = vadd.f32 %v7926_v10, %v7925_v6 }
 0x405   :  { %1849 = vmatpush.bf16.msrb.mxu0 %v5839_v15  ;;  %1862 = vmatpush.bf16.msrb.mxu1 %v5852_v19  ;;  %v7927_v15 = vld [vmem:[#allocation14_spill] sm:$0xff]  ;;  %v801_v23 = vadd.f32 %v6231_v36, %v677_v11 }
 0x406   :  { %1875 = vmatpush.bf16.msrb.mxu2 %v5854_v20  ;;  %1888 = vmatpush.bf16.msrb.mxu3 %v5905_v37  ;;  %v7928_v19 = vld [vmem:[#allocation34_spill] sm:$0xff] }
 0x407   :  { %v706_v20 = vadd.f32 %v7928_v19, %v7927_v15 }
 0x409   :  { %1850 = vmatpush.bf16.msrb.mxu0 %v5880_v28  ;;  %1863 = vmatpush.bf16.msrb.mxu1 %v5891_v32  ;;  %v802_v28 = vadd.f32 %v6233_v4, %v706_v20 }
 0x40a   :  { %1876 = vmatpush.bf16.msrb.mxu2 %v5893_v33  ;;  %1889 = vmatpush.bf16.msrb.mxu3 %v5937_v48 }
 0x40d   :  { %1851 = vmatpush.bf16.msrb.mxu0 %v5918_v41  ;;  %1864 = vmatpush.bf16.msrb.mxu1 %v5920_v42  ;;  %v7929_v42 = vld [vmem:[#allocation15_spill] sm:$0xff] }
 0x40e   :  { %1877 = vmatpush.bf16.msrb.mxu2 %v5932_v46  ;;  %1890 = vmatpush.bf16.msrb.mxu3 %v5980_v62  ;;  %v7930_v46 = vld [vmem:[#allocation37_spill] sm:$0xff] }
 0x40f   :  { %v735_v48 = vadd.f32 %v7930_v46, %v7929_v42 }
 0x411   :  { %1852 = vmatpush.bf16.msrb.mxu0 %v5955_v53  ;;  %1865 = vmatpush.bf16.msrb.mxu1 %v5966_v57 }
 0x412   :  { %1878 = vmatpush.bf16.msrb.mxu2 %v5968_v58  ;;  %1891 = vmatpush.bf16.msrb.mxu3 %v6012_v12  ;;  %v803_v58 = vadd.f32 %v6243_v59, %v735_v48 }
 0x415   :  { %1853 = vmatpush.bf16.msrb.mxu0 %v5993_v2  ;;  %1866 = vmatpush.bf16.msrb.mxu1 %v5995_v3 }
 0x416   :  { %1879 = vmatpush.bf16.msrb.mxu2 %v6007_v8  ;;  %1892 = vmatpush.bf16.msrb.mxu3 %v6055_v31 }
 0x419   :  { %1854 = vmatpush.bf16.msrb.mxu0 %v6030_v18  ;;  %1867 = vmatpush.bf16.msrb.mxu1 %v6041_v25 }
 0x41a   :  { %1880 = vmatpush.bf16.msrb.mxu2 %v6043_v26  ;;  %1893 = vmatpush.bf16.msrb.mxu3 %v6079_v44  ;;  %v7932_v44 = vld [vmem:[#allocation38_spill] sm:$0xff] }
 0x41d   :  { %1855 = vmatpush.bf16.msrb.mxu0 %v6068_v38  ;;  %1868 = vmatpush.bf16.msrb.mxu1 %v6070_v39  ;;  %v7931_v39 = vld [vmem:[#allocation16_spill] sm:$0xff] }
 0x41e   :  { %1881 = vmatpush.bf16.msrb.mxu2 %v6098_v51  ;;  %1894 = vmatpush.bf16.msrb.mxu3 %v7902_v27  ;;  %v764_v51 = vadd.f32 %v7932_v44, %v7931_v39  ;;  %v7934_v44 = vld [vmem:[#allocation40_spill] sm:$0xff] }
 0x420   :  { %v804_v50 = vadd.f32 %v6247_v54, %v764_v51 }
 0x47c   :  { %v1617_v32 = vpop.f32.mrf.mxu0  ;;  %v1630_v33 = vpop.f32.mrf.mxu1 }
 0x47d   :  { %v1660_v37 = vadd.f32 %v1617_v32, %v801_v23  ;;  %v1661_v41 = vadd.f32 %v1630_v33, %v802_v28 }
 0x47f   :  { %v4347_v53 = vmul.f32 -1.442695, %v1660_v37  ;;  %v4348_v57 = vmul.f32 -1.442695, %v1661_v41 }
 0x481   :  { %5181 = vpow2.f32 %v4347_v53  ;;  %v5067_v53 = vld [vmem:[%s7814_s4 + $0x3ec] sm:$0xf0] }
 0x482   :  { %5183 = vpow2.f32 %v4348_v57  ;;  %v5065_v57 = vld [vmem:[%s7814_s4 + $0x3e4] sm:$0xf] }
 0x483   :  { %v1643_v62 = vpop.f32.mrf.mxu2  ;;  %v1656_v2 = vpop.f32.mrf.mxu3 }
 0x484   :  { %v1662_v3 = vadd.f32 %v1643_v62, %v803_v58  ;;  %v1619_v8 = vpop.f32.mrf.mxu0  ;;  %v1632_v12 = vpop.f32.mrf.mxu1  ;;  %v1663_v5 = vadd.f32 %v1656_v2, %v804_v50  ;;  %v4552_v62 = vld [vmem:[%s7814_s4 + $0x3f0] sm:$0xf0]  ;;  %v4558_v2 = vld [vmem:[%s7814_s4 + $0x3e8] sm:$0xf]  ;;  %v5061_v50 = vld [vmem:[%s7814_s4 + $0x3c4] sm:$0xf] }
 0x486   :  { %v4349_v18 = vmul.f32 -1.442695, %v1662_v3  ;;  %v5068_v3 = vld [vmem:[%s7814_s4 + $0x3f4] sm:$0xf0] }
 0x487   :  { %v5182_v25 = vpop.eup %5181 }
 0x488   :  { %v5184_v26 = vpop.eup %5183  ;;  %v1673_v31 = vadd.f32 1.0, %v5182_v25  ;;  %5185 = vpow2.f32 %v4349_v18  ;;  %v4555_v18 = vor.u32 %v5065_v57, %v4552_v62  ;;  %v4559_v25 = vor.u32 %v5068_v3, %v4558_v2 }
 0x489   :  { %v1674_v38 = vadd.f32 1.0, %v5184_v26  ;;  %v5066_v26 = vld [vmem:[%s7814_s4 + $0x3ec] sm:$0xf] }
 0x48a   :  { %5187 = vrcp.f32 %v1673_v31  ;;  %v1687_v0 = vand.u32 2147483648, %v1673_v31  ;;  %v1685_v47 = vand.u32 2147483647, %v1673_v31  ;;  %vm1681_vm14 = vweird.f32 %v1673_v31 }
 0x48b   :  { %5189 = vrcp.f32 %v1674_v38  ;;  %v1645_v27 = vpop.f32.mrf.mxu2  ;;  %v1658_v17 = vpop.f32.mrf.mxu3  ;;  %v1702_v16 = vand.u32 2147483648, %v1674_v38  ;;  %v1700_v34 = vand.u32 2147483647, %v1674_v38  ;;  %vm1696_vm15 = vweird.f32 %v1674_v38 }
 0x48c   :  { %v1688_v55 = vor.u32 1.1754944e-38, %v1687_v0  ;;  %vm1686_vm2 = vcmp.eq.f32.partialorder %v1685_v47, 8.507059e+37  ;;  %v4534_v17 = vld [vmem:[%s7814_s4 + $0x3c0] sm:$0xf]  ;;  %v5059_v47 = vld [vmem:[%s7814_s4 + $0x3ac] sm:$0xf0] }
 0x48d   :  { %v1703_v43 = vor.u32 1.1754944e-38, %v1702_v16  ;;  %vm1701_vm3 = vcmp.eq.f32.partialorder %v1700_v34, 8.507059e+37  ;;  %v4544_v16 = vld [vmem:[%s7814_s4 + $0x3d8] sm:$0xf0] }
 0x48e   :  { %v5186_v56 = vpop.eup %5185 }
 0x48f   :  { %v1675_v24 = vadd.f32 1.0, %v5186_v56  ;;  %v5063_v56 = vld [vmem:[%s7814_s4 + $0x3cc] sm:$0xf0] }
 0x490   :  { %v5188_v9 = vpop.eup %5187 }
 0x491   :  { %v5190_v52 = vpop.eup %5189  ;;  %v1677_v40 = vmul.f32 %v5188_v9, %v1673_v31  ;;  %5191 = vrcp.f32 %v1675_v24  ;;  %vm1682_vm12 = vweird.f32 %v5188_v9  ;;  %v1717_v28 = vand.u32 2147483648, %v1675_v24  ;;  %v4560_v31 = vld [vmem:[%s7814_s4 + $0x3f8] sm:$0xf0] }
 0x492   :  { %v1692_v30 = vmul.f32 %v5190_v52, %v1674_v38  ;;  %5193 = vtanh.f32 %v1663_v5  ;;  %vm1697_vm13 = vweird.f32 %v5190_v52  ;;  %vm1683_vm0 = vmor %vm1681_vm14, %vm1682_vm12  ;;  %vm1711_vm5 = vweird.f32 %v1675_v24  ;;  %v7933_v38 = vld [vmem:[#allocation39_spill] sm:$0xff] }
 0x493   :  { %v1678_v13 = vsub.f32 1.0, %v1677_v40  ;;  %vm1698_vm1 = vmor %vm1696_vm15, %vm1697_vm13  ;;  %v1715_v32 = vand.u32 2147483647, %v1675_v24  ;;  %v1718_v37 = vor.u32 1.1754944e-38, %v1717_v28  ;;  %v4563_v27 = vor.u32 %v5066_v26, %v4560_v31  ;;  %v5055_v28 = vld [vmem:[%s7814_s4 + $0x38c] sm:$0xf0] }
 0x494   :  { %v1693_v1 = vsub.f32 1.0, %v1692_v30  ;;  %v4535_v5 = vor.u32 %v5063_v56, %v4534_v17  ;;  %v4542_v30 = vld [vmem:[%s7814_s4 + $0x3c8] sm:$0xf]  ;;  %v5051_v26 = vld [vmem:[%s7814_s4 + $0x36c] sm:$0xf0] }
 0x495   :  { %v1679_v49 = vmul.f32 %v5188_v9, %v1678_v13  ;;  %vm1716_vm7 = vcmp.eq.f32.partialorder %v1715_v32, 8.507059e+37  ;;  %v5064_v13 = vld [vmem:[%s7814_s4 + $0x3d4] sm:$0xf0]  ;;  %v5053_v32 = vld [vmem:[%s7814_s4 + $0x384] sm:$0xf] }
 0x496   :  { %v1694_v29 = vmul.f32 %v5190_v52, %v1693_v1  ;;  %v5062_v1 = vld [vmem:[%s7814_s4 + $0x3cc] sm:$0xf]  ;;  %v4543_v0 = vor.u32 %v5064_v13, %v4542_v30  ;;  %v5052_v17 = vld [vmem:[%s7814_s4 + $0x374] sm:$0xf0] }
 0x497   :  { %v5192_v60 = vpop.eup %5191  ;;  %v1680_v35 = vadd.f32 %v5188_v9, %v1679_v49  ;;  %v4518_v49 = vld [vmem:[%s7814_s4 + $0x3a0] sm:$0xf] }
 0x498   :  { %v1707_v7 = vmul.f32 %v5192_v60, %v1675_v24  ;;  %v1695_v61 = vadd.f32 %v5190_v52, %v1694_v29  ;;  %v5194_v14 = vpop.eup %5193  ;;  %vm1712_vm4 = vweird.f32 %v5192_v60  ;;  %v4547_v29 = vor.u32 %v5062_v1, %v4544_v16  ;;  %v5047_v1 = vld [vmem:[%s7814_s4 + $0x34c] sm:$0xf0] }
 0x499   :  { %v1684_v21 = vsel %vm1683_vm0, %v5188_v9, %v1680_v35  ;;  %vm1713_vm6 = vmor %vm1711_vm5, %vm1712_vm4  ;;  %v4519_v34 = vor.u32 %v5059_v47, %v4518_v49  ;;  %v4520_v35 = vld [vmem:[%s7814_s4 + $0x3b0] sm:$0xf0] }
 0x49a   :  { %v1708_v22 = vsub.f32 1.0, %v1707_v7  ;;  %v1689_v45 = vsel %vm1686_vm2, %v1688_v55, %v1684_v21  ;;  %v1699_v6 = vsel %vm1698_vm1, %v5190_v52, %v1695_v61  ;;  %v4536_v52 = vld [vmem:[%s7814_s4 + $0x3d0] sm:$0xf0]  ;;  %v4526_v7 = vld [vmem:[%s7814_s4 + $0x3a8] sm:$0xf] }
 0x49b   :  { %v1704_v10 = vsel %vm1701_vm3, %v1703_v43, %v1699_v6  ;;  %v1723_v11 = vmul.f32 %v5194_v14, %v1689_v45  ;;  %v4539_v40 = vor.u32 %v5061_v50, %v4536_v52  ;;  %v5060_v21 = vld [vmem:[%s7814_s4 + $0x3b4] sm:$0xf0]  ;;  %v5058_v14 = vld [vmem:[%s7814_s4 + $0x3ac] sm:$0xf]  ;;  %v7936_v50 = vld [vmem:[#allocation44_spill] sm:$0xff] }
 0x49c   :  { %v1709_v15 = vmul.f32 %v5192_v60, %v1708_v22  ;;  %v1722_v19 = vmul.f32 %v1704_v10, %v6487_v63  ;;  %v4550_v63 = vld [vmem:[%s7814_s4 + $0x3e0] sm:$0xf]  ;;  %v4528_v22 = vld [vmem:[%s7814_s4 + $0x3b8] sm:$0xf0]  ;;  %v4472_v47 = vld [vmem:[%s7814_s4 + $0x350] sm:$0xf0] }
 0x49d   :  { %v4551_v58 = vor.u32 %v5067_v53, %v4550_v63  ;;  %v7935_v45 = vld [vmem:[#allocation43_spill] sm:$0xff]  ;;  %v5054_v63 = vld [vmem:[%s7814_s4 + $0x38c] sm:$0xf] }
 0x49e   :  { %v6535_v20 = vadd.f32 %v1723_v11, %v1722_v19  ;;  %v1710_v23 = vadd.f32 %v5192_v60, %v1709_v15  ;;  %v4527_v15 = vor.u32 %v5060_v21, %v4526_v7  ;;  %v4531_v19 = vor.u32 %v5058_v14, %v4528_v22  ;;  %v4512_v53 = vld [vmem:[%s7814_s4 + $0x398] sm:$0xf0]  ;;  %v4454_v14 = vld [vmem:[%s7814_s4 + $0x320] sm:$0xf]  ;;  %v5043_v22 = vld [vmem:[%s7814_s4 + $0x32c] sm:$0xf0] }
 0x49f   :  { %v4515_v3 = vor.u32 %v5054_v63, %v4512_v53  ;;  %v4496_v52 = vld [vmem:[%s7814_s4 + $0x378] sm:$0xf0]  ;;  %v5042_v63 = vld [vmem:[%s7814_s4 + $0x32c] sm:$0xf] }
 0x4a0   :  { %5195 = vtanh.f32 %v6535_v20  ;;  %v1714_v33 = vsel %vm1713_vm6, %v5192_v60, %v1710_v23  ;;  %v5057_v60 = vld [vmem:[%s7814_s4 + $0x3a4] sm:$0xf]  ;;  %v4502_v23 = vld [vmem:[%s7814_s4 + $0x380] sm:$0xf]  ;;  %v4464_v53 = vld [vmem:[%s7814_s4 + $0x338] sm:$0xf0] }
 0x4a1   :  { %v1719_v42 = vsel %vm1716_vm7, %v1718_v37, %v1714_v33  ;;  %v4523_v43 = vor.u32 %v5057_v60, %v4520_v35  ;;  %v4503_v33 = vor.u32 %v5055_v28, %v4502_v23  ;;  %v4504_v37 = vld [vmem:[%s7814_s4 + $0x390] sm:$0xf0] }
 0x4a6   :  { %v5196_v41 = vpop.eup %5195 }
 0x4a7   :  { %v1726_v46 = vmul.f32 %v5196_v41, %v1719_v42  ;;  %v4510_v41 = vld [vmem:[%s7814_s4 + $0x388] sm:$0xf]  ;;  %v5056_v42 = vld [vmem:[%s7814_s4 + $0x394] sm:$0xf0] }
 0x4a9   :  { %v1727_v48 = vpack.c.bf16 %v1726_v46, %v1726_v46 }
 0x4ab   :  { %1736 = vmatmul.bf16.vlgmr.msra.gmra.mxu0 %v1727_v48  ;;  %1749 = vmatmul.bf16.vlgmr.msra.gmra.mxu1 %v1727_v48 }
 0x4ac   :  { %1762 = vmatmul.bf16.vlgmr.msra.gmra.mxu2 %v1727_v48  ;;  %1775 = vmatmul.bf16.vlgmr.msra.gmra.mxu3 %v1727_v48  ;;  %v4507_v48 = vor.u32 %v5053_v32, %v4504_v37  ;;  %v4462_v37 = vld [vmem:[%s7814_s4 + $0x328] sm:$0xf] }
 0x4ad   :  { %2235 = vmatpush.bf16.msra.mxu0 %v4551_v58  ;;  %2264 = vmatpush.bf16.msra.mxu1 %v4555_v18  ;;  %v4511_v58 = vor.u32 %v5056_v42, %v4510_v41  ;;  %v5044_v41 = vld [vmem:[%s7814_s4 + $0x334] sm:$0xf0] }
 0x4ae   :  { %2293 = vmatpush.bf16.msra.mxu2 %v4559_v25  ;;  %2322 = vmatpush.bf16.msra.mxu3 %v4563_v27  ;;  %v4494_v27 = vld [vmem:[%s7814_s4 + $0x368] sm:$0xf] }
 0x4b1   :  { %2236 = vmatpush.bf16.msra.mxu0 %v4535_v5  ;;  %2265 = vmatpush.bf16.msra.mxu1 %v4539_v40  ;;  %v5050_v5 = vld [vmem:[%s7814_s4 + $0x36c] sm:$0xf]  ;;  %v4470_v40 = vld [vmem:[%s7814_s4 + $0x340] sm:$0xf] }
 0x4b2   :  { %2294 = vmatpush.bf16.msra.mxu2 %v4543_v0  ;;  %2323 = vmatpush.bf16.msra.mxu3 %v4547_v29  ;;  %v4499_v13 = vor.u32 %v5050_v5, %v4496_v52  ;;  %v5045_v0 = vld [vmem:[%s7814_s4 + $0x344] sm:$0xf]  ;;  %v4471_v49 = vor.u32 %v5047_v1, %v4470_v40  ;;  %v4478_v29 = vld [vmem:[%s7814_s4 + $0x348] sm:$0xf] }
 0x4b5   :  { %2237 = vmatpush.bf16.msra.mxu0 %v4519_v34  ;;  %2266 = vmatpush.bf16.msra.mxu1 %v4523_v43  ;;  %v5048_v34 = vld [vmem:[%s7814_s4 + $0x354] sm:$0xf0] }
 0x4b6   :  { %2295 = vmatpush.bf16.msra.mxu2 %v4527_v15  ;;  %2324 = vmatpush.bf16.msra.mxu3 %v4531_v19  ;;  %v5041_v15 = vld [vmem:[%s7814_s4 + $0x324] sm:$0xf]  ;;  %v4456_v19 = vld [vmem:[%s7814_s4 + $0x330] sm:$0xf0] }
 0x4b9   :  { %2238 = vmatpush.bf16.msra.mxu0 %v4503_v33  ;;  %2267 = vmatpush.bf16.msra.mxu1 %v4507_v48  ;;  %v4455_v33 = vor.u32 %v5043_v22, %v4454_v14  ;;  %v4463_v48 = vor.u32 %v5044_v41, %v4462_v37  ;;  %v4702_v14 = vld [vmem:[%s7814_s4 + $0x2e8] sm:$0xf]  ;;  %v4680_v37 = vld [vmem:[%s7814_s4 + $0x2d0] sm:$0xf0] }
 0x4ba   :  { %2296 = vmatpush.bf16.msra.mxu2 %v4511_v58  ;;  %2325 = vmatpush.bf16.msra.mxu3 %v4515_v3  ;;  %v5039_v3 = vld [vmem:[%s7814_s4 + $0x30c] sm:$0xf0] }
 0x4be   :  { %2326 = vmatpush.bf16.msra.mxu3 %v4499_v13 }
 0x528   :  { %v1737_v8 = vpop.f32.mrf.mxu0  ;;  %v1750_v12 = vpop.f32.mrf.mxu1 }
 0x529   :  { %v1780_v39 = vadd.f32 %v1737_v8, %v7933_v38  ;;  %v1781_v51 = vadd.f32 %v1750_v12, %v7934_v44  ;;  %v4486_v12 = vld [vmem:[%s7814_s4 + $0x360] sm:$0xf]  ;;  %v5049_v38 = vld [vmem:[%s7814_s4 + $0x364] sm:$0xf] }
 0x52a   :  { %v4487_v31 = vor.u32 %v5051_v26, %v4486_v12  ;;  %v5037_v12 = vld [vmem:[%s7814_s4 + $0x304] sm:$0xf] }
 0x52b   :  { %v4350_v24 = vmul.f32 -1.442695, %v1780_v39  ;;  %v4351_v9 = vmul.f32 -1.442695, %v1781_v51  ;;  %v4488_v39 = vld [vmem:[%s7814_s4 + $0x370] sm:$0xf0] }
 0x52c   :  { %v4491_v51 = vor.u32 %v5049_v38, %v4488_v39  ;;  %2239 = vmatpush.bf16.msra.mxu0 %v4487_v31  ;;  %v4446_v38 = vld [vmem:[%s7814_s4 + $0x308] sm:$0xf]  ;;  %v5040_v39 = vld [vmem:[%s7814_s4 + $0x314] sm:$0xf0] }
 0x52d   :  { %5197 = vpow2.f32 %v4350_v24 }
 0x52e   :  { %5199 = vpow2.f32 %v4351_v9  ;;  %v4495_v9 = vor.u32 %v5052_v17, %v4494_v27  ;;  %2268 = vmatpush.bf16.msra.mxu1 %v4491_v51 }
 0x52f   :  { %v1763_v55 = vpop.f32.mrf.mxu2  ;;  %v1776_v61 = vpop.f32.mrf.mxu3 }
 0x530   :  { %v1782_v6 = vadd.f32 %v1763_v55, %v7935_v45  ;;  %v1739_v10 = vpop.f32.mrf.mxu0  ;;  %v1752_v11 = vpop.f32.mrf.mxu1  ;;  %v1783_v24 = vadd.f32 %v1776_v61, %v7936_v50  ;;  %2297 = vmatpush.bf16.msra.mxu2 %v4495_v9  ;;  %v5046_v55 = vld [vmem:[%s7814_s4 + $0x34c] sm:$0xf]  ;;  %v4480_v61 = vld [vmem:[%s7814_s4 + $0x358] sm:$0xf0]  ;;  %2240 = vmatpush.bf16.msra.mxu0 %v4471_v49  ;;  %v4447_v9 = vor.u32 %v5040_v39, %v4446_v38 }
 0x531   :  { %v4475_v10 = vor.u32 %v5045_v0, %v4472_v47  ;;  %v4479_v11 = vor.u32 %v5048_v34, %v4478_v29  ;;  %v4483_v32 = vor.u32 %v5046_v55, %v4480_v61  ;;  %v5031_v55 = vld [vmem:[%s7814_s4 + $0x2ec] sm:$0xf0]  ;;  %v5022_v38 = vld [vmem:[%s7814_s4 + $0x2ac] sm:$0xf] }
 0x532   :  { %v4352_v46 = vmul.f32 -1.442695, %v1782_v6 }
 0x533   :  { %v5198_v57 = vpop.eup %5197  ;;  %2269 = vmatpush.bf16.msra.mxu1 %v4475_v10  ;;  %2327 = vmatpush.bf16.msra.mxu3 %v4483_v32  ;;  %v4704_v10 = vld [vmem:[%s7814_s4 + $0x2f8] sm:$0xf0]  ;;  %v5027_v32 = vld [vmem:[%s7814_s4 + $0x2cc] sm:$0xf0] }
 0x534   :  { %v5200_v62 = vpop.eup %5199  ;;  %v6637_v2 = vadd.f32 1.0, %v5198_v57  ;;  %5201 = vpow2.f32 %v4352_v46  ;;  %2298 = vmatpush.bf16.msra.mxu2 %v4479_v11  ;;  %v4459_v46 = vor.u32 %v5041_v15, %v4456_v19  ;;  %v4438_v57 = vld [vmem:[%s7814_s4 + $0x300] sm:$0xf]  ;;  %2241 = vmatpush.bf16.msra.mxu0 %v4455_v33  ;;  %v5025_v33 = vld [vmem:[%s7814_s4 + $0x2c4] sm:$0xf] }
 0x535   :  { %v6639_v8 = vadd.f32 1.0, %v5200_v62  ;;  %v4467_v62 = vor.u32 %v5042_v63, %v4464_v53  ;;  %v4439_v31 = vor.u32 %v5039_v3, %v4438_v57  ;;  %v4683_v63 = vor.u32 %v5025_v33, %v4680_v37  ;;  %v4662_v53 = vld [vmem:[%s7814_s4 + $0x2a0] sm:$0xf]  ;;  %v5023_v57 = vld [vmem:[%s7814_s4 + $0x2ac] sm:$0xf0] }
 0x536   :  { %5203 = vrcp.f32 %v6637_v2  ;;  %v1805_v44 = vand.u32 2147483647, %v6637_v2  ;;  %v1807_v7 = vand.u32 2147483648, %v6637_v2  ;;  %vm1801_vm12 = vweird.f32 %v6637_v2  ;;  %v4664_v3 = vld [vmem:[%s7814_s4 + $0x2b0] sm:$0xf0] }
 0x537   :  { %5205 = vrcp.f32 %v6639_v8  ;;  %v1765_v18 = vpop.f32.mrf.mxu2  ;;  %v1778_v25 = vpop.f32.mrf.mxu3  ;;  %v1820_v21 = vand.u32 2147483647, %v6639_v8  ;;  %v1822_v6 = vand.u32 2147483648, %v6639_v8  ;;  %vm1816_vm11 = vweird.f32 %v6639_v8  ;;  %2270 = vmatpush.bf16.msra.mxu1 %v4459_v46  ;;  %2328 = vmatpush.bf16.msra.mxu3 %v4467_v62  ;;  %v5028_v46 = vld [vmem:[%s7814_s4 + $0x2d4] sm:$0xf0] }
 0x538   :  { %vm6719_vm8 = vcmp.eq.f32.partialorder %v1805_v44, 8.507059e+37  ;;  %v4440_v18 = vld [vmem:[%s7814_s4 + $0x310] sm:$0xf0]  ;;  %v5038_v44 = vld [vmem:[%s7814_s4 + $0x30c] sm:$0xf]  ;;  %2299 = vmatpush.bf16.msra.mxu2 %v4463_v48  ;;  %2242 = vmatpush.bf16.msra.mxu0 %v4439_v31  ;;  %v4663_v39 = vor.u32 %v5023_v57, %v4662_v53 }
 0x539   :  { %v1823_v27 = vor.u32 1.1754944e-38, %v1822_v6  ;;  %vm1821_vm15 = vcmp.eq.f32.partialorder %v1820_v21, 8.507059e+37  ;;  %v5029_v21 = vld [vmem:[%s7814_s4 + $0x2e4] sm:$0xf]  ;;  %v5030_v6 = vld [vmem:[%s7814_s4 + $0x2ec] sm:$0xf] }
 0x53a   :  { %v5202_v56 = vpop.eup %5201  ;;  %v4707_v41 = vor.u32 %v5030_v6, %v4704_v10  ;;  %v4622_v6 = vld [vmem:[%s7814_s4 + $0x248] sm:$0xf]  ;;  %v5012_v10 = vld [vmem:[%s7814_s4 + $0x254] sm:$0xf0]  ;;  %v5007_v33 = vld [vmem:[%s7814_s4 + $0x22c] sm:$0xf0] }
 0x53b   :  { %v6672_v30 = vadd.f32 1.0, %v5202_v56  ;;  %v4448_v56 = vld [vmem:[%s7814_s4 + $0x318] sm:$0xf0]  ;;  %v5005_v37 = vld [vmem:[%s7814_s4 + $0x224] sm:$0xf] }
 0x53c   :  { %v6680_v16 = vpop.eup %5203  ;;  %v4451_v13 = vor.u32 %v5038_v44, %v4448_v56  ;;  %2300 = vmatpush.bf16.msra.mxu2 %v4447_v9  ;;  %v4648_v56 = vld [vmem:[%s7814_s4 + $0x290] sm:$0xf0]  ;;  %v5020_v9 = vld [vmem:[%s7814_s4 + $0x294] sm:$0xf0]  ;;  %v5010_v57 = vld [vmem:[%s7814_s4 + $0x24c] sm:$0xf] }
 0x53d   :  { %v6691_v60 = vpop.eup %5205  ;;  %v1797_v35 = vmul.f32 %v6680_v16, %v6637_v2  ;;  %5207 = vrcp.f32 %v6672_v30  ;;  %vm1802_vm9 = vweird.f32 %v6680_v16  ;;  %v1808_v2 = vor.u32 1.1754944e-38, %v1807_v7 }
 0x53e   :  { %v1812_v43 = vmul.f32 %v6691_v60, %v6639_v8  ;;  %5209 = vtanh.f32 %v1783_v24  ;;  %vm1817_vm10 = vweird.f32 %v6691_v60  ;;  %vm1803_vm13 = vmor %vm1801_vm12, %vm1802_vm9  ;;  %v4443_v24 = vor.u32 %v5037_v12, %v4440_v18  ;;  %2329 = vmatpush.bf16.msra.mxu3 %v4451_v13  ;;  %v5026_v12 = vld [vmem:[%s7814_s4 + $0x2cc] sm:$0xf]  ;;  %v4688_v18 = vld [vmem:[%s7814_s4 + $0x2d8] sm:$0xf0] }
 0x53f   :  { %v1798_v45 = vsub.f32 1.0, %v1797_v35  ;;  %vm1818_vm14 = vmor %vm1816_vm11, %vm1817_vm10  ;;  %v1837_v34 = vand.u32 2147483648, %v6672_v30  ;;  %vm1831_vm1 = vweird.f32 %v6672_v30  ;;  %v4691_v31 = vor.u32 %v5026_v12, %v4688_v18  ;;  %v5033_v13 = vld [vmem:[%s7821_s3] sm:$0xff]  ;;  %v5003_v12 = vld [vmem:[%s7814_s4 + $0x20c] sm:$0xf0] }
 0x540   :  { %v1813_v23 = vsub.f32 1.0, %v1812_v43  ;;  %2271 = vmatpush.bf16.msra.mxu1 %v4443_v24  ;;  %v4654_v24 = vld [vmem:[%s7814_s4 + $0x288] sm:$0xf]  ;;  %v5001_v18 = vld [vmem:[%s7814_s4 + $0x204] sm:$0xf] }
 0x541   :  { %v1799_v42 = vmul.f32 %v6680_v16, %v1798_v45  ;;  %v1838_v7 = vor.u32 1.1754944e-38, %v1837_v34  ;;  %v5032_v45 = vld [vmem:[%s7814_s4 + $0x2f4] sm:$0xf0]  ;;  %v4638_v34 = vld [vmem:[%s7814_s4 + $0x268] sm:$0xf] }
 0x542   :  { %v1814_v58 = vmul.f32 %v6691_v60, %v1813_v23  ;;  %v4678_v23 = vld [vmem:[%s7814_s4 + $0x2c0] sm:$0xf]  ;;  %v4703_v28 = vor.u32 %v5032_v45, %v4702_v14  ;;  %v4616_v14 = vld [vmem:[%s7814_s4 + $0x250] sm:$0xf0] }
 0x543   :  { %v5208_v25 = vpop.eup %5207  ;;  %v1800_v26 = vadd.f32 %v6680_v16, %v1799_v42  ;;  %v4686_v42 = vld [vmem:[%s7814_s4 + $0x2c8] sm:$0xf]  ;;  %v4679_v48 = vor.u32 %v5027_v32, %v4678_v23  ;;  %v4598_v32 = vld [vmem:[%s7814_s4 + $0x220] sm:$0xf] }
 0x544   :  { %v5210_v51 = vpop.eup %5209  ;;  %v1827_v8 = vmul.f32 %v5208_v25, %v6672_v30  ;;  %v1815_v17 = vadd.f32 %v6691_v60, %v1814_v58  ;;  %vm1832_vm0 = vweird.f32 %v5208_v25  ;;  %v5021_v58 = vld [vmem:[%s7814_s4 + $0x2a4] sm:$0xf]  ;;  %v4687_v62 = vor.u32 %v5028_v46, %v4686_v42  ;;  %v4600_v42 = vld [vmem:[%s7814_s4 + $0x230] sm:$0xf0]  ;;  %v4606_v46 = vld [vmem:[%s7814_s4 + $0x228] sm:$0xf] }
 0x545   :  { %v1804_v50 = vsel %vm1803_vm13, %v6680_v16, %v1800_v26  ;;  %vm1833_vm2 = vmor %vm1831_vm1, %vm1832_vm0  ;;  %v5024_v26 = vld [vmem:[%s7814_s4 + $0x2b4] sm:$0xf0]  ;;  %v4667_v44 = vor.u32 %v5021_v58, %v4664_v3  ;;  %v4624_v58 = vld [vmem:[%s7814_s4 + $0x258] sm:$0xf0] }
 0x546   :  { %v1828_v5 = vsub.f32 1.0, %v1827_v8  ;;  %v1809_v52 = vsel %vm6719_vm8, %v1808_v2, %v1804_v50  ;;  %v1819_v40 = vsel %vm1818_vm14, %v6691_v60, %v1815_v17  ;;  %v1835_v60 = vand.u32 2147483647, %v6672_v30  ;;  %v4696_v30 = vld [vmem:[%s7814_s4 + $0x2f0] sm:$0xf0] }
 0x547   :  { %v1824_v1 = vsel %vm1821_vm15, %v1823_v27, %v1819_v40  ;;  %v1843_v0 = vmul.f32 %v5210_v51, %v1809_v52  ;;  %v4699_v19 = vor.u32 %v5029_v21, %v4696_v30  ;;  %v4646_v51 = vld [vmem:[%s7814_s4 + $0x280] sm:$0xf]  ;;  %v4672_v27 = vld [vmem:[%s7814_s4 + $0x2b8] sm:$0xf0]  ;;  %v5019_v2 = vld [vmem:[%s7814_s4 + $0x28c] sm:$0xf0]  ;;  %v4655_v40 = vor.u32 %v5020_v9, %v4654_v24 }
 0x548   :  { %v1829_v49 = vmul.f32 %v5208_v25, %v1828_v5  ;;  %v1842_v47 = vmul.f32 %v1824_v1, %v6535_v20  ;;  %vm1836_vm3 = vcmp.eq.f32.partialorder %v1835_v60, 8.507059e+37  ;;  %v4694_v20 = vld [vmem:[%s7814_s4 + $0x2e0] sm:$0xf]  ;;  %v5017_v17 = vld [vmem:[%s7814_s4 + $0x284] sm:$0xf]  ;;  %v4675_v50 = vor.u32 %v5022_v38, %v4672_v27 }
 0x549   :  { %v4695_v15 = vor.u32 %v5031_v55, %v4694_v20  ;;  %v4647_v5 = vor.u32 %v5019_v2, %v4646_v51  ;;  %v4651_v52 = vor.u32 %v5017_v17, %v4648_v56  ;;  %v4630_v1 = vld [vmem:[%s7814_s4 + $0x260] sm:$0xf]  ;;  %v5016_v60 = vld [vmem:[%s7814_s4 + $0x274] sm:$0xf0]  ;;  %v5018_v20 = vld [vmem:[%s7814_s4 + $0x28c] sm:$0xf]  ;;  %v4627_v3 = vor.u32 %v5010_v57, %v4624_v58 }
 0x54a   :  { %v6777_v16 = vadd.f32 %v1843_v0, %v1842_v47  ;;  %v1830_v29 = vadd.f32 %v5208_v25, %v1829_v49  ;;  %v5015_v0 = vld [vmem:[%s7814_s4 + $0x26c] sm:$0xf0]  ;;  %v5013_v49 = vld [vmem:[%s7814_s4 + $0x264] sm:$0xf]  ;;  %v4656_v55 = vld [vmem:[%s7814_s4 + $0x298] sm:$0xf0] }
 0x54b   :  { %v4631_v47 = vor.u32 %v5015_v0, %v4630_v1  ;;  %v5011_v21 = vld [vmem:[%s7814_s4 + $0x24c] sm:$0xf0]  ;;  %v5009_v30 = vld [vmem:[%s7814_s4 + $0x244] sm:$0xf]  ;;  %v5006_v38 = vld [vmem:[%s7814_s4 + $0x22c] sm:$0xf] }
 0x54c   :  { %5211 = vtanh.f32 %v6777_v16  ;;  %v1834_v35 = vsel %vm1833_vm2, %v5208_v25, %v1830_v29  ;;  %v4670_v25 = vld [vmem:[%s7814_s4 + $0x2a8] sm:$0xf]  ;;  %v4632_v29 = vld [vmem:[%s7814_s4 + $0x270] sm:$0xf0]  ;;  %v4619_v45 = vor.u32 %v5009_v30, %v4616_v14  ;;  %v5004_v27 = vld [vmem:[%s7814_s4 + $0x214] sm:$0xf0] }
 0x54d   :  { %v1839_v43 = vsel %vm1836_vm3, %v1838_v7, %v1834_v35  ;;  %v4671_v8 = vor.u32 %v5024_v26, %v4670_v25  ;;  %v4635_v35 = vor.u32 %v5013_v49, %v4632_v29  ;;  %v4639_v7 = vor.u32 %v5016_v60, %v4638_v34  ;;  %v4584_v25 = vld [vmem:[%s7814_s4 + $0x210] sm:$0xf0]  ;;  %v5002_v2 = vld [vmem:[%s7814_s4 + $0x20c] sm:$0xf]  ;;  %v4592_v17 = vld [vmem:[%s7814_s4 + $0x218] sm:$0xf0] }
 0x54e   :  { %v4595_v56 = vor.u32 %v5002_v2, %v4592_v17  ;;  %v4855_v24 = vld [vmem:[%s7816_s5 + $0x1e0] sm:$0xf]  ;;  %v5099_v9 = vld [vmem:[%s7816_s5 + $0x1ec] sm:$0xf0]  ;;  %v5100_v1 = vld [vmem:[%s7816_s5 + $0x1f4] sm:$0xf0] }
 0x54f   :  { %v5095_v29 = vld [vmem:[%s7816_s5 + $0x1cc] sm:$0xf0]  ;;  %v5093_v34 = vld [vmem:[%s7816_s5 + $0x1c4] sm:$0xf]  ;;  %v5036_v14 = vld [vmem:[%s7821_s3 + $0x18] sm:$0xff] }
 0x550   :  { %v4815_v57 = vld [vmem:[%s7816_s5 + $0x188] sm:$0xf]  ;;  %v5088_v58 = vld [vmem:[%s7816_s5 + $0x194] sm:$0xf0]  ;;  %v5086_v17 = vld [vmem:[%s7816_s5 + $0x18c] sm:$0xf] }
 0x552   :  { %v5212_v61 = vpop.eup %5211 }
 0x553   :  { %v1846_v22 = vmul.f32 %v5212_v61, %v1839_v43  ;;  %v4614_v61 = vld [vmem:[%s7814_s4 + $0x240] sm:$0xf]  ;;  %v4659_v43 = vor.u32 %v5018_v20, %v4656_v55  ;;  %v5096_v20 = vld [vmem:[%s7816_s5 + $0x1d4] sm:$0xf0] }
 0x555   :  { %v1847_v11 = vpack.c.bf16 %v1846_v22, %v1846_v22  ;;  %v4615_v22 = vor.u32 %v5011_v21, %v4614_v61  ;;  %v4865_v21 = vld [vmem:[%s7816_s5 + $0x1f8] sm:$0xf0] }
 0x557   :  { %1856 = vmatmul.bf16.vlgmr.msrb.gmra.mxu0 %v1847_v11  ;;  %1869 = vmatmul.bf16.vlgmr.msrb.gmra.mxu1 %v1847_v11 }
 0x558   :  { %1882 = vmatmul.bf16.vlgmr.msrb.gmra.mxu2 %v1847_v11  ;;  %1895 = vmatmul.bf16.vlgmr.msrb.gmra.mxu3 %v1847_v11  ;;  %v5014_v11 = vld [vmem:[%s7814_s4 + $0x26c] sm:$0xf] }
 0x559   :  { %2535 = vmatpush.bf16.msrb.mxu0 %v4695_v15  ;;  %2564 = vmatpush.bf16.msrb.mxu1 %v4699_v19  ;;  %v4623_v15 = vor.u32 %v5012_v10, %v4622_v6  ;;  %v4640_v19 = vld [vmem:[%s7814_s4 + $0x278] sm:$0xf0]  ;;  %v5089_v6 = vld [vmem:[%s7816_s5 + $0x1a4] sm:$0xf] }
 0x55a   :  { %2593 = vmatpush.bf16.msrb.mxu2 %v4703_v28  ;;  %2622 = vmatpush.bf16.msrb.mxu3 %v4707_v41  ;;  %v4643_v23 = vor.u32 %v5014_v11, %v4640_v19  ;;  %v5034_v28 = vld [vmem:[%s7821_s3 + $0x8] sm:$0xff]  ;;  %v4599_v41 = vor.u32 %v5007_v33, %v4598_v32  ;;  %v4825_v11 = vld [vmem:[%s7816_s5 + $0x1b0] sm:$0xf0]  ;;  %v5092_v19 = vld [vmem:[%s7816_s5 + $0x1b4] sm:$0xf0] }
 0x55b   :  { %v5094_v32 = vld [vmem:[%s7816_s5 + $0x1cc] sm:$0xf]  ;;  %v4849_v33 = vld [vmem:[%s7816_s5 + $0x1d8] sm:$0xf0] }
 0x55d   :  { %2536 = vmatpush.bf16.msrb.mxu0 %v4679_v48  ;;  %2565 = vmatpush.bf16.msrb.mxu1 %v4683_v63  ;;  %v5008_v48 = vld [vmem:[%s7814_s4 + $0x234] sm:$0xf0]  ;;  %v4603_v63 = vor.u32 %v5005_v37, %v4600_v42  ;;  %v4807_v37 = vld [vmem:[%s7816_s5 + $0x180] sm:$0xf]  ;;  %v5087_v42 = vld [vmem:[%s7816_s5 + $0x18c] sm:$0xf0] }
 0x55e   :  { %2594 = vmatpush.bf16.msrb.mxu2 %v4687_v62  ;;  %2623 = vmatpush.bf16.msrb.mxu3 %v4691_v31  ;;  %v4607_v53 = vor.u32 %v5008_v48, %v4606_v46  ;;  %v4582_v62 = vld [vmem:[%s7814_s4 + $0x200] sm:$0xf]  ;;  %v4587_v31 = vor.u32 %v5001_v18, %v4584_v25  ;;  %v5085_v46 = vld [vmem:[%s7816_s5 + $0x184] sm:$0xf]  ;;  %v4809_v48 = vld [vmem:[%s7816_s5 + $0x190] sm:$0xf0] }
 0x55f   :  { %v4583_v26 = vor.u32 %v5003_v12, %v4582_v62  ;;  %v5090_v62 = vld [vmem:[%s7816_s5 + $0x1ac] sm:$0xf]  ;;  %v4833_v12 = vld [vmem:[%s7816_s5 + $0x1b8] sm:$0xf0]  ;;  %v4997_v25 = vld [vmem:[%s7822_s2] sm:$0xff] }
 0x560   :  { %v7116_v18 = vor.u32 %v5090_v62, %v4833_v12  ;;  %v4743_v62 = vld [vmem:[%s7816_s5 + $0x100] sm:$0xf]  ;;  %v5071_v12 = vld [vmem:[%s7816_s5 + $0x10c] sm:$0xf0] }
 0x561   :  { %2537 = vmatpush.bf16.msrb.mxu0 %v4663_v39  ;;  %2566 = vmatpush.bf16.msrb.mxu1 %v4667_v44  ;;  %v4608_v39 = vld [vmem:[%s7814_s4 + $0x238] sm:$0xf0]  ;;  %v4590_v44 = vld [vmem:[%s7814_s4 + $0x208] sm:$0xf] }
 0x562   :  { %2595 = vmatpush.bf16.msrb.mxu2 %v4671_v8  ;;  %2624 = vmatpush.bf16.msrb.mxu3 %v4675_v50  ;;  %v4611_v51 = vor.u32 %v5006_v38, %v4608_v39  ;;  %v4591_v8 = vor.u32 %v5004_v27, %v4590_v44  ;;  %v5035_v50 = vld [vmem:[%s7821_s3 + $0x10] sm:$0xff]  ;;  %v5081_v38 = vld [vmem:[%s7816_s5 + $0x164] sm:$0xf]  ;;  %v5084_v27 = vld [vmem:[%s7816_s5 + $0x174] sm:$0xf0] }
 0x563   :  { %v4793_v44 = vld [vmem:[%s7816_s5 + $0x170] sm:$0xf0] }
 0x565   :  { %2538 = vmatpush.bf16.msrb.mxu0 %v4647_v5  ;;  %2567 = vmatpush.bf16.msrb.mxu1 %v4651_v52  ;;  %v5097_v5 = vld [vmem:[%s7816_s5 + $0x1e4] sm:$0xf]  ;;  %v6993_v52 = vor.u32 %v5099_v9, %v4855_v24  ;;  %v5079_v9 = vld [vmem:[%s7816_s5 + $0x14c] sm:$0xf0] }
 0x566   :  { %2596 = vmatpush.bf16.msrb.mxu2 %v4655_v40  ;;  %2625 = vmatpush.bf16.msrb.mxu3 %v4659_v43  ;;  %v4857_v40 = vld [vmem:[%s7816_s5 + $0x1f0] sm:$0xf0]  ;;  %v5098_v43 = vld [vmem:[%s7816_s5 + $0x1ec] sm:$0xf] }
 0x567   :  { %2243 = vmatmul.bf16.vlgmr.msra.gmra.mxu0 %v5033_v13  ;;  %2272 = vmatmul.bf16.vlgmr.msra.gmra.mxu1 %v5033_v13  ;;  %v7004_v0 = vor.u32 %v5097_v5, %v4857_v40  ;;  %v7041_v30 = vor.u32 %v5098_v43, %v4865_v21  ;;  %v5077_v5 = vld [vmem:[%s7816_s5 + $0x144] sm:$0xf]  ;;  %v4777_v40 = vld [vmem:[%s7816_s5 + $0x150] sm:$0xf0]  ;;  %v5078_v21 = vld [vmem:[%s7816_s5 + $0x14c] sm:$0xf] }
 0x568   :  { %2301 = vmatmul.bf16.vlgmr.msra.gmra.mxu2 %v5033_v13  ;;  %2330 = vmatmul.bf16.vlgmr.msra.gmra.mxu3 %v5033_v13  ;;  %v4863_v13 = vld [vmem:[%s7816_s5 + $0x1e8] sm:$0xf] }
 0x569   :  { %2539 = vmatpush.bf16.msrb.mxu0 %v4631_v47  ;;  %2568 = vmatpush.bf16.msrb.mxu1 %v4635_v35  ;;  %v7006_v49 = vor.u32 %v5100_v1, %v4863_v13  ;;  %v4839_v47 = vld [vmem:[%s7816_s5 + $0x1c0] sm:$0xf]  ;;  %v4841_v35 = vld [vmem:[%s7816_s5 + $0x1d0] sm:$0xf0]  ;;  %v7174_v1 = vor.u32 %v5077_v5, %v4777_v40  ;;  %v7956_v5 = vld [vmem:[#allocation41_spill] sm:$0xff] }
 0x56a   :  { %2597 = vmatpush.bf16.msrb.mxu2 %v4639_v7  ;;  %2626 = vmatpush.bf16.msrb.mxu3 %v4643_v23  ;;  %v7018_v60 = vor.u32 %v5095_v29, %v4839_v47  ;;  %v4847_v7 = vld [vmem:[%s7816_s5 + $0x1c8] sm:$0xf]  ;;  %v7031_v55 = vor.u32 %v5093_v34, %v4841_v35  ;;  %v7070_v23 = vor.u32 %v5089_v6, %v4825_v11  ;;  %v5082_v29 = vld [vmem:[%s7816_s5 + $0x16c] sm:$0xf]  ;;  %v4801_v34 = vld [vmem:[%s7816_s5 + $0x178] sm:$0xf0] }
 0x56b   :  { %v7033_v61 = vor.u32 %v5096_v20, %v4847_v7  ;;  %7943 = vst [vmem:[#allocation22_spill] sm:$0xff] %v7174_v1  ;;  %v4998_v47 = vld [vmem:[%s7822_s2 + $0x8] sm:$0xff]  ;;  %v7188_v35 = vor.u32 %v5082_v29, %v4801_v34  ;;  %v5080_v20 = vld [vmem:[%s7816_s5 + $0x154] sm:$0xf0]  ;;  %v5075_v6 = vld [vmem:[%s7816_s5 + $0x12c] sm:$0xf0] }
 0x56c   :  { %v4783_v7 = vld [vmem:[%s7816_s5 + $0x148] sm:$0xf]  ;;  %v5073_v11 = vld [vmem:[%s7816_s5 + $0x124] sm:$0xf]  ;;  %v7958_v29 = vld [vmem:[#allocation42_spill] sm:$0xff] }
 0x56d   :  { %2540 = vmatpush.bf16.msrb.mxu0 %v4615_v22  ;;  %2569 = vmatpush.bf16.msrb.mxu1 %v4619_v45  ;;  %v4823_v22 = vld [vmem:[%s7816_s5 + $0x1a0] sm:$0xf]  ;;  %v5091_v45 = vld [vmem:[%s7816_s5 + $0x1ac] sm:$0xf0]  ;;  %7944 = vst [vmem:[#allocation7_spill] sm:$0xff] %v7188_v35  ;;  %v7197_v43 = vor.u32 %v5080_v20, %v4783_v7 }
 0x56e   :  { %2598 = vmatpush.bf16.msrb.mxu2 %v4623_v15  ;;  %2627 = vmatpush.bf16.msrb.mxu3 %v4627_v3  ;;  %v7059_v10 = vor.u32 %v5091_v45, %v4823_v22  ;;  %v4831_v15 = vld [vmem:[%s7816_s5 + $0x1a8] sm:$0xf]  ;;  %v7111_v3 = vor.u32 %v5088_v58, %v4815_v57  ;;  %v4759_v45 = vld [vmem:[%s7816_s5 + $0x120] sm:$0xf]  ;;  %v4999_v58 = vld [vmem:[%s7822_s2 + $0x10] sm:$0xff] }
 0x56f   :  { %7945 = vst [vmem:[#allocation23_spill] sm:$0xff] %v7197_v43 }
 0x571   :  { %2541 = vmatpush.bf16.msrb.mxu0 %v4599_v41  ;;  %2570 = vmatpush.bf16.msrb.mxu1 %v4603_v63  ;;  %v7084_v41 = vor.u32 %v5094_v32, %v4849_v33  ;;  %v7097_v63 = vor.u32 %v5087_v42, %v4807_v37  ;;  %v4767_v32 = vld [vmem:[%s7816_s5 + $0x128] sm:$0xf]  ;;  %v5076_v33 = vld [vmem:[%s7816_s5 + $0x134] sm:$0xf0] }
 0x572   :  { %2599 = vmatpush.bf16.msrb.mxu2 %v4607_v53  ;;  %2628 = vmatpush.bf16.msrb.mxu3 %v4611_v51  ;;  %v7099_v53 = vor.u32 %v5085_v46, %v4809_v48  ;;  %v4799_v51 = vld [vmem:[%s7816_s5 + $0x168] sm:$0xf]  ;;  %v7231_v42 = vor.u32 %v5076_v33, %v4767_v32  ;;  %v5074_v46 = vld [vmem:[%s7816_s5 + $0x12c] sm:$0xf]  ;;  %v4769_v48 = vld [vmem:[%s7816_s5 + $0x138] sm:$0xf0] }
 0x573   :  { %v7147_v2 = vor.u32 %v5084_v27, %v4799_v51  ;;  %v7240_v57 = vor.u32 %v5074_v46, %v4769_v48  ;;  %v7960_v32 = vld [vmem:[#allocation45_spill] sm:$0xff] }
 0x574   :  { %7949 = vst [vmem:[#allocation28_spill] sm:$0xff] %v7231_v42 }
 0x575   :  { %2542 = vmatpush.bf16.msrb.mxu0 %v4583_v26  ;;  %2571 = vmatpush.bf16.msrb.mxu1 %v4587_v31  ;;  %v4791_v26 = vld [vmem:[%s7816_s5 + $0x160] sm:$0xf]  ;;  %v5083_v31 = vld [vmem:[%s7816_s5 + $0x16c] sm:$0xf0]  ;;  %7941 = vst [vmem:[#allocation21_spill] sm:$0xff] %v7147_v2 }
 0x576   :  { %2600 = vmatpush.bf16.msrb.mxu2 %v4591_v8  ;;  %2629 = vmatpush.bf16.msrb.mxu3 %v4595_v56  ;;  %v7134_v39 = vor.u32 %v5083_v31, %v4791_v26  ;;  %v7145_v8 = vor.u32 %v5081_v38, %v4793_v44  ;;  %v4817_v56 = vld [vmem:[%s7816_s5 + $0x198] sm:$0xf0]  ;;  %7950 = vst [vmem:[#allocation29_spill] sm:$0xff] %v7240_v57  ;;  %v4745_v31 = vld [vmem:[%s7816_s5 + $0x110] sm:$0xf0] }
 0x577   :  { %2248 = vmatmul.bf16.gmra.mxu0 %v5034_v28  ;;  %2277 = vmatmul.bf16.gmra.mxu1 %v5034_v28  ;;  %v7159_v24 = vor.u32 %v5086_v17, %v4817_v56  ;;  %v7257_v26 = vor.u32 %v5071_v12, %v4743_v62  ;;  %v4751_v38 = vld [vmem:[%s7816_s5 + $0x108] sm:$0xf]  ;;  %v5072_v44 = vld [vmem:[%s7816_s5 + $0x114] sm:$0xf0]  ;;  %v5070_v17 = vld [vmem:[%s7816_s5 + $0x10c] sm:$0xf] }
 0x578   :  { %2306 = vmatmul.bf16.gmra.mxu2 %v5034_v28  ;;  %2335 = vmatmul.bf16.gmra.mxu3 %v5034_v28  ;;  %v7072_v28 = vor.u32 %v5092_v19, %v4831_v15  ;;  %7939 = vst [vmem:[#allocation4_spill] sm:$0xff] %v7134_v39  ;;  %v7218_v15 = vor.u32 %v5075_v6, %v4759_v45  ;;  %v4761_v19 = vld [vmem:[%s7816_s5 + $0x130] sm:$0xf0]  ;;  %v4753_v56 = vld [vmem:[%s7816_s5 + $0x118] sm:$0xf0] }
 0x579   :  { %2892 = vmatpush.bf16.msra.mxu0 %v6993_v52  ;;  %2905 = vmatpush.bf16.msra.mxu1 %v7004_v0  ;;  %7940 = vst [vmem:[#allocation5_spill] sm:$0xff] %v7145_v8  ;;  %v7229_v37 = vor.u32 %v5073_v11, %v4761_v19  ;;  %v7270_v27 = vor.u32 %v5072_v44, %v4751_v38  ;;  %v7959_v19 = vld [vmem:[#allocation19_spill] sm:$0xff]  ;;  %v83_v44 = vld [vmem:[%s7818_s7 + $0x8] sm:$0xff] }
 0x57a   :  { %2918 = vmatpush.bf16.msra.mxu2 %v7006_v49  ;;  %2931 = vmatpush.bf16.msra.mxu3 %v7041_v30  ;;  %7947 = vst [vmem:[#allocation24_spill] sm:$0xff] %v7218_v15  ;;  %v740_v33 = vadd.f32 %v7960_v32, %v7959_v19 }
 0x57b   :  { %7948 = vst [vmem:[#allocation25_spill] sm:$0xff] %v7229_v37 }
 0x57c   :  { %7951 = vst [vmem:[#allocation9_spill] sm:$0xff] %v7257_v26  ;;  %v811_v46 = vadd.f32 %v6243_v59, %v740_v33 }
 0x57d   :  { %2893 = vmatpush.bf16.msra.mxu0 %v7018_v60  ;;  %2906 = vmatpush.bf16.msra.mxu1 %v7031_v55  ;;  %7953 = vst [vmem:[#allocation10_spill] sm:$0xff] %v7270_v27 }
 0x57e   :  { %2919 = vmatpush.bf16.msra.mxu2 %v7033_v61  ;;  %2932 = vmatpush.bf16.msra.mxu3 %v7084_v41 }
 0x581   :  { %2894 = vmatpush.bf16.msra.mxu0 %v7059_v10  ;;  %2907 = vmatpush.bf16.msra.mxu1 %v7070_v23 }
 0x582   :  { %2920 = vmatpush.bf16.msra.mxu2 %v7072_v28  ;;  %2933 = vmatpush.bf16.msra.mxu3 %v7116_v18 }
 0x585   :  { %2895 = vmatpush.bf16.msra.mxu0 %v7097_v63  ;;  %2908 = vmatpush.bf16.msra.mxu1 %v7099_v53 }
 0x586   :  { %2921 = vmatpush.bf16.msra.mxu2 %v7111_v3  ;;  %2934 = vmatpush.bf16.msra.mxu3 %v7159_v24 }
 0x587   :  { %2253 = vmatmul.bf16.gmra.mxu0 %v5035_v50  ;;  %2282 = vmatmul.bf16.gmra.mxu1 %v5035_v50 }
 0x588   :  { %2311 = vmatmul.bf16.gmra.mxu2 %v5035_v50  ;;  %2340 = vmatmul.bf16.gmra.mxu3 %v5035_v50  ;;  %v4775_v50 = vld [vmem:[%s7816_s5 + $0x140] sm:$0xf] }
 0x589   :  { %2896 = vmatpush.bf16.msra.mxu0 %v7134_v39  ;;  %2909 = vmatpush.bf16.msra.mxu1 %v7145_v8  ;;  %v7172_v13 = vor.u32 %v5079_v9, %v4775_v50  ;;  %v7279_v50 = vor.u32 %v5070_v17, %v4753_v56  ;;  %v7955_v9 = vld [vmem:[#allocation17_spill] sm:$0xff] }
 0x58a   :  { %2922 = vmatpush.bf16.msra.mxu2 %v7147_v2  ;;  %2935 = vmatpush.bf16.msra.mxu3 %v7188_v35  ;;  %v682_v40 = vadd.f32 %v7956_v5, %v7955_v9  ;;  %v7961_v9 = vld [vmem:[#allocation20_spill] sm:$0xff]  ;;  %v7962_v5 = vld [vmem:[#allocation46_spill] sm:$0xff] }
 0x58b   :  { %7942 = vst [vmem:[#allocation6_spill] sm:$0xff] %v7172_v13 }
 0x58c   :  { %7954 = vst [vmem:[#allocation27_spill] sm:$0xff] %v7279_v50  ;;  %v809_v7 = vadd.f32 %v6231_v36, %v682_v40  ;;  %v769_v40 = vadd.f32 %v7962_v5, %v7961_v9 }
 0x58d   :  { %2897 = vmatpush.bf16.msra.mxu0 %v7172_v13  ;;  %2910 = vmatpush.bf16.msra.mxu1 %v7174_v1 }
 0x58e   :  { %2923 = vmatpush.bf16.msra.mxu2 %v7197_v43 }
 0x591   :  { %2898 = vmatpush.bf16.msra.mxu0 %v7218_v15  ;;  %2911 = vmatpush.bf16.msra.mxu1 %v7229_v37 }
 0x592   :  { %2924 = vmatpush.bf16.msra.mxu2 %v7231_v42 }
 0x595   :  { %2899 = vmatpush.bf16.msra.mxu0 %v7257_v26 }
 0x596   :  { %2925 = vmatpush.bf16.msra.mxu2 %v7270_v27 }
 0x597   :  { %2258 = vmatmul.bf16.gmra.mxu0 %v5036_v14  ;;  %2287 = vmatmul.bf16.gmra.mxu1 %v5036_v14 }
 0x598   :  { %2316 = vmatmul.bf16.gmra.mxu2 %v5036_v14  ;;  %2345 = vmatmul.bf16.gmra.mxu3 %v5036_v14  ;;  %v4785_v14 = vld [vmem:[%s7816_s5 + $0x158] sm:$0xf0] }
 0x599   :  { %v7205_v22 = vor.u32 %v5078_v21, %v4785_v14  ;;  %v5000_v21 = vld [vmem:[%s7822_s2 + $0x18] sm:$0xff] }
 0x59b   :  { %7946 = vst [vmem:[#allocation8_spill] sm:$0xff] %v7205_v22  ;;  %2936 = vmatpush.bf16.msra.mxu3 %v7205_v22 }
 0x59f   :  { %2937 = vmatpush.bf16.msra.mxu3 %v7240_v57 }
 0x5a3   :  { %2938 = vmatpush.bf16.msra.mxu3 %v7279_v50 }
 0x5a7   :  { %2543 = vmatmul.bf16.vlgmr.msrb.gmra.mxu0 %v4997_v25  ;;  %2572 = vmatmul.bf16.vlgmr.msrb.gmra.mxu1 %v4997_v25 }
 0x5a8   :  { %2601 = vmatmul.bf16.vlgmr.msrb.gmra.mxu2 %v4997_v25  ;;  %2630 = vmatmul.bf16.vlgmr.msrb.gmra.mxu3 %v4997_v25  ;;  %v5069_v25 = vld [vmem:[%s7816_s5 + $0x104] sm:$0xf] }
 0x5a9   :  { %v7268_v51 = vor.u32 %v5069_v25, %v4745_v31  ;;  %3012 = vmatpush.bf16.msrb.mxu0 %v6993_v52  ;;  %3038 = vmatpush.bf16.msrb.mxu2 %v7006_v49 }
 0x5aa   :  { %3051 = vmatpush.bf16.msrb.mxu3 %v7041_v30 }
 0x5ab   :  { %7952 = vst [vmem:[#allocation26_spill] sm:$0xff] %v7268_v51  ;;  %2912 = vmatpush.bf16.msra.mxu1 %v7268_v51 }
 0x5ad   :  { %3013 = vmatpush.bf16.msrb.mxu0 %v7018_v60  ;;  %3039 = vmatpush.bf16.msrb.mxu2 %v7033_v61 }
 0x5ae   :  { %3052 = vmatpush.bf16.msrb.mxu3 %v7084_v41 }
 0x5af   :  { %3025 = vmatpush.bf16.msrb.mxu1 %v7004_v0 }
 0x5b1   :  { %3014 = vmatpush.bf16.msrb.mxu0 %v7059_v10  ;;  %3040 = vmatpush.bf16.msrb.mxu2 %v7072_v28 }
 0x5b2   :  { %3053 = vmatpush.bf16.msrb.mxu3 %v7116_v18 }
 0x5b3   :  { %3026 = vmatpush.bf16.msrb.mxu1 %v7031_v55 }
 0x5b5   :  { %3015 = vmatpush.bf16.msrb.mxu0 %v7097_v63  ;;  %3041 = vmatpush.bf16.msrb.mxu2 %v7111_v3 }
 0x5b6   :  { %3054 = vmatpush.bf16.msrb.mxu3 %v7159_v24 }
 0x5b7   :  { %2548 = vmatmul.bf16.gmra.mxu0 %v4998_v47  ;;  %2577 = vmatmul.bf16.gmra.mxu1 %v4998_v47 }
 0x5b8   :  { %2606 = vmatmul.bf16.gmra.mxu2 %v4998_v47  ;;  %2635 = vmatmul.bf16.gmra.mxu3 %v4998_v47  ;;  %v7957_v47 = vld [vmem:[#allocation18_spill] sm:$0xff] }
 0x5b9   :  { %v711_v34 = vadd.f32 %v7958_v29, %v7957_v47  ;;  %3027 = vmatpush.bf16.msrb.mxu1 %v7070_v23  ;;  %3016 = vmatpush.bf16.msrb.mxu0 %v7134_v39  ;;  %v2731_v47 = vpack.c.bf16 %v83_v44, %v83_v44 }
 0x5ba   :  { %3042 = vmatpush.bf16.msrb.mxu2 %v7147_v2  ;;  %3055 = vmatpush.bf16.msrb.mxu3 %v7188_v35 }
 0x5bb   :  { %v810_v20 = vadd.f32 %v6233_v4, %v711_v34 }
 0x5bd   :  { %3028 = vmatpush.bf16.msrb.mxu1 %v7099_v53  ;;  %3017 = vmatpush.bf16.msrb.mxu0 %v7172_v13 }
 0x5be   :  { %3043 = vmatpush.bf16.msrb.mxu2 %v7197_v43  ;;  %3056 = vmatpush.bf16.msrb.mxu3 %v7205_v22 }
 0x5c1   :  { %3029 = vmatpush.bf16.msrb.mxu1 %v7145_v8  ;;  %3018 = vmatpush.bf16.msrb.mxu0 %v7218_v15 }
 0x5c2   :  { %3044 = vmatpush.bf16.msrb.mxu2 %v7231_v42  ;;  %3057 = vmatpush.bf16.msrb.mxu3 %v7240_v57 }
 0x5c5   :  { %3030 = vmatpush.bf16.msrb.mxu1 %v7174_v1  ;;  %3019 = vmatpush.bf16.msrb.mxu0 %v7257_v26 }
 0x5c6   :  { %3045 = vmatpush.bf16.msrb.mxu2 %v7270_v27  ;;  %3058 = vmatpush.bf16.msrb.mxu3 %v7279_v50 }
 0x5c7   :  { %2553 = vmatmul.bf16.gmra.mxu0 %v4999_v58  ;;  %2582 = vmatmul.bf16.gmra.mxu1 %v4999_v58 }
 0x5c8   :  { %2611 = vmatmul.bf16.gmra.mxu2 %v4999_v58  ;;  %2640 = vmatmul.bf16.gmra.mxu3 %v4999_v58 }
 0x5c9   :  { %3031 = vmatpush.bf16.msrb.mxu1 %v7229_v37 }
 0x5cd   :  { %3032 = vmatpush.bf16.msrb.mxu1 %v7268_v51 }
 0x5d4   :  { %v1857_v14 = vpop.f32.mrf.mxu0  ;;  %v1870_v45 = vpop.f32.mrf.mxu1 }
 0x5d5   :  { %v1900_v6 = vadd.f32 %v1857_v14, %v809_v7  ;;  %v1901_v11 = vadd.f32 %v1870_v45, %v810_v20  ;;  %v812_v14 = vadd.f32 %v6247_v54, %v769_v40 }
 0x5d7   :  { %v4353_v4 = vmul.f32 -1.442695, %v1900_v6  ;;  %v4354_v36 = vmul.f32 -1.442695, %v1901_v11  ;;  %2558 = vmatmul.bf16.gmra.mxu0 %v5000_v21  ;;  %2587 = vmatmul.bf16.gmra.mxu1 %v5000_v21 }
 0x5d8   :  { %2616 = vmatmul.bf16.gmra.mxu2 %v5000_v21  ;;  %2645 = vmatmul.bf16.gmra.mxu3 %v5000_v21 }
 0x5d9   :  { %5213 = vpow2.f32 %v4353_v4 }
 0x5da   :  { %5215 = vpow2.f32 %v4354_v36 }
 0x5db   :  { %v1883_v48 = vpop.f32.mrf.mxu2  ;;  %v1896_v58 = vpop.f32.mrf.mxu3 }
 0x5dc   :  { %v1902_v62 = vadd.f32 %v1883_v48, %v811_v46  ;;  %v1859_v12 = vpop.f32.mrf.mxu0  ;;  %v1872_v25 = vpop.f32.mrf.mxu1  ;;  %v1903_v11 = vadd.f32 %v1896_v58, %v812_v14 }
 0x5de   :  { %v4355_v31 = vmul.f32 -1.442695, %v1902_v62 }
 0x5df   :  { %v5214_v38 = vpop.eup %5213 }
 0x5e0   :  { %v5216_v59 = vpop.eup %5215  ;;  %v7320_v17 = vadd.f32 1.0, %v5214_v38  ;;  %5217 = vpow2.f32 %v4355_v31 }
 0x5e1   :  { %v7322_v56 = vadd.f32 1.0, %v5216_v59 }
 0x5e2   :  { %5219 = vrcp.f32 %v7320_v17  ;;  %v1927_v48 = vand.u32 2147483648, %v7320_v17  ;;  %v1925_v31 = vand.u32 2147483647, %v7320_v17  ;;  %vm1921_vm6 = vweird.f32 %v7320_v17 }
 0x5e3   :  { %5221 = vrcp.f32 %v7322_v56  ;;  %v1885_v29 = vpop.f32.mrf.mxu2  ;;  %v1898_v34 = vpop.f32.mrf.mxu3  ;;  %v1942_v12 = vand.u32 2147483648, %v7322_v56  ;;  %v1940_v59 = vand.u32 2147483647, %v7322_v56  ;;  %vm1936_vm7 = vweird.f32 %v7322_v56 }
 0x5e4   :  { %v7332_v7 = vpop.f32.mrf.mxu0  ;;  %v7334_v20 = vpop.f32.mrf.mxu1  ;;  %v1928_v40 = vor.u32 1.1754944e-38, %v1927_v48  ;;  %vm1926_vm10 = vcmp.eq.f32.partialorder %v1925_v31, 8.507059e+37 }
 0x5e5   :  { %v1943_v29 = vor.u32 1.1754944e-38, %v1942_v12  ;;  %vm1941_vm11 = vcmp.eq.f32.partialorder %v1940_v59, 8.507059e+37 }
 0x5e6   :  { %v5218_v21 = vpop.eup %5217 }
 0x5e7   :  { %v7341_v45 = vadd.f32 1.0, %v5218_v21  ;;  %2900 = vmatmul.bf16.vlgmr.msra.gmra.mxu0 %v2731_v47  ;;  %2913 = vmatmul.bf16.vlgmr.msra.gmra.mxu1 %v2731_v47 }
 0x5e8   :  { %v5220_v6 = vpop.eup %5219  ;;  %2926 = vmatmul.bf16.vlgmr.msra.gmra.mxu2 %v2731_v47  ;;  %2939 = vmatmul.bf16.vlgmr.msra.gmra.mxu3 %v2731_v47 }
 0x5e9   :  { %v5222_v19 = vpop.eup %5221  ;;  %v1917_v32 = vmul.f32 %v5220_v6, %v7320_v17  ;;  %5223 = vrcp.f32 %v7341_v45  ;;  %3132 = vmatpush.bf16.msra.mxu0 %v6993_v52  ;;  %3145 = vmatpush.bf16.msra.mxu1 %v7004_v0  ;;  %vm1922_vm4 = vweird.f32 %v5220_v6  ;;  %v1957_v31 = vand.u32 2147483648, %v7341_v45 }
 0x5ea   :  { %v1932_v54 = vmul.f32 %v5222_v19, %v7322_v56  ;;  %3158 = vmatpush.bf16.msra.mxu2 %v7006_v49  ;;  %5225 = vtanh.f32 %v1903_v11  ;;  %3171 = vmatpush.bf16.msra.mxu3 %v7041_v30  ;;  %vm1937_vm5 = vweird.f32 %v5222_v19  ;;  %vm1923_vm8 = vmor %vm1921_vm6, %vm1922_vm4  ;;  %vm1951_vm13 = vweird.f32 %v7341_v45 }
 0x5eb   :  { %v1918_v33 = vsub.f32 1.0, %v1917_v32  ;;  %v7350_v4 = vpop.f32.mrf.mxu2  ;;  %v7352_v36 = vpop.f32.mrf.mxu3  ;;  %vm1938_vm9 = vmor %vm1936_vm7, %vm1937_vm5 }
 0x5ec   :  { %v1933_v46 = vsub.f32 1.0, %v1932_v54  ;;  %v7357_v58 = vpop.f32.mrf.mxu0  ;;  %v7359_v62 = vpop.f32.mrf.mxu1 }
 0x5ed   :  { %v1919_v25 = vmul.f32 %v5220_v6, %v1918_v33  ;;  %3133 = vmatpush.bf16.msra.mxu0 %v7018_v60  ;;  %3146 = vmatpush.bf16.msra.mxu1 %v7031_v55 }
 0x5ee   :  { %v1934_v38 = vmul.f32 %v5222_v19, %v1933_v46  ;;  %3159 = vmatpush.bf16.msra.mxu2 %v7033_v61  ;;  %3172 = vmatpush.bf16.msra.mxu3 %v7084_v41 }
 0x5ef   :  { %v5224_v44 = vpop.eup %5223  ;;  %v1920_v9 = vadd.f32 %v5220_v6, %v1919_v25 }
 0x5f0   :  { %v1947_v5 = vmul.f32 %v5224_v44, %v7341_v45  ;;  %v1935_v47 = vadd.f32 %v5222_v19, %v1934_v38  ;;  %v5226_v21 = vpop.eup %5225  ;;  %vm1952_vm12 = vweird.f32 %v5224_v44 }
 0x5f1   :  { %v1924_v34 = vsel %vm1923_vm8, %v5220_v6, %v1920_v9  ;;  %3134 = vmatpush.bf16.msra.mxu0 %v7059_v10  ;;  %3147 = vmatpush.bf16.msra.mxu1 %v7070_v23  ;;  %vm1953_vm14 = vmor %vm1951_vm13, %vm1952_vm12 }
 0x5f2   :  { %v1948_v14 = vsub.f32 1.0, %v1947_v5  ;;  %v1929_v17 = vsel %vm1926_vm10, %v1928_v40, %v1924_v34  ;;  %v1939_v11 = vsel %vm1938_vm9, %v5222_v19, %v1935_v47  ;;  %3160 = vmatpush.bf16.msra.mxu2 %v7072_v28  ;;  %3173 = vmatpush.bf16.msra.mxu3 %v7116_v18  ;;  %v1958_v5 = vor.u32 1.1754944e-38, %v1957_v31 }
 0x5f3   :  { %v1944_v32 = vsel %vm1941_vm11, %v1943_v29, %v1939_v11  ;;  %v1963_v56 = vmul.f32 %v5226_v21, %v1929_v17  ;;  %v7373_v54 = vpop.f32.mrf.mxu2  ;;  %v7375_v33 = vpop.f32.mrf.mxu3 }
 0x5f4   :  { %v1949_v46 = vmul.f32 %v5224_v44, %v1948_v14  ;;  %v1962_v6 = vmul.f32 %v1944_v32, %v6777_v16  ;;  %v7380_v48 = vpop.f32.mrf.mxu0  ;;  %v7382_v12 = vpop.f32.mrf.mxu1  ;;  %v1955_v16 = vand.u32 2147483647, %v7341_v45 }
 0x5f5   :  { %3135 = vmatpush.bf16.msra.mxu0 %v7097_v63  ;;  %3148 = vmatpush.bf16.msra.mxu1 %v7099_v53 }
 0x5f6   :  { %v1964_v19 = vadd.f32 %v1963_v56, %v1962_v6  ;;  %v1950_v25 = vadd.f32 %v5224_v44, %v1949_v46  ;;  %3161 = vmatpush.bf16.msra.mxu2 %v7111_v3  ;;  %3174 = vmatpush.bf16.msra.mxu3 %v7159_v24  ;;  %vm1956_vm15 = vcmp.eq.f32.partialorder %v1955_v16, 8.507059e+37 }
 0x5f8   :  { %5227 = vtanh.f32 %v1964_v19  ;;  %3862 = vst [vmem:[%s7823_s10] sm:$0xff] %v1964_v19  ;;  %v1954_v38 = vsel %vm1953_vm14, %v5224_v44, %v1950_v25 }
 0x5f9   :  { %3136 = vmatpush.bf16.msra.mxu0 %v7134_v39  ;;  %3149 = vmatpush.bf16.msra.mxu1 %v7145_v8  ;;  %v1959_v29 = vsel %vm1956_vm15, %v1958_v5, %v1954_v38 }
 0x5fa   :  { %3162 = vmatpush.bf16.msra.mxu2 %v7147_v2  ;;  %3175 = vmatpush.bf16.msra.mxu3 %v7188_v35 }
 0x5fb   :  { %v7396_v59 = vpop.f32.mrf.mxu2  ;;  %v7398_v9 = vpop.f32.mrf.mxu3 }
 0x5fc   :  { %v7402_v40 = vpop.f32.mrf.mxu0  ;;  %v7404_v47 = vpop.f32.mrf.mxu1 }
 0x5fd   :  { %3137 = vmatpush.bf16.msra.mxu0 %v7172_v13  ;;  %3150 = vmatpush.bf16.msra.mxu1 %v7174_v1 }
 0x5fe   :  { %v5228_v45 = vpop.eup %5227  ;;  %3163 = vmatpush.bf16.msra.mxu2 %v7197_v43  ;;  %3176 = vmatpush.bf16.msra.mxu3 %v7205_v22 }
 0x5ff   :  { %v1966_v44 = vmul.f32 %v5228_v45, %v1959_v29  ;;  %v4708_v29 = vld [vmem:[%s7819_s6 + $0x4] sm:$0xf] }
 0x600   :  { %v7473_v43 = vperm.slane %v4708_v29, 2  ;;  %v7475_v1 = vperm.slane %v4708_v29, 3 }
 0x601   :  { %3858 = vst [vmem:[%s7824_s9] sm:$0xff] %v1966_v44  ;;  %3138 = vmatpush.bf16.msra.mxu0 %v7218_v15  ;;  %3151 = vmatpush.bf16.msra.mxu1 %v7229_v37 }
 0x602   :  { %3164 = vmatpush.bf16.msra.mxu2 %v7231_v42  ;;  %3177 = vmatpush.bf16.msra.mxu3 %v7240_v57 }
 0x603   :  { %v7415_v34 = vpop.f32.mrf.mxu2  ;;  %v7417_v21 = vpop.f32.mrf.mxu3 }
 0x604   :  { %v7421_v14 = vpop.f32.mrf.mxu0  ;;  %v7423_v17 = vpop.f32.mrf.mxu1 }
 0x605   :  { %3139 = vmatpush.bf16.msra.mxu0 %v7257_v26  ;;  %3152 = vmatpush.bf16.msra.mxu1 %v7268_v51  ;;  %v7463_v51 = vperm.slane %v4708_v29, 1 }
 0x606   :  { %3165 = vmatpush.bf16.msra.mxu2 %v7270_v27  ;;  %3178 = vmatpush.bf16.msra.mxu3 %v7279_v50  ;;  %v7461_v27 = vperm.slane %v4708_v29, 0 }
 0x60b   :  { %v7430_v11 = vpop.f32.mrf.mxu2  ;;  %v7432_v32 = vpop.f32.mrf.mxu3 }
 0x60c   :  { %v7434_v56 = vpop.f32.mrf.mxu0  ;;  %v7436_v46 = vpop.f32.mrf.mxu1 }
 0x613   :  { %v7438_v6 = vpop.f32.mrf.mxu2  ;;  %v7440_v19 = vpop.f32.mrf.mxu3 }
 0x614   :  { %v7442_v25 = vpop.f32.mrf.mxu0  ;;  %v7444_v31 = vpop.f32.mrf.mxu1 }
 0x61b   :  { %v7446_v16 = vpop.f32.mrf.mxu2  ;;  %v7448_v38 = vpop.f32.mrf.mxu3 }
 0x61c   :  { %v7450_v5 = vpop.f32.mrf.mxu0  ;;  %v7452_v45 = vpop.f32.mrf.mxu1 }
 0x623   :  { %v7457_v44 = vpop.f32.mrf.mxu2  ;;  %v7459_v50 = vpop.f32.mrf.mxu3 }
 0x624   :  { %v2544_v26 = vpop.f32.mrf.mxu0  ;;  %v2573_v57 = vpop.f32.mrf.mxu1 }
 0x625   :  { %v2545_v42 = vadd.f32 %v2544_v26, %v7332_v7  ;;  %v2574_v37 = vadd.f32 %v2573_v57, %v7334_v20 }
 0x627   :  { %v7468_v15 = vadd.f32 %v7461_v27, %v2545_v42  ;;  %v7471_v22 = vadd.f32 %v7463_v51, %v2574_v37 }
 0x629   :  { %7963 = vst [vmem:[#allocation11_spill] sm:$0xff] %v7468_v15 }
 0x62a   :  { %7964 = vst [vmem:[#allocation12_spill] sm:$0xff] %v7471_v22 }
 0x62b   :  { %v2602_v13 = vpop.f32.mrf.mxu2  ;;  %v2631_v35 = vpop.f32.mrf.mxu3 }
 0x62c   :  { %v2603_v2 = vadd.f32 %v2602_v13, %v7350_v4  ;;  %v2632_v8 = vadd.f32 %v2631_v35, %v7352_v36  ;;  %v2546_v39 = vpop.f32.mrf.mxu0  ;;  %v2575_v26 = vpop.f32.mrf.mxu1 }
 0x62d   :  { %v2547_v57 = vadd.f32 %v2546_v39, %v7357_v58  ;;  %v2576_v42 = vadd.f32 %v2575_v26, %v7359_v62 }
 0x62e   :  { %v7482_v7 = vadd.f32 %v7473_v43, %v2603_v2  ;;  %v7485_v37 = vadd.f32 %v7475_v1, %v2632_v8 }
 0x62f   :  { %v7488_v20 = vadd.f32 %v7461_v27, %v2547_v57  ;;  %v7491_v29 = vadd.f32 %v7463_v51, %v2576_v42 }
 0x630   :  { %7965 = vst [vmem:[#allocation30_spill] sm:$0xff] %v7482_v7 }
 0x631   :  { %7966 = vst [vmem:[#allocation31_spill] sm:$0xff] %v7485_v37 }
 0x632   :  { %7967 = vst [vmem:[#allocation32_spill] sm:$0xff] %v7488_v20 }
 0x633   :  { %7968 = vst [vmem:[#allocation35_spill] sm:$0xff] %v7491_v29  ;;  %v2604_v13 = vpop.f32.mrf.mxu2  ;;  %v2633_v35 = vpop.f32.mrf.mxu3 }
 0x634   :  { %v2605_v4 = vadd.f32 %v2604_v13, %v7373_v54  ;;  %v2634_v39 = vadd.f32 %v2633_v35, %v7375_v33  ;;  %v2549_v36 = vpop.f32.mrf.mxu0  ;;  %v2578_v58 = vpop.f32.mrf.mxu1 }
 0x635   :  { %v2550_v2 = vadd.f32 %v2549_v36, %v7380_v48  ;;  %v2579_v62 = vadd.f32 %v2578_v58, %v7382_v12 }
 0x636   :  { %v7498_v8 = vadd.f32 %v7473_v43, %v2605_v4  ;;  %v7501_v26 = vadd.f32 %v7475_v1, %v2634_v39 }
 0x637   :  { %v7504_v57 = vadd.f32 %v7461_v27, %v2550_v2  ;;  %v7507_v42 = vadd.f32 %v7463_v51, %v2579_v62 }
 0x638   :  { %7969 = vst [vmem:[#allocation36_spill] sm:$0xff] %v7498_v8 }
 0x639   :  { %7970 = vst [vmem:[#allocation13_spill] sm:$0xff] %v7501_v26 }
 0x63a   :  { %7971 = vst [vmem:[#allocation33_spill] sm:$0xff] %v7504_v57 }
 0x63b   :  { %7972 = vst [vmem:[#allocation14_spill] sm:$0xff] %v7507_v42  ;;  %v2607_v54 = vpop.f32.mrf.mxu2  ;;  %v2636_v33 = vpop.f32.mrf.mxu3 }
 0x63c   :  { %v2608_v13 = vadd.f32 %v2607_v54, %v7396_v59  ;;  %v2637_v48 = vadd.f32 %v2636_v33, %v7398_v9  ;;  %v2551_v35 = vpop.f32.mrf.mxu0  ;;  %v2580_v12 = vpop.f32.mrf.mxu1 }
 0x63d   :  { %v2552_v4 = vadd.f32 %v2551_v35, %v7402_v40  ;;  %v2581_v36 = vadd.f32 %v2580_v12, %v7404_v47 }
 0x63e   :  { %v7514_v39 = vadd.f32 %v7473_v43, %v2608_v13  ;;  %v7517_v58 = vadd.f32 %v7475_v1, %v2637_v48 }
 0x63f   :  { %v7520_v2 = vadd.f32 %v7461_v27, %v2552_v4  ;;  %v7523_v62 = vadd.f32 %v7463_v51, %v2581_v36 }
 0x640   :  { %7973 = vst [vmem:[#allocation34_spill] sm:$0xff] %v7514_v39 }
 0x641   :  { %7974 = vst [vmem:[#allocation15_spill] sm:$0xff] %v7517_v58 }
 0x642   :  { %7975 = vst [vmem:[#allocation37_spill] sm:$0xff] %v7520_v2 }
 0x643   :  { %7976 = vst [vmem:[#allocation16_spill] sm:$0xff] %v7523_v62  ;;  %v2609_v59 = vpop.f32.mrf.mxu2  ;;  %v2638_v9 = vpop.f32.mrf.mxu3 }
 0x644   :  { %v2610_v54 = vadd.f32 %v2609_v59, %v7415_v34  ;;  %v2639_v40 = vadd.f32 %v2638_v9, %v7417_v21  ;;  %v2554_v33 = vpop.f32.mrf.mxu0  ;;  %v2583_v47 = vpop.f32.mrf.mxu1 }
 0x645   :  { %v2555_v13 = vadd.f32 %v2554_v33, %v7421_v14  ;;  %v2584_v35 = vadd.f32 %v2583_v47, %v7423_v17 }
 0x646   :  { %v7530_v48 = vadd.f32 %v7473_v43, %v2610_v54  ;;  %v7533_v12 = vadd.f32 %v7475_v1, %v2639_v40 }
 0x647   :  { %v7536_v4 = vadd.f32 %v7461_v27, %v2555_v13  ;;  %v7539_v36 = vadd.f32 %v7463_v51, %v2584_v35 }
 0x648   :  { %7977 = vst [vmem:[#allocation38_spill] sm:$0xff] %v7530_v48 }
 0x649   :  { %7978 = vst [vmem:[#allocation39_spill] sm:$0xff] %v7533_v12 }
 0x64b   :  { %v2612_v34 = vpop.f32.mrf.mxu2  ;;  %v2641_v21 = vpop.f32.mrf.mxu3 }
 0x64c   :  { %v2613_v59 = vadd.f32 %v2612_v34, %v7430_v11  ;;  %v2642_v14 = vadd.f32 %v2641_v21, %v7432_v32  ;;  %v2556_v9 = vpop.f32.mrf.mxu0  ;;  %v2585_v17 = vpop.f32.mrf.mxu1 }
 0x64d   :  { %v2557_v54 = vadd.f32 %v2556_v9, %v7434_v56  ;;  %v2586_v33 = vadd.f32 %v2585_v17, %v7436_v46 }
 0x64e   :  { %v7546_v40 = vadd.f32 %v7473_v43, %v2613_v59  ;;  %v7549_v47 = vadd.f32 %v7475_v1, %v2642_v14 }
 0x64f   :  { %v7552_v13 = vadd.f32 %v7461_v27, %v2557_v54  ;;  %v7555_v35 = vadd.f32 %v7463_v51, %v2586_v33 }
 0x650   :  { %7979 = vst [vmem:[#allocation40_spill] sm:$0xff] %v7546_v40 }
 0x651   :  { %7980 = vst [vmem:[#allocation43_spill] sm:$0xff] %v7549_v47 }
 0x653   :  { %v2614_v11 = vpop.f32.mrf.mxu2  ;;  %v2643_v32 = vpop.f32.mrf.mxu3 }
 0x654   :  { %v2615_v34 = vadd.f32 %v2614_v11, %v7438_v6  ;;  %v2644_v56 = vadd.f32 %v2643_v32, %v7440_v19  ;;  %v2559_v21 = vpop.f32.mrf.mxu0  ;;  %v2588_v46 = vpop.f32.mrf.mxu1 }
 0x655   :  { %v2560_v59 = vadd.f32 %v2559_v21, %v7442_v25  ;;  %v2589_v9 = vadd.f32 %v2588_v46, %v7444_v31 }
 0x656   :  { %v7562_v14 = vadd.f32 %v7473_v43, %v2615_v34  ;;  %v7565_v17 = vadd.f32 %v7475_v1, %v2644_v56 }
 0x657   :  { %v7568_v54 = vadd.f32 %v7461_v27, %v2560_v59  ;;  %v7571_v33 = vadd.f32 %v7463_v51, %v2589_v9 }
 0x65b   :  { %v2617_v6 = vpop.f32.mrf.mxu2  ;;  %v2646_v19 = vpop.f32.mrf.mxu3 }
 0x65c   :  { %v2618_v11 = vadd.f32 %v2617_v6, %v7446_v16  ;;  %v2647_v25 = vadd.f32 %v2646_v19, %v7448_v38  ;;  %v2561_v32 = vpop.f32.mrf.mxu0  ;;  %v2590_v31 = vpop.f32.mrf.mxu1 }
 0x65d   :  { %v2562_v21 = vadd.f32 %v2561_v32, %v7450_v5  ;;  %v2591_v46 = vadd.f32 %v2590_v31, %v7452_v45 }
 0x65e   :  { %v7576_v34 = vadd.f32 %v7473_v43, %v2618_v11  ;;  %v7579_v56 = vadd.f32 %v7475_v1, %v2647_v25 }
 0x65f   :  { %v2690_v37 = vadd.f32 %v7461_v27, %v2562_v21  ;;  %v2691_v16 = vadd.f32 %v7463_v51, %v2591_v46 }
 0x663   :  { %v2619_v59 = vpop.f32.mrf.mxu2  ;;  %v2648_v9 = vpop.f32.mrf.mxu3 }
 0x664   :  { %v2901_v6 = vpop.f32.mrf.mxu0  ;;  %v2914_v38 = vpop.f32.mrf.mxu1  ;;  %v2620_v11 = vadd.f32 %v2619_v59, %v7457_v44 }
 0x665   :  { %v2944_v19 = vadd.f32 %v2901_v6, %v2690_v37  ;;  %v2945_v7 = vadd.f32 %v2914_v38, %v2691_v16  ;;  %v2649_v16 = vadd.f32 %v2648_v9, %v7459_v50 }
 0x666   :  { %v2692_v5 = vadd.f32 %v7473_v43, %v2620_v11 }
 0x667   :  { %v4869_v22 = vmul.f32 -1.442695, %v2944_v19  ;;  %v4870_v15 = vmul.f32 -1.442695, %v2945_v7  ;;  %v2693_v43 = vadd.f32 %v7475_v1, %v2649_v16 }
 0x669   :  { %5229 = vpow2.f32 %v4869_v22 }
 0x66a   :  { %5231 = vpow2.f32 %v4870_v15 }
 0x66b   :  { %v2927_v25 = vpop.f32.mrf.mxu2  ;;  %v2940_v45 = vpop.f32.mrf.mxu3 }
 0x66c   :  { %v2946_v32 = vadd.f32 %v2927_v25, %v2692_v5  ;;  %v2903_v31 = vpop.f32.mrf.mxu0  ;;  %v2916_v26 = vpop.f32.mrf.mxu1  ;;  %v2947_v6 = vadd.f32 %v2940_v45, %v2693_v43 }
 0x66e   :  { %v4871_v27 = vmul.f32 -1.442695, %v2946_v32 }
 0x66f   :  { %v5230_v21 = vpop.eup %5229 }
 0x670   :  { %v5232_v51 = vpop.eup %5231  ;;  %v2957_v46 = vadd.f32 1.0, %v5230_v21  ;;  %5233 = vpow2.f32 %v4871_v27 }
 0x671   :  { %v2958_v37 = vadd.f32 1.0, %v5232_v51 }
 0x672   :  { %5235 = vrcp.f32 %v2957_v46  ;;  %v2971_v25 = vand.u32 2147483648, %v2957_v46  ;;  %v2969_v9 = vand.u32 2147483647, %v2957_v46  ;;  %vm2965_vm2 = vweird.f32 %v2957_v46 }
 0x673   :  { %5237 = vrcp.f32 %v2958_v37  ;;  %v2929_v44 = vpop.f32.mrf.mxu2  ;;  %v2942_v22 = vpop.f32.mrf.mxu3  ;;  %v2986_v32 = vand.u32 2147483648, %v2958_v37  ;;  %v2984_v27 = vand.u32 2147483647, %v2958_v37  ;;  %vm2980_vm3 = vweird.f32 %v2958_v37 }
 0x674   :  { %v2972_v51 = vor.u32 1.1754944e-38, %v2971_v25  ;;  %v87_v22 = vld [vmem:[%s7820_s8 + $0x8] sm:$0xff]  ;;  %vm2970_vm6 = vcmp.eq.f32.partialorder %v2969_v9, 8.507059e+37 }
 0x675   :  { %v2987_v44 = vor.u32 1.1754944e-38, %v2986_v32  ;;  %vm2985_vm7 = vcmp.eq.f32.partialorder %v2984_v27, 8.507059e+37 }
 0x676   :  { %v5234_v15 = vpop.eup %5233 }
 0x677   :  { %v2959_v7 = vadd.f32 1.0, %v5234_v15 }
 0x678   :  { %v5236_v59 = vpop.eup %5235 }
 0x679   :  { %v5238_v38 = vpop.eup %5237  ;;  %v2961_v26 = vmul.f32 %v5236_v59, %v2957_v46  ;;  %5239 = vrcp.f32 %v2959_v7  ;;  %vm2966_vm0 = vweird.f32 %v5236_v59  ;;  %v3001_v32 = vand.u32 2147483648, %v2959_v7 }
 0x67a   :  { %v2976_v19 = vmul.f32 %v5238_v38, %v2958_v37  ;;  %5241 = vtanh.f32 %v2947_v6  ;;  %vm2981_vm1 = vweird.f32 %v5238_v38  ;;  %vm2967_vm4 = vmor %vm2965_vm2, %vm2966_vm0  ;;  %vm2995_vm9 = vweird.f32 %v2959_v7 }
 0x67b   :  { %v2962_v11 = vsub.f32 1.0, %v2961_v26  ;;  %vm2982_vm5 = vmor %vm2980_vm3, %vm2981_vm1  ;;  %v3002_v9 = vor.u32 1.1754944e-38, %v3001_v32 }
 0x67c   :  { %v2977_v5 = vsub.f32 1.0, %v2976_v19 }
 0x67d   :  { %v2963_v50 = vmul.f32 %v5236_v59, %v2962_v11 }
 0x67e   :  { %v2978_v31 = vmul.f32 %v5238_v38, %v2977_v5 }
 0x67f   :  { %v5240_v21 = vpop.eup %5239  ;;  %v2964_v1 = vadd.f32 %v5236_v59, %v2963_v50 }
 0x680   :  { %v2991_v45 = vmul.f32 %v5240_v21, %v2959_v7  ;;  %v2979_v16 = vadd.f32 %v5238_v38, %v2978_v31  ;;  %v5242_v43 = vpop.eup %5241  ;;  %vm2996_vm8 = vweird.f32 %v5240_v21  ;;  %v2999_v31 = vand.u32 2147483647, %v2959_v7  ;;  %v7981_v7 = vld [vmem:[#allocation4_spill] sm:$0xff] }
 0x681   :  { %v2968_v15 = vsel %vm2967_vm4, %v5236_v59, %v2964_v1  ;;  %vm2997_vm10 = vmor %vm2995_vm9, %vm2996_vm8 }
 0x682   :  { %v2992_v6 = vsub.f32 1.0, %v2991_v45  ;;  %v2973_v26 = vsel %vm2970_vm6, %v2972_v51, %v2968_v15  ;;  %v2983_v19 = vsel %vm2982_vm5, %v5238_v38, %v2979_v16  ;;  %vm3000_vm11 = vcmp.eq.f32.partialorder %v2999_v31, 8.507059e+37  ;;  %v7983_v51 = vld [vmem:[#allocation21_spill] sm:$0xff]  ;;  %v7984_v16 = vld [vmem:[#allocation7_spill] sm:$0xff] }
 0x683   :  { %v2988_v11 = vsel %vm2985_vm7, %v2987_v44, %v2983_v19  ;;  %v3007_v46 = vmul.f32 %v5242_v43, %v2973_v26  ;;  %v7985_v44 = vld [vmem:[#allocation6_spill] sm:$0xff]  ;;  %v7987_v15 = vld [vmem:[#allocation23_spill] sm:$0xff]  ;;  %v7988_v43 = vld [vmem:[#allocation8_spill] sm:$0xff] }
 0x684   :  { %v2993_v37 = vmul.f32 %v5240_v21, %v2992_v6  ;;  %v3006_v5 = vmul.f32 %v2988_v11, %v87_v22  ;;  %v7986_v22 = vld [vmem:[#allocation22_spill] sm:$0xff]  ;;  %v7989_v6 = vld [vmem:[#allocation24_spill] sm:$0xff]  ;;  %v7990_v26 = vld [vmem:[#allocation25_spill] sm:$0xff] }
 0x685   :  { %v7991_v19 = vld [vmem:[#allocation28_spill] sm:$0xff]  ;;  %v7992_v11 = vld [vmem:[#allocation29_spill] sm:$0xff] }
 0x686   :  { %v7592_v50 = vadd.f32 %v3007_v46, %v3006_v5  ;;  %v2994_v25 = vadd.f32 %v5240_v21, %v2993_v37  ;;  %v7993_v46 = vld [vmem:[#allocation9_spill] sm:$0xff]  ;;  %v7994_v37 = vld [vmem:[#allocation26_spill] sm:$0xff] }
 0x687   :  { %v7995_v5 = vld [vmem:[#allocation10_spill] sm:$0xff] }
 0x688   :  { %5243 = vtanh.f32 %v7592_v50  ;;  %v2998_v59 = vsel %vm2997_vm10, %v5240_v21, %v2994_v25  ;;  %v7982_v21 = vld [vmem:[#allocation5_spill] sm:$0xff]  ;;  %v7996_v25 = vld [vmem:[#allocation27_spill] sm:$0xff] }
 0x689   :  { %v3003_v38 = vsel %vm3000_vm11, %v3002_v9, %v2998_v59 }
 0x68e   :  { %v5244_v1 = vpop.eup %5243 }
 0x68f   :  { %v3010_v27 = vmul.f32 %v5244_v1, %v3003_v38 }
 0x691   :  { %v3011_v45 = vpack.c.bf16 %v3010_v27, %v3010_v27 }
 0x693   :  { %3020 = vmatmul.bf16.vlgmr.msrb.gmra.mxu0 %v3011_v45  ;;  %3033 = vmatmul.bf16.vlgmr.msrb.gmra.mxu1 %v3011_v45 }
 0x694   :  { %3046 = vmatmul.bf16.vlgmr.msrb.gmra.mxu2 %v3011_v45  ;;  %3059 = vmatmul.bf16.vlgmr.msrb.gmra.mxu3 %v3011_v45 }
 0x695   :  { %3252 = vmatpush.bf16.msrb.mxu0 %v6993_v52  ;;  %3265 = vmatpush.bf16.msrb.mxu1 %v7004_v0 }
 0x696   :  { %3278 = vmatpush.bf16.msrb.mxu2 %v7006_v49  ;;  %3291 = vmatpush.bf16.msrb.mxu3 %v7041_v30 }
 0x699   :  { %3253 = vmatpush.bf16.msrb.mxu0 %v7018_v60  ;;  %3266 = vmatpush.bf16.msrb.mxu1 %v7031_v55 }
 0x69a   :  { %3279 = vmatpush.bf16.msrb.mxu2 %v7033_v61  ;;  %3292 = vmatpush.bf16.msrb.mxu3 %v7084_v41 }
 0x69d   :  { %3254 = vmatpush.bf16.msrb.mxu0 %v7059_v10  ;;  %3267 = vmatpush.bf16.msrb.mxu1 %v7070_v23 }
 0x69e   :  { %3280 = vmatpush.bf16.msrb.mxu2 %v7072_v28  ;;  %3293 = vmatpush.bf16.msrb.mxu3 %v7116_v18 }
 0x6a1   :  { %3255 = vmatpush.bf16.msrb.mxu0 %v7097_v63  ;;  %3268 = vmatpush.bf16.msrb.mxu1 %v7099_v53 }
 0x6a2   :  { %3281 = vmatpush.bf16.msrb.mxu2 %v7111_v3  ;;  %3294 = vmatpush.bf16.msrb.mxu3 %v7159_v24 }
 0x6a5   :  { %3256 = vmatpush.bf16.msrb.mxu0 %v7981_v7  ;;  %3269 = vmatpush.bf16.msrb.mxu1 %v7982_v21 }
 0x6a6   :  { %3282 = vmatpush.bf16.msrb.mxu2 %v7983_v51  ;;  %3295 = vmatpush.bf16.msrb.mxu3 %v7984_v16 }
 0x6a9   :  { %3257 = vmatpush.bf16.msrb.mxu0 %v7985_v44  ;;  %3270 = vmatpush.bf16.msrb.mxu1 %v7986_v22 }
 0x6aa   :  { %3283 = vmatpush.bf16.msrb.mxu2 %v7987_v15  ;;  %3296 = vmatpush.bf16.msrb.mxu3 %v7988_v43 }
 0x6ad   :  { %3258 = vmatpush.bf16.msrb.mxu0 %v7989_v6  ;;  %3271 = vmatpush.bf16.msrb.mxu1 %v7990_v26 }
 0x6ae   :  { %3284 = vmatpush.bf16.msrb.mxu2 %v7991_v19  ;;  %3297 = vmatpush.bf16.msrb.mxu3 %v7992_v11 }
 0x6b1   :  { %3259 = vmatpush.bf16.msrb.mxu0 %v7993_v46  ;;  %3272 = vmatpush.bf16.msrb.mxu1 %v7994_v37 }
 0x6b2   :  { %3285 = vmatpush.bf16.msrb.mxu2 %v7995_v5  ;;  %3298 = vmatpush.bf16.msrb.mxu3 %v7996_v25 }
 0x710   :  { %v3021_v32 = vpop.f32.mrf.mxu0  ;;  %v3034_v31 = vpop.f32.mrf.mxu1 }
 0x711   :  { %v3064_v59 = vadd.f32 %v3021_v32, %v7568_v54  ;;  %v3065_v9 = vadd.f32 %v3034_v31, %v7571_v33 }
 0x713   :  { %v4872_v1 = vmul.f32 -1.442695, %v3064_v59  ;;  %v4873_v38 = vmul.f32 -1.442695, %v3065_v9 }
 0x715   :  { %5245 = vpow2.f32 %v4872_v1 }
 0x716   :  { %5247 = vpow2.f32 %v4873_v38 }
 0x717   :  { %v3047_v27 = vpop.f32.mrf.mxu2  ;;  %v3060_v45 = vpop.f32.mrf.mxu3 }
 0x718   :  { %v3066_v8 = vadd.f32 %v3047_v27, %v7576_v34  ;;  %v3023_v29 = vpop.f32.mrf.mxu0  ;;  %v3036_v20 = vpop.f32.mrf.mxu1  ;;  %v3067_v9 = vadd.f32 %v3060_v45, %v7579_v56 }
 0x71a   :  { %v4874_v58 = vmul.f32 -1.442695, %v3066_v8 }
 0x71b   :  { %v5246_v39 = vpop.eup %5245 }
 0x71c   :  { %v5248_v42 = vpop.eup %5247  ;;  %v3077_v57 = vadd.f32 1.0, %v5246_v39  ;;  %5249 = vpow2.f32 %v4874_v58 }
 0x71d   :  { %v3078_v12 = vadd.f32 1.0, %v5248_v42 }
 0x71e   :  { %5251 = vrcp.f32 %v3077_v57  ;;  %v3091_v34 = vand.u32 2147483648, %v3077_v57  ;;  %v3089_v42 = vand.u32 2147483647, %v3077_v57  ;;  %vm3085_vm14 = vweird.f32 %v3077_v57 }
 0x71f   :  { %5253 = vrcp.f32 %v3078_v12  ;;  %v3049_v54 = vpop.f32.mrf.mxu2  ;;  %v3062_v33 = vpop.f32.mrf.mxu3  ;;  %v3106_v39 = vand.u32 2147483648, %v3078_v12  ;;  %vm3100_vm15 = vweird.f32 %v3078_v12 }
 0x720   :  { %v3104_v54 = vand.u32 2147483647, %v3078_v12  ;;  %v3092_v45 = vor.u32 1.1754944e-38, %v3091_v34  ;;  %vm3090_vm2 = vcmp.eq.f32.partialorder %v3089_v42, 8.507059e+37 }
 0x722   :  { %v5250_v32 = vpop.eup %5249  ;;  %vm3105_vm3 = vcmp.eq.f32.partialorder %v3104_v54, 8.507059e+37 }
 0x723   :  { %v3079_v31 = vadd.f32 1.0, %v5250_v32 }
 0x724   :  { %v5252_v59 = vpop.eup %5251 }
 0x725   :  { %v5254_v1 = vpop.eup %5253  ;;  %v3081_v38 = vmul.f32 %v5252_v59, %v3077_v57  ;;  %5255 = vrcp.f32 %v3079_v31  ;;  %vm3086_vm12 = vweird.f32 %v5252_v59  ;;  %v3121_v34 = vand.u32 2147483648, %v3079_v31 }
 0x726   :  { %v3096_v29 = vmul.f32 %v5254_v1, %v3078_v12  ;;  %5257 = vtanh.f32 %v3067_v9  ;;  %vm3101_vm13 = vweird.f32 %v5254_v1  ;;  %vm3087_vm0 = vmor %vm3085_vm14, %vm3086_vm12  ;;  %vm3115_vm5 = vweird.f32 %v3079_v31 }
 0x727   :  { %v3082_v20 = vsub.f32 1.0, %v3081_v38  ;;  %vm3102_vm1 = vmor %vm3100_vm15, %vm3101_vm13  ;;  %v3107_v38 = vor.u32 1.1754944e-38, %v3106_v39  ;;  %v3122_v42 = vor.u32 1.1754944e-38, %v3121_v34 }
 0x728   :  { %v3097_v8 = vsub.f32 1.0, %v3096_v29 }
 0x729   :  { %v3083_v58 = vmul.f32 %v5252_v59, %v3082_v20 }
 0x72a   :  { %v3098_v27 = vmul.f32 %v5254_v1, %v3097_v8 }
 0x72b   :  { %v5256_v33 = vpop.eup %5255  ;;  %v3084_v32 = vadd.f32 %v5252_v59, %v3083_v58 }
 0x72c   :  { %v3111_v56 = vmul.f32 %v5256_v33, %v3079_v31  ;;  %v3099_v48 = vadd.f32 %v5254_v1, %v3098_v27  ;;  %v5258_v9 = vpop.eup %5257  ;;  %vm3116_vm4 = vweird.f32 %v5256_v33 }
 0x72d   :  { %v3088_v29 = vsel %vm3087_vm0, %v5252_v59, %v3084_v32  ;;  %v3119_v59 = vand.u32 2147483647, %v3079_v31  ;;  %vm3117_vm6 = vmor %vm3115_vm5, %vm3116_vm4 }
 0x72e   :  { %v3112_v62 = vsub.f32 1.0, %v3111_v56  ;;  %v3093_v20 = vsel %vm3090_vm2, %v3092_v45, %v3088_v29  ;;  %v3103_v2 = vsel %vm3102_vm1, %v5254_v1, %v3099_v48 }
 0x72f   :  { %v3108_v8 = vsel %vm3105_vm3, %v3107_v38, %v3103_v2  ;;  %v3127_v47 = vmul.f32 %v5258_v9, %v3093_v20  ;;  %vm3120_vm7 = vcmp.eq.f32.partialorder %v3119_v59, 8.507059e+37 }
 0x730   :  { %v3113_v40 = vmul.f32 %v5256_v33, %v3112_v62  ;;  %v3126_v58 = vmul.f32 %v3108_v8, %v7592_v50 }
 0x732   :  { %v7632_v57 = vadd.f32 %v3127_v47, %v3126_v58  ;;  %v3114_v12 = vadd.f32 %v5256_v33, %v3113_v40 }
 0x734   :  { %5259 = vtanh.f32 %v7632_v57  ;;  %v3118_v39 = vsel %vm3117_vm6, %v5256_v33, %v3114_v12 }
 0x735   :  { %v3123_v1 = vsel %vm3120_vm7, %v3122_v42, %v3118_v39 }
 0x73a   :  { %v5260_v48 = vpop.eup %5259 }
 0x73b   :  { %v3130_v2 = vmul.f32 %v5260_v48, %v3123_v1 }
 0x73d   :  { %v3131_v27 = vpack.c.bf16 %v3130_v2, %v3130_v2 }
 0x73f   :  { %3140 = vmatmul.bf16.vlgmr.msra.gmra.mxu0 %v3131_v27  ;;  %3153 = vmatmul.bf16.vlgmr.msra.gmra.mxu1 %v3131_v27 }
 0x740   :  { %3166 = vmatmul.bf16.vlgmr.msra.gmra.mxu2 %v3131_v27  ;;  %3179 = vmatmul.bf16.vlgmr.msra.gmra.mxu3 %v3131_v27 }
 0x741   :  { %3372 = vmatpush.bf16.msra.mxu0 %v6993_v52  ;;  %3385 = vmatpush.bf16.msra.mxu1 %v7004_v0 }
 0x742   :  { %3398 = vmatpush.bf16.msra.mxu2 %v7006_v49  ;;  %3411 = vmatpush.bf16.msra.mxu3 %v7041_v30 }
 0x745   :  { %3373 = vmatpush.bf16.msra.mxu0 %v7018_v60  ;;  %3386 = vmatpush.bf16.msra.mxu1 %v7031_v55 }
 0x746   :  { %3399 = vmatpush.bf16.msra.mxu2 %v7033_v61  ;;  %3412 = vmatpush.bf16.msra.mxu3 %v7084_v41 }
 0x749   :  { %3374 = vmatpush.bf16.msra.mxu0 %v7059_v10  ;;  %3387 = vmatpush.bf16.msra.mxu1 %v7070_v23 }
 0x74a   :  { %3400 = vmatpush.bf16.msra.mxu2 %v7072_v28  ;;  %3413 = vmatpush.bf16.msra.mxu3 %v7116_v18 }
 0x74d   :  { %3375 = vmatpush.bf16.msra.mxu0 %v7097_v63  ;;  %3388 = vmatpush.bf16.msra.mxu1 %v7099_v53 }
 0x74e   :  { %3401 = vmatpush.bf16.msra.mxu2 %v7111_v3  ;;  %3414 = vmatpush.bf16.msra.mxu3 %v7159_v24 }
 0x751   :  { %3376 = vmatpush.bf16.msra.mxu0 %v7981_v7  ;;  %3389 = vmatpush.bf16.msra.mxu1 %v7982_v21 }
 0x752   :  { %3402 = vmatpush.bf16.msra.mxu2 %v7983_v51  ;;  %3415 = vmatpush.bf16.msra.mxu3 %v7984_v16 }
 0x755   :  { %3377 = vmatpush.bf16.msra.mxu0 %v7985_v44  ;;  %3390 = vmatpush.bf16.msra.mxu1 %v7986_v22 }
 0x756   :  { %3403 = vmatpush.bf16.msra.mxu2 %v7987_v15  ;;  %3416 = vmatpush.bf16.msra.mxu3 %v7988_v43 }
 0x759   :  { %3378 = vmatpush.bf16.msra.mxu0 %v7989_v6  ;;  %3391 = vmatpush.bf16.msra.mxu1 %v7990_v26 }
 0x75a   :  { %3404 = vmatpush.bf16.msra.mxu2 %v7991_v19  ;;  %3417 = vmatpush.bf16.msra.mxu3 %v7992_v11 }
 0x75d   :  { %3379 = vmatpush.bf16.msra.mxu0 %v7993_v46  ;;  %3392 = vmatpush.bf16.msra.mxu1 %v7994_v37 }
 0x75e   :  { %3405 = vmatpush.bf16.msra.mxu2 %v7995_v5  ;;  %3418 = vmatpush.bf16.msra.mxu3 %v7996_v25 }
 0x7bc   :  { %v3141_v62 = vpop.f32.mrf.mxu0  ;;  %v3154_v40 = vpop.f32.mrf.mxu1 }
 0x7bd   :  { %v3184_v47 = vadd.f32 %v3141_v62, %v7552_v13  ;;  %v3185_v50 = vadd.f32 %v3154_v40, %v7555_v35 }
 0x7bf   :  { %v4875_v31 = vmul.f32 -1.442695, %v3184_v47  ;;  %v4876_v54 = vmul.f32 -1.442695, %v3185_v50 }
 0x7c1   :  { %5261 = vpow2.f32 %v4875_v31 }
 0x7c2   :  { %5263 = vpow2.f32 %v4876_v54 }
 0x7c3   :  { %v3167_v33 = vpop.f32.mrf.mxu2  ;;  %v3180_v32 = vpop.f32.mrf.mxu3 }
 0x7c4   :  { %v3186_v56 = vadd.f32 %v3167_v33, %v7562_v14  ;;  %v3143_v45 = vpop.f32.mrf.mxu0  ;;  %v3156_v38 = vpop.f32.mrf.mxu1  ;;  %v3187_v39 = vadd.f32 %v3180_v32, %v7565_v17 }
 0x7c6   :  { %v4877_v29 = vmul.f32 -1.442695, %v3186_v56 }
 0x7c7   :  { %v5262_v9 = vpop.eup %5261 }
 0x7c8   :  { %v5264_v20 = vpop.eup %5263  ;;  %v3197_v8 = vadd.f32 1.0, %v5262_v9  ;;  %5265 = vpow2.f32 %v4877_v29 }
 0x7c9   :  { %v3198_v58 = vadd.f32 1.0, %v5264_v20 }
 0x7ca   :  { %5267 = vrcp.f32 %v3197_v8  ;;  %v3211_v27 = vand.u32 2147483648, %v3197_v8  ;;  %v3209_v47 = vand.u32 2147483647, %v3197_v8  ;;  %vm3205_vm10 = vweird.f32 %v3197_v8 }
 0x7cb   :  { %5269 = vrcp.f32 %v3198_v58  ;;  %v3169_v13 = vpop.f32.mrf.mxu2  ;;  %v3182_v35 = vpop.f32.mrf.mxu3  ;;  %v3226_v62 = vand.u32 2147483648, %v3198_v58  ;;  %v3224_v31 = vand.u32 2147483647, %v3198_v58  ;;  %vm3220_vm11 = vweird.f32 %v3198_v58 }
 0x7cc   :  { %v3212_v32 = vor.u32 1.1754944e-38, %v3211_v27  ;;  %vm3210_vm14 = vcmp.eq.f32.partialorder %v3209_v47, 8.507059e+37 }
 0x7cd   :  { %v3227_v45 = vor.u32 1.1754944e-38, %v3226_v62  ;;  %vm3225_vm15 = vcmp.eq.f32.partialorder %v3224_v31, 8.507059e+37 }
 0x7ce   :  { %v5266_v12 = vpop.eup %5265 }
 0x7cf   :  { %v3199_v34 = vadd.f32 1.0, %v5266_v12 }
 0x7d0   :  { %v5268_v59 = vpop.eup %5267 }
 0x7d1   :  { %v5270_v42 = vpop.eup %5269  ;;  %v3201_v48 = vmul.f32 %v5268_v59, %v3197_v8  ;;  %5271 = vrcp.f32 %v3199_v34  ;;  %vm3206_vm8 = vweird.f32 %v5268_v59  ;;  %vm3235_vm1 = vweird.f32 %v3199_v34 }
 0x7d2   :  { %v3216_v14 = vmul.f32 %v5270_v42, %v3198_v58  ;;  %5273 = vtanh.f32 %v3187_v39  ;;  %vm3221_vm9 = vweird.f32 %v5270_v42  ;;  %vm3207_vm12 = vmor %vm3205_vm10, %vm3206_vm8 }
 0x7d3   :  { %v3202_v1 = vsub.f32 1.0, %v3201_v48  ;;  %vm3222_vm13 = vmor %vm3220_vm11, %vm3221_vm9 }
 0x7d4   :  { %v3217_v2 = vsub.f32 1.0, %v3216_v14  ;;  %v3241_v14 = vand.u32 2147483648, %v3199_v34 }
 0x7d5   :  { %v3203_v40 = vmul.f32 %v5268_v59, %v3202_v1 }
 0x7d6   :  { %v3218_v50 = vmul.f32 %v5270_v42, %v3217_v2  ;;  %v3242_v2 = vor.u32 1.1754944e-38, %v3241_v14 }
 0x7d7   :  { %v5272_v54 = vpop.eup %5271  ;;  %v3204_v33 = vadd.f32 %v5268_v59, %v3203_v40 }
 0x7d8   :  { %v3231_v17 = vmul.f32 %v5272_v54, %v3199_v34  ;;  %v3219_v56 = vadd.f32 %v5270_v42, %v3218_v50  ;;  %v5274_v29 = vpop.eup %5273  ;;  %vm3236_vm0 = vweird.f32 %v5272_v54 }
 0x7d9   :  { %v3208_v38 = vsel %vm3207_vm12, %v5268_v59, %v3204_v33  ;;  %v3239_v59 = vand.u32 2147483647, %v3199_v34  ;;  %vm3237_vm2 = vmor %vm3235_vm1, %vm3236_vm0 }
 0x7da   :  { %v3232_v9 = vsub.f32 1.0, %v3231_v17  ;;  %v3213_v20 = vsel %vm3210_vm14, %v3212_v32, %v3208_v38  ;;  %v3223_v13 = vsel %vm3222_vm13, %v5270_v42, %v3219_v56  ;;  %v7997_v32 = vld [vmem:[#allocation40_spill] sm:$0xff] }
 0x7db   :  { %v3228_v35 = vsel %vm3225_vm15, %v3227_v45, %v3223_v13  ;;  %v3247_v12 = vmul.f32 %v5274_v29, %v3213_v20  ;;  %vm3240_vm3 = vcmp.eq.f32.partialorder %v3239_v59, 8.507059e+37 }
 0x7dc   :  { %v3233_v39 = vmul.f32 %v5272_v54, %v3232_v9  ;;  %v3246_v48 = vmul.f32 %v3228_v35, %v7632_v57 }
 0x7de   :  { %v7672_v8 = vadd.f32 %v3247_v12, %v3246_v48  ;;  %v3234_v58 = vadd.f32 %v5272_v54, %v3233_v39 }
 0x7e0   :  { %5275 = vtanh.f32 %v7672_v8  ;;  %v3238_v1 = vsel %vm3237_vm2, %v5272_v54, %v3234_v58  ;;  %v7998_v58 = vld [vmem:[#allocation43_spill] sm:$0xff] }
 0x7e1   :  { %v3243_v27 = vsel %vm3240_vm3, %v3242_v2, %v3238_v1 }
 0x7e6   :  { %v5276_v42 = vpop.eup %5275 }
 0x7e7   :  { %v3250_v62 = vmul.f32 %v5276_v42, %v3243_v27 }
 0x7e9   :  { %v3251_v40 = vpack.c.bf16 %v3250_v62, %v3250_v62 }
 0x7eb   :  { %3260 = vmatmul.bf16.vlgmr.msrb.gmra.mxu0 %v3251_v40  ;;  %3273 = vmatmul.bf16.vlgmr.msrb.gmra.mxu1 %v3251_v40 }
 0x7ec   :  { %3286 = vmatmul.bf16.vlgmr.msrb.gmra.mxu2 %v3251_v40  ;;  %3299 = vmatmul.bf16.vlgmr.msrb.gmra.mxu3 %v3251_v40 }
 0x7ed   :  { %3492 = vmatpush.bf16.msrb.mxu0 %v6993_v52  ;;  %3505 = vmatpush.bf16.msrb.mxu1 %v7004_v0 }
 0x7ee   :  { %3518 = vmatpush.bf16.msrb.mxu2 %v7006_v49  ;;  %3531 = vmatpush.bf16.msrb.mxu3 %v7041_v30 }
 0x7f1   :  { %3493 = vmatpush.bf16.msrb.mxu0 %v7018_v60  ;;  %3506 = vmatpush.bf16.msrb.mxu1 %v7031_v55 }
 0x7f2   :  { %3519 = vmatpush.bf16.msrb.mxu2 %v7033_v61  ;;  %3532 = vmatpush.bf16.msrb.mxu3 %v7084_v41 }
 0x7f5   :  { %3494 = vmatpush.bf16.msrb.mxu0 %v7059_v10  ;;  %3507 = vmatpush.bf16.msrb.mxu1 %v7070_v23 }
 0x7f6   :  { %3520 = vmatpush.bf16.msrb.mxu2 %v7072_v28  ;;  %3533 = vmatpush.bf16.msrb.mxu3 %v7116_v18 }
 0x7f9   :  { %3495 = vmatpush.bf16.msrb.mxu0 %v7097_v63  ;;  %3508 = vmatpush.bf16.msrb.mxu1 %v7099_v53 }
 0x7fa   :  { %3521 = vmatpush.bf16.msrb.mxu2 %v7111_v3  ;;  %3534 = vmatpush.bf16.msrb.mxu3 %v7159_v24 }
 0x7fd   :  { %3496 = vmatpush.bf16.msrb.mxu0 %v7981_v7  ;;  %3509 = vmatpush.bf16.msrb.mxu1 %v7982_v21 }
 0x7fe   :  { %3522 = vmatpush.bf16.msrb.mxu2 %v7983_v51  ;;  %3535 = vmatpush.bf16.msrb.mxu3 %v7984_v16 }
 0x801   :  { %3497 = vmatpush.bf16.msrb.mxu0 %v7985_v44  ;;  %3510 = vmatpush.bf16.msrb.mxu1 %v7986_v22 }
 0x802   :  { %3523 = vmatpush.bf16.msrb.mxu2 %v7987_v15  ;;  %3536 = vmatpush.bf16.msrb.mxu3 %v7988_v43 }
 0x805   :  { %3498 = vmatpush.bf16.msrb.mxu0 %v7989_v6  ;;  %3511 = vmatpush.bf16.msrb.mxu1 %v7990_v26 }
 0x806   :  { %3524 = vmatpush.bf16.msrb.mxu2 %v7991_v19  ;;  %3537 = vmatpush.bf16.msrb.mxu3 %v7992_v11 }
 0x809   :  { %3499 = vmatpush.bf16.msrb.mxu0 %v7993_v46  ;;  %3512 = vmatpush.bf16.msrb.mxu1 %v7994_v37 }
 0x80a   :  { %3525 = vmatpush.bf16.msrb.mxu2 %v7995_v5  ;;  %3538 = vmatpush.bf16.msrb.mxu3 %v7996_v25 }
 0x868   :  { %v3261_v57 = vpop.f32.mrf.mxu0  ;;  %v3274_v34 = vpop.f32.mrf.mxu1 }
 0x869   :  { %v3304_v47 = vadd.f32 %v3261_v57, %v7536_v4  ;;  %v3305_v50 = vadd.f32 %v3274_v34, %v7539_v36 }
 0x86b   :  { %v4878_v31 = vmul.f32 -1.442695, %v3304_v47  ;;  %v4879_v54 = vmul.f32 -1.442695, %v3305_v50 }
 0x86d   :  { %5277 = vpow2.f32 %v4878_v31 }
 0x86e   :  { %5279 = vpow2.f32 %v4879_v54 }
 0x86f   :  { %v3287_v33 = vpop.f32.mrf.mxu2  ;;  %v3300_v17 = vpop.f32.mrf.mxu3 }
 0x870   :  { %v3306_v56 = vadd.f32 %v3287_v33, %v7997_v32  ;;  %v3263_v45 = vpop.f32.mrf.mxu0  ;;  %v3276_v38 = vpop.f32.mrf.mxu1  ;;  %v3307_v14 = vadd.f32 %v3300_v17, %v7998_v58 }
 0x872   :  { %v4880_v29 = vmul.f32 -1.442695, %v3306_v56 }
 0x873   :  { %v5278_v9 = vpop.eup %5277 }
 0x874   :  { %v5280_v20 = vpop.eup %5279  ;;  %v3317_v13 = vadd.f32 1.0, %v5278_v9  ;;  %5281 = vpow2.f32 %v4880_v29 }
 0x875   :  { %v3318_v35 = vadd.f32 1.0, %v5280_v20 }
 0x876   :  { %5283 = vrcp.f32 %v3317_v13  ;;  %v3331_v62 = vand.u32 2147483648, %v3317_v13  ;;  %v3329_v34 = vand.u32 2147483647, %v3317_v13  ;;  %vm3325_vm6 = vweird.f32 %v3317_v13 }
 0x877   :  { %5285 = vrcp.f32 %v3318_v35  ;;  %v3289_v4 = vpop.f32.mrf.mxu2  ;;  %v3302_v36 = vpop.f32.mrf.mxu3  ;;  %v3346_v40 = vand.u32 2147483648, %v3318_v35  ;;  %v3344_v50 = vand.u32 2147483647, %v3318_v35  ;;  %vm3340_vm7 = vweird.f32 %v3318_v35 }
 0x878   :  { %v3332_v17 = vor.u32 1.1754944e-38, %v3331_v62  ;;  %vm3330_vm10 = vcmp.eq.f32.partialorder %v3329_v34, 8.507059e+37  ;;  %v8000_v34 = vld [vmem:[#allocation16_spill] sm:$0xff] }
 0x879   :  { %v3347_v56 = vor.u32 1.1754944e-38, %v3346_v40  ;;  %vm3345_vm11 = vcmp.eq.f32.partialorder %v3344_v50, 8.507059e+37  ;;  %v7999_v40 = vld [vmem:[#allocation37_spill] sm:$0xff] }
 0x87a   :  { %v5282_v12 = vpop.eup %5281 }
 0x87b   :  { %v3319_v39 = vadd.f32 1.0, %v5282_v12 }
 0x87c   :  { %v5284_v48 = vpop.eup %5283 }
 0x87d   :  { %v5286_v59 = vpop.eup %5285  ;;  %v3321_v1 = vmul.f32 %v5284_v48, %v3317_v13  ;;  %5287 = vrcp.f32 %v3319_v39  ;;  %vm3326_vm4 = vweird.f32 %v5284_v48  ;;  %vm3355_vm13 = vweird.f32 %v3319_v39 }
 0x87e   :  { %v3336_v2 = vmul.f32 %v5286_v59, %v3318_v35  ;;  %5289 = vtanh.f32 %v3307_v14  ;;  %vm3341_vm5 = vweird.f32 %v5286_v59  ;;  %vm3327_vm8 = vmor %vm3325_vm6, %vm3326_vm4  ;;  %v3361_v14 = vand.u32 2147483648, %v3319_v39 }
 0x87f   :  { %v3322_v42 = vsub.f32 1.0, %v3321_v1  ;;  %vm3342_vm9 = vmor %vm3340_vm7, %vm3341_vm5 }
 0x880   :  { %v3337_v27 = vsub.f32 1.0, %v3336_v2  ;;  %v3362_v2 = vor.u32 1.1754944e-38, %v3361_v14 }
 0x881   :  { %v3323_v57 = vmul.f32 %v5284_v48, %v3322_v42 }
 0x882   :  { %v3338_v47 = vmul.f32 %v5286_v59, %v3337_v27 }
 0x883   :  { %v5288_v31 = vpop.eup %5287  ;;  %v3324_v54 = vadd.f32 %v5284_v48, %v3323_v57 }
 0x884   :  { %v3351_v33 = vmul.f32 %v5288_v31, %v3319_v39  ;;  %v3339_v32 = vadd.f32 %v5286_v59, %v3338_v47  ;;  %v5290_v38 = vpop.eup %5289  ;;  %vm3356_vm12 = vweird.f32 %v5288_v31 }
 0x885   :  { %v3328_v45 = vsel %vm3327_vm8, %v5284_v48, %v3324_v54  ;;  %v3359_v48 = vand.u32 2147483647, %v3319_v39  ;;  %vm3357_vm14 = vmor %vm3355_vm13, %vm3356_vm12 }
 0x886   :  { %v3352_v29 = vsub.f32 1.0, %v3351_v33  ;;  %v3333_v9 = vsel %vm3330_vm10, %v3332_v17, %v3328_v45  ;;  %v3343_v20 = vsel %vm3342_vm9, %v5286_v59, %v3339_v32  ;;  %v8001_v17 = vld [vmem:[#allocation38_spill] sm:$0xff] }
 0x887   :  { %v3348_v4 = vsel %vm3345_vm11, %v3347_v56, %v3343_v20  ;;  %v3367_v36 = vmul.f32 %v5290_v38, %v3333_v9  ;;  %vm3360_vm15 = vcmp.eq.f32.partialorder %v3359_v48, 8.507059e+37  ;;  %v8002_v48 = vld [vmem:[#allocation39_spill] sm:$0xff] }
 0x888   :  { %v3353_v12 = vmul.f32 %v5288_v31, %v3352_v29  ;;  %v3366_v58 = vmul.f32 %v3348_v4, %v7672_v8 }
 0x88a   :  { %v7712_v13 = vadd.f32 %v3367_v36, %v3366_v58  ;;  %v3354_v35 = vadd.f32 %v5288_v31, %v3353_v12 }
 0x88c   :  { %5291 = vtanh.f32 %v7712_v13  ;;  %v3358_v1 = vsel %vm3357_vm14, %v5288_v31, %v3354_v35 }
 0x88d   :  { %v3363_v42 = vsel %vm3360_vm15, %v3362_v2, %v3358_v1 }
 0x892   :  { %v5292_v59 = vpop.eup %5291 }
 0x893   :  { %v3370_v27 = vmul.f32 %v5292_v59, %v3363_v42 }
 0x895   :  { %v3371_v62 = vpack.c.bf16 %v3370_v27, %v3370_v27 }
 0x897   :  { %3380 = vmatmul.bf16.vlgmr.msra.gmra.mxu0 %v3371_v62  ;;  %3393 = vmatmul.bf16.vlgmr.msra.gmra.mxu1 %v3371_v62 }
 0x898   :  { %3406 = vmatmul.bf16.vlgmr.msra.gmra.mxu2 %v3371_v62  ;;  %3419 = vmatmul.bf16.vlgmr.msra.gmra.mxu3 %v3371_v62 }
 0x899   :  { %3612 = vmatpush.bf16.msra.mxu0 %v6993_v52  ;;  %3625 = vmatpush.bf16.msra.mxu1 %v7004_v0 }
 0x89a   :  { %3638 = vmatpush.bf16.msra.mxu2 %v7006_v49  ;;  %3651 = vmatpush.bf16.msra.mxu3 %v7041_v30 }
 0x89d   :  { %3613 = vmatpush.bf16.msra.mxu0 %v7018_v60  ;;  %3626 = vmatpush.bf16.msra.mxu1 %v7031_v55 }
 0x89e   :  { %3639 = vmatpush.bf16.msra.mxu2 %v7033_v61  ;;  %3652 = vmatpush.bf16.msra.mxu3 %v7084_v41 }
 0x8a1   :  { %3614 = vmatpush.bf16.msra.mxu0 %v7059_v10  ;;  %3627 = vmatpush.bf16.msra.mxu1 %v7070_v23 }
 0x8a2   :  { %3640 = vmatpush.bf16.msra.mxu2 %v7072_v28  ;;  %3653 = vmatpush.bf16.msra.mxu3 %v7116_v18 }
 0x8a5   :  { %3615 = vmatpush.bf16.msra.mxu0 %v7097_v63  ;;  %3628 = vmatpush.bf16.msra.mxu1 %v7099_v53 }
 0x8a6   :  { %3641 = vmatpush.bf16.msra.mxu2 %v7111_v3  ;;  %3654 = vmatpush.bf16.msra.mxu3 %v7159_v24 }
 0x8a9   :  { %3616 = vmatpush.bf16.msra.mxu0 %v7981_v7  ;;  %3629 = vmatpush.bf16.msra.mxu1 %v7982_v21 }
 0x8aa   :  { %3642 = vmatpush.bf16.msra.mxu2 %v7983_v51  ;;  %3655 = vmatpush.bf16.msra.mxu3 %v7984_v16 }
 0x8ad   :  { %3617 = vmatpush.bf16.msra.mxu0 %v7985_v44  ;;  %3630 = vmatpush.bf16.msra.mxu1 %v7986_v22 }
 0x8ae   :  { %3643 = vmatpush.bf16.msra.mxu2 %v7987_v15  ;;  %3656 = vmatpush.bf16.msra.mxu3 %v7988_v43 }
 0x8b1   :  { %3618 = vmatpush.bf16.msra.mxu0 %v7989_v6  ;;  %3631 = vmatpush.bf16.msra.mxu1 %v7990_v26 }
 0x8b2   :  { %3644 = vmatpush.bf16.msra.mxu2 %v7991_v19  ;;  %3657 = vmatpush.bf16.msra.mxu3 %v7992_v11 }
 0x8b5   :  { %3619 = vmatpush.bf16.msra.mxu0 %v7993_v46  ;;  %3632 = vmatpush.bf16.msra.mxu1 %v7994_v37 }
 0x8b6   :  { %3645 = vmatpush.bf16.msra.mxu2 %v7995_v5  ;;  %3658 = vmatpush.bf16.msra.mxu3 %v7996_v25 }
 0x914   :  { %v3381_v8 = vpop.f32.mrf.mxu0  ;;  %v3394_v39 = vpop.f32.mrf.mxu1 }
 0x915   :  { %v3424_v57 = vadd.f32 %v3381_v8, %v7999_v40  ;;  %v3425_v47 = vadd.f32 %v3394_v39, %v8000_v34 }
 0x917   :  { %v4881_v50 = vmul.f32 -1.442695, %v3424_v57  ;;  %v4882_v31 = vmul.f32 -1.442695, %v3425_v47 }
 0x919   :  { %5293 = vpow2.f32 %v4881_v50 }
 0x91a   :  { %5295 = vpow2.f32 %v4882_v31 }
 0x91b   :  { %v3407_v54 = vpop.f32.mrf.mxu2  ;;  %v3420_v33 = vpop.f32.mrf.mxu3 }
 0x91c   :  { %v3426_v32 = vadd.f32 %v3407_v54, %v8001_v17  ;;  %v3383_v56 = vpop.f32.mrf.mxu0  ;;  %v3396_v45 = vpop.f32.mrf.mxu1  ;;  %v3427_v1 = vadd.f32 %v3420_v33, %v8002_v48 }
 0x91e   :  { %v4883_v38 = vmul.f32 -1.442695, %v3426_v32 }
 0x91f   :  { %v5294_v29 = vpop.eup %5293 }
 0x920   :  { %v5296_v9 = vpop.eup %5295  ;;  %v3437_v20 = vadd.f32 1.0, %v5294_v29  ;;  %5297 = vpow2.f32 %v4883_v38 }
 0x921   :  { %v3438_v4 = vadd.f32 1.0, %v5296_v9 }
 0x922   :  { %5299 = vrcp.f32 %v3437_v20  ;;  %v3451_v8 = vand.u32 2147483648, %v3437_v20  ;;  %v3449_v57 = vand.u32 2147483647, %v3437_v20  ;;  %vm3445_vm2 = vweird.f32 %v3437_v20 }
 0x923   :  { %5301 = vrcp.f32 %v3438_v4  ;;  %v3409_v36 = vpop.f32.mrf.mxu2  ;;  %v3422_v12 = vpop.f32.mrf.mxu3  ;;  %v3466_v39 = vand.u32 2147483648, %v3438_v4  ;;  %v3464_v47 = vand.u32 2147483647, %v3438_v4  ;;  %vm3460_vm3 = vweird.f32 %v3438_v4 }
 0x924   :  { %v3452_v33 = vor.u32 1.1754944e-38, %v3451_v8  ;;  %vm3450_vm6 = vcmp.eq.f32.partialorder %v3449_v57, 8.507059e+37 }
 0x925   :  { %v3467_v32 = vor.u32 1.1754944e-38, %v3466_v39  ;;  %vm3465_vm7 = vcmp.eq.f32.partialorder %v3464_v47, 8.507059e+37 }
 0x926   :  { %v5298_v58 = vpop.eup %5297 }
 0x927   :  { %v3439_v35 = vadd.f32 1.0, %v5298_v58 }
 0x928   :  { %v5300_v14 = vpop.eup %5299 }
 0x929   :  { %v5302_v2 = vpop.eup %5301  ;;  %v3441_v59 = vmul.f32 %v5300_v14, %v3437_v20  ;;  %5303 = vrcp.f32 %v3439_v35  ;;  %vm3446_vm0 = vweird.f32 %v5300_v14  ;;  %vm3475_vm9 = vweird.f32 %v3439_v35 }
 0x92a   :  { %v3456_v42 = vmul.f32 %v5302_v2, %v3438_v4  ;;  %5305 = vtanh.f32 %v3427_v1  ;;  %vm3461_vm1 = vweird.f32 %v5302_v2  ;;  %vm3447_vm4 = vmor %vm3445_vm2, %vm3446_vm0  ;;  %v3481_v1 = vand.u32 2147483648, %v3439_v35 }
 0x92b   :  { %v3442_v27 = vsub.f32 1.0, %v3441_v59  ;;  %vm3462_vm5 = vmor %vm3460_vm3, %vm3461_vm1 }
 0x92c   :  { %v3457_v62 = vsub.f32 1.0, %v3456_v42  ;;  %v3482_v42 = vor.u32 1.1754944e-38, %v3481_v1 }
 0x92d   :  { %v3443_v40 = vmul.f32 %v5300_v14, %v3442_v27 }
 0x92e   :  { %v3458_v34 = vmul.f32 %v5302_v2, %v3457_v62 }
 0x92f   :  { %v5304_v50 = vpop.eup %5303  ;;  %v3444_v31 = vadd.f32 %v5300_v14, %v3443_v40 }
 0x930   :  { %v3471_v54 = vmul.f32 %v5304_v50, %v3439_v35  ;;  %v3459_v17 = vadd.f32 %v5302_v2, %v3458_v34  ;;  %v5306_v45 = vpop.eup %5305  ;;  %vm3476_vm8 = vweird.f32 %v5304_v50 }
 0x931   :  { %v3448_v56 = vsel %vm3447_vm4, %v5300_v14, %v3444_v31  ;;  %v3479_v14 = vand.u32 2147483647, %v3439_v35  ;;  %vm3477_vm10 = vmor %vm3475_vm9, %vm3476_vm8 }
 0x932   :  { %v3472_v38 = vsub.f32 1.0, %v3471_v54  ;;  %v3453_v29 = vsel %vm3450_vm6, %v3452_v33, %v3448_v56  ;;  %v3463_v9 = vsel %vm3462_vm5, %v5302_v2, %v3459_v17 }
 0x933   :  { %v3468_v36 = vsel %vm3465_vm7, %v3467_v32, %v3463_v9  ;;  %v3487_v12 = vmul.f32 %v5306_v45, %v3453_v29  ;;  %vm3480_vm11 = vcmp.eq.f32.partialorder %v3479_v14, 8.507059e+37 }
 0x934   :  { %v3473_v58 = vmul.f32 %v5304_v50, %v3472_v38  ;;  %v3486_v48 = vmul.f32 %v3468_v36, %v7712_v13 }
 0x936   :  { %v7752_v20 = vadd.f32 %v3487_v12, %v3486_v48  ;;  %v3474_v4 = vadd.f32 %v5304_v50, %v3473_v58 }
 0x938   :  { %5307 = vtanh.f32 %v7752_v20  ;;  %v3478_v59 = vsel %vm3477_vm10, %v5304_v50, %v3474_v4 }
 0x939   :  { %v3483_v27 = vsel %vm3480_vm11, %v3482_v42, %v3478_v59 }
 0x93e   :  { %v5308_v2 = vpop.eup %5307 }
 0x93f   :  { %v3490_v62 = vmul.f32 %v5308_v2, %v3483_v27 }
 0x941   :  { %v3491_v8 = vpack.c.bf16 %v3490_v62, %v3490_v62 }
 0x943   :  { %3500 = vmatmul.bf16.vlgmr.msrb.gmra.mxu0 %v3491_v8  ;;  %3513 = vmatmul.bf16.vlgmr.msrb.gmra.mxu1 %v3491_v8 }
 0x944   :  { %3526 = vmatmul.bf16.vlgmr.msrb.gmra.mxu2 %v3491_v8  ;;  %3539 = vmatmul.bf16.vlgmr.msrb.gmra.mxu3 %v3491_v8 }
 0x945   :  { %3732 = vmatpush.bf16.msrb.mxu0 %v6993_v52  ;;  %3745 = vmatpush.bf16.msrb.mxu1 %v7004_v0 }
 0x946   :  { %3758 = vmatpush.bf16.msrb.mxu2 %v7006_v49  ;;  %3771 = vmatpush.bf16.msrb.mxu3 %v7041_v30  ;;  %v8003_v49 = vld [vmem:[#allocation33_spill] sm:$0xff] }
 0x949   :  { %3733 = vmatpush.bf16.msrb.mxu0 %v7018_v60  ;;  %3746 = vmatpush.bf16.msrb.mxu1 %v7031_v55  ;;  %v8004_v55 = vld [vmem:[#allocation14_spill] sm:$0xff] }
 0x94a   :  { %3759 = vmatpush.bf16.msrb.mxu2 %v7033_v61  ;;  %3772 = vmatpush.bf16.msrb.mxu3 %v7084_v41  ;;  %v8005_v41 = vld [vmem:[#allocation34_spill] sm:$0xff] }
 0x94d   :  { %3734 = vmatpush.bf16.msrb.mxu0 %v7059_v10  ;;  %3747 = vmatpush.bf16.msrb.mxu1 %v7070_v23 }
 0x94e   :  { %3760 = vmatpush.bf16.msrb.mxu2 %v7072_v28  ;;  %3773 = vmatpush.bf16.msrb.mxu3 %v7116_v18 }
 0x951   :  { %3735 = vmatpush.bf16.msrb.mxu0 %v7097_v63  ;;  %3748 = vmatpush.bf16.msrb.mxu1 %v7099_v53 }
 0x952   :  { %3761 = vmatpush.bf16.msrb.mxu2 %v7111_v3  ;;  %3774 = vmatpush.bf16.msrb.mxu3 %v7159_v24 }
 0x955   :  { %3736 = vmatpush.bf16.msrb.mxu0 %v7981_v7  ;;  %3749 = vmatpush.bf16.msrb.mxu1 %v7982_v21 }
 0x956   :  { %3762 = vmatpush.bf16.msrb.mxu2 %v7983_v51  ;;  %3775 = vmatpush.bf16.msrb.mxu3 %v7984_v16 }
 0x959   :  { %3737 = vmatpush.bf16.msrb.mxu0 %v7985_v44  ;;  %3750 = vmatpush.bf16.msrb.mxu1 %v7986_v22 }
 0x95a   :  { %3763 = vmatpush.bf16.msrb.mxu2 %v7987_v15  ;;  %3776 = vmatpush.bf16.msrb.mxu3 %v7988_v43 }
 0x95d   :  { %3738 = vmatpush.bf16.msrb.mxu0 %v7989_v6  ;;  %3751 = vmatpush.bf16.msrb.mxu1 %v7990_v26  ;;  %v8006_v6 = vld [vmem:[#allocation15_spill] sm:$0xff] }
 0x95e   :  { %3764 = vmatpush.bf16.msrb.mxu2 %v7991_v19  ;;  %3777 = vmatpush.bf16.msrb.mxu3 %v7992_v11 }
 0x961   :  { %3739 = vmatpush.bf16.msrb.mxu0 %v7993_v46  ;;  %3752 = vmatpush.bf16.msrb.mxu1 %v7994_v37 }
 0x962   :  { %3765 = vmatpush.bf16.msrb.mxu2 %v7995_v5  ;;  %3778 = vmatpush.bf16.msrb.mxu3 %v7996_v25 }
 0x9c0   :  { %v3501_v52 = vpop.f32.mrf.mxu0  ;;  %v3514_v0 = vpop.f32.mrf.mxu1 }
 0x9c1   :  { %v3544_v60 = vadd.f32 %v3501_v52, %v8003_v49  ;;  %v3545_v61 = vadd.f32 %v3514_v0, %v8004_v55  ;;  %v8007_v52 = vld [vmem:[#allocation32_spill] sm:$0xff]  ;;  %v8008_v49 = vld [vmem:[#allocation35_spill] sm:$0xff] }
 0x9c3   :  { %v4884_v30 = vmul.f32 -1.442695, %v3544_v60  ;;  %v4885_v10 = vmul.f32 -1.442695, %v3545_v61 }
 0x9c5   :  { %5309 = vpow2.f32 %v4884_v30 }
 0x9c6   :  { %5311 = vpow2.f32 %v4885_v10 }
 0x9c7   :  { %v3527_v23 = vpop.f32.mrf.mxu2  ;;  %v3540_v28 = vpop.f32.mrf.mxu3 }
 0x9c8   :  { %v3546_v63 = vadd.f32 %v3527_v23, %v8005_v41  ;;  %v3503_v53 = vpop.f32.mrf.mxu0  ;;  %v3516_v3 = vpop.f32.mrf.mxu1  ;;  %v3547_v26 = vadd.f32 %v3540_v28, %v8006_v6  ;;  %v8009_v23 = vld [vmem:[#allocation36_spill] sm:$0xff] }
 0x9ca   :  { %v4886_v18 = vmul.f32 -1.442695, %v3546_v63 }
 0x9cb   :  { %v5310_v24 = vpop.eup %5309 }
 0x9cc   :  { %v5312_v7 = vpop.eup %5311  ;;  %v3557_v21 = vadd.f32 1.0, %v5310_v24  ;;  %5313 = vpow2.f32 %v4886_v18 }
 0x9cd   :  { %v3558_v51 = vadd.f32 1.0, %v5312_v7 }
 0x9ce   :  { %5315 = vrcp.f32 %v3557_v21  ;;  %v3571_v25 = vand.u32 2147483648, %v3557_v21  ;;  %v3569_v39 = vand.u32 2147483647, %v3557_v21  ;;  %vm3565_vm14 = vweird.f32 %v3557_v21 }
 0x9cf   :  { %5317 = vrcp.f32 %v3558_v51  ;;  %v3529_v16 = vpop.f32.mrf.mxu2  ;;  %v3542_v44 = vpop.f32.mrf.mxu3  ;;  %v3586_v13 = vand.u32 2147483648, %v3558_v51  ;;  %v3584_v57 = vand.u32 2147483647, %v3558_v51  ;;  %vm3580_vm15 = vweird.f32 %v3558_v51 }
 0x9d0   :  { %v3572_v31 = vor.u32 1.1754944e-38, %v3571_v25  ;;  %vm3570_vm2 = vcmp.eq.f32.partialorder %v3569_v39, 8.507059e+37 }
 0x9d1   :  { %v3587_v33 = vor.u32 1.1754944e-38, %v3586_v13  ;;  %vm3585_vm3 = vcmp.eq.f32.partialorder %v3584_v57, 8.507059e+37 }
 0x9d2   :  { %v5314_v22 = vpop.eup %5313 }
 0x9d3   :  { %v3559_v15 = vadd.f32 1.0, %v5314_v22 }
 0x9d4   :  { %v5316_v43 = vpop.eup %5315 }
 0x9d5   :  { %v5318_v19 = vpop.eup %5317  ;;  %v3561_v11 = vmul.f32 %v5316_v43, %v3557_v21  ;;  %5319 = vrcp.f32 %v3559_v15  ;;  %vm3566_vm12 = vweird.f32 %v5316_v43  ;;  %v3601_v4 = vand.u32 2147483648, %v3559_v15 }
 0x9d6   :  { %v3576_v46 = vmul.f32 %v5318_v19, %v3558_v51  ;;  %5321 = vtanh.f32 %v3547_v26  ;;  %vm3581_vm13 = vweird.f32 %v5318_v19  ;;  %vm3567_vm0 = vmor %vm3565_vm14, %vm3566_vm12  ;;  %vm3595_vm5 = vweird.f32 %v3559_v15 }
 0x9d7   :  { %v3562_v37 = vsub.f32 1.0, %v3561_v11  ;;  %vm3582_vm1 = vmor %vm3580_vm15, %vm3581_vm13  ;;  %v3599_v1 = vand.u32 2147483647, %v3559_v15  ;;  %v3602_v59 = vor.u32 1.1754944e-38, %v3601_v4 }
 0x9d8   :  { %v3577_v5 = vsub.f32 1.0, %v3576_v46 }
 0x9d9   :  { %v3563_v35 = vmul.f32 %v5316_v43, %v3562_v37  ;;  %vm3600_vm7 = vcmp.eq.f32.partialorder %v3599_v1, 8.507059e+37 }
 0x9da   :  { %v3578_v40 = vmul.f32 %v5318_v19, %v3577_v5 }
 0x9db   :  { %v5320_v34 = vpop.eup %5319  ;;  %v3564_v47 = vadd.f32 %v5316_v43, %v3563_v35 }
 0x9dc   :  { %v3591_v50 = vmul.f32 %v5320_v34, %v3559_v15  ;;  %v3579_v54 = vadd.f32 %v5318_v19, %v3578_v40  ;;  %v5322_v32 = vpop.eup %5321  ;;  %vm3596_vm4 = vweird.f32 %v5320_v34  ;;  %v8010_v15 = vld [vmem:[#allocation13_spill] sm:$0xff] }
 0x9dd   :  { %v3568_v17 = vsel %vm3567_vm0, %v5316_v43, %v3564_v47  ;;  %vm3597_vm6 = vmor %vm3595_vm5, %vm3596_vm4 }
 0x9de   :  { %v3592_v56 = vsub.f32 1.0, %v3591_v50  ;;  %v3573_v45 = vsel %vm3570_vm2, %v3572_v31, %v3568_v17  ;;  %v3583_v38 = vsel %vm3582_vm1, %v5318_v19, %v3579_v54 }
 0x9df   :  { %v3588_v29 = vsel %vm3585_vm3, %v3587_v33, %v3583_v38  ;;  %v3607_v9 = vmul.f32 %v5322_v32, %v3573_v45 }
 0x9e0   :  { %v3593_v36 = vmul.f32 %v5320_v34, %v3592_v56  ;;  %v3606_v12 = vmul.f32 %v3588_v29, %v7752_v20 }
 0x9e2   :  { %v7792_v58 = vadd.f32 %v3607_v9, %v3606_v12  ;;  %v3594_v48 = vadd.f32 %v5320_v34, %v3593_v36 }
 0x9e4   :  { %5323 = vtanh.f32 %v7792_v58  ;;  %v3598_v14 = vsel %vm3597_vm6, %v5320_v34, %v3594_v48 }
 0x9e5   :  { %v3603_v2 = vsel %vm3600_vm7, %v3602_v59, %v3598_v14 }
 0x9ea   :  { %v5324_v42 = vpop.eup %5323 }
 0x9eb   :  { %v3610_v27 = vmul.f32 %v5324_v42, %v3603_v2 }
 0x9ed   :  { %v3611_v62 = vpack.c.bf16 %v3610_v27, %v3610_v27 }
 0x9ef   :  { %3620 = vmatmul.bf16.vlgmr.msra.gmra.mxu0 %v3611_v62  ;;  %3633 = vmatmul.bf16.vlgmr.msra.gmra.mxu1 %v3611_v62 }
 0x9f0   :  { %3646 = vmatmul.bf16.vlgmr.msra.gmra.mxu2 %v3611_v62  ;;  %3659 = vmatmul.bf16.vlgmr.msra.gmra.mxu3 %v3611_v62 }
 0xa6c   :  { %v3621_v20 = vpop.f32.mrf.mxu0  ;;  %v3634_v8 = vpop.f32.mrf.mxu1 }
 0xa6d   :  { %v3664_v0 = vadd.f32 %v3621_v20, %v8007_v52  ;;  %v3665_v60 = vadd.f32 %v3634_v8, %v8008_v49  ;;  %v8011_v20 = vld [vmem:[#allocation11_spill] sm:$0xff]  ;;  %v8012_v52 = vld [vmem:[#allocation12_spill] sm:$0xff] }
 0xa6f   :  { %v4887_v55 = vmul.f32 -1.442695, %v3664_v0  ;;  %v4888_v61 = vmul.f32 -1.442695, %v3665_v60 }
 0xa71   :  { %5325 = vpow2.f32 %v4887_v55 }
 0xa72   :  { %5327 = vpow2.f32 %v4888_v61 }
 0xa73   :  { %v3647_v30 = vpop.f32.mrf.mxu2  ;;  %v3660_v10 = vpop.f32.mrf.mxu3 }
 0xa74   :  { %v3666_v28 = vadd.f32 %v3647_v30, %v8009_v23  ;;  %v3623_v41 = vpop.f32.mrf.mxu0  ;;  %v3636_v63 = vpop.f32.mrf.mxu1  ;;  %v3667_v43 = vadd.f32 %v3660_v10, %v8010_v15  ;;  %v8013_v30 = vld [vmem:[#allocation30_spill] sm:$0xff] }
 0xa76   :  { %v4889_v53 = vmul.f32 -1.442695, %v3666_v28 }
 0xa77   :  { %v5326_v3 = vpop.eup %5325 }
 0xa78   :  { %v5328_v18 = vpop.eup %5327  ;;  %v3677_v24 = vadd.f32 1.0, %v5326_v3  ;;  %5329 = vpow2.f32 %v4889_v53 }
 0xa79   :  { %v3678_v7 = vadd.f32 1.0, %v5328_v18 }
 0xa7a   :  { %5331 = vrcp.f32 %v3677_v24  ;;  %v3691_v37 = vand.u32 2147483648, %v3677_v24  ;;  %v3689_v13 = vand.u32 2147483647, %v3677_v24  ;;  %vm3685_vm10 = vweird.f32 %v3677_v24 }
 0xa7b   :  { %5333 = vrcp.f32 %v3678_v7  ;;  %v3649_v21 = vpop.f32.mrf.mxu2  ;;  %v3662_v51 = vpop.f32.mrf.mxu3  ;;  %v3706_v5 = vand.u32 2147483648, %v3678_v7  ;;  %v3704_v39 = vand.u32 2147483647, %v3678_v7  ;;  %vm3700_vm11 = vweird.f32 %v3678_v7 }
 0xa7c   :  { %v3692_v47 = vor.u32 1.1754944e-38, %v3691_v37  ;;  %vm3690_vm14 = vcmp.eq.f32.partialorder %v3689_v13, 8.507059e+37 }
 0xa7d   :  { %v3707_v31 = vor.u32 1.1754944e-38, %v3706_v5  ;;  %vm3705_vm15 = vcmp.eq.f32.partialorder %v3704_v39, 8.507059e+37 }
 0xa7e   :  { %v5330_v16 = vpop.eup %5329 }
 0xa7f   :  { %v3679_v44 = vadd.f32 1.0, %v5330_v16 }
 0xa80   :  { %v5332_v22 = vpop.eup %5331 }
 0xa81   :  { %v5334_v6 = vpop.eup %5333  ;;  %v3681_v26 = vmul.f32 %v5332_v22, %v3677_v24  ;;  %5335 = vrcp.f32 %v3679_v44  ;;  %vm3686_vm8 = vweird.f32 %v5332_v22  ;;  %v3721_v48 = vand.u32 2147483648, %v3679_v44 }
 0xa82   :  { %v3696_v19 = vmul.f32 %v5334_v6, %v3678_v7  ;;  %5337 = vtanh.f32 %v3667_v43  ;;  %vm3701_vm9 = vweird.f32 %v5334_v6  ;;  %vm3687_vm12 = vmor %vm3685_vm10, %vm3686_vm8  ;;  %vm3715_vm1 = vweird.f32 %v3679_v44 }
 0xa83   :  { %v3682_v11 = vsub.f32 1.0, %v3681_v26  ;;  %vm3702_vm13 = vmor %vm3700_vm11, %vm3701_vm9  ;;  %v3719_v4 = vand.u32 2147483647, %v3679_v44  ;;  %v3722_v14 = vor.u32 1.1754944e-38, %v3721_v48 }
 0xa84   :  { %v3697_v46 = vsub.f32 1.0, %v3696_v19 }
 0xa85   :  { %v3683_v25 = vmul.f32 %v5332_v22, %v3682_v11  ;;  %vm3720_vm3 = vcmp.eq.f32.partialorder %v3719_v4, 8.507059e+37 }
 0xa86   :  { %v3698_v35 = vmul.f32 %v5334_v6, %v3697_v46 }
 0xa87   :  { %v5336_v40 = vpop.eup %5335  ;;  %v3684_v57 = vadd.f32 %v5332_v22, %v3683_v25 }
 0xa88   :  { %v3711_v34 = vmul.f32 %v5336_v40, %v3679_v44  ;;  %v3699_v50 = vadd.f32 %v5334_v6, %v3698_v35  ;;  %v5338_v33 = vpop.eup %5337  ;;  %vm3716_vm0 = vweird.f32 %v5336_v40  ;;  %v8014_v44 = vld [vmem:[#allocation31_spill] sm:$0xff] }
 0xa89   :  { %v3688_v54 = vsel %vm3687_vm12, %v5332_v22, %v3684_v57  ;;  %vm3717_vm2 = vmor %vm3715_vm1, %vm3716_vm0 }
 0xa8a   :  { %v3712_v17 = vsub.f32 1.0, %v3711_v34  ;;  %v3693_v32 = vsel %vm3690_vm14, %v3692_v47, %v3688_v54  ;;  %v3703_v56 = vsel %vm3702_vm13, %v5334_v6, %v3699_v50 }
 0xa8b   :  { %v3708_v45 = vsel %vm3705_vm15, %v3707_v31, %v3703_v56  ;;  %v3727_v38 = vmul.f32 %v5338_v33, %v3693_v32 }
 0xa8c   :  { %v3713_v29 = vmul.f32 %v5336_v40, %v3712_v17  ;;  %v3726_v9 = vmul.f32 %v3708_v45, %v7792_v58 }
 0xa8e   :  { %v7800_v36 = vadd.f32 %v3727_v38, %v3726_v9  ;;  %v3714_v12 = vadd.f32 %v5336_v40, %v3713_v29 }
 0xa90   :  { %5339 = vtanh.f32 %v7800_v36  ;;  %v3718_v1 = vsel %vm3717_vm2, %v5336_v40, %v3714_v12 }
 0xa91   :  { %v3723_v42 = vsel %vm3720_vm3, %v3722_v14, %v3718_v1 }
 0xa96   :  { %v5340_v59 = vpop.eup %5339 }
 0xa97   :  { %v3730_v2 = vmul.f32 %v5340_v59, %v3723_v42 }
 0xa99   :  { %v3731_v27 = vpack.c.bf16 %v3730_v2, %v3730_v2 }
 0xa9b   :  { %3740 = vmatmul.bf16.vlgmr.msrb.gmra.mxu0 %v3731_v27  ;;  %3753 = vmatmul.bf16.vlgmr.msrb.gmra.mxu1 %v3731_v27 }
 0xa9c   :  { %3766 = vmatmul.bf16.vlgmr.msrb.gmra.mxu2 %v3731_v27  ;;  %3779 = vmatmul.bf16.vlgmr.msrb.gmra.mxu3 %v3731_v27 }
 0xb18   :  { %v3741_v58 = vpop.f32.mrf.mxu0  ;;  %v3754_v62 = vpop.f32.mrf.mxu1 }
 0xb19   :  { %v3784_v8 = vadd.f32 %v3741_v58, %v8011_v20  ;;  %v3785_v0 = vadd.f32 %v3754_v62, %v8012_v52 }
 0xb1b   :  { %v4890_v49 = vmul.f32 -1.442695, %v3784_v8  ;;  %v4891_v60 = vmul.f32 -1.442695, %v3785_v0 }
 0xb1d   :  { %5341 = vpow2.f32 %v4890_v49 }
 0xb1e   :  { %5343 = vpow2.f32 %v4891_v60 }
 0xb1f   :  { %v3767_v55 = vpop.f32.mrf.mxu2  ;;  %v3780_v61 = vpop.f32.mrf.mxu3 }
 0xb20   :  { %v3786_v10 = vadd.f32 %v3767_v55, %v8013_v30  ;;  %v3743_v23 = vpop.f32.mrf.mxu0  ;;  %v3756_v28 = vpop.f32.mrf.mxu1  ;;  %v3787_v22 = vadd.f32 %v3780_v61, %v8014_v44 }
 0xb22   :  { %v4892_v41 = vmul.f32 -1.442695, %v3786_v10 }
 0xb23   :  { %v5342_v63 = vpop.eup %5341 }
 0xb24   :  { %v5344_v53 = vpop.eup %5343  ;;  %v3797_v3 = vadd.f32 1.0, %v5342_v63  ;;  %5345 = vpow2.f32 %v4892_v41 }
 0xb25   :  { %v3798_v18 = vadd.f32 1.0, %v5344_v53 }
 0xb26   :  { %5347 = vrcp.f32 %v3797_v3  ;;  %v3811_v11 = vand.u32 2147483648, %v3797_v3  ;;  %v3809_v5 = vand.u32 2147483647, %v3797_v3  ;;  %vm3805_vm6 = vweird.f32 %v3797_v3 }
 0xb27   :  { %5349 = vrcp.f32 %v3798_v18  ;;  %v3769_v24 = vpop.f32.mrf.mxu2  ;;  %v3782_v7 = vpop.f32.mrf.mxu3  ;;  %v3826_v46 = vand.u32 2147483648, %v3798_v18  ;;  %v3824_v13 = vand.u32 2147483647, %v3798_v18  ;;  %vm3820_vm7 = vweird.f32 %v3798_v18 }
 0xb28   :  { %v3812_v57 = vor.u32 1.1754944e-38, %v3811_v11  ;;  %vm3810_vm10 = vcmp.eq.f32.partialorder %v3809_v5, 8.507059e+37 }
 0xb29   :  { %v3827_v47 = vor.u32 1.1754944e-38, %v3826_v46  ;;  %vm3825_vm11 = vcmp.eq.f32.partialorder %v3824_v13, 8.507059e+37 }
 0xb2a   :  { %v5346_v21 = vpop.eup %5345 }
 0xb2b   :  { %v3799_v51 = vadd.f32 1.0, %v5346_v21 }
 0xb2c   :  { %v5348_v16 = vpop.eup %5347 }
 0xb2d   :  { %v5350_v15 = vpop.eup %5349  ;;  %v3801_v43 = vmul.f32 %v5348_v16, %v3797_v3  ;;  %5351 = vrcp.f32 %v3799_v51  ;;  %vm3806_vm4 = vweird.f32 %v5348_v16  ;;  %v3841_v12 = vand.u32 2147483648, %v3799_v51 }
 0xb2e   :  { %v3816_v6 = vmul.f32 %v5350_v15, %v3798_v18  ;;  %5353 = vtanh.f32 %v3787_v22  ;;  %vm3821_vm5 = vweird.f32 %v5350_v15  ;;  %vm3807_vm8 = vmor %vm3805_vm6, %vm3806_vm4  ;;  %vm3835_vm13 = vweird.f32 %v3799_v51 }
 0xb2f   :  { %v3802_v26 = vsub.f32 1.0, %v3801_v43  ;;  %vm3822_vm9 = vmor %vm3820_vm7, %vm3821_vm5  ;;  %v3839_v48 = vand.u32 2147483647, %v3799_v51  ;;  %v3842_v1 = vor.u32 1.1754944e-38, %v3841_v12 }
 0xb30   :  { %v3817_v19 = vsub.f32 1.0, %v3816_v6 }
 0xb31   :  { %v3803_v37 = vmul.f32 %v5348_v16, %v3802_v26  ;;  %vm3840_vm15 = vcmp.eq.f32.partialorder %v3839_v48, 8.507059e+37 }
 0xb32   :  { %v3818_v25 = vmul.f32 %v5350_v15, %v3817_v19 }
 0xb33   :  { %v5352_v35 = vpop.eup %5351  ;;  %v3804_v39 = vadd.f32 %v5348_v16, %v3803_v37 }
 0xb34   :  { %v3831_v40 = vmul.f32 %v5352_v35, %v3799_v51  ;;  %v3819_v34 = vadd.f32 %v5350_v15, %v3818_v25  ;;  %v5354_v31 = vpop.eup %5353  ;;  %vm3836_vm12 = vweird.f32 %v5352_v35 }
 0xb35   :  { %v3808_v50 = vsel %vm3807_vm8, %v5348_v16, %v3804_v39  ;;  %vm3837_vm14 = vmor %vm3835_vm13, %vm3836_vm12 }
 0xb36   :  { %v3832_v54 = vsub.f32 1.0, %v3831_v40  ;;  %v3813_v33 = vsel %vm3810_vm10, %v3812_v57, %v3808_v50  ;;  %v3823_v17 = vsel %vm3822_vm9, %v5350_v15, %v3819_v34 }
 0xb37   :  { %v3828_v32 = vsel %vm3825_vm11, %v3827_v47, %v3823_v17  ;;  %v3847_v56 = vmul.f32 %v5354_v31, %v3813_v33 }
 0xb38   :  { %v3833_v45 = vmul.f32 %v5352_v35, %v3832_v54  ;;  %v3846_v38 = vmul.f32 %v3828_v32, %v7800_v36 }
 0xb3a   :  { %v3848_v29 = vadd.f32 %v3847_v56, %v3846_v38  ;;  %v3834_v9 = vadd.f32 %v5352_v35, %v3833_v45 }
 0xb3c   :  { %5355 = vtanh.f32 %v3848_v29  ;;  %3863 = vst [vmem:[%s7823_s10 + $0x8] sm:$0xff] %v3848_v29  ;;  %v3838_v4 = vsel %vm3837_vm14, %v5352_v35, %v3834_v9 }
 0xb3d   :  { %v3843_v59 = vsel %vm3840_vm15, %v3842_v1, %v3838_v4 }
 0xb42   :  { %v5356_v14 = vpop.eup %5355 }
 0xb43   :  { %v3850_v42 = vmul.f32 %v5356_v14, %v3843_v59 }
 0xb45   :  { %3859 = vst [vmem:[%s7824_s9 + $0x8] sm:$0xff] %v3850_v42 }

</bundles_post_ra>
